<compile_context>
chip_gen: v6e
topology: v6e:2x2x1
jax: 0.10.0
libtpu: 0.0.40
codegen_flags: <defaults>
</compile_context>

<pallas_src>
import jax
import jax.numpy as jnp
from jax.experimental import pallas as pl
from jax.experimental.pallas import tpu as pltpu

STRIDE = (6, 6)
PADDING = (1, 1)
KSIZE = (4, 3)

# Target ~2 MiB per (KH*KW, tile) f32 output block (double-buffered by BlockSpec),
# comfortably within the scoped-VMEM defaults on v5e/v6e/v7x.
_MAX_TILE_ELEMS = (2 * 1024 * 1024) // (KSIZE[0] * KSIZE[1] * 4)


def _gelu(v):
    # v2 = v*0.5 ; v3 = v*0.70710678 ; v4 = erf(v3) ; v5 = v4+1 ; v6 = v2*v5
    return (v * 0.5) * (jax.lax.erf(v * 0.7071067811865476) + 1.0)


def _pick_tile(hw):
    """Largest lane-aligned (multiple-of-128) divisor of hw within the VMEM budget,
    or hw itself when the whole flattened plane already fits."""
    if hw <= _MAX_TILE_ELEMS:
        return hw
    best = None
    t = 128
    while t <= _MAX_TILE_ELEMS:
        if hw % t == 0:
            best = t
        t += 128
    return best if best is not None else hw


def _deconv_gelu_kernel(x_ref, w_ref, b_ref, out_ref):
    """x_ref: (1, T) VMEM; w_ref: (KH*KW, 1) VMEM; b_ref: (1, 1) VMEM;
    out_ref: (KH*KW, T) VMEM.  Single broadcasted, lane-dense store."""
    v = x_ref[...] * w_ref[...] + b_ref[...]          # (1,T)*(12,1)+(1,1) -> (12,T)
    out_ref[...] = _gelu(v).astype(out_ref.dtype)


@jax.jit
def model_forward(x, w, b):
    """x: (1, 1, H, W) f32; w: (KH, KW) f32; b: (1,) f32 -> (1, 1, H_out, W_out)."""
    N, C, H, W = x.shape
    KH, KW = KSIZE
    SH, SW = STRIDE
    PH, PW = PADDING
    H_out = (H - 1) * SH - 2 * PH + KH
    W_out = (W - 1) * SW - 2 * PW + KW

    HW = H * W
    tile = _pick_tile(HW)
    n_tiles = HW // tile

    x_flat = x.reshape(1, HW)          # lane-dense: last dim is a multiple of 128
    w_col = w.reshape(KH * KW, 1)      # 12 taps down the sublane axis
    b_11 = b.reshape(1, 1)

    out12 = pl.pallas_call(
        _deconv_gelu_kernel,
        out_shape=jax.ShapeDtypeStruct((KH * KW, HW), jnp.float32),
        grid=(n_tiles,),
        in_specs=[
            pl.BlockSpec((1, tile), lambda i: (0, i)),          # x tile
            pl.BlockSpec((KH * KW, 1), lambda i: (0, 0)),       # weights (resident)
            pl.BlockSpec((1, 1), lambda i: (0, 0)),             # bias (resident)
        ],
        out_specs=pl.BlockSpec((KH * KW, tile), lambda i: (0, i)),
        compiler_params=pltpu.CompilerParams(
            dimension_semantics=("parallel",)),
    )(x_flat, w_col, b_11)

    # --- XLA glue: constant gelu(b) filler + scatter reassembly + padding crop ---
    gelu_b = _gelu(b[0])                                  # scalar, computed once
    out4 = out12.reshape(KH, KW, H, W)                    # [ky, kx, iy, ix]
    out36 = jnp.pad(out4, ((0, SH - KH), (0, SW - KW), (0, 0), (0, 0)),
                    constant_values=gelu_b)               # the 24 bias-only planes
    out_full = out36.transpose(2, 0, 3, 1).reshape(H * SH, W * SW)
    out = out_full[PH:PH + H_out, PW:PW + W_out]
    return out[None, None, :, :]


def reference(x, w, b):
    """Pure-JAX reference: ConvTranspose2d == lhs-dilated conv with flipped kernel."""
    KH, KW = KSIZE
    SH, SW = STRIDE
    PH, PW = PADDING
    w_conv = w[::-1, ::-1][None, None]  # (O=1, I=1, KH, KW)
    v1 = jax.lax.conv_general_dilated(
        x, w_conv,
        window_strides=(1, 1),
        padding=[(KH - 1 - PH, KH - 1 - PH), (KW - 1 - PW, KW - 1 - PW)],
        lhs_dilation=(SH, SW),
        dimension_numbers=("NCHW", "OIHW", "NCHW"),
        precision=jax.lax.Precision.HIGHEST,
    ) + b[0]
    return (v1 * 0.5) * (jax.scipy.special.erf(v1 * 0.7071067811865476) + 1.0)


if __name__ == "__main__":
    key = jax.random.PRNGKey(0)
    k_x, k_w, k_b = jax.random.split(key, 3)

    H = W = 128  # matches the module's (1, 1, 128, 128) input
    x = jax.random.normal(k_x, (1, 1, H, W), dtype=jnp.float32)

    # Deterministic parameter init (PyTorch-style uniform bound 1/sqrt(fan)).
    fan = KSIZE[0] * KSIZE[1]  # out_channels/groups * kH * kW = 1 * 4 * 3
    bound = 1.0 / (fan ** 0.5)
    w = jax.random.uniform(k_w, KSIZE, jnp.float32, -bound, bound)
    b = jax.random.uniform(k_b, (1,), jnp.float32, -bound, bound)

    out = jax.block_until_ready(model_forward(x, w, b))

    H_out = (H - 1) * STRIDE[0] - 2 * PADDING[0] + KSIZE[0]
    W_out = (W - 1) * STRIDE[1] - 2 * PADDING[1] + KSIZE[1]
    assert out.shape == (1, 1, H_out, W_out), out.shape

    ref = reference(x, w, b)
    assert jnp.allclose(out, ref, atol=1e-5, rtol=1e-5), float(
        jnp.max(jnp.abs(out - ref)))

    print("KERNEL_OK")
</pallas_src>

<mosaic_0001>
module attributes {stable_mosaic.version = 11 : i64} {
  func.func @_deconv_gelu_kernel(%arg0: i32, %arg1: memref<1x16384xf32, #tpu.memory_space<vmem>>, %arg2: memref<12x1xf32, #tpu.memory_space<vmem>>, %arg3: memref<1x1xf32, #tpu.memory_space<vmem>>, %arg4: memref<12x16384xf32, #tpu.memory_space<vmem>>) attributes {dimension_semantics = [#tpu.dimension_semantics<parallel>], iteration_bounds = array<i64: 1>, scalar_prefetch = 0 : i64, scratch_operands = 0 : i64, tpu.core_type = #tpu.core_type<tc>, window_params = [{transform_indices = @transform_0, window_bounds = array<i64: 1, 16384>}, {pipeline_mode = #tpu.pipeline_mode<synchronous>, transform_indices = @transform_1, window_bounds = array<i64: 12, 1>}, {pipeline_mode = #tpu.pipeline_mode<synchronous>, transform_indices = @transform_2, window_bounds = array<i64: 1, 1>}, {transform_indices = @transform_3, window_bounds = array<i64: 12, 16384>}]} {
    %c0 = arith.constant 0 : index
    %c0_0 = arith.constant 0 : index
    %0 = vector.load %arg1[%c0, %c0_0] : memref<1x16384xf32, #tpu.memory_space<vmem>>, vector<1x16384xf32>
    %c0_1 = arith.constant 0 : index
    %c0_2 = arith.constant 0 : index
    %1 = vector.load %arg2[%c0_1, %c0_2] : memref<12x1xf32, #tpu.memory_space<vmem>>, vector<12x1xf32>
    %2 = vector.broadcast %0 : vector<1x16384xf32> to vector<12x16384xf32>
    %3 = vector.broadcast %1 : vector<12x1xf32> to vector<12x16384xf32>
    %4 = arith.mulf %2, %3 : vector<12x16384xf32>
    %c0_3 = arith.constant 0 : index
    %c0_4 = arith.constant 0 : index
    %5 = vector.load %arg3[%c0_3, %c0_4] : memref<1x1xf32, #tpu.memory_space<vmem>>, vector<1x1xf32>
    %6 = vector.broadcast %5 : vector<1x1xf32> to vector<12x16384xf32>
    %7 = arith.addf %4, %6 : vector<12x16384xf32>
    %cst = arith.constant 5.000000e-01 : f32
    %8 = vector.broadcast %cst : f32 to vector<12x16384xf32>
    %9 = arith.mulf %7, %8 : vector<12x16384xf32>
    %cst_5 = arith.constant 0.707106769 : f32
    %10 = vector.broadcast %cst_5 : f32 to vector<12x16384xf32>
    %11 = arith.mulf %7, %10 : vector<12x16384xf32>
    %12 = math.erf %11 : vector<12x16384xf32>
    %cst_6 = arith.constant 1.000000e+00 : f32
    %13 = vector.broadcast %cst_6 : f32 to vector<12x16384xf32>
    %14 = arith.addf %12, %13 : vector<12x16384xf32>
    %15 = arith.mulf %9, %14 : vector<12x16384xf32>
    %c0_7 = arith.constant 0 : index
    %c0_8 = arith.constant 0 : index
    %16 = vector.load %arg4[%c0_7, %c0_8] : memref<12x16384xf32, #tpu.memory_space<vmem>>, vector<12x16384xf32>
    tpu.vector_store %arg4[%c0_7, %c0_8], %15 {strides = array<i32>} : memref<12x16384xf32, #tpu.memory_space<vmem>>, vector<12x16384xf32>,
    return
  }
  func.func @transform_0(%arg0: i32) -> (i32, i32) {
    %c0_i32 = arith.constant 0 : i32
    %c0_i32_0 = arith.constant 0 : i32
    return %c0_i32, %arg0 : i32, i32
  }
  func.func @transform_1(%arg0: i32) -> (i32, i32) {
    %c0_i32 = arith.constant 0 : i32
    %c0_i32_0 = arith.constant 0 : i32
    %c0_i32_1 = arith.constant 0 : i32
    return %c0_i32, %c0_i32_0 : i32, i32
  }
  func.func @transform_2(%arg0: i32) -> (i32, i32) {
    %c0_i32 = arith.constant 0 : i32
    %c0_i32_0 = arith.constant 0 : i32
    %c0_i32_1 = arith.constant 0 : i32
    return %c0_i32, %c0_i32_0 : i32, i32
  }
  func.func @transform_3(%arg0: i32) -> (i32, i32) {
    %c0_i32 = arith.constant 0 : i32
    %c0_i32_0 = arith.constant 0 : i32
    return %c0_i32, %arg0 : i32, i32
  }
}

</mosaic_0001>

<bundles_post_ra>
// kernel: model_forward.1
= control target key start
LH: loop header
LB: loop body
LE: loop exit
PB: predicated region body
PF: predicated region fallthrough
CT: control target
= control target key end

     0   :  { %s9602_s0 = inlined_call_operand.hbm [shape: f32[1,16384], index: 0, kind: input, shape index: {}]   ;;  %s9603_s1 = inlined_call_operand.vmem [shape: f32[12,1], index: 1, kind: input, shape index: {}]   ;;  %s9604_s2 = inlined_call_operand.<no memory space> [shape: f32[1,1], index: 2, kind: input, shape index: {}]   ;;  %s9605_s3 = inlined_call_operand.vmem [shape: f32[12,16384], index: 3, kind: output, shape index: {}]  }
   0x1   :  { %v8_v0 = vstv %s9604_s2 }
   0x2   :  { %9 = vst [vmem:[#allocation2] sm:$0x1] %v8_v0 }
   0x3   :  { %10 = vsyncpa [#allocation4], 0  ;;  %s3314_s14 = smov [#allocation3]  }
   0x4   :  { %s17_s15 = sshll.u32 %s3314_s14, 4  ;;  %s18_s15 = int_to_ptr.vmem [resolvable:$true] %s17_s15 }
   0x5   :  { %s3300_s16 = scalar_lea.vmem %s18_s15, 2048  ;;  %p3305_p1 = scmp.lt.s32.totalorder %s18_s15, %s18_s15 }
   0x6   :  { %p3301_p0 = scmp.ne.s32.totalorder %s18_s15, %s3300_s16  ;;  %p3306_p2 = scmp.lt.s32.totalorder %s3300_s16, %s3300_s16 }
   0x8   :  { %p3307_p3 = por %p3306_p2, %p3305_p1 }
   0xa   :  { %p3308_p4 = pnand %p3307_p3, %p3301_p0 }
   0xc   :  { %3311 = shalt.err (!%p3308_p4)
}
   0xd   :  { %20 = dma.hbm_to_vmem [thread:$0]  %s9602_s0, 2048, %s18_s15, [#allocation4]  }
   0xe   :  { %3312 = dma.done.wait [#allocation4], 2048  }
   0xf   :  { %3313 = vsyncadd [#allocation4], 4294965248  ;;  %v3315_v1 = vmov 0   ;;  %v44_v2 = vld [vmem:[%s9603_s1] sm:$0xff]  ;;  %v45_v4 = vld [vmem:[%s9603_s1 + $0x8] sm:$0xf]  ;;  %v62_v5 = vlaneseq }
  0x10   :  { %2778 = vset.pattern.permute.xlu0 %v3315_v1  ;;  %2779 = vset.pattern.permute.xlu1 %v3315_v1  ;;  %v2775_v3 = vld [vmem:[#allocation2] ss:$0 sm:$0xff]  ;;  %v28_v10 = vld [vmem:[#allocation3] sm:$0xff]  ;;  %v29_v16 = vld [vmem:[#allocation3 + $0x8] sm:$0xff] }
  0x11   :  { %704 = vperm.xlu0 %2778, %v44_v2   ;;  %975 = vperm.xlu1 %2779, %v2775_v3   ;;  %v63_v6 = vshrl.u32 %v62_v5, 7  ;;  %v30_v20 = vld [vmem:[#allocation3 + $0x10] sm:$0xff]  ;;  %v31_v29 = vld [vmem:[#allocation3 + $0x18] sm:$0xff]  ;;  %v32_v38 = vld [vmem:[#allocation3 + $0x20] sm:$0xff] }
  0x12   :  { %v33_v47 = vld [vmem:[#allocation3 + $0x28] sm:$0xff]  ;;  %v34_v56 = vld [vmem:[#allocation3 + $0x30] sm:$0xff]  ;;  %v35_v1 = vld [vmem:[#allocation3 + $0x38] sm:$0xff] }
  0x13   :  { %v3348_v7 = vsub.s32 0, %v63_v6  ;;  %v3350_v8 = vsub.s32 1, %v63_v6  ;;  %v3352_v9 = vsub.s32 2, %v63_v6  ;;  %v3354_v11 = vsub.s32 3, %v63_v6 }
  0x14   :  { %v3356_v12 = vsub.s32 4, %v63_v6  ;;  %v3358_v13 = vsub.s32 5, %v63_v6  ;;  %v3360_v14 = vsub.s32 6, %v63_v6  ;;  %v3362_v15 = vsub.s32 7, %v63_v6 }
  0x15   :  { %709 = vperm.xlu0 %2778, %v45_v4   ;;  %v3365_v17 = vrot.slane %v28_v10, %v3348_v7  ;;  %v3368_v18 = vrot.slane %v28_v10, %v3350_v8  ;;  %v3371_v19 = vrot.slane %v28_v10, %v3352_v9  ;;  %v3374_v21 = vrot.slane %v28_v10, %v3354_v11 }
  0x16   :  { %v3377_v22 = vrot.slane %v28_v10, %v3356_v12  ;;  %v3380_v23 = vrot.slane %v28_v10, %v3358_v13  ;;  %v3383_v24 = vrot.slane %v28_v10, %v3360_v14  ;;  %v3386_v25 = vrot.slane %v28_v10, %v3362_v15 }
  0x17   :  { %v3389_v26 = vrot.slane %v29_v16, %v3348_v7  ;;  %v3392_v27 = vrot.slane %v29_v16, %v3350_v8  ;;  %v3395_v28 = vrot.slane %v29_v16, %v3352_v9  ;;  %v3398_v30 = vrot.slane %v29_v16, %v3354_v11 }
  0x18   :  { %v3401_v31 = vrot.slane %v29_v16, %v3356_v12  ;;  %v3404_v32 = vrot.slane %v29_v16, %v3358_v13  ;;  %v3407_v33 = vrot.slane %v29_v16, %v3360_v14  ;;  %v3410_v34 = vrot.slane %v29_v16, %v3362_v15 }
  0x19   :  { %v3413_v35 = vrot.slane %v30_v20, %v3348_v7  ;;  %v3416_v36 = vrot.slane %v30_v20, %v3350_v8  ;;  %v3419_v37 = vrot.slane %v30_v20, %v3352_v9  ;;  %v3422_v39 = vrot.slane %v30_v20, %v3354_v11 }
  0x1a   :  { %v3425_v40 = vrot.slane %v30_v20, %v3356_v12  ;;  %v3428_v41 = vrot.slane %v30_v20, %v3358_v13  ;;  %v3431_v42 = vrot.slane %v30_v20, %v3360_v14  ;;  %v3434_v43 = vrot.slane %v30_v20, %v3362_v15 }
  0x1b   :  { %v3437_v44 = vrot.slane %v31_v29, %v3348_v7  ;;  %v3440_v45 = vrot.slane %v31_v29, %v3350_v8  ;;  %v3443_v46 = vrot.slane %v31_v29, %v3352_v9  ;;  %v3446_v48 = vrot.slane %v31_v29, %v3354_v11 }
  0x1c   :  { %v3449_v49 = vrot.slane %v31_v29, %v3356_v12  ;;  %v3452_v50 = vrot.slane %v31_v29, %v3358_v13  ;;  %v3455_v51 = vrot.slane %v31_v29, %v3360_v14  ;;  %v3458_v52 = vrot.slane %v31_v29, %v3362_v15  ;;  %v36_v29 = vld [vmem:[#allocation3 + $0x40] sm:$0xff] }
  0x1d   :  { %v3461_v53 = vrot.slane %v32_v38, %v3348_v7  ;;  %v3464_v54 = vrot.slane %v32_v38, %v3350_v8  ;;  %v3467_v55 = vrot.slane %v32_v38, %v3352_v9  ;;  %v3470_v57 = vrot.slane %v32_v38, %v3354_v11 }
  0x1e   :  { %v3473_v58 = vrot.slane %v32_v38, %v3356_v12  ;;  %v3476_v59 = vrot.slane %v32_v38, %v3358_v13  ;;  %v3479_v60 = vrot.slane %v32_v38, %v3360_v14  ;;  %v3482_v61 = vrot.slane %v32_v38, %v3362_v15 }
  0x1f   :  { %v3485_v62 = vrot.slane %v33_v47, %v3348_v7  ;;  %v3488_v63 = vrot.slane %v33_v47, %v3350_v8  ;;  %v3491_v0 = vrot.slane %v33_v47, %v3352_v9  ;;  %v3494_v2 = vrot.slane %v33_v47, %v3354_v11 }
  0x20   :  { %v3497_v3 = vrot.slane %v33_v47, %v3356_v12  ;;  %v3500_v4 = vrot.slane %v33_v47, %v3358_v13  ;;  %v3503_v5 = vrot.slane %v33_v47, %v3360_v14  ;;  %v3506_v6 = vrot.slane %v33_v47, %v3362_v15 }
  0x21   :  { %9909 = vst [vmem:[#allocation6_spill] sm:$0xff] %v3491_v0  ;;  %9910 = vst [vmem:[#allocation7_spill] sm:$0xff] %v3494_v2  ;;  %v3509_v10 = vrot.slane %v34_v56, %v3348_v7  ;;  %v3512_v16 = vrot.slane %v34_v56, %v3350_v8  ;;  %v3515_v20 = vrot.slane %v34_v56, %v3352_v9 }
  0x22   :  { %9911 = vst [vmem:[#allocation8_spill] sm:$0xff] %v3497_v3  ;;  %9912 = vst [vmem:[#allocation9_spill] sm:$0xff] %v3500_v4  ;;  %v3518_v38 = vrot.slane %v34_v56, %v3354_v11  ;;  %v3521_v4 = vrot.slane %v34_v56, %v3356_v12  ;;  %v3527_v47 = vrot.slane %v34_v56, %v3360_v14 }
  0x23   :  { %9913 = vst [vmem:[#allocation10_spill] sm:$0xff] %v3503_v5  ;;  %9914 = vst [vmem:[#allocation11_spill] sm:$0xff] %v3506_v6  ;;  %v3524_v5 = vrot.slane %v34_v56, %v3358_v13  ;;  %v37_v6 = vld [vmem:[#allocation3 + $0x48] sm:$0xff] }
  0x24   :  { %9915 = vst [vmem:[#allocation12_spill] sm:$0xff] %v3509_v10  ;;  %9916 = vst [vmem:[#allocation13_spill] sm:$0xff] %v3512_v16  ;;  %v3530_v10 = vrot.slane %v34_v56, %v3362_v15  ;;  %v3533_v16 = vrot.slane %v35_v1, %v3348_v7  ;;  %v3551_v56 = vrot.slane %v35_v1, %v3360_v14 }
  0x25   :  { %9917 = vst [vmem:[#allocation14_spill] sm:$0xff] %v3515_v20  ;;  %9918 = vst [vmem:[#allocation15_spill] sm:$0xff] %v3518_v38  ;;  %v3536_v20 = vrot.slane %v35_v1, %v3350_v8  ;;  %v3539_v38 = vrot.slane %v35_v1, %v3352_v9 }
  0x26   :  { %9919 = vst [vmem:[#allocation16_spill] sm:$0xff] %v3521_v4  ;;  %9920 = vst [vmem:[#allocation17_spill] sm:$0xff] %v3524_v5  ;;  %v3542_v4 = vrot.slane %v35_v1, %v3354_v11  ;;  %v3545_v5 = vrot.slane %v35_v1, %v3356_v12 }
  0x27   :  { %9921 = vst [vmem:[#allocation18_spill] sm:$0xff] %v3527_v47  ;;  %9922 = vst [vmem:[#allocation19_spill] sm:$0xff] %v3530_v10  ;;  %v3548_v47 = vrot.slane %v35_v1, %v3358_v13  ;;  %v38_v10 = vld [vmem:[#allocation3 + $0x50] sm:$0xff] }
  0x28   :  { %9923 = vst [vmem:[#allocation20_spill] sm:$0xff] %v3533_v16  ;;  %9924 = vst [vmem:[#allocation21_spill] sm:$0xff] %v3536_v20  ;;  %v3554_v16 = vrot.slane %v35_v1, %v3362_v15  ;;  %v3557_v20 = vrot.slane %v36_v29, %v3348_v7  ;;  %v3575_v1 = vrot.slane %v36_v29, %v3360_v14 }
  0x29   :  { %9925 = vst [vmem:[#allocation22_spill] sm:$0xff] %v3539_v38  ;;  %9926 = vst [vmem:[#allocation23_spill] sm:$0xff] %v3542_v4  ;;  %v3560_v38 = vrot.slane %v36_v29, %v3350_v8  ;;  %v3563_v4 = vrot.slane %v36_v29, %v3352_v9 }
  0x2a   :  { %9927 = vst [vmem:[#allocation24_spill] sm:$0xff] %v3545_v5  ;;  %9928 = vst [vmem:[#allocation25_spill] sm:$0xff] %v3548_v47  ;;  %v3566_v5 = vrot.slane %v36_v29, %v3354_v11  ;;  %v3569_v47 = vrot.slane %v36_v29, %v3356_v12 }
  0x2b   :  { %9929 = vst [vmem:[#allocation26_spill] sm:$0xff] %v3551_v56  ;;  %9930 = vst [vmem:[#allocation27_spill] sm:$0xff] %v3554_v16  ;;  %v3572_v56 = vrot.slane %v36_v29, %v3358_v13  ;;  %v39_v16 = vld [vmem:[#allocation3 + $0x58] sm:$0xff] }
  0x2c   :  { %9931 = vst [vmem:[#allocation28_spill] sm:$0xff] %v3557_v20  ;;  %9932 = vst [vmem:[#allocation29_spill] sm:$0xff] %v3560_v38  ;;  %v3578_v20 = vrot.slane %v36_v29, %v3362_v15  ;;  %v3581_v38 = vrot.slane %v37_v6, %v3348_v7  ;;  %v3599_v29 = vrot.slane %v37_v6, %v3360_v14 }
  0x2d   :  { %9933 = vst [vmem:[#allocation30_spill] sm:$0xff] %v3563_v4  ;;  %9934 = vst [vmem:[#allocation31_spill] sm:$0xff] %v3566_v5  ;;  %v3584_v4 = vrot.slane %v37_v6, %v3350_v8  ;;  %v3587_v5 = vrot.slane %v37_v6, %v3352_v9 }
  0x2e   :  { %9935 = vst [vmem:[#allocation32_spill] sm:$0xff] %v3569_v47  ;;  %9936 = vst [vmem:[#allocation33_spill] sm:$0xff] %v3572_v56  ;;  %v3590_v47 = vrot.slane %v37_v6, %v3354_v11  ;;  %v3593_v56 = vrot.slane %v37_v6, %v3356_v12 }
  0x2f   :  { %9937 = vst [vmem:[#allocation34_spill] sm:$0xff] %v3575_v1  ;;  %9938 = vst [vmem:[#allocation35_spill] sm:$0xff] %v3578_v20  ;;  %v3596_v1 = vrot.slane %v37_v6, %v3358_v13  ;;  %v40_v20 = vld [vmem:[#allocation3 + $0x60] sm:$0xff] }
  0x30   :  { %9939 = vst [vmem:[#allocation36_spill] sm:$0xff] %v3581_v38  ;;  %9940 = vst [vmem:[#allocation37_spill] sm:$0xff] %v3584_v4  ;;  %v3602_v38 = vrot.slane %v37_v6, %v3362_v15  ;;  %v3605_v4 = vrot.slane %v38_v10, %v3348_v7  ;;  %v3623_v6 = vrot.slane %v38_v10, %v3360_v14 }
  0x31   :  { %9941 = vst [vmem:[#allocation38_spill] sm:$0xff] %v3587_v5  ;;  %9942 = vst [vmem:[#allocation39_spill] sm:$0xff] %v3590_v47  ;;  %v3608_v5 = vrot.slane %v38_v10, %v3350_v8  ;;  %v3611_v47 = vrot.slane %v38_v10, %v3352_v9 }
  0x32   :  { %9943 = vst [vmem:[#allocation40_spill] sm:$0xff] %v3593_v56  ;;  %9944 = vst [vmem:[#allocation41_spill] sm:$0xff] %v3596_v1  ;;  %v3614_v56 = vrot.slane %v38_v10, %v3354_v11  ;;  %v3617_v1 = vrot.slane %v38_v10, %v3356_v12 }
  0x33   :  { %9945 = vst [vmem:[#allocation42_spill] sm:$0xff] %v3599_v29  ;;  %9946 = vst [vmem:[#allocation43_spill] sm:$0xff] %v3602_v38  ;;  %v3620_v29 = vrot.slane %v38_v10, %v3358_v13  ;;  %v41_v38 = vld [vmem:[#allocation3 + $0x68] sm:$0xff] }
  0x34   :  { %9947 = vst [vmem:[#allocation44_spill] sm:$0xff] %v3605_v4  ;;  %9948 = vst [vmem:[#allocation45_spill] sm:$0xff] %v3608_v5  ;;  %v3626_v4 = vrot.slane %v38_v10, %v3362_v15  ;;  %v3629_v5 = vrot.slane %v39_v16, %v3348_v7  ;;  %v3647_v10 = vrot.slane %v39_v16, %v3360_v14 }
  0x35   :  { %9949 = vst [vmem:[#allocation46_spill] sm:$0xff] %v3611_v47  ;;  %9950 = vst [vmem:[#allocation47_spill] sm:$0xff] %v3614_v56  ;;  %v3632_v47 = vrot.slane %v39_v16, %v3350_v8  ;;  %v3635_v56 = vrot.slane %v39_v16, %v3352_v9 }
  0x36   :  { %9951 = vst [vmem:[#allocation48_spill] sm:$0xff] %v3617_v1  ;;  %9952 = vst [vmem:[#allocation49_spill] sm:$0xff] %v3620_v29  ;;  %v3638_v1 = vrot.slane %v39_v16, %v3354_v11  ;;  %v3641_v29 = vrot.slane %v39_v16, %v3356_v12 }
  0x37   :  { %9953 = vst [vmem:[#allocation50_spill] sm:$0xff] %v3623_v6  ;;  %9954 = vst [vmem:[#allocation51_spill] sm:$0xff] %v3626_v4  ;;  %v3644_v6 = vrot.slane %v39_v16, %v3358_v13  ;;  %v42_v4 = vld [vmem:[#allocation3 + $0x70] sm:$0xff] }
  0x38   :  { %9955 = vst [vmem:[#allocation52_spill] sm:$0xff] %v3629_v5  ;;  %9956 = vst [vmem:[#allocation53_spill] sm:$0xff] %v3632_v47  ;;  %v3650_v5 = vrot.slane %v39_v16, %v3362_v15  ;;  %v3653_v47 = vrot.slane %v40_v20, %v3348_v7  ;;  %v3671_v16 = vrot.slane %v40_v20, %v3360_v14 }
  0x39   :  { %9957 = vst [vmem:[#allocation54_spill] sm:$0xff] %v3635_v56  ;;  %9958 = vst [vmem:[#allocation55_spill] sm:$0xff] %v3638_v1  ;;  %v3656_v56 = vrot.slane %v40_v20, %v3350_v8  ;;  %v3659_v1 = vrot.slane %v40_v20, %v3352_v9 }
  0x3a   :  { %9959 = vst [vmem:[#allocation56_spill] sm:$0xff] %v3641_v29  ;;  %9960 = vst [vmem:[#allocation57_spill] sm:$0xff] %v3644_v6  ;;  %v3662_v29 = vrot.slane %v40_v20, %v3354_v11  ;;  %v3665_v6 = vrot.slane %v40_v20, %v3356_v12 }
  0x3b   :  { %9961 = vst [vmem:[#allocation58_spill] sm:$0xff] %v3647_v10  ;;  %9962 = vst [vmem:[#allocation59_spill] sm:$0xff] %v3650_v5  ;;  %v3668_v10 = vrot.slane %v40_v20, %v3358_v13  ;;  %v43_v5 = vld [vmem:[#allocation3 + $0x78] sm:$0xff] }
  0x3c   :  { %9963 = vst [vmem:[#allocation60_spill] sm:$0xff] %v3653_v47  ;;  %9964 = vst [vmem:[#allocation61_spill] sm:$0xff] %v3656_v56  ;;  %v3674_v47 = vrot.slane %v40_v20, %v3362_v15  ;;  %v3677_v56 = vrot.slane %v41_v38, %v3348_v7  ;;  %v3695_v20 = vrot.slane %v41_v38, %v3360_v14 }
  0x3d   :  { %9965 = vst [vmem:[#allocation62_spill] sm:$0xff] %v3659_v1  ;;  %9966 = vst [vmem:[#allocation63_spill] sm:$0xff] %v3662_v29  ;;  %v3680_v1 = vrot.slane %v41_v38, %v3350_v8  ;;  %v3683_v29 = vrot.slane %v41_v38, %v3352_v9 }
  0x3e   :  { %9967 = vst [vmem:[#allocation64_spill] sm:$0xff] %v3665_v6  ;;  %9968 = vst [vmem:[#allocation65_spill] sm:$0xff] %v3668_v10  ;;  %v3686_v6 = vrot.slane %v41_v38, %v3354_v11  ;;  %v3689_v10 = vrot.slane %v41_v38, %v3356_v12 }
  0x3f   :  { %9969 = vst [vmem:[#allocation66_spill] sm:$0xff] %v3671_v16  ;;  %9970 = vst [vmem:[#allocation67_spill] sm:$0xff] %v3674_v47  ;;  %v3692_v16 = vrot.slane %v41_v38, %v3358_v13 }
  0x40   :  { %9971 = vst [vmem:[#allocation68_spill] sm:$0xff] %v3677_v56  ;;  %9972 = vst [vmem:[#allocation69_spill] sm:$0xff] %v3680_v1  ;;  %v3698_v56 = vrot.slane %v41_v38, %v3362_v15  ;;  %v3701_v1 = vrot.slane %v42_v4, %v3348_v7  ;;  %v3718_v38 = vrot.slane %v42_v4, %v3358_v13 }
  0x41   :  { %9973 = vst [vmem:[#allocation70_spill] sm:$0xff] %v3683_v29  ;;  %9974 = vst [vmem:[#allocation71_spill] sm:$0xff] %v3686_v6  ;;  %v3704_v29 = vrot.slane %v42_v4, %v3350_v8  ;;  %v3707_v6 = vrot.slane %v42_v4, %v3352_v9 }
  0x42   :  { %9975 = vst [vmem:[#allocation72_spill] sm:$0xff] %v3689_v10  ;;  %9976 = vst [vmem:[#allocation73_spill] sm:$0xff] %v3692_v16  ;;  %v3712_v10 = vrot.slane %v42_v4, %v3354_v11  ;;  %v3715_v16 = vrot.slane %v42_v4, %v3356_v12 }
  0x43   :  { %9977 = vst [vmem:[#allocation74_spill] sm:$0xff] %v3695_v20  ;;  %9978 = vst [vmem:[#allocation75_spill] sm:$0xff] %v3698_v56  ;;  %v3721_v56 = vrot.slane %v42_v4, %v3360_v14 }
  0x44   :  { %9979 = vst [vmem:[#allocation76_spill] sm:$0xff] %v3701_v1  ;;  %9980 = vst [vmem:[#allocation77_spill] sm:$0xff] %v3704_v29  ;;  %v3724_v1 = vrot.slane %v42_v4, %v3362_v15  ;;  %v3727_v29 = vrot.slane %v43_v5, %v3348_v7  ;;  %v3745_v4 = vrot.slane %v43_v5, %v3360_v14 }
  0x45   :  { %9981 = vst [vmem:[#allocation78_spill] sm:$0xff] %v3707_v6  ;;  %9982 = vst [vmem:[#allocation79_spill] sm:$0xff] %v3712_v10  ;;  %v3730_v6 = vrot.slane %v43_v5, %v3350_v8  ;;  %v3733_v10 = vrot.slane %v43_v5, %v3352_v9  ;;  %v3748_v7 = vrot.slane %v43_v5, %v3362_v15 }
  0x46   :  { %9983 = vst [vmem:[#allocation80_spill] sm:$0xff] %v3715_v16  ;;  %9984 = vst [vmem:[#allocation81_spill] sm:$0xff] %v3718_v38  ;;  %v3736_v16 = vrot.slane %v43_v5, %v3354_v11  ;;  %v3739_v38 = vrot.slane %v43_v5, %v3356_v12 }
  0x47   :  { %9985 = vst [vmem:[#allocation82_spill] sm:$0xff] %v3721_v56  ;;  %v3742_v56 = vrot.slane %v43_v5, %v3358_v13 }
  0x8c   :  { %v3709_v47 = vpop.permute.xlu0 %704 }
  0x8d   :  { %v3752_v8 = vmul.f32 %v3709_v47, %v3365_v17  ;;  %v3756_v9 = vmul.f32 %v3709_v47, %v3368_v18  ;;  %v3760_v11 = vmul.f32 %v3709_v47, %v3371_v19  ;;  %v3764_v12 = vmul.f32 %v3709_v47, %v3374_v21 }
  0x8e   :  { %v3768_v13 = vmul.f32 %v3709_v47, %v3377_v22  ;;  %v3772_v14 = vmul.f32 %v3709_v47, %v3380_v23  ;;  %v3776_v15 = vmul.f32 %v3709_v47, %v3383_v24  ;;  %v3780_v5 = vmul.f32 %v3709_v47, %v3386_v25 }
  0x8f   :  { %9986 = vst [vmem:[#allocation83_spill] sm:$0xff] %v3752_v8  ;;  %9987 = vst [vmem:[#allocation84_spill] sm:$0xff] %v3756_v9 }
  0x90   :  { %9988 = vst [vmem:[#allocation85_spill] sm:$0xff] %v3760_v11  ;;  %9989 = vst [vmem:[#allocation86_spill] sm:$0xff] %v3764_v12  ;;  %v3784_v11 = vmul.f32 %v3709_v47, %v3389_v26  ;;  %v3788_v12 = vmul.f32 %v3709_v47, %v3392_v27 }
  0x91   :  { %9990 = vst [vmem:[#allocation87_spill] sm:$0xff] %v3768_v13  ;;  %9991 = vst [vmem:[#allocation88_spill] sm:$0xff] %v3772_v14  ;;  %v3792_v13 = vmul.f32 %v3709_v47, %v3395_v28  ;;  %v3796_v14 = vmul.f32 %v3709_v47, %v3398_v30 }
  0x92   :  { %9992 = vst [vmem:[#allocation89_spill] sm:$0xff] %v3776_v15  ;;  %9993 = vst [vmem:[#allocation90_spill] sm:$0xff] %v3780_v5  ;;  %v3800_v15 = vmul.f32 %v3709_v47, %v3401_v31  ;;  %v3804_v5 = vmul.f32 %v3709_v47, %v3404_v32 }
  0x93   :  { %9994 = vst [vmem:[#allocation91_spill] sm:$0xff] %v3784_v11  ;;  %9995 = vst [vmem:[#allocation92_spill] sm:$0xff] %v3788_v12  ;;  %v3808_v11 = vmul.f32 %v3709_v47, %v3407_v33  ;;  %v3812_v12 = vmul.f32 %v3709_v47, %v3410_v34 }
  0x94   :  { %9996 = vst [vmem:[#allocation93_spill] sm:$0xff] %v3792_v13  ;;  %9997 = vst [vmem:[#allocation94_spill] sm:$0xff] %v3796_v14  ;;  %v3816_v13 = vmul.f32 %v3709_v47, %v3413_v35  ;;  %v3820_v14 = vmul.f32 %v3709_v47, %v3416_v36 }
  0x95   :  { %9998 = vst [vmem:[#allocation95_spill] sm:$0xff] %v3800_v15  ;;  %9999 = vst [vmem:[#allocation96_spill] sm:$0xff] %v3804_v5  ;;  %v3824_v15 = vmul.f32 %v3709_v47, %v3419_v37  ;;  %v3828_v5 = vmul.f32 %v3709_v47, %v3422_v39 }
  0x96   :  { %10000 = vst [vmem:[#allocation97_spill] sm:$0xff] %v3808_v11  ;;  %10001 = vst [vmem:[#allocation98_spill] sm:$0xff] %v3812_v12  ;;  %v3832_v11 = vmul.f32 %v3709_v47, %v3425_v40  ;;  %v3836_v12 = vmul.f32 %v3709_v47, %v3428_v41 }
  0x97   :  { %10002 = vst [vmem:[#allocation99_spill] sm:$0xff] %v3816_v13  ;;  %10003 = vst [vmem:[#allocation100_spill] sm:$0xff] %v3820_v14  ;;  %v3840_v13 = vmul.f32 %v3709_v47, %v3431_v42  ;;  %v3844_v14 = vmul.f32 %v3709_v47, %v3434_v43 }
  0x98   :  { %10004 = vst [vmem:[#allocation101_spill] sm:$0xff] %v3824_v15  ;;  %10005 = vst [vmem:[#allocation102_spill] sm:$0xff] %v3828_v5  ;;  %v3848_v15 = vmul.f32 %v3709_v47, %v3437_v44  ;;  %v3852_v5 = vmul.f32 %v3709_v47, %v3440_v45 }
  0x99   :  { %10006 = vst [vmem:[#allocation103_spill] sm:$0xff] %v3832_v11  ;;  %10007 = vst [vmem:[#allocation104_spill] sm:$0xff] %v3836_v12  ;;  %v3856_v11 = vmul.f32 %v3709_v47, %v3443_v46  ;;  %v3860_v12 = vmul.f32 %v3709_v47, %v3446_v48 }
  0x9a   :  { %10008 = vst [vmem:[#allocation105_spill] sm:$0xff] %v3840_v13  ;;  %10009 = vst [vmem:[#allocation106_spill] sm:$0xff] %v3844_v14  ;;  %v3864_v13 = vmul.f32 %v3709_v47, %v3449_v49  ;;  %v3868_v14 = vmul.f32 %v3709_v47, %v3452_v50 }
  0x9b   :  { %10010 = vst [vmem:[#allocation107_spill] sm:$0xff] %v3848_v15  ;;  %10011 = vst [vmem:[#allocation108_spill] sm:$0xff] %v3852_v5  ;;  %v3872_v15 = vmul.f32 %v3709_v47, %v3455_v51  ;;  %v3876_v5 = vmul.f32 %v3709_v47, %v3458_v52 }
  0x9c   :  { %10012 = vst [vmem:[#allocation109_spill] sm:$0xff] %v3856_v11  ;;  %10013 = vst [vmem:[#allocation110_spill] sm:$0xff] %v3860_v12  ;;  %v3880_v11 = vmul.f32 %v3709_v47, %v3461_v53  ;;  %v3884_v12 = vmul.f32 %v3709_v47, %v3464_v54 }
  0x9d   :  { %10014 = vst [vmem:[#allocation111_spill] sm:$0xff] %v3864_v13  ;;  %10015 = vst [vmem:[#allocation112_spill] sm:$0xff] %v3868_v14  ;;  %v3888_v13 = vmul.f32 %v3709_v47, %v3467_v55  ;;  %v3892_v14 = vmul.f32 %v3709_v47, %v3470_v57 }
  0x9e   :  { %10016 = vst [vmem:[#allocation113_spill] sm:$0xff] %v3872_v15  ;;  %10017 = vst [vmem:[#allocation114_spill] sm:$0xff] %v3876_v5  ;;  %v3896_v15 = vmul.f32 %v3709_v47, %v3473_v58  ;;  %v3900_v5 = vmul.f32 %v3709_v47, %v3476_v59 }
  0x9f   :  { %10018 = vst [vmem:[#allocation115_spill] sm:$0xff] %v3880_v11  ;;  %10019 = vst [vmem:[#allocation116_spill] sm:$0xff] %v3884_v12  ;;  %v3904_v11 = vmul.f32 %v3709_v47, %v3479_v60  ;;  %v3908_v12 = vmul.f32 %v3709_v47, %v3482_v61 }
  0xa0   :  { %10020 = vst [vmem:[#allocation117_spill] sm:$0xff] %v3888_v13  ;;  %10021 = vst [vmem:[#allocation118_spill] sm:$0xff] %v3892_v14  ;;  %v3912_v13 = vmul.f32 %v3709_v47, %v3485_v62  ;;  %v3916_v14 = vmul.f32 %v3709_v47, %v3488_v63 }
  0xa1   :  { %10022 = vst [vmem:[#allocation119_spill] sm:$0xff] %v3896_v15  ;;  %10023 = vst [vmem:[#allocation120_spill] sm:$0xff] %v3900_v5  ;;  %v3920_v15 = vmul.f32 %v3709_v47, %v3491_v0  ;;  %v3924_v5 = vmul.f32 %v3709_v47, %v3494_v2 }
  0xa2   :  { %10024 = vst [vmem:[#allocation121_spill] sm:$0xff] %v3904_v11  ;;  %10025 = vst [vmem:[#allocation122_spill] sm:$0xff] %v3908_v12  ;;  %v3928_v11 = vmul.f32 %v3709_v47, %v3497_v3  ;;  %v10031_v12 = vld [vmem:[#allocation9_spill] sm:$0xff] }
  0xa3   :  { %10026 = vst [vmem:[#allocation123_spill] sm:$0xff] %v3912_v13  ;;  %10027 = vst [vmem:[#allocation124_spill] sm:$0xff] %v3916_v14  ;;  %v3932_v9 = vmul.f32 %v3709_v47, %v10031_v12  ;;  %v10033_v13 = vld [vmem:[#allocation10_spill] sm:$0xff]  ;;  %v10035_v14 = vld [vmem:[#allocation11_spill] sm:$0xff] }
  0xa4   :  { %10028 = vst [vmem:[#allocation125_spill] sm:$0xff] %v3920_v15  ;;  %10029 = vst [vmem:[#allocation126_spill] sm:$0xff] %v3924_v5  ;;  %v3936_v8 = vmul.f32 %v3709_v47, %v10033_v13  ;;  %v3940_v0 = vmul.f32 %v3709_v47, %v10035_v14  ;;  %v10037_v15 = vld [vmem:[#allocation12_spill] sm:$0xff]  ;;  %v10039_v5 = vld [vmem:[#allocation13_spill] sm:$0xff] }
  0xa5   :  { %10030 = vst [vmem:[#allocation127_spill] sm:$0xff] %v3928_v11  ;;  %10032 = vst [vmem:[#allocation128_spill] sm:$0xff] %v3932_v9  ;;  %v3944_v2 = vmul.f32 %v3709_v47, %v10037_v15  ;;  %v3948_v3 = vmul.f32 %v3709_v47, %v10039_v5  ;;  %v10041_v11 = vld [vmem:[#allocation14_spill] sm:$0xff]  ;;  %v10043_v9 = vld [vmem:[#allocation15_spill] sm:$0xff] }
  0xa6   :  { %10034 = vst [vmem:[#allocation129_spill] sm:$0xff] %v3936_v8  ;;  %10036 = vst [vmem:[#allocation130_spill] sm:$0xff] %v3940_v0  ;;  %v3952_v12 = vmul.f32 %v3709_v47, %v10041_v11  ;;  %v3956_v13 = vmul.f32 %v3709_v47, %v10043_v9  ;;  %v10045_v8 = vld [vmem:[#allocation16_spill] sm:$0xff]  ;;  %v10047_v0 = vld [vmem:[#allocation17_spill] sm:$0xff] }
  0xa7   :  { %10038 = vst [vmem:[#allocation131_spill] sm:$0xff] %v3944_v2  ;;  %10040 = vst [vmem:[#allocation132_spill] sm:$0xff] %v3948_v3  ;;  %v3960_v14 = vmul.f32 %v3709_v47, %v10045_v8  ;;  %v3964_v15 = vmul.f32 %v3709_v47, %v10047_v0  ;;  %v10049_v2 = vld [vmem:[#allocation18_spill] sm:$0xff]  ;;  %v10051_v3 = vld [vmem:[#allocation19_spill] sm:$0xff] }
  0xa8   :  { %10042 = vst [vmem:[#allocation133_spill] sm:$0xff] %v3952_v12  ;;  %10044 = vst [vmem:[#allocation134_spill] sm:$0xff] %v3956_v13  ;;  %v3968_v5 = vmul.f32 %v3709_v47, %v10049_v2  ;;  %v3972_v11 = vmul.f32 %v3709_v47, %v10051_v3  ;;  %v10053_v12 = vld [vmem:[#allocation20_spill] sm:$0xff]  ;;  %v10055_v13 = vld [vmem:[#allocation21_spill] sm:$0xff] }
  0xa9   :  { %10046 = vst [vmem:[#allocation135_spill] sm:$0xff] %v3960_v14  ;;  %10048 = vst [vmem:[#allocation136_spill] sm:$0xff] %v3964_v15  ;;  %v3976_v9 = vmul.f32 %v3709_v47, %v10053_v12  ;;  %v3980_v8 = vmul.f32 %v3709_v47, %v10055_v13  ;;  %v10057_v14 = vld [vmem:[#allocation22_spill] sm:$0xff]  ;;  %v10059_v15 = vld [vmem:[#allocation23_spill] sm:$0xff] }
  0xaa   :  { %10050 = vst [vmem:[#allocation137_spill] sm:$0xff] %v3968_v5  ;;  %10052 = vst [vmem:[#allocation138_spill] sm:$0xff] %v3972_v11  ;;  %v3984_v0 = vmul.f32 %v3709_v47, %v10057_v14  ;;  %v3988_v2 = vmul.f32 %v3709_v47, %v10059_v15  ;;  %v10061_v5 = vld [vmem:[#allocation24_spill] sm:$0xff]  ;;  %v10063_v11 = vld [vmem:[#allocation25_spill] sm:$0xff] }
  0xab   :  { %10054 = vst [vmem:[#allocation139_spill] sm:$0xff] %v3976_v9  ;;  %10056 = vst [vmem:[#allocation140_spill] sm:$0xff] %v3980_v8  ;;  %v3992_v3 = vmul.f32 %v3709_v47, %v10061_v5  ;;  %v3996_v12 = vmul.f32 %v3709_v47, %v10063_v11  ;;  %v10065_v9 = vld [vmem:[#allocation26_spill] sm:$0xff]  ;;  %v10067_v8 = vld [vmem:[#allocation27_spill] sm:$0xff] }
  0xac   :  { %10058 = vst [vmem:[#allocation141_spill] sm:$0xff] %v3984_v0  ;;  %10060 = vst [vmem:[#allocation142_spill] sm:$0xff] %v3988_v2  ;;  %v4000_v13 = vmul.f32 %v3709_v47, %v10065_v9  ;;  %v4004_v14 = vmul.f32 %v3709_v47, %v10067_v8  ;;  %v10069_v0 = vld [vmem:[#allocation28_spill] sm:$0xff]  ;;  %v10071_v2 = vld [vmem:[#allocation29_spill] sm:$0xff] }
  0xad   :  { %10062 = vst [vmem:[#allocation143_spill] sm:$0xff] %v3992_v3  ;;  %10064 = vst [vmem:[#allocation144_spill] sm:$0xff] %v3996_v12  ;;  %v4008_v15 = vmul.f32 %v3709_v47, %v10069_v0  ;;  %v4012_v5 = vmul.f32 %v3709_v47, %v10071_v2  ;;  %v10073_v3 = vld [vmem:[#allocation30_spill] sm:$0xff]  ;;  %v10075_v12 = vld [vmem:[#allocation31_spill] sm:$0xff] }
  0xae   :  { %10066 = vst [vmem:[#allocation145_spill] sm:$0xff] %v4000_v13  ;;  %10068 = vst [vmem:[#allocation146_spill] sm:$0xff] %v4004_v14  ;;  %v4016_v11 = vmul.f32 %v3709_v47, %v10073_v3  ;;  %v4020_v9 = vmul.f32 %v3709_v47, %v10075_v12  ;;  %v10077_v13 = vld [vmem:[#allocation32_spill] sm:$0xff]  ;;  %v10079_v14 = vld [vmem:[#allocation33_spill] sm:$0xff] }
  0xaf   :  { %10070 = vst [vmem:[#allocation147_spill] sm:$0xff] %v4008_v15  ;;  %10072 = vst [vmem:[#allocation148_spill] sm:$0xff] %v4012_v5  ;;  %v4024_v8 = vmul.f32 %v3709_v47, %v10077_v13  ;;  %v4028_v0 = vmul.f32 %v3709_v47, %v10079_v14  ;;  %v10081_v15 = vld [vmem:[#allocation34_spill] sm:$0xff]  ;;  %v10083_v5 = vld [vmem:[#allocation35_spill] sm:$0xff] }
  0xb0   :  { %10074 = vst [vmem:[#allocation149_spill] sm:$0xff] %v4016_v11  ;;  %10076 = vst [vmem:[#allocation150_spill] sm:$0xff] %v4020_v9  ;;  %v4032_v2 = vmul.f32 %v3709_v47, %v10081_v15  ;;  %v4036_v3 = vmul.f32 %v3709_v47, %v10083_v5  ;;  %v10085_v11 = vld [vmem:[#allocation36_spill] sm:$0xff]  ;;  %v10087_v9 = vld [vmem:[#allocation37_spill] sm:$0xff] }
  0xb1   :  { %10078 = vst [vmem:[#allocation151_spill] sm:$0xff] %v4024_v8  ;;  %10080 = vst [vmem:[#allocation152_spill] sm:$0xff] %v4028_v0  ;;  %v4040_v12 = vmul.f32 %v3709_v47, %v10085_v11  ;;  %v4044_v13 = vmul.f32 %v3709_v47, %v10087_v9  ;;  %v10089_v8 = vld [vmem:[#allocation38_spill] sm:$0xff]  ;;  %v10091_v0 = vld [vmem:[#allocation39_spill] sm:$0xff] }
  0xb2   :  { %10082 = vst [vmem:[#allocation153_spill] sm:$0xff] %v4032_v2  ;;  %10084 = vst [vmem:[#allocation154_spill] sm:$0xff] %v4036_v3  ;;  %v4048_v14 = vmul.f32 %v3709_v47, %v10089_v8  ;;  %v4052_v15 = vmul.f32 %v3709_v47, %v10091_v0  ;;  %v10093_v2 = vld [vmem:[#allocation40_spill] sm:$0xff]  ;;  %v10095_v3 = vld [vmem:[#allocation41_spill] sm:$0xff] }
  0xb3   :  { %10086 = vst [vmem:[#allocation155_spill] sm:$0xff] %v4040_v12  ;;  %10088 = vst [vmem:[#allocation156_spill] sm:$0xff] %v4044_v13  ;;  %v4056_v5 = vmul.f32 %v3709_v47, %v10093_v2  ;;  %v4060_v11 = vmul.f32 %v3709_v47, %v10095_v3  ;;  %v10097_v12 = vld [vmem:[#allocation42_spill] sm:$0xff]  ;;  %v10099_v13 = vld [vmem:[#allocation43_spill] sm:$0xff] }
  0xb4   :  { %10090 = vst [vmem:[#allocation157_spill] sm:$0xff] %v4048_v14  ;;  %10092 = vst [vmem:[#allocation158_spill] sm:$0xff] %v4052_v15  ;;  %v4064_v9 = vmul.f32 %v3709_v47, %v10097_v12  ;;  %v4068_v8 = vmul.f32 %v3709_v47, %v10099_v13  ;;  %v10101_v14 = vld [vmem:[#allocation44_spill] sm:$0xff]  ;;  %v10103_v15 = vld [vmem:[#allocation45_spill] sm:$0xff] }
  0xb5   :  { %10094 = vst [vmem:[#allocation159_spill] sm:$0xff] %v4056_v5  ;;  %10096 = vst [vmem:[#allocation160_spill] sm:$0xff] %v4060_v11  ;;  %v4072_v0 = vmul.f32 %v3709_v47, %v10101_v14  ;;  %v4076_v2 = vmul.f32 %v3709_v47, %v10103_v15  ;;  %v10105_v5 = vld [vmem:[#allocation46_spill] sm:$0xff]  ;;  %v10107_v11 = vld [vmem:[#allocation47_spill] sm:$0xff] }
  0xb6   :  { %10098 = vst [vmem:[#allocation161_spill] sm:$0xff] %v4064_v9  ;;  %10100 = vst [vmem:[#allocation162_spill] sm:$0xff] %v4068_v8  ;;  %v4080_v3 = vmul.f32 %v3709_v47, %v10105_v5  ;;  %v4084_v12 = vmul.f32 %v3709_v47, %v10107_v11  ;;  %v10109_v9 = vld [vmem:[#allocation48_spill] sm:$0xff]  ;;  %v10111_v8 = vld [vmem:[#allocation49_spill] sm:$0xff] }
  0xb7   :  { %10102 = vst [vmem:[#allocation163_spill] sm:$0xff] %v4072_v0  ;;  %10104 = vst [vmem:[#allocation164_spill] sm:$0xff] %v4076_v2  ;;  %v4088_v13 = vmul.f32 %v3709_v47, %v10109_v9  ;;  %v4092_v14 = vmul.f32 %v3709_v47, %v10111_v8  ;;  %v10113_v0 = vld [vmem:[#allocation50_spill] sm:$0xff]  ;;  %v10115_v2 = vld [vmem:[#allocation51_spill] sm:$0xff] }
  0xb8   :  { %10106 = vst [vmem:[#allocation165_spill] sm:$0xff] %v4080_v3  ;;  %10108 = vst [vmem:[#allocation166_spill] sm:$0xff] %v4084_v12  ;;  %v4096_v15 = vmul.f32 %v3709_v47, %v10113_v0  ;;  %v4100_v5 = vmul.f32 %v3709_v47, %v10115_v2  ;;  %v10117_v3 = vld [vmem:[#allocation52_spill] sm:$0xff]  ;;  %v10119_v12 = vld [vmem:[#allocation53_spill] sm:$0xff] }
  0xb9   :  { %10110 = vst [vmem:[#allocation167_spill] sm:$0xff] %v4088_v13  ;;  %10112 = vst [vmem:[#allocation168_spill] sm:$0xff] %v4092_v14  ;;  %v4104_v11 = vmul.f32 %v3709_v47, %v10117_v3  ;;  %v4108_v9 = vmul.f32 %v3709_v47, %v10119_v12  ;;  %v10121_v13 = vld [vmem:[#allocation54_spill] sm:$0xff]  ;;  %v10123_v14 = vld [vmem:[#allocation55_spill] sm:$0xff] }
  0xba   :  { %10114 = vst [vmem:[#allocation169_spill] sm:$0xff] %v4096_v15  ;;  %10116 = vst [vmem:[#allocation170_spill] sm:$0xff] %v4100_v5  ;;  %v4112_v8 = vmul.f32 %v3709_v47, %v10121_v13  ;;  %v4116_v0 = vmul.f32 %v3709_v47, %v10123_v14  ;;  %v10125_v15 = vld [vmem:[#allocation56_spill] sm:$0xff]  ;;  %v10127_v5 = vld [vmem:[#allocation57_spill] sm:$0xff] }
  0xbb   :  { %10118 = vst [vmem:[#allocation171_spill] sm:$0xff] %v4104_v11  ;;  %10120 = vst [vmem:[#allocation172_spill] sm:$0xff] %v4108_v9  ;;  %v4120_v2 = vmul.f32 %v3709_v47, %v10125_v15  ;;  %v4124_v3 = vmul.f32 %v3709_v47, %v10127_v5  ;;  %v10129_v11 = vld [vmem:[#allocation58_spill] sm:$0xff]  ;;  %v10131_v9 = vld [vmem:[#allocation59_spill] sm:$0xff] }
  0xbc   :  { %10122 = vst [vmem:[#allocation173_spill] sm:$0xff] %v4112_v8  ;;  %10124 = vst [vmem:[#allocation174_spill] sm:$0xff] %v4116_v0  ;;  %v4128_v12 = vmul.f32 %v3709_v47, %v10129_v11  ;;  %v4132_v13 = vmul.f32 %v3709_v47, %v10131_v9  ;;  %v10133_v8 = vld [vmem:[#allocation60_spill] sm:$0xff]  ;;  %v10135_v0 = vld [vmem:[#allocation61_spill] sm:$0xff] }
  0xbd   :  { %10126 = vst [vmem:[#allocation175_spill] sm:$0xff] %v4120_v2  ;;  %10128 = vst [vmem:[#allocation176_spill] sm:$0xff] %v4124_v3  ;;  %v4136_v14 = vmul.f32 %v3709_v47, %v10133_v8  ;;  %v4140_v15 = vmul.f32 %v3709_v47, %v10135_v0  ;;  %v10137_v2 = vld [vmem:[#allocation62_spill] sm:$0xff]  ;;  %v10139_v3 = vld [vmem:[#allocation63_spill] sm:$0xff] }
  0xbe   :  { %10130 = vst [vmem:[#allocation177_spill] sm:$0xff] %v4128_v12  ;;  %10132 = vst [vmem:[#allocation178_spill] sm:$0xff] %v4132_v13  ;;  %v4144_v5 = vmul.f32 %v3709_v47, %v10137_v2  ;;  %v4148_v11 = vmul.f32 %v3709_v47, %v10139_v3  ;;  %v10141_v12 = vld [vmem:[#allocation64_spill] sm:$0xff]  ;;  %v10143_v13 = vld [vmem:[#allocation65_spill] sm:$0xff] }
  0xbf   :  { %10134 = vst [vmem:[#allocation179_spill] sm:$0xff] %v4136_v14  ;;  %10136 = vst [vmem:[#allocation180_spill] sm:$0xff] %v4140_v15  ;;  %v4152_v9 = vmul.f32 %v3709_v47, %v10141_v12  ;;  %v4156_v8 = vmul.f32 %v3709_v47, %v10143_v13  ;;  %v10145_v14 = vld [vmem:[#allocation66_spill] sm:$0xff]  ;;  %v10147_v15 = vld [vmem:[#allocation67_spill] sm:$0xff] }
  0xc0   :  { %10138 = vst [vmem:[#allocation181_spill] sm:$0xff] %v4144_v5  ;;  %10140 = vst [vmem:[#allocation182_spill] sm:$0xff] %v4148_v11  ;;  %v4160_v0 = vmul.f32 %v3709_v47, %v10145_v14  ;;  %v4164_v2 = vmul.f32 %v3709_v47, %v10147_v15  ;;  %v10149_v5 = vld [vmem:[#allocation68_spill] sm:$0xff]  ;;  %v10151_v11 = vld [vmem:[#allocation69_spill] sm:$0xff] }
  0xc1   :  { %10142 = vst [vmem:[#allocation183_spill] sm:$0xff] %v4152_v9  ;;  %10144 = vst [vmem:[#allocation184_spill] sm:$0xff] %v4156_v8  ;;  %v4168_v3 = vmul.f32 %v3709_v47, %v10149_v5  ;;  %v4172_v12 = vmul.f32 %v3709_v47, %v10151_v11  ;;  %v10153_v9 = vld [vmem:[#allocation70_spill] sm:$0xff]  ;;  %v10155_v8 = vld [vmem:[#allocation71_spill] sm:$0xff] }
  0xc2   :  { %10146 = vst [vmem:[#allocation185_spill] sm:$0xff] %v4160_v0  ;;  %10148 = vst [vmem:[#allocation186_spill] sm:$0xff] %v4164_v2  ;;  %v4176_v13 = vmul.f32 %v3709_v47, %v10153_v9  ;;  %v4180_v14 = vmul.f32 %v3709_v47, %v10155_v8  ;;  %v10157_v0 = vld [vmem:[#allocation72_spill] sm:$0xff]  ;;  %v10159_v2 = vld [vmem:[#allocation73_spill] sm:$0xff] }
  0xc3   :  { %10150 = vst [vmem:[#allocation187_spill] sm:$0xff] %v4168_v3  ;;  %10152 = vst [vmem:[#allocation69_spill] sm:$0xff] %v4172_v12  ;;  %v4184_v15 = vmul.f32 %v3709_v47, %v10157_v0  ;;  %v4188_v5 = vmul.f32 %v3709_v47, %v10159_v2  ;;  %v4192_v3 = vmul.f32 %v3709_v47, %v3695_v20  ;;  %v10162_v12 = vld [vmem:[#allocation75_spill] sm:$0xff] }
  0xc4   :  { %10154 = vst [vmem:[#allocation188_spill] sm:$0xff] %v4176_v13  ;;  %10156 = vst [vmem:[#allocation189_spill] sm:$0xff] %v4180_v14  ;;  %v4196_v9 = vmul.f32 %v3709_v47, %v10162_v12  ;;  %v10164_v13 = vld [vmem:[#allocation76_spill] sm:$0xff]  ;;  %v10166_v14 = vld [vmem:[#allocation77_spill] sm:$0xff] }
  0xc5   :  { %10158 = vst [vmem:[#allocation190_spill] sm:$0xff] %v4184_v15  ;;  %10160 = vst [vmem:[#allocation191_spill] sm:$0xff] %v4188_v5  ;;  %v4200_v8 = vmul.f32 %v3709_v47, %v10164_v13  ;;  %v4204_v0 = vmul.f32 %v3709_v47, %v10166_v14  ;;  %v10168_v15 = vld [vmem:[#allocation78_spill] sm:$0xff]  ;;  %v4210_v5 = vpop.permute.xlu0 %709  ;;  %v10170_v20 = vld [vmem:[#allocation79_spill] sm:$0xff] }
  0xc6   :  { %10161 = vst [vmem:[#allocation192_spill] sm:$0xff] %v4192_v3  ;;  %10163 = vst [vmem:[#allocation193_spill] sm:$0xff] %v4196_v9  ;;  %v4208_v2 = vmul.f32 %v3709_v47, %v10168_v15  ;;  %v4214_v3 = vmul.f32 %v3709_v47, %v10170_v20  ;;  %v10172_v12 = vld [vmem:[#allocation80_spill] sm:$0xff]  ;;  %v10174_v13 = vld [vmem:[#allocation81_spill] sm:$0xff]  ;;  %v4234_v20 = vmul.f32 %v3709_v47, %v3727_v29 }
  0xc7   :  { %10165 = vst [vmem:[#allocation194_spill] sm:$0xff] %v4200_v8  ;;  %10167 = vst [vmem:[#allocation195_spill] sm:$0xff] %v4204_v0  ;;  %v4218_v9 = vmul.f32 %v3709_v47, %v10172_v12  ;;  %v4222_v8 = vmul.f32 %v3709_v47, %v10174_v13  ;;  %v10176_v14 = vld [vmem:[#allocation82_spill] sm:$0xff] }
  0xc8   :  { %10169 = vst [vmem:[#allocation78_spill] sm:$0xff] %v4208_v2  ;;  %10171 = vst [vmem:[#allocation196_spill] sm:$0xff] %v4214_v3  ;;  %v4226_v0 = vmul.f32 %v3709_v47, %v10176_v14  ;;  %v4230_v2 = vmul.f32 %v3709_v47, %v3724_v1  ;;  %v4238_v3 = vmul.f32 %v3709_v47, %v3730_v6 }
  0xc9   :  { %10173 = vst [vmem:[#allocation80_spill] sm:$0xff] %v4218_v9  ;;  %10175 = vst [vmem:[#allocation81_spill] sm:$0xff] %v4222_v8  ;;  %v4242_v9 = vmul.f32 %v3709_v47, %v3733_v10  ;;  %v4246_v8 = vmul.f32 %v3709_v47, %v3736_v16 }
  0xca   :  { %10177 = vst [vmem:[#allocation82_spill] sm:$0xff] %v4226_v0  ;;  %10178 = vst [vmem:[#allocation197_spill] sm:$0xff] %v4230_v2  ;;  %v4250_v0 = vmul.f32 %v3709_v47, %v3739_v38  ;;  %v4254_v2 = vmul.f32 %v3709_v47, %v3742_v56 }
  0xcb   :  { %10179 = vst [vmem:[#allocation198_spill] sm:$0xff] %v4234_v20  ;;  %10180 = vst [vmem:[#allocation199_spill] sm:$0xff] %v4238_v3  ;;  %v4258_v20 = vmul.f32 %v3709_v47, %v3745_v4  ;;  %v4262_v3 = vmul.f32 %v3709_v47, %v3748_v7  ;;  %v4282_v47 = vmul.f32 %v4210_v5, %v3377_v22 }
  0xcc   :  { %10181 = vst [vmem:[#allocation200_spill] sm:$0xff] %v4242_v9  ;;  %10182 = vst [vmem:[#allocation201_spill] sm:$0xff] %v4246_v8  ;;  %v4266_v9 = vmul.f32 %v4210_v5, %v3365_v17  ;;  %v4270_v8 = vmul.f32 %v4210_v5, %v3368_v18  ;;  %v4286_v17 = vmul.f32 %v4210_v5, %v3380_v23 }
  0xcd   :  { %10183 = vst [vmem:[#allocation202_spill] sm:$0xff] %v4250_v0  ;;  %10184 = vst [vmem:[#allocation203_spill] sm:$0xff] %v4254_v2  ;;  %v4274_v0 = vmul.f32 %v4210_v5, %v3371_v19  ;;  %v4278_v2 = vmul.f32 %v4210_v5, %v3374_v21  ;;  %v4290_v18 = vmul.f32 %v4210_v5, %v3383_v24 }
  0xce   :  { %v4294_v19 = vmul.f32 %v4210_v5, %v3386_v25  ;;  %v4298_v21 = vmul.f32 %v4210_v5, %v3389_v26  ;;  %v4302_v22 = vmul.f32 %v4210_v5, %v3392_v27  ;;  %v4306_v23 = vmul.f32 %v4210_v5, %v3395_v28 }
  0xcf   :  { %v4310_v24 = vmul.f32 %v4210_v5, %v3398_v30  ;;  %v4314_v25 = vmul.f32 %v4210_v5, %v3401_v31  ;;  %v4318_v26 = vmul.f32 %v4210_v5, %v3404_v32  ;;  %v4322_v27 = vmul.f32 %v4210_v5, %v3407_v33 }
  0xd0   :  { %v4326_v28 = vmul.f32 %v4210_v5, %v3410_v34  ;;  %v4330_v30 = vmul.f32 %v4210_v5, %v3413_v35  ;;  %v4334_v31 = vmul.f32 %v4210_v5, %v3416_v36  ;;  %v4338_v32 = vmul.f32 %v4210_v5, %v3419_v37 }
  0xd1   :  { %v4342_v33 = vmul.f32 %v4210_v5, %v3422_v39  ;;  %v4346_v34 = vmul.f32 %v4210_v5, %v3425_v40  ;;  %v4350_v35 = vmul.f32 %v4210_v5, %v3428_v41  ;;  %v4354_v36 = vmul.f32 %v4210_v5, %v3431_v42 }
  0xd2   :  { %v4358_v37 = vmul.f32 %v4210_v5, %v3434_v43  ;;  %v4362_v39 = vmul.f32 %v4210_v5, %v3437_v44  ;;  %v4366_v40 = vmul.f32 %v4210_v5, %v3440_v45  ;;  %v4370_v41 = vmul.f32 %v4210_v5, %v3443_v46 }
  0xd3   :  { %v4374_v42 = vmul.f32 %v4210_v5, %v3446_v48  ;;  %v4378_v43 = vmul.f32 %v4210_v5, %v3449_v49  ;;  %v4382_v44 = vmul.f32 %v4210_v5, %v3452_v50  ;;  %v4386_v45 = vmul.f32 %v4210_v5, %v3455_v51 }
  0xd4   :  { %v4390_v46 = vmul.f32 %v4210_v5, %v3458_v52  ;;  %v4394_v48 = vmul.f32 %v4210_v5, %v3461_v53  ;;  %v4398_v49 = vmul.f32 %v4210_v5, %v3464_v54  ;;  %v4402_v50 = vmul.f32 %v4210_v5, %v3467_v55 }
  0xd5   :  { %v4406_v51 = vmul.f32 %v4210_v5, %v3470_v57  ;;  %v4410_v52 = vmul.f32 %v4210_v5, %v3473_v58  ;;  %v4414_v53 = vmul.f32 %v4210_v5, %v3476_v59  ;;  %v4418_v54 = vmul.f32 %v4210_v5, %v3479_v60 }
  0xd6   :  { %v4422_v55 = vmul.f32 %v4210_v5, %v3482_v61  ;;  %v4426_v57 = vmul.f32 %v4210_v5, %v3485_v62  ;;  %v4430_v58 = vmul.f32 %v4210_v5, %v3488_v63 }
  0xd7   :  { %10185 = vst [vmem:[#allocation204_spill] sm:$0xff] %v4410_v52  ;;  %10186 = vst [vmem:[#allocation205_spill] sm:$0xff] %v4414_v53  ;;  %v10191_v52 = vld [vmem:[#allocation6_spill] sm:$0xff]  ;;  %v10193_v53 = vld [vmem:[#allocation7_spill] sm:$0xff] }
  0xd8   :  { %10187 = vst [vmem:[#allocation206_spill] sm:$0xff] %v4418_v54  ;;  %10188 = vst [vmem:[#allocation207_spill] sm:$0xff] %v4422_v55  ;;  %v4434_v59 = vmul.f32 %v4210_v5, %v10191_v52  ;;  %v4438_v60 = vmul.f32 %v4210_v5, %v10193_v53  ;;  %v10195_v54 = vld [vmem:[#allocation8_spill] sm:$0xff]  ;;  %v10197_v55 = vld [vmem:[#allocation9_spill] sm:$0xff] }
  0xd9   :  { %10189 = vst [vmem:[#allocation208_spill] sm:$0xff] %v4426_v57  ;;  %10190 = vst [vmem:[#allocation209_spill] sm:$0xff] %v4430_v58  ;;  %v4442_v61 = vmul.f32 %v4210_v5, %v10195_v54  ;;  %v4446_v62 = vmul.f32 %v4210_v5, %v10197_v55  ;;  %v10199_v57 = vld [vmem:[#allocation10_spill] sm:$0xff]  ;;  %v10201_v58 = vld [vmem:[#allocation11_spill] sm:$0xff] }
  0xda   :  { %10192 = vst [vmem:[#allocation6_spill] sm:$0xff] %v4434_v59  ;;  %10194 = vst [vmem:[#allocation7_spill] sm:$0xff] %v4438_v60  ;;  %v4450_v63 = vmul.f32 %v4210_v5, %v10199_v57  ;;  %v4454_v52 = vmul.f32 %v4210_v5, %v10201_v58  ;;  %v10203_v59 = vld [vmem:[#allocation12_spill] sm:$0xff]  ;;  %v10205_v60 = vld [vmem:[#allocation13_spill] sm:$0xff] }
  0xdb   :  { %10196 = vst [vmem:[#allocation8_spill] sm:$0xff] %v4442_v61  ;;  %10198 = vst [vmem:[#allocation9_spill] sm:$0xff] %v4446_v62  ;;  %v4458_v53 = vmul.f32 %v4210_v5, %v10203_v59  ;;  %v4462_v54 = vmul.f32 %v4210_v5, %v10205_v60  ;;  %v10207_v61 = vld [vmem:[#allocation14_spill] sm:$0xff]  ;;  %v10209_v62 = vld [vmem:[#allocation15_spill] sm:$0xff] }
  0xdc   :  { %10200 = vst [vmem:[#allocation10_spill] sm:$0xff] %v4450_v63  ;;  %10202 = vst [vmem:[#allocation11_spill] sm:$0xff] %v4454_v52  ;;  %v4466_v55 = vmul.f32 %v4210_v5, %v10207_v61  ;;  %v4470_v57 = vmul.f32 %v4210_v5, %v10209_v62  ;;  %v10211_v63 = vld [vmem:[#allocation16_spill] sm:$0xff]  ;;  %v10213_v52 = vld [vmem:[#allocation17_spill] sm:$0xff] }
  0xdd   :  { %10204 = vst [vmem:[#allocation12_spill] sm:$0xff] %v4458_v53  ;;  %10206 = vst [vmem:[#allocation13_spill] sm:$0xff] %v4462_v54  ;;  %v4474_v58 = vmul.f32 %v4210_v5, %v10211_v63  ;;  %v4478_v59 = vmul.f32 %v4210_v5, %v10213_v52  ;;  %v10215_v53 = vld [vmem:[#allocation18_spill] sm:$0xff]  ;;  %v10217_v54 = vld [vmem:[#allocation19_spill] sm:$0xff] }
  0xde   :  { %10208 = vst [vmem:[#allocation14_spill] sm:$0xff] %v4466_v55  ;;  %10210 = vst [vmem:[#allocation15_spill] sm:$0xff] %v4470_v57  ;;  %v4482_v60 = vmul.f32 %v4210_v5, %v10215_v53  ;;  %v4486_v61 = vmul.f32 %v4210_v5, %v10217_v54  ;;  %v10219_v55 = vld [vmem:[#allocation20_spill] sm:$0xff]  ;;  %v10221_v57 = vld [vmem:[#allocation21_spill] sm:$0xff] }
  0xdf   :  { %10212 = vst [vmem:[#allocation16_spill] sm:$0xff] %v4474_v58  ;;  %10214 = vst [vmem:[#allocation17_spill] sm:$0xff] %v4478_v59  ;;  %v4490_v62 = vmul.f32 %v4210_v5, %v10219_v55  ;;  %v4494_v63 = vmul.f32 %v4210_v5, %v10221_v57  ;;  %v10223_v58 = vld [vmem:[#allocation22_spill] sm:$0xff]  ;;  %v10225_v59 = vld [vmem:[#allocation23_spill] sm:$0xff] }
  0xe0   :  { %10216 = vst [vmem:[#allocation18_spill] sm:$0xff] %v4482_v60  ;;  %10218 = vst [vmem:[#allocation19_spill] sm:$0xff] %v4486_v61  ;;  %v4498_v52 = vmul.f32 %v4210_v5, %v10223_v58  ;;  %v4502_v53 = vmul.f32 %v4210_v5, %v10225_v59  ;;  %v10227_v60 = vld [vmem:[#allocation24_spill] sm:$0xff]  ;;  %v10229_v61 = vld [vmem:[#allocation25_spill] sm:$0xff] }
  0xe1   :  { %10220 = vst [vmem:[#allocation20_spill] sm:$0xff] %v4490_v62  ;;  %10222 = vst [vmem:[#allocation21_spill] sm:$0xff] %v4494_v63  ;;  %v4506_v54 = vmul.f32 %v4210_v5, %v10227_v60  ;;  %v4510_v55 = vmul.f32 %v4210_v5, %v10229_v61  ;;  %v10231_v62 = vld [vmem:[#allocation26_spill] sm:$0xff]  ;;  %v10233_v63 = vld [vmem:[#allocation27_spill] sm:$0xff] }
  0xe2   :  { %10224 = vst [vmem:[#allocation22_spill] sm:$0xff] %v4498_v52  ;;  %10226 = vst [vmem:[#allocation23_spill] sm:$0xff] %v4502_v53  ;;  %v4514_v57 = vmul.f32 %v4210_v5, %v10231_v62  ;;  %v4518_v58 = vmul.f32 %v4210_v5, %v10233_v63  ;;  %v10235_v52 = vld [vmem:[#allocation28_spill] sm:$0xff]  ;;  %v10237_v53 = vld [vmem:[#allocation29_spill] sm:$0xff] }
  0xe3   :  { %10228 = vst [vmem:[#allocation24_spill] sm:$0xff] %v4506_v54  ;;  %10230 = vst [vmem:[#allocation25_spill] sm:$0xff] %v4510_v55  ;;  %v4522_v59 = vmul.f32 %v4210_v5, %v10235_v52  ;;  %v4526_v60 = vmul.f32 %v4210_v5, %v10237_v53  ;;  %v10239_v54 = vld [vmem:[#allocation30_spill] sm:$0xff]  ;;  %v10241_v55 = vld [vmem:[#allocation31_spill] sm:$0xff] }
  0xe4   :  { %10232 = vst [vmem:[#allocation26_spill] sm:$0xff] %v4514_v57  ;;  %10234 = vst [vmem:[#allocation27_spill] sm:$0xff] %v4518_v58  ;;  %v4530_v61 = vmul.f32 %v4210_v5, %v10239_v54  ;;  %v4534_v62 = vmul.f32 %v4210_v5, %v10241_v55  ;;  %v10243_v57 = vld [vmem:[#allocation32_spill] sm:$0xff]  ;;  %v10245_v58 = vld [vmem:[#allocation33_spill] sm:$0xff] }
  0xe5   :  { %10236 = vst [vmem:[#allocation28_spill] sm:$0xff] %v4522_v59  ;;  %10238 = vst [vmem:[#allocation29_spill] sm:$0xff] %v4526_v60  ;;  %v4538_v63 = vmul.f32 %v4210_v5, %v10243_v57  ;;  %v4542_v52 = vmul.f32 %v4210_v5, %v10245_v58  ;;  %v10247_v59 = vld [vmem:[#allocation34_spill] sm:$0xff]  ;;  %v10249_v60 = vld [vmem:[#allocation35_spill] sm:$0xff] }
  0xe6   :  { %10240 = vst [vmem:[#allocation30_spill] sm:$0xff] %v4530_v61  ;;  %10242 = vst [vmem:[#allocation31_spill] sm:$0xff] %v4534_v62  ;;  %v4546_v53 = vmul.f32 %v4210_v5, %v10247_v59  ;;  %v4550_v54 = vmul.f32 %v4210_v5, %v10249_v60  ;;  %v10251_v61 = vld [vmem:[#allocation36_spill] sm:$0xff]  ;;  %v10253_v62 = vld [vmem:[#allocation37_spill] sm:$0xff] }
  0xe7   :  { %10244 = vst [vmem:[#allocation32_spill] sm:$0xff] %v4538_v63  ;;  %10246 = vst [vmem:[#allocation33_spill] sm:$0xff] %v4542_v52  ;;  %v4554_v55 = vmul.f32 %v4210_v5, %v10251_v61  ;;  %v4558_v57 = vmul.f32 %v4210_v5, %v10253_v62  ;;  %v10255_v63 = vld [vmem:[#allocation38_spill] sm:$0xff]  ;;  %v10257_v52 = vld [vmem:[#allocation39_spill] sm:$0xff] }
  0xe8   :  { %10248 = vst [vmem:[#allocation34_spill] sm:$0xff] %v4546_v53  ;;  %10250 = vst [vmem:[#allocation35_spill] sm:$0xff] %v4550_v54  ;;  %v4562_v58 = vmul.f32 %v4210_v5, %v10255_v63  ;;  %v4566_v59 = vmul.f32 %v4210_v5, %v10257_v52  ;;  %v10259_v53 = vld [vmem:[#allocation40_spill] sm:$0xff]  ;;  %v10261_v54 = vld [vmem:[#allocation41_spill] sm:$0xff] }
  0xe9   :  { %10252 = vst [vmem:[#allocation36_spill] sm:$0xff] %v4554_v55  ;;  %10254 = vst [vmem:[#allocation37_spill] sm:$0xff] %v4558_v57  ;;  %v4570_v60 = vmul.f32 %v4210_v5, %v10259_v53  ;;  %v4574_v61 = vmul.f32 %v4210_v5, %v10261_v54  ;;  %v10263_v55 = vld [vmem:[#allocation42_spill] sm:$0xff]  ;;  %v10265_v57 = vld [vmem:[#allocation43_spill] sm:$0xff] }
  0xea   :  { %10256 = vst [vmem:[#allocation38_spill] sm:$0xff] %v4562_v58  ;;  %10258 = vst [vmem:[#allocation39_spill] sm:$0xff] %v4566_v59  ;;  %v4578_v62 = vmul.f32 %v4210_v5, %v10263_v55  ;;  %v4582_v63 = vmul.f32 %v4210_v5, %v10265_v57  ;;  %v10267_v58 = vld [vmem:[#allocation44_spill] sm:$0xff]  ;;  %v10269_v59 = vld [vmem:[#allocation45_spill] sm:$0xff] }
  0xeb   :  { %10260 = vst [vmem:[#allocation40_spill] sm:$0xff] %v4570_v60  ;;  %10262 = vst [vmem:[#allocation41_spill] sm:$0xff] %v4574_v61  ;;  %v4586_v52 = vmul.f32 %v4210_v5, %v10267_v58  ;;  %v4590_v53 = vmul.f32 %v4210_v5, %v10269_v59  ;;  %v10271_v60 = vld [vmem:[#allocation46_spill] sm:$0xff]  ;;  %v10273_v61 = vld [vmem:[#allocation47_spill] sm:$0xff] }
  0xec   :  { %10264 = vst [vmem:[#allocation42_spill] sm:$0xff] %v4578_v62  ;;  %10266 = vst [vmem:[#allocation43_spill] sm:$0xff] %v4582_v63  ;;  %v4594_v54 = vmul.f32 %v4210_v5, %v10271_v60  ;;  %v4598_v55 = vmul.f32 %v4210_v5, %v10273_v61  ;;  %v10275_v62 = vld [vmem:[#allocation48_spill] sm:$0xff]  ;;  %v10277_v63 = vld [vmem:[#allocation49_spill] sm:$0xff] }
  0xed   :  { %10268 = vst [vmem:[#allocation44_spill] sm:$0xff] %v4586_v52  ;;  %10270 = vst [vmem:[#allocation45_spill] sm:$0xff] %v4590_v53  ;;  %v4602_v57 = vmul.f32 %v4210_v5, %v10275_v62  ;;  %v4606_v58 = vmul.f32 %v4210_v5, %v10277_v63  ;;  %v10279_v52 = vld [vmem:[#allocation50_spill] sm:$0xff]  ;;  %v10281_v53 = vld [vmem:[#allocation51_spill] sm:$0xff] }
  0xee   :  { %10272 = vst [vmem:[#allocation46_spill] sm:$0xff] %v4594_v54  ;;  %10274 = vst [vmem:[#allocation47_spill] sm:$0xff] %v4598_v55  ;;  %v4610_v59 = vmul.f32 %v4210_v5, %v10279_v52  ;;  %v4614_v60 = vmul.f32 %v4210_v5, %v10281_v53  ;;  %v10283_v54 = vld [vmem:[#allocation52_spill] sm:$0xff]  ;;  %v10285_v55 = vld [vmem:[#allocation53_spill] sm:$0xff] }
  0xef   :  { %10276 = vst [vmem:[#allocation48_spill] sm:$0xff] %v4602_v57  ;;  %10278 = vst [vmem:[#allocation49_spill] sm:$0xff] %v4606_v58  ;;  %v4618_v61 = vmul.f32 %v4210_v5, %v10283_v54  ;;  %v4622_v62 = vmul.f32 %v4210_v5, %v10285_v55  ;;  %v10287_v57 = vld [vmem:[#allocation54_spill] sm:$0xff]  ;;  %v10289_v58 = vld [vmem:[#allocation55_spill] sm:$0xff] }
  0xf0   :  { %10280 = vst [vmem:[#allocation50_spill] sm:$0xff] %v4610_v59  ;;  %10282 = vst [vmem:[#allocation51_spill] sm:$0xff] %v4614_v60  ;;  %v4626_v63 = vmul.f32 %v4210_v5, %v10287_v57  ;;  %v4630_v52 = vmul.f32 %v4210_v5, %v10289_v58  ;;  %v10291_v59 = vld [vmem:[#allocation56_spill] sm:$0xff]  ;;  %v10293_v60 = vld [vmem:[#allocation57_spill] sm:$0xff] }
  0xf1   :  { %10284 = vst [vmem:[#allocation52_spill] sm:$0xff] %v4618_v61  ;;  %10286 = vst [vmem:[#allocation53_spill] sm:$0xff] %v4622_v62  ;;  %v4634_v53 = vmul.f32 %v4210_v5, %v10291_v59  ;;  %v4638_v54 = vmul.f32 %v4210_v5, %v10293_v60  ;;  %v10295_v61 = vld [vmem:[#allocation58_spill] sm:$0xff]  ;;  %v10297_v62 = vld [vmem:[#allocation59_spill] sm:$0xff] }
  0xf2   :  { %10288 = vst [vmem:[#allocation54_spill] sm:$0xff] %v4626_v63  ;;  %10290 = vst [vmem:[#allocation55_spill] sm:$0xff] %v4630_v52  ;;  %v4642_v55 = vmul.f32 %v4210_v5, %v10295_v61  ;;  %v4646_v57 = vmul.f32 %v4210_v5, %v10297_v62  ;;  %v10299_v63 = vld [vmem:[#allocation60_spill] sm:$0xff]  ;;  %v10301_v52 = vld [vmem:[#allocation61_spill] sm:$0xff] }
  0xf3   :  { %10292 = vst [vmem:[#allocation56_spill] sm:$0xff] %v4634_v53  ;;  %10294 = vst [vmem:[#allocation57_spill] sm:$0xff] %v4638_v54  ;;  %v4650_v58 = vmul.f32 %v4210_v5, %v10299_v63  ;;  %v4654_v59 = vmul.f32 %v4210_v5, %v10301_v52  ;;  %v10303_v53 = vld [vmem:[#allocation62_spill] sm:$0xff]  ;;  %v10305_v54 = vld [vmem:[#allocation63_spill] sm:$0xff] }
  0xf4   :  { %10296 = vst [vmem:[#allocation58_spill] sm:$0xff] %v4642_v55  ;;  %10298 = vst [vmem:[#allocation59_spill] sm:$0xff] %v4646_v57  ;;  %v4658_v60 = vmul.f32 %v4210_v5, %v10303_v53  ;;  %v4662_v61 = vmul.f32 %v4210_v5, %v10305_v54  ;;  %v10307_v55 = vld [vmem:[#allocation64_spill] sm:$0xff]  ;;  %v10309_v57 = vld [vmem:[#allocation65_spill] sm:$0xff] }
  0xf5   :  { %10300 = vst [vmem:[#allocation60_spill] sm:$0xff] %v4650_v58  ;;  %10302 = vst [vmem:[#allocation61_spill] sm:$0xff] %v4654_v59  ;;  %v4666_v62 = vmul.f32 %v4210_v5, %v10307_v55  ;;  %v4670_v63 = vmul.f32 %v4210_v5, %v10309_v57  ;;  %v10311_v58 = vld [vmem:[#allocation66_spill] sm:$0xff]  ;;  %v10313_v59 = vld [vmem:[#allocation67_spill] sm:$0xff]  ;;  %v4686_v55 = vmul.f32 %v4210_v5, %v10151_v11 }
  0xf6   :  { %10304 = vst [vmem:[#allocation62_spill] sm:$0xff] %v4658_v60  ;;  %10306 = vst [vmem:[#allocation63_spill] sm:$0xff] %v4662_v61  ;;  %v4674_v52 = vmul.f32 %v4210_v5, %v10311_v58  ;;  %v4678_v53 = vmul.f32 %v4210_v5, %v10313_v59  ;;  %v10315_v60 = vld [vmem:[#allocation68_spill] sm:$0xff]  ;;  %v10320_v58 = vld [vmem:[#allocation71_spill] sm:$0xff] }
  0xf7   :  { %10308 = vst [vmem:[#allocation64_spill] sm:$0xff] %v4666_v62  ;;  %10310 = vst [vmem:[#allocation65_spill] sm:$0xff] %v4670_v63  ;;  %v4682_v54 = vmul.f32 %v4210_v5, %v10315_v60  ;;  %v10318_v62 = vld [vmem:[#allocation70_spill] sm:$0xff]  ;;  %v4692_v63 = vpop.permute.xlu1 %975  ;;  %v10322_v59 = vld [vmem:[#allocation72_spill] sm:$0xff] }
  0xf8   :  { %10312 = vst [vmem:[#allocation66_spill] sm:$0xff] %v4674_v52  ;;  %10314 = vst [vmem:[#allocation67_spill] sm:$0xff] %v4678_v53  ;;  %v4690_v57 = vmul.f32 %v4210_v5, %v10318_v62  ;;  %v4696_v52 = vmul.f32 %v4210_v5, %v10320_v58  ;;  %v4700_v53 = vmul.f32 %v4210_v5, %v10322_v59  ;;  %v10323_v60 = vld [vmem:[#allocation73_spill] sm:$0xff]  ;;  %v10325_v11 = vld [vmem:[#allocation74_spill] sm:$0xff] }
  0xf9   :  { %10316 = vst [vmem:[#allocation68_spill] sm:$0xff] %v4682_v54  ;;  %10317 = vst [vmem:[#allocation210_spill] sm:$0xff] %v4686_v55  ;;  %v4704_v54 = vmul.f32 %v4210_v5, %v10323_v60  ;;  %v4708_v55 = vmul.f32 %v4210_v5, %v10325_v11  ;;  %v10326_v62 = vld [vmem:[#allocation75_spill] sm:$0xff]  ;;  %v10327_v61 = vld [vmem:[#allocation76_spill] sm:$0xff]  ;;  %v4724_v60 = vmul.f32 %v4210_v5, %v10168_v15 }
  0xfa   :  { %10319 = vst [vmem:[#allocation70_spill] sm:$0xff] %v4690_v57  ;;  %10321 = vst [vmem:[#allocation71_spill] sm:$0xff] %v4696_v52  ;;  %v4712_v57 = vmul.f32 %v4210_v5, %v10326_v62  ;;  %v4716_v58 = vmul.f32 %v4210_v5, %v10327_v61  ;;  %v10328_v52 = vld [vmem:[#allocation77_spill] sm:$0xff]  ;;  %v4732_v62 = vmul.f32 %v4210_v5, %v10172_v12 }
  0xfb   :  { %10324 = vst [vmem:[#allocation72_spill] sm:$0xff] %v4704_v54  ;;  %v4720_v59 = vmul.f32 %v4210_v5, %v10328_v52  ;;  %v10329_v54 = vld [vmem:[#allocation79_spill] sm:$0xff]  ;;  %v4736_v61 = vmul.f32 %v4210_v5, %v10174_v13  ;;  %v4740_v52 = vmul.f32 %v4210_v5, %v10176_v14  ;;  %v4744_v15 = vmul.f32 %v4210_v5, %v3724_v1 }
  0xfc   :  { %v4728_v11 = vmul.f32 %v4210_v5, %v10329_v54  ;;  %v4748_v54 = vmul.f32 %v4210_v5, %v3727_v29  ;;  %v4752_v12 = vmul.f32 %v4210_v5, %v3730_v6  ;;  %v4756_v13 = vadd.f32 %v4692_v63, %v4262_v3 }
  0xfd   :  { %v4760_v14 = vadd.f32 %v4692_v63, %v4266_v9  ;;  %v4764_v1 = vadd.f32 %v4692_v63, %v4270_v8  ;;  %v4768_v29 = vadd.f32 %v4692_v63, %v4274_v0  ;;  %v4772_v6 = vadd.f32 %v4692_v63, %v4278_v2 }
  0xfe   :  { %10330 = vst [vmem:[#allocation73_spill] sm:$0xff] %v4756_v13  ;;  %v4776_v3 = vadd.f32 %v4692_v63, %v4282_v47  ;;  %v4780_v9 = vadd.f32 %v4692_v63, %v4286_v17  ;;  %v4784_v8 = vadd.f32 %v4692_v63, %v4290_v18  ;;  %v4788_v0 = vadd.f32 %v4692_v63, %v4294_v19  ;;  %v10389_v13 = vld [vmem:[#allocation110_spill] sm:$0xff] }
  0xff   :  { %10331 = vst [vmem:[#allocation74_spill] sm:$0xff] %v4760_v14  ;;  %10332 = vst [vmem:[#allocation75_spill] sm:$0xff] %v4764_v1  ;;  %v4792_v2 = vadd.f32 %v4692_v63, %v4298_v21  ;;  %v4796_v47 = vadd.f32 %v4692_v63, %v4302_v22  ;;  %v4800_v17 = vadd.f32 %v4692_v63, %v4306_v23  ;;  %v10385_v1 = vld [vmem:[#allocation108_spill] sm:$0xff]  ;;  %v10387_v14 = vld [vmem:[#allocation109_spill] sm:$0xff] }
 0x100   :  { %10333 = vst [vmem:[#allocation76_spill] sm:$0xff] %v4768_v29  ;;  %10334 = vst [vmem:[#allocation77_spill] sm:$0xff] %v4772_v6  ;;  %v4804_v18 = vadd.f32 %v4692_v63, %v4310_v24  ;;  %v4808_v19 = vadd.f32 %v4692_v63, %v4314_v25  ;;  %v4812_v21 = vadd.f32 %v4692_v63, %v4318_v26  ;;  %v10381_v6 = vld [vmem:[#allocation106_spill] sm:$0xff]  ;;  %v10383_v29 = vld [vmem:[#allocation107_spill] sm:$0xff] }
 0x101   :  { %10335 = vst [vmem:[#allocation79_spill] sm:$0xff] %v4776_v3  ;;  %10336 = vst [vmem:[#allocation211_spill] sm:$0xff] %v4780_v9  ;;  %v4816_v22 = vadd.f32 %v4692_v63, %v4322_v27  ;;  %v4820_v23 = vadd.f32 %v4692_v63, %v4326_v28  ;;  %v4824_v24 = vadd.f32 %v4692_v63, %v4330_v30  ;;  %v10379_v9 = vld [vmem:[#allocation104_spill] sm:$0xff]  ;;  %v10380_v3 = vld [vmem:[#allocation105_spill] sm:$0xff] }
 0x102   :  { %10337 = vst [vmem:[#allocation212_spill] sm:$0xff] %v4784_v8  ;;  %10338 = vst [vmem:[#allocation213_spill] sm:$0xff] %v4788_v0  ;;  %v4828_v25 = vadd.f32 %v4692_v63, %v4334_v31  ;;  %v4832_v26 = vadd.f32 %v4692_v63, %v4338_v32  ;;  %v4836_v27 = vadd.f32 %v4692_v63, %v4342_v33  ;;  %v10377_v0 = vld [vmem:[#allocation102_spill] sm:$0xff]  ;;  %v10378_v8 = vld [vmem:[#allocation103_spill] sm:$0xff] }
 0x103   :  { %10339 = vst [vmem:[#allocation214_spill] sm:$0xff] %v4792_v2  ;;  %10340 = vst [vmem:[#allocation215_spill] sm:$0xff] %v4796_v47  ;;  %v4840_v28 = vadd.f32 %v4692_v63, %v4346_v34  ;;  %v4844_v30 = vadd.f32 %v4692_v63, %v4350_v35  ;;  %v4848_v31 = vadd.f32 %v4692_v63, %v4354_v36  ;;  %v10375_v47 = vld [vmem:[#allocation100_spill] sm:$0xff]  ;;  %v10376_v2 = vld [vmem:[#allocation101_spill] sm:$0xff] }
 0x104   :  { %10341 = vst [vmem:[#allocation216_spill] sm:$0xff] %v4800_v17  ;;  %10342 = vst [vmem:[#allocation217_spill] sm:$0xff] %v4804_v18  ;;  %v4852_v32 = vadd.f32 %v4692_v63, %v4358_v37  ;;  %v4856_v33 = vmul.f32 %v4210_v5, %v3733_v10  ;;  %v4860_v34 = vmul.f32 %v4210_v5, %v3736_v16  ;;  %v10373_v18 = vld [vmem:[#allocation98_spill] sm:$0xff]  ;;  %v10374_v17 = vld [vmem:[#allocation99_spill] sm:$0xff] }
 0x105   :  { %10343 = vst [vmem:[#allocation218_spill] sm:$0xff] %v4808_v19  ;;  %10344 = vst [vmem:[#allocation219_spill] sm:$0xff] %v4812_v21  ;;  %v4864_v35 = vadd.f32 %v4692_v63, %v4362_v39  ;;  %v4868_v36 = vadd.f32 %v4692_v63, %v4370_v41  ;;  %v4872_v37 = vmul.f32 %v4210_v5, %v3739_v38  ;;  %v10371_v21 = vld [vmem:[#allocation96_spill] sm:$0xff]  ;;  %v10372_v19 = vld [vmem:[#allocation97_spill] sm:$0xff] }
 0x106   :  { %10345 = vst [vmem:[#allocation220_spill] sm:$0xff] %v4816_v22  ;;  %10346 = vst [vmem:[#allocation221_spill] sm:$0xff] %v4820_v23  ;;  %v4876_v10 = vmul.f32 %v4210_v5, %v3742_v56  ;;  %v4880_v16 = vmul.f32 %v4210_v5, %v3745_v4  ;;  %v4884_v39 = vmul.f32 %v4210_v5, %v3748_v7  ;;  %v10363_v5 = vld [vmem:[#allocation88_spill] sm:$0xff]  ;;  %v10369_v23 = vld [vmem:[#allocation94_spill] sm:$0xff] }
 0x107   :  { %10347 = vst [vmem:[#allocation222_spill] sm:$0xff] %v4824_v24  ;;  %10348 = vst [vmem:[#allocation223_spill] sm:$0xff] %v4828_v25  ;;  %v10367_v25 = vld [vmem:[#allocation92_spill] sm:$0xff]  ;;  %v10368_v24 = vld [vmem:[#allocation93_spill] sm:$0xff] }
 0x108   :  { %10349 = vst [vmem:[#allocation224_spill] sm:$0xff] %v4832_v26  ;;  %10350 = vst [vmem:[#allocation225_spill] sm:$0xff] %v4836_v27  ;;  %v10365_v27 = vld [vmem:[#allocation90_spill] sm:$0xff]  ;;  %v10366_v26 = vld [vmem:[#allocation91_spill] sm:$0xff] }
 0x109   :  { %10351 = vst [vmem:[#allocation226_spill] sm:$0xff] %v4840_v28  ;;  %10352 = vst [vmem:[#allocation227_spill] sm:$0xff] %v4844_v30  ;;  %v10362_v30 = vld [vmem:[#allocation87_spill] sm:$0xff]  ;;  %v10364_v28 = vld [vmem:[#allocation89_spill] sm:$0xff] }
 0x10a   :  { %10353 = vst [vmem:[#allocation228_spill] sm:$0xff] %v4848_v31  ;;  %10354 = vst [vmem:[#allocation229_spill] sm:$0xff] %v4852_v32  ;;  %v10360_v32 = vld [vmem:[#allocation85_spill] sm:$0xff]  ;;  %v10361_v31 = vld [vmem:[#allocation86_spill] sm:$0xff]  ;;  %v4904_v7 = vadd.f32 %v4692_v63, %v10362_v30  ;;  %v4924_v30 = vadd.f32 %v4692_v63, %v10367_v25  ;;  %v4944_v25 = vadd.f32 %v4692_v63, %v10372_v19 }
 0x10b   :  { %10355 = vst [vmem:[#allocation230_spill] sm:$0xff] %v4864_v35  ;;  %10356 = vst [vmem:[#allocation231_spill] sm:$0xff] %v4868_v36  ;;  %v10358_v35 = vld [vmem:[#allocation83_spill] sm:$0xff]  ;;  %v10359_v36 = vld [vmem:[#allocation84_spill] sm:$0xff]  ;;  %v4896_v56 = vadd.f32 %v4692_v63, %v10360_v32  ;;  %v4900_v4 = vadd.f32 %v4692_v63, %v10361_v31  ;;  %v4916_v32 = vadd.f32 %v4692_v63, %v10365_v27 }
 0x10c   :  { %10357 = vst [vmem:[#allocation232_spill] sm:$0xff] %v4884_v39  ;;  %v4888_v41 = vadd.f32 %v4692_v63, %v10358_v35  ;;  %v4892_v38 = vadd.f32 %v4692_v63, %v10359_v36  ;;  %v4908_v35 = vadd.f32 %v4692_v63, %v10363_v5  ;;  %v4912_v36 = vadd.f32 %v4692_v63, %v10364_v28  ;;  %v10370_v22 = vld [vmem:[#allocation95_spill] sm:$0xff] }
 0x10d   :  { %v4920_v31 = vadd.f32 %v4692_v63, %v10366_v26  ;;  %v4928_v5 = vadd.f32 %v4692_v63, %v10368_v24  ;;  %v4932_v28 = vadd.f32 %v4692_v63, %v10369_v23  ;;  %v4936_v27 = vadd.f32 %v4692_v63, %v10370_v22  ;;  %v10391_v39 = vld [vmem:[#allocation111_spill] sm:$0xff] }
 0x10e   :  { %v4940_v26 = vadd.f32 %v4692_v63, %v10371_v21  ;;  %v4948_v24 = vadd.f32 %v4692_v63, %v10373_v18  ;;  %v4952_v23 = vadd.f32 %v4692_v63, %v10374_v17  ;;  %v4956_v22 = vadd.f32 %v4692_v63, %v10375_v47 }
 0x10f   :  { %v4960_v21 = vadd.f32 %v4692_v63, %v10376_v2  ;;  %v4964_v19 = vadd.f32 %v4692_v63, %v10377_v0  ;;  %v4968_v18 = vadd.f32 %v4692_v63, %v10378_v8  ;;  %v4972_v17 = vadd.f32 %v4692_v63, %v10379_v9 }
 0x110   :  { %v4976_v47 = vadd.f32 %v4692_v63, %v10380_v3  ;;  %v4980_v2 = vadd.f32 %v4692_v63, %v10381_v6  ;;  %v4984_v0 = vadd.f32 %v4692_v63, %v10383_v29  ;;  %v4988_v8 = vadd.f32 %v4692_v63, %v10385_v1 }
 0x111   :  { %v4992_v9 = vadd.f32 %v4692_v63, %v10387_v14  ;;  %v4996_v3 = vadd.f32 %v4692_v63, %v10389_v13  ;;  %v5000_v6 = vadd.f32 %v4692_v63, %v10391_v39 }
 0x112   :  { %10382 = vst [vmem:[#allocation83_spill] sm:$0xff] %v4980_v2  ;;  %10384 = vst [vmem:[#allocation84_spill] sm:$0xff] %v4984_v0  ;;  %v10393_v2 = vld [vmem:[#allocation112_spill] sm:$0xff]  ;;  %v10395_v0 = vld [vmem:[#allocation113_spill] sm:$0xff] }
 0x113   :  { %10386 = vst [vmem:[#allocation85_spill] sm:$0xff] %v4988_v8  ;;  %10388 = vst [vmem:[#allocation86_spill] sm:$0xff] %v4992_v9  ;;  %v5004_v29 = vadd.f32 %v4692_v63, %v10393_v2  ;;  %v5008_v1 = vadd.f32 %v4692_v63, %v10395_v0  ;;  %v10397_v8 = vld [vmem:[#allocation114_spill] sm:$0xff]  ;;  %v10399_v9 = vld [vmem:[#allocation115_spill] sm:$0xff] }
 0x114   :  { %10390 = vst [vmem:[#allocation87_spill] sm:$0xff] %v4996_v3  ;;  %10392 = vst [vmem:[#allocation88_spill] sm:$0xff] %v5000_v6  ;;  %v5012_v14 = vadd.f32 %v4692_v63, %v10397_v8  ;;  %v5016_v13 = vadd.f32 %v4692_v63, %v10399_v9  ;;  %v10401_v3 = vld [vmem:[#allocation116_spill] sm:$0xff]  ;;  %v10403_v6 = vld [vmem:[#allocation117_spill] sm:$0xff] }
 0x115   :  { %10394 = vst [vmem:[#allocation89_spill] sm:$0xff] %v5004_v29  ;;  %10396 = vst [vmem:[#allocation90_spill] sm:$0xff] %v5008_v1  ;;  %v5020_v39 = vadd.f32 %v4692_v63, %v10401_v3  ;;  %v5024_v2 = vadd.f32 %v4692_v63, %v10403_v6  ;;  %v10405_v29 = vld [vmem:[#allocation118_spill] sm:$0xff]  ;;  %v10407_v1 = vld [vmem:[#allocation119_spill] sm:$0xff] }
 0x116   :  { %10398 = vst [vmem:[#allocation91_spill] sm:$0xff] %v5012_v14  ;;  %10400 = vst [vmem:[#allocation92_spill] sm:$0xff] %v5016_v13  ;;  %v5028_v0 = vadd.f32 %v4692_v63, %v10405_v29  ;;  %v5032_v8 = vadd.f32 %v4692_v63, %v10407_v1  ;;  %v10409_v14 = vld [vmem:[#allocation120_spill] sm:$0xff]  ;;  %v10411_v13 = vld [vmem:[#allocation121_spill] sm:$0xff] }
 0x117   :  { %10402 = vst [vmem:[#allocation93_spill] sm:$0xff] %v5020_v39  ;;  %10404 = vst [vmem:[#allocation94_spill] sm:$0xff] %v5024_v2  ;;  %v5036_v9 = vadd.f32 %v4692_v63, %v10409_v14  ;;  %v5040_v3 = vadd.f32 %v4692_v63, %v10411_v13  ;;  %v10413_v39 = vld [vmem:[#allocation122_spill] sm:$0xff]  ;;  %v10415_v2 = vld [vmem:[#allocation123_spill] sm:$0xff] }
 0x118   :  { %10406 = vst [vmem:[#allocation95_spill] sm:$0xff] %v5028_v0  ;;  %10408 = vst [vmem:[#allocation96_spill] sm:$0xff] %v5032_v8  ;;  %v5044_v6 = vadd.f32 %v4692_v63, %v10413_v39  ;;  %v5048_v29 = vadd.f32 %v4692_v63, %v10415_v2  ;;  %v10417_v0 = vld [vmem:[#allocation124_spill] sm:$0xff]  ;;  %v10419_v8 = vld [vmem:[#allocation125_spill] sm:$0xff] }
 0x119   :  { %10410 = vst [vmem:[#allocation97_spill] sm:$0xff] %v5036_v9  ;;  %10412 = vst [vmem:[#allocation98_spill] sm:$0xff] %v5040_v3  ;;  %v5052_v1 = vadd.f32 %v4692_v63, %v10417_v0  ;;  %v5056_v14 = vadd.f32 %v4692_v63, %v10419_v8  ;;  %v10421_v9 = vld [vmem:[#allocation126_spill] sm:$0xff]  ;;  %v10423_v3 = vld [vmem:[#allocation127_spill] sm:$0xff] }
 0x11a   :  { %10414 = vst [vmem:[#allocation99_spill] sm:$0xff] %v5044_v6  ;;  %10416 = vst [vmem:[#allocation100_spill] sm:$0xff] %v5048_v29  ;;  %v5060_v13 = vadd.f32 %v4692_v63, %v10421_v9  ;;  %v5064_v39 = vadd.f32 %v4692_v63, %v10423_v3  ;;  %v10425_v6 = vld [vmem:[#allocation128_spill] sm:$0xff]  ;;  %v10427_v29 = vld [vmem:[#allocation129_spill] sm:$0xff] }
 0x11b   :  { %10418 = vst [vmem:[#allocation101_spill] sm:$0xff] %v5052_v1  ;;  %10420 = vst [vmem:[#allocation102_spill] sm:$0xff] %v5056_v14  ;;  %v5068_v2 = vadd.f32 %v4692_v63, %v10425_v6  ;;  %v5072_v0 = vadd.f32 %v4692_v63, %v10427_v29  ;;  %v10429_v1 = vld [vmem:[#allocation130_spill] sm:$0xff]  ;;  %v10431_v14 = vld [vmem:[#allocation131_spill] sm:$0xff] }
 0x11c   :  { %10422 = vst [vmem:[#allocation103_spill] sm:$0xff] %v5060_v13  ;;  %10424 = vst [vmem:[#allocation104_spill] sm:$0xff] %v5064_v39  ;;  %v5076_v8 = vadd.f32 %v4692_v63, %v10429_v1  ;;  %v5080_v9 = vadd.f32 %v4692_v63, %v10431_v14  ;;  %v10433_v13 = vld [vmem:[#allocation132_spill] sm:$0xff]  ;;  %v10435_v39 = vld [vmem:[#allocation133_spill] sm:$0xff] }
 0x11d   :  { %10426 = vst [vmem:[#allocation105_spill] sm:$0xff] %v5068_v2  ;;  %10428 = vst [vmem:[#allocation106_spill] sm:$0xff] %v5072_v0  ;;  %v5084_v3 = vadd.f32 %v4692_v63, %v10433_v13  ;;  %v5088_v6 = vadd.f32 %v4692_v63, %v10435_v39  ;;  %v10437_v2 = vld [vmem:[#allocation134_spill] sm:$0xff]  ;;  %v10439_v0 = vld [vmem:[#allocation135_spill] sm:$0xff] }
 0x11e   :  { %10430 = vst [vmem:[#allocation107_spill] sm:$0xff] %v5076_v8  ;;  %10432 = vst [vmem:[#allocation108_spill] sm:$0xff] %v5080_v9  ;;  %v5092_v29 = vadd.f32 %v4692_v63, %v10437_v2  ;;  %v5096_v1 = vadd.f32 %v4692_v63, %v10439_v0  ;;  %v10441_v8 = vld [vmem:[#allocation136_spill] sm:$0xff]  ;;  %v10443_v9 = vld [vmem:[#allocation137_spill] sm:$0xff] }
 0x11f   :  { %10434 = vst [vmem:[#allocation109_spill] sm:$0xff] %v5084_v3  ;;  %10436 = vst [vmem:[#allocation110_spill] sm:$0xff] %v5088_v6  ;;  %v5100_v14 = vadd.f32 %v4692_v63, %v10441_v8  ;;  %v5104_v13 = vadd.f32 %v4692_v63, %v10443_v9  ;;  %v10445_v3 = vld [vmem:[#allocation138_spill] sm:$0xff]  ;;  %v10447_v6 = vld [vmem:[#allocation139_spill] sm:$0xff] }
 0x120   :  { %10438 = vst [vmem:[#allocation111_spill] sm:$0xff] %v5092_v29  ;;  %10440 = vst [vmem:[#allocation112_spill] sm:$0xff] %v5096_v1  ;;  %v5108_v39 = vadd.f32 %v4692_v63, %v10445_v3  ;;  %v5112_v2 = vadd.f32 %v4692_v63, %v10447_v6  ;;  %v10449_v29 = vld [vmem:[#allocation140_spill] sm:$0xff]  ;;  %v10451_v1 = vld [vmem:[#allocation141_spill] sm:$0xff] }
 0x121   :  { %10442 = vst [vmem:[#allocation113_spill] sm:$0xff] %v5100_v14  ;;  %10444 = vst [vmem:[#allocation114_spill] sm:$0xff] %v5104_v13  ;;  %v5116_v0 = vadd.f32 %v4692_v63, %v10449_v29  ;;  %v5120_v8 = vadd.f32 %v4692_v63, %v10451_v1  ;;  %v10453_v14 = vld [vmem:[#allocation142_spill] sm:$0xff]  ;;  %v10455_v13 = vld [vmem:[#allocation143_spill] sm:$0xff] }
 0x122   :  { %10446 = vst [vmem:[#allocation115_spill] sm:$0xff] %v5108_v39  ;;  %10448 = vst [vmem:[#allocation116_spill] sm:$0xff] %v5112_v2  ;;  %v5124_v9 = vadd.f32 %v4692_v63, %v10453_v14  ;;  %v5128_v3 = vadd.f32 %v4692_v63, %v10455_v13  ;;  %v10457_v39 = vld [vmem:[#allocation144_spill] sm:$0xff]  ;;  %v10459_v2 = vld [vmem:[#allocation145_spill] sm:$0xff] }
 0x123   :  { %10450 = vst [vmem:[#allocation117_spill] sm:$0xff] %v5116_v0  ;;  %10452 = vst [vmem:[#allocation118_spill] sm:$0xff] %v5120_v8  ;;  %v5132_v6 = vadd.f32 %v4692_v63, %v10457_v39  ;;  %v5136_v29 = vadd.f32 %v4692_v63, %v10459_v2  ;;  %v10461_v0 = vld [vmem:[#allocation146_spill] sm:$0xff]  ;;  %v10463_v8 = vld [vmem:[#allocation147_spill] sm:$0xff] }
 0x124   :  { %10454 = vst [vmem:[#allocation119_spill] sm:$0xff] %v5124_v9  ;;  %10456 = vst [vmem:[#allocation120_spill] sm:$0xff] %v5128_v3  ;;  %v5140_v1 = vadd.f32 %v4692_v63, %v10461_v0  ;;  %v5144_v14 = vadd.f32 %v4692_v63, %v10463_v8  ;;  %v10465_v9 = vld [vmem:[#allocation148_spill] sm:$0xff]  ;;  %v10467_v3 = vld [vmem:[#allocation149_spill] sm:$0xff] }
 0x125   :  { %10458 = vst [vmem:[#allocation121_spill] sm:$0xff] %v5132_v6  ;;  %10460 = vst [vmem:[#allocation122_spill] sm:$0xff] %v5136_v29  ;;  %v5148_v13 = vadd.f32 %v4692_v63, %v10465_v9  ;;  %v5152_v39 = vadd.f32 %v4692_v63, %v10467_v3  ;;  %v10469_v6 = vld [vmem:[#allocation150_spill] sm:$0xff]  ;;  %v10471_v29 = vld [vmem:[#allocation151_spill] sm:$0xff] }
 0x126   :  { %10462 = vst [vmem:[#allocation123_spill] sm:$0xff] %v5140_v1  ;;  %10464 = vst [vmem:[#allocation124_spill] sm:$0xff] %v5144_v14  ;;  %v5156_v2 = vadd.f32 %v4692_v63, %v10469_v6  ;;  %v5160_v0 = vadd.f32 %v4692_v63, %v10471_v29  ;;  %v10473_v1 = vld [vmem:[#allocation152_spill] sm:$0xff]  ;;  %v10475_v14 = vld [vmem:[#allocation153_spill] sm:$0xff] }
 0x127   :  { %10466 = vst [vmem:[#allocation125_spill] sm:$0xff] %v5148_v13  ;;  %10468 = vst [vmem:[#allocation126_spill] sm:$0xff] %v5152_v39  ;;  %v5164_v8 = vadd.f32 %v4692_v63, %v10473_v1  ;;  %v5168_v9 = vadd.f32 %v4692_v63, %v10475_v14  ;;  %v10477_v13 = vld [vmem:[#allocation154_spill] sm:$0xff]  ;;  %v10479_v39 = vld [vmem:[#allocation155_spill] sm:$0xff] }
 0x128   :  { %10470 = vst [vmem:[#allocation127_spill] sm:$0xff] %v5156_v2  ;;  %10472 = vst [vmem:[#allocation128_spill] sm:$0xff] %v5160_v0  ;;  %v5172_v3 = vadd.f32 %v4692_v63, %v10477_v13  ;;  %v5176_v6 = vadd.f32 %v4692_v63, %v10479_v39  ;;  %v10481_v2 = vld [vmem:[#allocation156_spill] sm:$0xff]  ;;  %v10483_v0 = vld [vmem:[#allocation157_spill] sm:$0xff] }
 0x129   :  { %10474 = vst [vmem:[#allocation129_spill] sm:$0xff] %v5164_v8  ;;  %10476 = vst [vmem:[#allocation130_spill] sm:$0xff] %v5168_v9  ;;  %v5180_v29 = vadd.f32 %v4692_v63, %v10481_v2  ;;  %v5184_v1 = vadd.f32 %v4692_v63, %v10483_v0  ;;  %v10485_v8 = vld [vmem:[#allocation158_spill] sm:$0xff]  ;;  %v10487_v9 = vld [vmem:[#allocation159_spill] sm:$0xff] }
 0x12a   :  { %10478 = vst [vmem:[#allocation131_spill] sm:$0xff] %v5172_v3  ;;  %10480 = vst [vmem:[#allocation132_spill] sm:$0xff] %v5176_v6  ;;  %v5188_v14 = vadd.f32 %v4692_v63, %v10485_v8  ;;  %v5192_v13 = vadd.f32 %v4692_v63, %v10487_v9  ;;  %v10489_v3 = vld [vmem:[#allocation160_spill] sm:$0xff]  ;;  %v10491_v6 = vld [vmem:[#allocation161_spill] sm:$0xff] }
 0x12b   :  { %10482 = vst [vmem:[#allocation133_spill] sm:$0xff] %v5180_v29  ;;  %10484 = vst [vmem:[#allocation134_spill] sm:$0xff] %v5184_v1  ;;  %v5196_v39 = vadd.f32 %v4692_v63, %v10489_v3  ;;  %v5200_v2 = vadd.f32 %v4692_v63, %v10491_v6  ;;  %v10493_v29 = vld [vmem:[#allocation162_spill] sm:$0xff]  ;;  %v10495_v1 = vld [vmem:[#allocation163_spill] sm:$0xff] }
 0x12c   :  { %10486 = vst [vmem:[#allocation135_spill] sm:$0xff] %v5188_v14  ;;  %10488 = vst [vmem:[#allocation136_spill] sm:$0xff] %v5192_v13  ;;  %v5204_v0 = vadd.f32 %v4692_v63, %v10493_v29  ;;  %v5208_v8 = vadd.f32 %v4692_v63, %v10495_v1  ;;  %v10497_v14 = vld [vmem:[#allocation164_spill] sm:$0xff]  ;;  %v10499_v13 = vld [vmem:[#allocation165_spill] sm:$0xff] }
 0x12d   :  { %10490 = vst [vmem:[#allocation137_spill] sm:$0xff] %v5196_v39  ;;  %10492 = vst [vmem:[#allocation138_spill] sm:$0xff] %v5200_v2  ;;  %v5212_v9 = vadd.f32 %v4692_v63, %v10497_v14  ;;  %v5216_v3 = vadd.f32 %v4692_v63, %v10499_v13  ;;  %v10501_v39 = vld [vmem:[#allocation166_spill] sm:$0xff]  ;;  %v10503_v2 = vld [vmem:[#allocation167_spill] sm:$0xff] }
 0x12e   :  { %10494 = vst [vmem:[#allocation139_spill] sm:$0xff] %v5204_v0  ;;  %10496 = vst [vmem:[#allocation140_spill] sm:$0xff] %v5208_v8  ;;  %v5220_v6 = vadd.f32 %v4692_v63, %v10501_v39  ;;  %v5224_v29 = vadd.f32 %v4692_v63, %v10503_v2  ;;  %v10505_v0 = vld [vmem:[#allocation168_spill] sm:$0xff]  ;;  %v10507_v8 = vld [vmem:[#allocation169_spill] sm:$0xff] }
 0x12f   :  { %10498 = vst [vmem:[#allocation141_spill] sm:$0xff] %v5212_v9  ;;  %10500 = vst [vmem:[#allocation142_spill] sm:$0xff] %v5216_v3  ;;  %v5228_v1 = vadd.f32 %v4692_v63, %v10505_v0  ;;  %v5232_v14 = vadd.f32 %v4692_v63, %v10507_v8  ;;  %v10509_v9 = vld [vmem:[#allocation170_spill] sm:$0xff]  ;;  %v10511_v3 = vld [vmem:[#allocation171_spill] sm:$0xff] }
 0x130   :  { %10502 = vst [vmem:[#allocation143_spill] sm:$0xff] %v5220_v6  ;;  %10504 = vst [vmem:[#allocation144_spill] sm:$0xff] %v5224_v29  ;;  %v5236_v13 = vadd.f32 %v4692_v63, %v10509_v9  ;;  %v5240_v39 = vadd.f32 %v4692_v63, %v10511_v3  ;;  %v10513_v6 = vld [vmem:[#allocation172_spill] sm:$0xff]  ;;  %v10515_v29 = vld [vmem:[#allocation173_spill] sm:$0xff] }
 0x131   :  { %10506 = vst [vmem:[#allocation145_spill] sm:$0xff] %v5228_v1  ;;  %10508 = vst [vmem:[#allocation146_spill] sm:$0xff] %v5232_v14  ;;  %v5244_v2 = vadd.f32 %v4692_v63, %v10513_v6  ;;  %v5248_v0 = vadd.f32 %v4692_v63, %v10515_v29  ;;  %v10517_v1 = vld [vmem:[#allocation174_spill] sm:$0xff]  ;;  %v10519_v14 = vld [vmem:[#allocation175_spill] sm:$0xff] }
 0x132   :  { %10510 = vst [vmem:[#allocation147_spill] sm:$0xff] %v5236_v13  ;;  %10512 = vst [vmem:[#allocation148_spill] sm:$0xff] %v5240_v39  ;;  %v5252_v8 = vadd.f32 %v4692_v63, %v10517_v1  ;;  %v5256_v9 = vadd.f32 %v4692_v63, %v10519_v14  ;;  %v10521_v13 = vld [vmem:[#allocation176_spill] sm:$0xff]  ;;  %v10523_v39 = vld [vmem:[#allocation177_spill] sm:$0xff] }
 0x133   :  { %10514 = vst [vmem:[#allocation149_spill] sm:$0xff] %v5244_v2  ;;  %10516 = vst [vmem:[#allocation150_spill] sm:$0xff] %v5248_v0  ;;  %v5260_v3 = vadd.f32 %v4692_v63, %v10521_v13  ;;  %v5264_v6 = vadd.f32 %v4692_v63, %v10523_v39  ;;  %v10525_v2 = vld [vmem:[#allocation178_spill] sm:$0xff]  ;;  %v10527_v0 = vld [vmem:[#allocation179_spill] sm:$0xff] }
 0x134   :  { %10518 = vst [vmem:[#allocation151_spill] sm:$0xff] %v5252_v8  ;;  %10520 = vst [vmem:[#allocation152_spill] sm:$0xff] %v5256_v9  ;;  %v5268_v29 = vadd.f32 %v4692_v63, %v10525_v2  ;;  %v5272_v1 = vadd.f32 %v4692_v63, %v10527_v0  ;;  %v10529_v8 = vld [vmem:[#allocation180_spill] sm:$0xff]  ;;  %v10531_v9 = vld [vmem:[#allocation181_spill] sm:$0xff] }
 0x135   :  { %10522 = vst [vmem:[#allocation153_spill] sm:$0xff] %v5260_v3  ;;  %10524 = vst [vmem:[#allocation154_spill] sm:$0xff] %v5264_v6  ;;  %v5276_v14 = vadd.f32 %v4692_v63, %v10529_v8  ;;  %v5280_v13 = vadd.f32 %v4692_v63, %v10531_v9  ;;  %v10533_v3 = vld [vmem:[#allocation182_spill] sm:$0xff]  ;;  %v10535_v6 = vld [vmem:[#allocation183_spill] sm:$0xff] }
 0x136   :  { %10526 = vst [vmem:[#allocation155_spill] sm:$0xff] %v5268_v29  ;;  %10528 = vst [vmem:[#allocation156_spill] sm:$0xff] %v5272_v1  ;;  %v5284_v39 = vadd.f32 %v4692_v63, %v10533_v3  ;;  %v5288_v2 = vadd.f32 %v4692_v63, %v10535_v6  ;;  %v10537_v29 = vld [vmem:[#allocation184_spill] sm:$0xff]  ;;  %v10539_v1 = vld [vmem:[#allocation185_spill] sm:$0xff] }
 0x137   :  { %10530 = vst [vmem:[#allocation157_spill] sm:$0xff] %v5276_v14  ;;  %10532 = vst [vmem:[#allocation158_spill] sm:$0xff] %v5280_v13  ;;  %v5292_v0 = vadd.f32 %v4692_v63, %v10537_v29  ;;  %v5296_v8 = vadd.f32 %v4692_v63, %v10539_v1  ;;  %v10541_v14 = vld [vmem:[#allocation186_spill] sm:$0xff]  ;;  %v10543_v13 = vld [vmem:[#allocation187_spill] sm:$0xff] }
 0x138   :  { %10534 = vst [vmem:[#allocation159_spill] sm:$0xff] %v5284_v39  ;;  %10536 = vst [vmem:[#allocation160_spill] sm:$0xff] %v5288_v2  ;;  %v5300_v9 = vadd.f32 %v4692_v63, %v10541_v14  ;;  %v5304_v3 = vadd.f32 %v4692_v63, %v10543_v13  ;;  %v10545_v39 = vld [vmem:[#allocation69_spill] sm:$0xff]  ;;  %v10547_v2 = vld [vmem:[#allocation188_spill] sm:$0xff] }
 0x139   :  { %10538 = vst [vmem:[#allocation161_spill] sm:$0xff] %v5292_v0  ;;  %10540 = vst [vmem:[#allocation162_spill] sm:$0xff] %v5296_v8  ;;  %v5308_v6 = vadd.f32 %v4692_v63, %v10545_v39  ;;  %v5312_v29 = vadd.f32 %v4692_v63, %v10547_v2  ;;  %v10549_v0 = vld [vmem:[#allocation189_spill] sm:$0xff]  ;;  %v10551_v8 = vld [vmem:[#allocation190_spill] sm:$0xff] }
 0x13a   :  { %10542 = vst [vmem:[#allocation163_spill] sm:$0xff] %v5300_v9  ;;  %10544 = vst [vmem:[#allocation164_spill] sm:$0xff] %v5304_v3  ;;  %v5316_v1 = vadd.f32 %v4692_v63, %v10549_v0  ;;  %v5320_v14 = vadd.f32 %v4692_v63, %v10551_v8  ;;  %v10553_v9 = vld [vmem:[#allocation191_spill] sm:$0xff]  ;;  %v10555_v3 = vld [vmem:[#allocation192_spill] sm:$0xff] }
 0x13b   :  { %10546 = vst [vmem:[#allocation165_spill] sm:$0xff] %v5308_v6  ;;  %10548 = vst [vmem:[#allocation166_spill] sm:$0xff] %v5312_v29  ;;  %v5324_v13 = vadd.f32 %v4692_v63, %v10553_v9  ;;  %v5328_v39 = vadd.f32 %v4692_v63, %v10555_v3  ;;  %v10557_v6 = vld [vmem:[#allocation193_spill] sm:$0xff]  ;;  %v10559_v29 = vld [vmem:[#allocation194_spill] sm:$0xff] }
 0x13c   :  { %10550 = vst [vmem:[#allocation167_spill] sm:$0xff] %v5316_v1  ;;  %10552 = vst [vmem:[#allocation168_spill] sm:$0xff] %v5320_v14  ;;  %v5332_v2 = vadd.f32 %v4692_v63, %v10557_v6  ;;  %v5336_v0 = vadd.f32 %v4692_v63, %v10559_v29  ;;  %v10561_v1 = vld [vmem:[#allocation195_spill] sm:$0xff]  ;;  %v10563_v14 = vld [vmem:[#allocation78_spill] sm:$0xff] }
 0x13d   :  { %10554 = vst [vmem:[#allocation169_spill] sm:$0xff] %v5324_v13  ;;  %10556 = vst [vmem:[#allocation170_spill] sm:$0xff] %v5328_v39  ;;  %v5340_v8 = vadd.f32 %v4692_v63, %v10561_v1  ;;  %v5344_v9 = vadd.f32 %v4692_v63, %v10563_v14  ;;  %v10565_v13 = vld [vmem:[#allocation196_spill] sm:$0xff] }
 0x13e   :  { %10558 = vst [vmem:[#allocation171_spill] sm:$0xff] %v5332_v2  ;;  %10560 = vst [vmem:[#allocation172_spill] sm:$0xff] %v5336_v0  ;;  %v5348_v3 = vadd.f32 %v4692_v63, %v10565_v13  ;;  %v10567_v39 = vld [vmem:[#allocation80_spill] sm:$0xff]  ;;  %v10569_v2 = vld [vmem:[#allocation81_spill] sm:$0xff] }
 0x13f   :  { %10562 = vst [vmem:[#allocation173_spill] sm:$0xff] %v5340_v8  ;;  %10564 = vst [vmem:[#allocation174_spill] sm:$0xff] %v5344_v9  ;;  %v5352_v6 = vadd.f32 %v4692_v63, %v10567_v39  ;;  %v5356_v29 = vadd.f32 %v4692_v63, %v10569_v2  ;;  %v10571_v0 = vld [vmem:[#allocation82_spill] sm:$0xff]  ;;  %v10573_v8 = vld [vmem:[#allocation197_spill] sm:$0xff] }
 0x140   :  { %10566 = vst [vmem:[#allocation175_spill] sm:$0xff] %v5348_v3  ;;  %v5360_v1 = vadd.f32 %v4692_v63, %v10571_v0  ;;  %v5364_v14 = vadd.f32 %v4692_v63, %v10573_v8  ;;  %v10575_v9 = vld [vmem:[#allocation198_spill] sm:$0xff]  ;;  %v10577_v3 = vld [vmem:[#allocation199_spill] sm:$0xff] }
 0x141   :  { %10568 = vst [vmem:[#allocation176_spill] sm:$0xff] %v5352_v6  ;;  %10570 = vst [vmem:[#allocation177_spill] sm:$0xff] %v5356_v29  ;;  %v5368_v13 = vadd.f32 %v4692_v63, %v10575_v9  ;;  %v5372_v39 = vadd.f32 %v4692_v63, %v10577_v3  ;;  %v10578_v6 = vld [vmem:[#allocation200_spill] sm:$0xff]  ;;  %v10579_v29 = vld [vmem:[#allocation201_spill] sm:$0xff]  ;;  %v5392_v3 = vadd.f32 %v4692_v63, %v4258_v20 }
 0x142   :  { %10572 = vst [vmem:[#allocation178_spill] sm:$0xff] %v5360_v1  ;;  %10574 = vst [vmem:[#allocation179_spill] sm:$0xff] %v5364_v14  ;;  %v5376_v2 = vadd.f32 %v4692_v63, %v10578_v6  ;;  %v5380_v0 = vadd.f32 %v4692_v63, %v10579_v29  ;;  %v10581_v1 = vld [vmem:[#allocation202_spill] sm:$0xff]  ;;  %v10583_v14 = vld [vmem:[#allocation203_spill] sm:$0xff]  ;;  %v5396_v6 = vadd.f32 %v4692_v63, %v4366_v40 }
 0x143   :  { %10576 = vst [vmem:[#allocation180_spill] sm:$0xff] %v5368_v13  ;;  %v5384_v8 = vadd.f32 %v4692_v63, %v10581_v1  ;;  %v5388_v9 = vadd.f32 %v4692_v63, %v10583_v14  ;;  %v5400_v29 = vadd.f32 %v4692_v63, %v4374_v42  ;;  %v5404_v1 = vadd.f32 %v4692_v63, %v4378_v43 }
 0x144   :  { %10580 = vst [vmem:[#allocation181_spill] sm:$0xff] %v5380_v0  ;;  %v5408_v14 = vadd.f32 %v4692_v63, %v4382_v44  ;;  %v5412_v20 = vadd.f32 %v4692_v63, %v4386_v45  ;;  %v5416_v40 = vadd.f32 %v4692_v63, %v4390_v46  ;;  %v5420_v42 = vadd.f32 %v4692_v63, %v4394_v48 }
 0x145   :  { %10582 = vst [vmem:[#allocation182_spill] sm:$0xff] %v5384_v8  ;;  %10584 = vst [vmem:[#allocation183_spill] sm:$0xff] %v5388_v9  ;;  %v5424_v43 = vadd.f32 %v4692_v63, %v4398_v49  ;;  %v5428_v44 = vadd.f32 %v4692_v63, %v4402_v50  ;;  %v5432_v45 = vadd.f32 %v4692_v63, %v4406_v51 }
 0x146   :  { %10585 = vst [vmem:[#allocation184_spill] sm:$0xff] %v5412_v20  ;;  %10586 = vst [vmem:[#allocation185_spill] sm:$0xff] %v5416_v40  ;;  %v10591_v20 = vld [vmem:[#allocation204_spill] sm:$0xff]  ;;  %v10593_v40 = vld [vmem:[#allocation205_spill] sm:$0xff] }
 0x147   :  { %10587 = vst [vmem:[#allocation186_spill] sm:$0xff] %v5420_v42  ;;  %10588 = vst [vmem:[#allocation187_spill] sm:$0xff] %v5424_v43  ;;  %v5436_v46 = vadd.f32 %v4692_v63, %v10591_v20  ;;  %v5440_v48 = vadd.f32 %v4692_v63, %v10593_v40  ;;  %v10595_v42 = vld [vmem:[#allocation206_spill] sm:$0xff]  ;;  %v10597_v43 = vld [vmem:[#allocation207_spill] sm:$0xff] }
 0x148   :  { %10589 = vst [vmem:[#allocation69_spill] sm:$0xff] %v5428_v44  ;;  %10590 = vst [vmem:[#allocation188_spill] sm:$0xff] %v5432_v45  ;;  %v5444_v49 = vadd.f32 %v4692_v63, %v10595_v42  ;;  %v5448_v50 = vadd.f32 %v4692_v63, %v10597_v43  ;;  %v10599_v44 = vld [vmem:[#allocation208_spill] sm:$0xff]  ;;  %v10601_v45 = vld [vmem:[#allocation209_spill] sm:$0xff] }
 0x149   :  { %10592 = vst [vmem:[#allocation189_spill] sm:$0xff] %v5436_v46  ;;  %10594 = vst [vmem:[#allocation190_spill] sm:$0xff] %v5440_v48  ;;  %v5452_v51 = vadd.f32 %v4692_v63, %v10599_v44  ;;  %v5456_v20 = vadd.f32 %v4692_v63, %v10601_v45  ;;  %v10603_v46 = vld [vmem:[#allocation6_spill] sm:$0xff]  ;;  %v10605_v48 = vld [vmem:[#allocation7_spill] sm:$0xff] }
 0x14a   :  { %10596 = vst [vmem:[#allocation191_spill] sm:$0xff] %v5444_v49  ;;  %10598 = vst [vmem:[#allocation192_spill] sm:$0xff] %v5448_v50  ;;  %v5460_v40 = vadd.f32 %v4692_v63, %v10603_v46  ;;  %v5464_v42 = vadd.f32 %v4692_v63, %v10605_v48  ;;  %v10607_v49 = vld [vmem:[#allocation8_spill] sm:$0xff]  ;;  %v10609_v50 = vld [vmem:[#allocation9_spill] sm:$0xff] }
 0x14b   :  { %10600 = vst [vmem:[#allocation193_spill] sm:$0xff] %v5452_v51  ;;  %10602 = vst [vmem:[#allocation194_spill] sm:$0xff] %v5456_v20  ;;  %v5468_v43 = vadd.f32 %v4692_v63, %v10607_v49  ;;  %v5472_v44 = vadd.f32 %v4692_v63, %v10609_v50  ;;  %v10611_v51 = vld [vmem:[#allocation10_spill] sm:$0xff]  ;;  %v10613_v20 = vld [vmem:[#allocation11_spill] sm:$0xff] }
 0x14c   :  { %10604 = vst [vmem:[#allocation195_spill] sm:$0xff] %v5460_v40  ;;  %10606 = vst [vmem:[#allocation78_spill] sm:$0xff] %v5464_v42  ;;  %v5476_v45 = vadd.f32 %v4692_v63, %v10611_v51  ;;  %v5480_v46 = vadd.f32 %v4692_v63, %v10613_v20  ;;  %v10615_v40 = vld [vmem:[#allocation12_spill] sm:$0xff]  ;;  %v10617_v42 = vld [vmem:[#allocation13_spill] sm:$0xff] }
 0x14d   :  { %10608 = vst [vmem:[#allocation196_spill] sm:$0xff] %v5468_v43  ;;  %10610 = vst [vmem:[#allocation80_spill] sm:$0xff] %v5472_v44  ;;  %v5484_v48 = vadd.f32 %v4692_v63, %v10615_v40  ;;  %v5488_v49 = vadd.f32 %v4692_v63, %v10617_v42  ;;  %v10619_v43 = vld [vmem:[#allocation14_spill] sm:$0xff]  ;;  %v10621_v44 = vld [vmem:[#allocation15_spill] sm:$0xff] }
 0x14e   :  { %10612 = vst [vmem:[#allocation81_spill] sm:$0xff] %v5476_v45  ;;  %10614 = vst [vmem:[#allocation82_spill] sm:$0xff] %v5480_v46  ;;  %v5492_v50 = vadd.f32 %v4692_v63, %v10619_v43  ;;  %v5496_v51 = vadd.f32 %v4692_v63, %v10621_v44  ;;  %v10623_v45 = vld [vmem:[#allocation16_spill] sm:$0xff]  ;;  %v10625_v46 = vld [vmem:[#allocation17_spill] sm:$0xff] }
 0x14f   :  { %10616 = vst [vmem:[#allocation197_spill] sm:$0xff] %v5484_v48  ;;  %10618 = vst [vmem:[#allocation198_spill] sm:$0xff] %v5488_v49  ;;  %v5500_v20 = vadd.f32 %v4692_v63, %v10623_v45  ;;  %v5504_v40 = vadd.f32 %v4692_v63, %v10625_v46  ;;  %v10627_v48 = vld [vmem:[#allocation18_spill] sm:$0xff]  ;;  %v10629_v49 = vld [vmem:[#allocation19_spill] sm:$0xff] }
 0x150   :  { %10620 = vst [vmem:[#allocation199_spill] sm:$0xff] %v5492_v50  ;;  %10622 = vst [vmem:[#allocation200_spill] sm:$0xff] %v5496_v51  ;;  %v5508_v42 = vadd.f32 %v4692_v63, %v10627_v48  ;;  %v5512_v43 = vadd.f32 %v4692_v63, %v10629_v49  ;;  %v10631_v50 = vld [vmem:[#allocation20_spill] sm:$0xff]  ;;  %v10633_v51 = vld [vmem:[#allocation21_spill] sm:$0xff] }
 0x151   :  { %10624 = vst [vmem:[#allocation201_spill] sm:$0xff] %v5500_v20  ;;  %10626 = vst [vmem:[#allocation202_spill] sm:$0xff] %v5504_v40  ;;  %v5516_v44 = vadd.f32 %v4692_v63, %v10631_v50  ;;  %v5520_v45 = vadd.f32 %v4692_v63, %v10633_v51  ;;  %v10635_v20 = vld [vmem:[#allocation22_spill] sm:$0xff]  ;;  %v10637_v40 = vld [vmem:[#allocation23_spill] sm:$0xff] }
 0x152   :  { %10628 = vst [vmem:[#allocation203_spill] sm:$0xff] %v5508_v42  ;;  %10630 = vst [vmem:[#allocation204_spill] sm:$0xff] %v5512_v43  ;;  %v5524_v46 = vadd.f32 %v4692_v63, %v10635_v20  ;;  %v5528_v48 = vadd.f32 %v4692_v63, %v10637_v40  ;;  %v10639_v42 = vld [vmem:[#allocation24_spill] sm:$0xff]  ;;  %v10641_v43 = vld [vmem:[#allocation25_spill] sm:$0xff] }
 0x153   :  { %10632 = vst [vmem:[#allocation205_spill] sm:$0xff] %v5516_v44  ;;  %10634 = vst [vmem:[#allocation206_spill] sm:$0xff] %v5520_v45  ;;  %v5532_v49 = vadd.f32 %v4692_v63, %v10639_v42  ;;  %v5536_v50 = vadd.f32 %v4692_v63, %v10641_v43  ;;  %v10643_v44 = vld [vmem:[#allocation26_spill] sm:$0xff]  ;;  %v10645_v45 = vld [vmem:[#allocation27_spill] sm:$0xff] }
 0x154   :  { %10636 = vst [vmem:[#allocation207_spill] sm:$0xff] %v5524_v46  ;;  %10638 = vst [vmem:[#allocation208_spill] sm:$0xff] %v5528_v48  ;;  %v5540_v51 = vadd.f32 %v4692_v63, %v10643_v44  ;;  %v5544_v20 = vadd.f32 %v4692_v63, %v10645_v45  ;;  %v10647_v46 = vld [vmem:[#allocation28_spill] sm:$0xff]  ;;  %v10649_v48 = vld [vmem:[#allocation29_spill] sm:$0xff] }
 0x155   :  { %10640 = vst [vmem:[#allocation209_spill] sm:$0xff] %v5532_v49  ;;  %10642 = vst [vmem:[#allocation6_spill] sm:$0xff] %v5536_v50  ;;  %v5548_v40 = vadd.f32 %v4692_v63, %v10647_v46  ;;  %v5552_v42 = vadd.f32 %v4692_v63, %v10649_v48  ;;  %v10651_v49 = vld [vmem:[#allocation30_spill] sm:$0xff]  ;;  %v10653_v50 = vld [vmem:[#allocation31_spill] sm:$0xff] }
 0x156   :  { %10644 = vst [vmem:[#allocation7_spill] sm:$0xff] %v5540_v51  ;;  %10646 = vst [vmem:[#allocation8_spill] sm:$0xff] %v5544_v20  ;;  %v5556_v43 = vadd.f32 %v4692_v63, %v10651_v49  ;;  %v5560_v44 = vadd.f32 %v4692_v63, %v10653_v50  ;;  %v10655_v51 = vld [vmem:[#allocation32_spill] sm:$0xff]  ;;  %v10657_v20 = vld [vmem:[#allocation33_spill] sm:$0xff] }
 0x157   :  { %10648 = vst [vmem:[#allocation9_spill] sm:$0xff] %v5548_v40  ;;  %10650 = vst [vmem:[#allocation10_spill] sm:$0xff] %v5552_v42  ;;  %v5564_v45 = vadd.f32 %v4692_v63, %v10655_v51  ;;  %v5568_v46 = vadd.f32 %v4692_v63, %v10657_v20  ;;  %v10659_v40 = vld [vmem:[#allocation34_spill] sm:$0xff]  ;;  %v10661_v42 = vld [vmem:[#allocation35_spill] sm:$0xff] }
 0x158   :  { %10652 = vst [vmem:[#allocation11_spill] sm:$0xff] %v5556_v43  ;;  %10654 = vst [vmem:[#allocation12_spill] sm:$0xff] %v5560_v44  ;;  %v5572_v48 = vadd.f32 %v4692_v63, %v10659_v40  ;;  %v5576_v49 = vadd.f32 %v4692_v63, %v10661_v42  ;;  %v10663_v43 = vld [vmem:[#allocation36_spill] sm:$0xff]  ;;  %v10665_v44 = vld [vmem:[#allocation37_spill] sm:$0xff] }
 0x159   :  { %10656 = vst [vmem:[#allocation13_spill] sm:$0xff] %v5564_v45  ;;  %10658 = vst [vmem:[#allocation14_spill] sm:$0xff] %v5568_v46  ;;  %v5580_v50 = vadd.f32 %v4692_v63, %v10663_v43  ;;  %v5584_v51 = vadd.f32 %v4692_v63, %v10665_v44  ;;  %v10667_v45 = vld [vmem:[#allocation38_spill] sm:$0xff]  ;;  %v10669_v46 = vld [vmem:[#allocation39_spill] sm:$0xff] }
 0x15a   :  { %10660 = vst [vmem:[#allocation15_spill] sm:$0xff] %v5572_v48  ;;  %10662 = vst [vmem:[#allocation16_spill] sm:$0xff] %v5576_v49  ;;  %v5588_v20 = vadd.f32 %v4692_v63, %v10667_v45  ;;  %v5592_v40 = vadd.f32 %v4692_v63, %v10669_v46  ;;  %v10671_v48 = vld [vmem:[#allocation40_spill] sm:$0xff]  ;;  %v10673_v49 = vld [vmem:[#allocation41_spill] sm:$0xff] }
 0x15b   :  { %10664 = vst [vmem:[#allocation17_spill] sm:$0xff] %v5580_v50  ;;  %10666 = vst [vmem:[#allocation18_spill] sm:$0xff] %v5584_v51  ;;  %v5596_v42 = vadd.f32 %v4692_v63, %v10671_v48  ;;  %v5600_v43 = vadd.f32 %v4692_v63, %v10673_v49  ;;  %v10675_v50 = vld [vmem:[#allocation42_spill] sm:$0xff]  ;;  %v10677_v51 = vld [vmem:[#allocation43_spill] sm:$0xff] }
 0x15c   :  { %10668 = vst [vmem:[#allocation19_spill] sm:$0xff] %v5588_v20  ;;  %10670 = vst [vmem:[#allocation20_spill] sm:$0xff] %v5592_v40  ;;  %v5604_v44 = vadd.f32 %v4692_v63, %v10675_v50  ;;  %v5608_v45 = vadd.f32 %v4692_v63, %v10677_v51  ;;  %v10679_v20 = vld [vmem:[#allocation44_spill] sm:$0xff]  ;;  %v10681_v40 = vld [vmem:[#allocation45_spill] sm:$0xff] }
 0x15d   :  { %10672 = vst [vmem:[#allocation21_spill] sm:$0xff] %v5596_v42  ;;  %10674 = vst [vmem:[#allocation22_spill] sm:$0xff] %v5600_v43  ;;  %v5612_v46 = vadd.f32 %v4692_v63, %v10679_v20  ;;  %v5616_v48 = vadd.f32 %v4692_v63, %v10681_v40  ;;  %v10683_v42 = vld [vmem:[#allocation46_spill] sm:$0xff]  ;;  %v10685_v43 = vld [vmem:[#allocation47_spill] sm:$0xff] }
 0x15e   :  { %10676 = vst [vmem:[#allocation23_spill] sm:$0xff] %v5604_v44  ;;  %10678 = vst [vmem:[#allocation24_spill] sm:$0xff] %v5608_v45  ;;  %v5620_v49 = vadd.f32 %v4692_v63, %v10683_v42  ;;  %v5624_v50 = vadd.f32 %v4692_v63, %v10685_v43  ;;  %v10687_v44 = vld [vmem:[#allocation48_spill] sm:$0xff]  ;;  %v10689_v45 = vld [vmem:[#allocation49_spill] sm:$0xff] }
 0x15f   :  { %10680 = vst [vmem:[#allocation25_spill] sm:$0xff] %v5612_v46  ;;  %10682 = vst [vmem:[#allocation26_spill] sm:$0xff] %v5616_v48  ;;  %v5628_v51 = vadd.f32 %v4692_v63, %v10687_v44  ;;  %v5632_v20 = vadd.f32 %v4692_v63, %v10689_v45  ;;  %v10691_v46 = vld [vmem:[#allocation50_spill] sm:$0xff]  ;;  %v10693_v48 = vld [vmem:[#allocation51_spill] sm:$0xff] }
 0x160   :  { %10684 = vst [vmem:[#allocation27_spill] sm:$0xff] %v5620_v49  ;;  %10686 = vst [vmem:[#allocation28_spill] sm:$0xff] %v5624_v50  ;;  %v5636_v40 = vadd.f32 %v4692_v63, %v10691_v46  ;;  %v5640_v42 = vadd.f32 %v4692_v63, %v10693_v48  ;;  %v10695_v49 = vld [vmem:[#allocation52_spill] sm:$0xff]  ;;  %v10697_v50 = vld [vmem:[#allocation53_spill] sm:$0xff] }
 0x161   :  { %10688 = vst [vmem:[#allocation29_spill] sm:$0xff] %v5628_v51  ;;  %10690 = vst [vmem:[#allocation30_spill] sm:$0xff] %v5632_v20  ;;  %v5644_v43 = vadd.f32 %v4692_v63, %v10695_v49  ;;  %v5648_v44 = vadd.f32 %v4692_v63, %v10697_v50  ;;  %v10699_v51 = vld [vmem:[#allocation54_spill] sm:$0xff]  ;;  %v10701_v20 = vld [vmem:[#allocation55_spill] sm:$0xff] }
 0x162   :  { %10692 = vst [vmem:[#allocation31_spill] sm:$0xff] %v5636_v40  ;;  %10694 = vst [vmem:[#allocation32_spill] sm:$0xff] %v5640_v42  ;;  %v5652_v45 = vadd.f32 %v4692_v63, %v10699_v51  ;;  %v5656_v46 = vadd.f32 %v4692_v63, %v10701_v20  ;;  %v10703_v40 = vld [vmem:[#allocation56_spill] sm:$0xff]  ;;  %v10705_v42 = vld [vmem:[#allocation57_spill] sm:$0xff] }
 0x163   :  { %10696 = vst [vmem:[#allocation33_spill] sm:$0xff] %v5644_v43  ;;  %10698 = vst [vmem:[#allocation34_spill] sm:$0xff] %v5648_v44  ;;  %v5660_v48 = vadd.f32 %v4692_v63, %v10703_v40  ;;  %v5664_v49 = vadd.f32 %v4692_v63, %v10705_v42  ;;  %v10707_v43 = vld [vmem:[#allocation58_spill] sm:$0xff]  ;;  %v10709_v44 = vld [vmem:[#allocation59_spill] sm:$0xff] }
 0x164   :  { %10700 = vst [vmem:[#allocation35_spill] sm:$0xff] %v5652_v45  ;;  %10702 = vst [vmem:[#allocation36_spill] sm:$0xff] %v5656_v46  ;;  %v5668_v50 = vadd.f32 %v4692_v63, %v10707_v43  ;;  %v5672_v51 = vadd.f32 %v4692_v63, %v10709_v44  ;;  %v10711_v45 = vld [vmem:[#allocation60_spill] sm:$0xff]  ;;  %v10713_v46 = vld [vmem:[#allocation61_spill] sm:$0xff] }
 0x165   :  { %10704 = vst [vmem:[#allocation37_spill] sm:$0xff] %v5660_v48  ;;  %10706 = vst [vmem:[#allocation38_spill] sm:$0xff] %v5664_v49  ;;  %v5676_v20 = vadd.f32 %v4692_v63, %v10711_v45  ;;  %v5680_v40 = vadd.f32 %v4692_v63, %v10713_v46  ;;  %v10715_v48 = vld [vmem:[#allocation62_spill] sm:$0xff]  ;;  %v10717_v49 = vld [vmem:[#allocation63_spill] sm:$0xff] }
 0x166   :  { %10708 = vst [vmem:[#allocation39_spill] sm:$0xff] %v5668_v50  ;;  %10710 = vst [vmem:[#allocation40_spill] sm:$0xff] %v5672_v51  ;;  %v5684_v42 = vadd.f32 %v4692_v63, %v10715_v48  ;;  %v5688_v43 = vadd.f32 %v4692_v63, %v10717_v49  ;;  %v10719_v50 = vld [vmem:[#allocation64_spill] sm:$0xff]  ;;  %v10721_v51 = vld [vmem:[#allocation65_spill] sm:$0xff] }
 0x167   :  { %10712 = vst [vmem:[#allocation41_spill] sm:$0xff] %v5676_v20  ;;  %10714 = vst [vmem:[#allocation42_spill] sm:$0xff] %v5680_v40  ;;  %v5692_v44 = vadd.f32 %v4692_v63, %v10719_v50  ;;  %v5696_v45 = vadd.f32 %v4692_v63, %v10721_v51  ;;  %v10723_v20 = vld [vmem:[#allocation66_spill] sm:$0xff]  ;;  %v10725_v40 = vld [vmem:[#allocation67_spill] sm:$0xff] }
 0x168   :  { %10716 = vst [vmem:[#allocation43_spill] sm:$0xff] %v5684_v42  ;;  %10718 = vst [vmem:[#allocation44_spill] sm:$0xff] %v5688_v43  ;;  %v5700_v46 = vadd.f32 %v4692_v63, %v10723_v20  ;;  %v5704_v48 = vadd.f32 %v4692_v63, %v10725_v40  ;;  %v10727_v42 = vld [vmem:[#allocation68_spill] sm:$0xff]  ;;  %v10729_v43 = vld [vmem:[#allocation210_spill] sm:$0xff]  ;;  %v5724_v40 = vadd.f32 %v4692_v63, %v4700_v53 }
 0x169   :  { %10720 = vst [vmem:[#allocation45_spill] sm:$0xff] %v5692_v44  ;;  %10722 = vst [vmem:[#allocation46_spill] sm:$0xff] %v5696_v45  ;;  %v5708_v49 = vadd.f32 %v4692_v63, %v10727_v42  ;;  %v5712_v50 = vadd.f32 %v4692_v63, %v10729_v43  ;;  %v10731_v44 = vld [vmem:[#allocation70_spill] sm:$0xff]  ;;  %v10733_v45 = vld [vmem:[#allocation71_spill] sm:$0xff]  ;;  %v5732_v43 = vadd.f32 %v4692_v63, %v4708_v55 }
 0x16a   :  { %10724 = vst [vmem:[#allocation47_spill] sm:$0xff] %v5700_v46  ;;  %10726 = vst [vmem:[#allocation48_spill] sm:$0xff] %v5704_v48  ;;  %v5716_v51 = vadd.f32 %v4692_v63, %v10731_v44  ;;  %v5720_v20 = vadd.f32 %v4692_v63, %v10733_v45  ;;  %v10736_v48 = vld [vmem:[#allocation72_spill] sm:$0xff]  ;;  %v5736_v44 = vadd.f32 %v4692_v63, %v4712_v57 }
 0x16b   :  { %10728 = vst [vmem:[#allocation49_spill] sm:$0xff] %v5708_v49  ;;  %10730 = vst [vmem:[#allocation50_spill] sm:$0xff] %v5712_v50  ;;  %v5728_v42 = vadd.f32 %v4692_v63, %v10736_v48  ;;  %v5740_v45 = vadd.f32 %v4692_v63, %v4716_v58  ;;  %v5744_v53 = vadd.f32 %v4692_v63, %v4720_v59  ;;  %v10816_v50 = vld [vmem:[#allocation102_spill] sm:$0xff]  ;;  %v10818_v49 = vld [vmem:[#allocation103_spill] sm:$0xff] }
 0x16c   :  { %10732 = vst [vmem:[#allocation51_spill] sm:$0xff] %v5716_v51  ;;  %10734 = vst [vmem:[#allocation52_spill] sm:$0xff] %v5720_v20  ;;  %v5748_v48 = vadd.f32 %v4692_v63, %v4724_v60  ;;  %v5752_v55 = vadd.f32 %v4692_v63, %v4728_v11  ;;  %v5756_v57 = vadd.f32 %v4692_v63, %v4732_v62  ;;  %v10812_v20 = vld [vmem:[#allocation100_spill] sm:$0xff]  ;;  %v10814_v51 = vld [vmem:[#allocation101_spill] sm:$0xff] }
 0x16d   :  { %10735 = vst [vmem:[#allocation53_spill] sm:$0xff] %v5724_v40  ;;  %10737 = vst [vmem:[#allocation54_spill] sm:$0xff] %v5728_v42  ;;  %v5760_v58 = vadd.f32 %v4692_v63, %v4736_v61  ;;  %v5764_v59 = vadd.f32 %v4692_v63, %v4740_v52  ;;  %v5768_v60 = vadd.f32 %v4692_v63, %v4744_v15  ;;  %v10808_v42 = vld [vmem:[#allocation98_spill] sm:$0xff]  ;;  %v10810_v40 = vld [vmem:[#allocation99_spill] sm:$0xff] }
 0x16e   :  { %10738 = vst [vmem:[#allocation55_spill] sm:$0xff] %v5732_v43  ;;  %10739 = vst [vmem:[#allocation56_spill] sm:$0xff] %v5736_v44  ;;  %v5772_v11 = vadd.f32 %v4692_v63, %v4748_v54  ;;  %v5776_v62 = vadd.f32 %v4692_v63, %v4752_v12  ;;  %v5780_v61 = vadd.f32 %v4692_v63, %v4856_v33  ;;  %v5802_v33 = vmul.f32 0.5, %v4892_v38  ;;  %v10804_v44 = vld [vmem:[#allocation96_spill] sm:$0xff]  ;;  %v10806_v43 = vld [vmem:[#allocation97_spill] sm:$0xff] }
 0x16f   :  { %10740 = vst [vmem:[#allocation57_spill] sm:$0xff] %v5740_v45  ;;  %10741 = vst [vmem:[#allocation58_spill] sm:$0xff] %v5744_v53  ;;  %v5784_v52 = vadd.f32 %v4692_v63, %v4860_v34  ;;  %v5788_v15 = vadd.f32 %v4692_v63, %v4872_v37  ;;  %v5792_v54 = vadd.f32 %v4692_v63, %v4876_v10  ;;  %v5805_v34 = vmul.f32 0.5, %v4896_v56  ;;  %v10800_v53 = vld [vmem:[#allocation94_spill] sm:$0xff]  ;;  %v10802_v45 = vld [vmem:[#allocation95_spill] sm:$0xff] }
 0x170   :  { %10742 = vst [vmem:[#allocation59_spill] sm:$0xff] %v5748_v48  ;;  %10743 = vst [vmem:[#allocation60_spill] sm:$0xff] %v5752_v55  ;;  %v5796_v12 = vadd.f32 %v4692_v63, %v4880_v16  ;;  %v5808_v37 = vmul.f32 0.5, %v4900_v4  ;;  %v5814_v10 = vmul.f32 0.5, %v4908_v35  ;;  %v5817_v16 = vmul.f32 0.5, %v4912_v36  ;;  %v10796_v55 = vld [vmem:[#allocation92_spill] sm:$0xff] }
 0x171   :  { %10744 = vst [vmem:[#allocation61_spill] sm:$0xff] %v5756_v57  ;;  %10745 = vst [vmem:[#allocation62_spill] sm:$0xff] %v5760_v58  ;;  %v10792_v58 = vld [vmem:[#allocation90_spill] sm:$0xff]  ;;  %v10794_v57 = vld [vmem:[#allocation91_spill] sm:$0xff] }
 0x172   :  { %10746 = vst [vmem:[#allocation63_spill] sm:$0xff] %v5764_v59  ;;  %10747 = vst [vmem:[#allocation64_spill] sm:$0xff] %v5768_v60  ;;  %v10788_v60 = vld [vmem:[#allocation88_spill] sm:$0xff]  ;;  %v10790_v59 = vld [vmem:[#allocation89_spill] sm:$0xff] }
 0x173   :  { %10748 = vst [vmem:[#allocation65_spill] sm:$0xff] %v5772_v11  ;;  %10749 = vst [vmem:[#allocation66_spill] sm:$0xff] %v5776_v62  ;;  %v5799_v62 = vmul.f32 0.5, %v4888_v41  ;;  %v10786_v11 = vld [vmem:[#allocation87_spill] sm:$0xff]  ;;  %v10798_v48 = vld [vmem:[#allocation93_spill] sm:$0xff] }
 0x174   :  { %10750 = vst [vmem:[#allocation67_spill] sm:$0xff] %v5780_v61  ;;  %10751 = vst [vmem:[#allocation68_spill] sm:$0xff] %v5784_v52  ;;  %v10782_v52 = vld [vmem:[#allocation85_spill] sm:$0xff]  ;;  %v10784_v61 = vld [vmem:[#allocation86_spill] sm:$0xff] }
 0x175   :  { %10752 = vst [vmem:[#allocation210_spill] sm:$0xff] %v5788_v15  ;;  %10753 = vst [vmem:[#allocation70_spill] sm:$0xff] %v5792_v54  ;;  %v5811_v15 = vmul.f32 0.5, %v4904_v7  ;;  %v10780_v54 = vld [vmem:[#allocation84_spill] sm:$0xff] }
 0x176   :  { %10754 = vst [vmem:[#allocation71_spill] sm:$0xff] %v5796_v12  ;;  %10755 = vst [vmem:[#allocation72_spill] sm:$0xff] %v5799_v62  ;;  %v5820_v62 = vmul.f32 0.5, %v4916_v32  ;;  %v10778_v12 = vld [vmem:[#allocation83_spill] sm:$0xff]  ;;  %v10820_v46 = vld [vmem:[#allocation104_spill] sm:$0xff] }
 0x177   :  { %10756 = vst [vmem:[#allocation233_spill] sm:$0xff] %v5802_v33  ;;  %10757 = vst [vmem:[#allocation234_spill] sm:$0xff] %v5805_v34  ;;  %v5823_v33 = vmul.f32 0.5, %v4920_v31  ;;  %v5826_v34 = vmul.f32 0.5, %v4924_v30 }
 0x178   :  { %10758 = vst [vmem:[#allocation235_spill] sm:$0xff] %v5808_v37  ;;  %10759 = vst [vmem:[#allocation236_spill] sm:$0xff] %v5811_v15  ;;  %v5829_v37 = vmul.f32 0.5, %v4928_v5  ;;  %v5832_v15 = vmul.f32 0.5, %v4932_v28 }
 0x179   :  { %10760 = vst [vmem:[#allocation237_spill] sm:$0xff] %v5814_v10  ;;  %10761 = vst [vmem:[#allocation238_spill] sm:$0xff] %v5817_v16  ;;  %v5835_v10 = vmul.f32 0.5, %v4936_v27  ;;  %v5838_v16 = vmul.f32 0.5, %v4940_v26 }
 0x17a   :  { %10762 = vst [vmem:[#allocation239_spill] sm:$0xff] %v5820_v62  ;;  %10763 = vst [vmem:[#allocation240_spill] sm:$0xff] %v5823_v33  ;;  %v5841_v62 = vmul.f32 0.5, %v4944_v25  ;;  %v5844_v33 = vmul.f32 0.5, %v4948_v24 }
 0x17b   :  { %10764 = vst [vmem:[#allocation241_spill] sm:$0xff] %v5826_v34  ;;  %10765 = vst [vmem:[#allocation242_spill] sm:$0xff] %v5829_v37  ;;  %v5847_v34 = vmul.f32 0.5, %v4952_v23  ;;  %v5850_v37 = vmul.f32 0.5, %v4956_v22 }
 0x17c   :  { %10766 = vst [vmem:[#allocation243_spill] sm:$0xff] %v5832_v15  ;;  %10767 = vst [vmem:[#allocation244_spill] sm:$0xff] %v5835_v10  ;;  %v5853_v15 = vmul.f32 0.5, %v4960_v21  ;;  %v5856_v10 = vmul.f32 0.5, %v4964_v19 }
 0x17d   :  { %10768 = vst [vmem:[#allocation245_spill] sm:$0xff] %v5838_v16  ;;  %10769 = vst [vmem:[#allocation246_spill] sm:$0xff] %v5841_v62  ;;  %v5859_v16 = vmul.f32 0.5, %v4968_v18  ;;  %v5862_v62 = vmul.f32 0.5, %v4972_v17 }
 0x17e   :  { %10770 = vst [vmem:[#allocation247_spill] sm:$0xff] %v5844_v33  ;;  %10771 = vst [vmem:[#allocation248_spill] sm:$0xff] %v5847_v34  ;;  %v5865_v33 = vmul.f32 0.5, %v4976_v47  ;;  %v5868_v34 = vmul.f32 0.5, %v10778_v12 }
 0x17f   :  { %10772 = vst [vmem:[#allocation249_spill] sm:$0xff] %v5850_v37  ;;  %10773 = vst [vmem:[#allocation250_spill] sm:$0xff] %v5853_v15  ;;  %v5871_v37 = vmul.f32 0.5, %v10780_v54  ;;  %v5874_v15 = vmul.f32 0.5, %v10782_v52 }
 0x180   :  { %10774 = vst [vmem:[#allocation251_spill] sm:$0xff] %v5856_v10  ;;  %10775 = vst [vmem:[#allocation252_spill] sm:$0xff] %v5859_v16  ;;  %v5877_v10 = vmul.f32 0.5, %v10784_v61  ;;  %v5880_v16 = vmul.f32 0.5, %v10786_v11 }
 0x181   :  { %10776 = vst [vmem:[#allocation253_spill] sm:$0xff] %v5862_v62  ;;  %10777 = vst [vmem:[#allocation254_spill] sm:$0xff] %v5865_v33  ;;  %v5883_v62 = vmul.f32 0.5, %v10788_v60  ;;  %v5886_v33 = vmul.f32 0.5, %v10790_v59 }
 0x182   :  { %10779 = vst [vmem:[#allocation83_spill] sm:$0xff] %v5868_v34  ;;  %10781 = vst [vmem:[#allocation84_spill] sm:$0xff] %v5871_v37  ;;  %v5889_v34 = vmul.f32 0.5, %v10792_v58  ;;  %v5892_v37 = vmul.f32 0.5, %v10794_v57 }
 0x183   :  { %10783 = vst [vmem:[#allocation85_spill] sm:$0xff] %v5874_v15  ;;  %10785 = vst [vmem:[#allocation86_spill] sm:$0xff] %v5877_v10  ;;  %v5895_v15 = vmul.f32 0.5, %v10796_v55  ;;  %v5898_v10 = vmul.f32 0.5, %v10798_v48 }
 0x184   :  { %10787 = vst [vmem:[#allocation87_spill] sm:$0xff] %v5880_v16  ;;  %10789 = vst [vmem:[#allocation88_spill] sm:$0xff] %v5883_v62  ;;  %v5901_v16 = vmul.f32 0.5, %v10800_v53  ;;  %v5904_v62 = vmul.f32 0.5, %v10802_v45 }
 0x185   :  { %10791 = vst [vmem:[#allocation89_spill] sm:$0xff] %v5886_v33  ;;  %10793 = vst [vmem:[#allocation90_spill] sm:$0xff] %v5889_v34  ;;  %v5907_v33 = vmul.f32 0.5, %v10804_v44  ;;  %v5910_v34 = vmul.f32 0.5, %v10806_v43 }
 0x186   :  { %10795 = vst [vmem:[#allocation91_spill] sm:$0xff] %v5892_v37  ;;  %10797 = vst [vmem:[#allocation92_spill] sm:$0xff] %v5895_v15  ;;  %v5913_v37 = vmul.f32 0.5, %v10808_v42  ;;  %v5916_v15 = vmul.f32 0.5, %v10810_v40  ;;  %v10822_v42 = vld [vmem:[#allocation105_spill] sm:$0xff]  ;;  %v10824_v40 = vld [vmem:[#allocation106_spill] sm:$0xff] }
 0x187   :  { %10799 = vst [vmem:[#allocation93_spill] sm:$0xff] %v5898_v10  ;;  %10801 = vst [vmem:[#allocation94_spill] sm:$0xff] %v5901_v16  ;;  %v5919_v10 = vmul.f32 0.5, %v10812_v20  ;;  %v5922_v16 = vmul.f32 0.5, %v10814_v51  ;;  %v10826_v20 = vld [vmem:[#allocation107_spill] sm:$0xff]  ;;  %v10828_v51 = vld [vmem:[#allocation108_spill] sm:$0xff] }
 0x188   :  { %10803 = vst [vmem:[#allocation95_spill] sm:$0xff] %v5904_v62  ;;  %10805 = vst [vmem:[#allocation96_spill] sm:$0xff] %v5907_v33  ;;  %v5925_v62 = vmul.f32 0.5, %v10816_v50  ;;  %v5928_v33 = vmul.f32 0.5, %v10818_v49  ;;  %v10830_v50 = vld [vmem:[#allocation109_spill] sm:$0xff]  ;;  %v10832_v49 = vld [vmem:[#allocation110_spill] sm:$0xff] }
 0x189   :  { %10807 = vst [vmem:[#allocation97_spill] sm:$0xff] %v5910_v34  ;;  %10809 = vst [vmem:[#allocation255_spill] sm:$0xff] %v5913_v37  ;;  %v5931_v34 = vmul.f32 0.5, %v10820_v46  ;;  %v5934_v37 = vmul.f32 0.5, %v10822_v42  ;;  %v10834_v46 = vld [vmem:[#allocation111_spill] sm:$0xff]  ;;  %v10836_v42 = vld [vmem:[#allocation112_spill] sm:$0xff] }
 0x18a   :  { %10811 = vst [vmem:[#allocation256_spill] sm:$0xff] %v5916_v15  ;;  %10813 = vst [vmem:[#allocation257_spill] sm:$0xff] %v5919_v10  ;;  %v5937_v15 = vmul.f32 0.5, %v10824_v40  ;;  %v5940_v10 = vmul.f32 0.5, %v10826_v20  ;;  %v10838_v40 = vld [vmem:[#allocation113_spill] sm:$0xff]  ;;  %v10840_v20 = vld [vmem:[#allocation114_spill] sm:$0xff] }
 0x18b   :  { %10815 = vst [vmem:[#allocation258_spill] sm:$0xff] %v5922_v16  ;;  %10817 = vst [vmem:[#allocation259_spill] sm:$0xff] %v5925_v62  ;;  %v5943_v16 = vmul.f32 0.5, %v10828_v51  ;;  %v5946_v62 = vmul.f32 0.5, %v10830_v50  ;;  %v10842_v51 = vld [vmem:[#allocation115_spill] sm:$0xff]  ;;  %v10844_v50 = vld [vmem:[#allocation116_spill] sm:$0xff] }
 0x18c   :  { %10819 = vst [vmem:[#allocation260_spill] sm:$0xff] %v5928_v33  ;;  %10821 = vst [vmem:[#allocation261_spill] sm:$0xff] %v5931_v34  ;;  %v5949_v33 = vmul.f32 0.5, %v10832_v49  ;;  %v5952_v34 = vmul.f32 0.5, %v10834_v46  ;;  %v10846_v49 = vld [vmem:[#allocation117_spill] sm:$0xff]  ;;  %v10848_v46 = vld [vmem:[#allocation118_spill] sm:$0xff] }
 0x18d   :  { %10823 = vst [vmem:[#allocation262_spill] sm:$0xff] %v5934_v37  ;;  %10825 = vst [vmem:[#allocation263_spill] sm:$0xff] %v5937_v15  ;;  %v5955_v37 = vmul.f32 0.5, %v10836_v42  ;;  %v5958_v15 = vmul.f32 0.5, %v10838_v40  ;;  %v10850_v42 = vld [vmem:[#allocation119_spill] sm:$0xff]  ;;  %v10852_v40 = vld [vmem:[#allocation120_spill] sm:$0xff] }
 0x18e   :  { %10827 = vst [vmem:[#allocation264_spill] sm:$0xff] %v5940_v10  ;;  %10829 = vst [vmem:[#allocation265_spill] sm:$0xff] %v5943_v16  ;;  %v5961_v10 = vmul.f32 0.5, %v10840_v20  ;;  %v5964_v16 = vmul.f32 0.5, %v10842_v51  ;;  %v10854_v20 = vld [vmem:[#allocation121_spill] sm:$0xff]  ;;  %v10856_v51 = vld [vmem:[#allocation122_spill] sm:$0xff] }
 0x18f   :  { %10831 = vst [vmem:[#allocation266_spill] sm:$0xff] %v5946_v62  ;;  %10833 = vst [vmem:[#allocation267_spill] sm:$0xff] %v5949_v33  ;;  %v5967_v62 = vmul.f32 0.5, %v10844_v50  ;;  %v5970_v33 = vmul.f32 0.5, %v10846_v49  ;;  %v10858_v50 = vld [vmem:[#allocation123_spill] sm:$0xff]  ;;  %v10860_v49 = vld [vmem:[#allocation124_spill] sm:$0xff] }
 0x190   :  { %10835 = vst [vmem:[#allocation268_spill] sm:$0xff] %v5952_v34  ;;  %10837 = vst [vmem:[#allocation269_spill] sm:$0xff] %v5955_v37  ;;  %v5973_v34 = vmul.f32 0.5, %v10848_v46  ;;  %v5976_v37 = vmul.f32 0.5, %v10850_v42  ;;  %v10862_v46 = vld [vmem:[#allocation125_spill] sm:$0xff]  ;;  %v10864_v42 = vld [vmem:[#allocation126_spill] sm:$0xff] }
 0x191   :  { %10839 = vst [vmem:[#allocation270_spill] sm:$0xff] %v5958_v15  ;;  %10841 = vst [vmem:[#allocation271_spill] sm:$0xff] %v5961_v10  ;;  %v5979_v15 = vmul.f32 0.5, %v10852_v40  ;;  %v5982_v10 = vmul.f32 0.5, %v10854_v20  ;;  %v10866_v40 = vld [vmem:[#allocation127_spill] sm:$0xff]  ;;  %v10868_v20 = vld [vmem:[#allocation128_spill] sm:$0xff] }
 0x192   :  { %10843 = vst [vmem:[#allocation272_spill] sm:$0xff] %v5964_v16  ;;  %10845 = vst [vmem:[#allocation273_spill] sm:$0xff] %v5967_v62  ;;  %v5985_v16 = vmul.f32 0.5, %v10856_v51  ;;  %v5988_v62 = vmul.f32 0.5, %v10858_v50  ;;  %v10870_v51 = vld [vmem:[#allocation129_spill] sm:$0xff]  ;;  %v10872_v50 = vld [vmem:[#allocation130_spill] sm:$0xff] }
 0x193   :  { %10847 = vst [vmem:[#allocation274_spill] sm:$0xff] %v5970_v33  ;;  %10849 = vst [vmem:[#allocation275_spill] sm:$0xff] %v5973_v34  ;;  %v5991_v33 = vmul.f32 0.5, %v10860_v49  ;;  %v5994_v34 = vmul.f32 0.5, %v10862_v46  ;;  %v10874_v49 = vld [vmem:[#allocation131_spill] sm:$0xff]  ;;  %v10876_v46 = vld [vmem:[#allocation132_spill] sm:$0xff] }
 0x194   :  { %10851 = vst [vmem:[#allocation276_spill] sm:$0xff] %v5976_v37  ;;  %10853 = vst [vmem:[#allocation277_spill] sm:$0xff] %v5979_v15  ;;  %v5997_v37 = vmul.f32 0.5, %v10864_v42  ;;  %v6000_v15 = vmul.f32 0.5, %v10866_v40  ;;  %v10878_v42 = vld [vmem:[#allocation133_spill] sm:$0xff]  ;;  %v10880_v40 = vld [vmem:[#allocation134_spill] sm:$0xff] }
 0x195   :  { %10855 = vst [vmem:[#allocation278_spill] sm:$0xff] %v5982_v10  ;;  %10857 = vst [vmem:[#allocation279_spill] sm:$0xff] %v5985_v16  ;;  %v6003_v10 = vmul.f32 0.5, %v10868_v20  ;;  %v6006_v16 = vmul.f32 0.5, %v10870_v51  ;;  %v10882_v20 = vld [vmem:[#allocation135_spill] sm:$0xff]  ;;  %v10884_v51 = vld [vmem:[#allocation136_spill] sm:$0xff] }
 0x196   :  { %10859 = vst [vmem:[#allocation280_spill] sm:$0xff] %v5988_v62  ;;  %10861 = vst [vmem:[#allocation281_spill] sm:$0xff] %v5991_v33  ;;  %v6009_v62 = vmul.f32 0.5, %v10872_v50  ;;  %v6012_v33 = vmul.f32 0.5, %v10874_v49  ;;  %v10886_v50 = vld [vmem:[#allocation137_spill] sm:$0xff]  ;;  %v10888_v49 = vld [vmem:[#allocation138_spill] sm:$0xff] }
 0x197   :  { %10863 = vst [vmem:[#allocation282_spill] sm:$0xff] %v5994_v34  ;;  %10865 = vst [vmem:[#allocation283_spill] sm:$0xff] %v5997_v37  ;;  %v6015_v34 = vmul.f32 0.5, %v10876_v46  ;;  %v6018_v37 = vmul.f32 0.5, %v10878_v42  ;;  %v10890_v46 = vld [vmem:[#allocation139_spill] sm:$0xff]  ;;  %v10892_v42 = vld [vmem:[#allocation140_spill] sm:$0xff] }
 0x198   :  { %10867 = vst [vmem:[#allocation284_spill] sm:$0xff] %v6000_v15  ;;  %10869 = vst [vmem:[#allocation285_spill] sm:$0xff] %v6003_v10  ;;  %v6021_v15 = vmul.f32 0.5, %v10880_v40  ;;  %v6024_v10 = vmul.f32 0.5, %v10882_v20  ;;  %v10894_v40 = vld [vmem:[#allocation141_spill] sm:$0xff]  ;;  %v10896_v20 = vld [vmem:[#allocation142_spill] sm:$0xff] }
 0x199   :  { %10871 = vst [vmem:[#allocation286_spill] sm:$0xff] %v6006_v16  ;;  %10873 = vst [vmem:[#allocation287_spill] sm:$0xff] %v6009_v62  ;;  %v6027_v16 = vmul.f32 0.5, %v10884_v51  ;;  %v6030_v62 = vmul.f32 0.5, %v10886_v50  ;;  %v10898_v51 = vld [vmem:[#allocation143_spill] sm:$0xff]  ;;  %v10900_v50 = vld [vmem:[#allocation144_spill] sm:$0xff] }
 0x19a   :  { %10875 = vst [vmem:[#allocation288_spill] sm:$0xff] %v6012_v33  ;;  %10877 = vst [vmem:[#allocation289_spill] sm:$0xff] %v6015_v34  ;;  %v6033_v33 = vmul.f32 0.5, %v10888_v49  ;;  %v6036_v34 = vmul.f32 0.5, %v10890_v46  ;;  %v10902_v49 = vld [vmem:[#allocation145_spill] sm:$0xff]  ;;  %v10904_v46 = vld [vmem:[#allocation146_spill] sm:$0xff] }
 0x19b   :  { %10879 = vst [vmem:[#allocation290_spill] sm:$0xff] %v6018_v37  ;;  %10881 = vst [vmem:[#allocation291_spill] sm:$0xff] %v6021_v15  ;;  %v6039_v37 = vmul.f32 0.5, %v10892_v42  ;;  %v6042_v15 = vmul.f32 0.5, %v10894_v40  ;;  %v10906_v42 = vld [vmem:[#allocation147_spill] sm:$0xff]  ;;  %v10908_v40 = vld [vmem:[#allocation148_spill] sm:$0xff] }
 0x19c   :  { %10883 = vst [vmem:[#allocation292_spill] sm:$0xff] %v6024_v10  ;;  %10885 = vst [vmem:[#allocation293_spill] sm:$0xff] %v6027_v16  ;;  %v6045_v10 = vmul.f32 0.5, %v10896_v20  ;;  %v6048_v16 = vmul.f32 0.5, %v10898_v51  ;;  %v10910_v20 = vld [vmem:[#allocation149_spill] sm:$0xff]  ;;  %v10912_v51 = vld [vmem:[#allocation150_spill] sm:$0xff] }
 0x19d   :  { %10887 = vst [vmem:[#allocation294_spill] sm:$0xff] %v6030_v62  ;;  %10889 = vst [vmem:[#allocation295_spill] sm:$0xff] %v6033_v33  ;;  %v6051_v62 = vmul.f32 0.5, %v10900_v50  ;;  %v6054_v33 = vmul.f32 0.5, %v10902_v49  ;;  %v10914_v50 = vld [vmem:[#allocation151_spill] sm:$0xff]  ;;  %v10916_v49 = vld [vmem:[#allocation152_spill] sm:$0xff] }
 0x19e   :  { %10891 = vst [vmem:[#allocation296_spill] sm:$0xff] %v6036_v34  ;;  %10893 = vst [vmem:[#allocation297_spill] sm:$0xff] %v6039_v37  ;;  %v6057_v34 = vmul.f32 0.5, %v10904_v46  ;;  %v6060_v37 = vmul.f32 0.5, %v10906_v42  ;;  %v10918_v46 = vld [vmem:[#allocation153_spill] sm:$0xff]  ;;  %v10920_v42 = vld [vmem:[#allocation154_spill] sm:$0xff] }
 0x19f   :  { %10895 = vst [vmem:[#allocation298_spill] sm:$0xff] %v6042_v15  ;;  %10897 = vst [vmem:[#allocation299_spill] sm:$0xff] %v6045_v10  ;;  %v6063_v15 = vmul.f32 0.5, %v10908_v40  ;;  %v6066_v10 = vmul.f32 0.5, %v10910_v20  ;;  %v10922_v40 = vld [vmem:[#allocation155_spill] sm:$0xff]  ;;  %v10924_v20 = vld [vmem:[#allocation156_spill] sm:$0xff] }
 0x1a0   :  { %10899 = vst [vmem:[#allocation300_spill] sm:$0xff] %v6048_v16  ;;  %10901 = vst [vmem:[#allocation301_spill] sm:$0xff] %v6051_v62  ;;  %v6069_v16 = vmul.f32 0.5, %v10912_v51  ;;  %v6072_v62 = vmul.f32 0.5, %v10914_v50  ;;  %v10926_v51 = vld [vmem:[#allocation157_spill] sm:$0xff]  ;;  %v10928_v50 = vld [vmem:[#allocation158_spill] sm:$0xff] }
 0x1a1   :  { %10903 = vst [vmem:[#allocation302_spill] sm:$0xff] %v6054_v33  ;;  %10905 = vst [vmem:[#allocation303_spill] sm:$0xff] %v6057_v34  ;;  %v6075_v33 = vmul.f32 0.5, %v10916_v49  ;;  %v6078_v34 = vmul.f32 0.5, %v10918_v46  ;;  %v10930_v49 = vld [vmem:[#allocation159_spill] sm:$0xff]  ;;  %v10932_v46 = vld [vmem:[#allocation160_spill] sm:$0xff] }
 0x1a2   :  { %10907 = vst [vmem:[#allocation304_spill] sm:$0xff] %v6060_v37  ;;  %10909 = vst [vmem:[#allocation305_spill] sm:$0xff] %v6063_v15  ;;  %v6081_v37 = vmul.f32 0.5, %v10920_v42  ;;  %v6084_v15 = vmul.f32 0.5, %v10922_v40  ;;  %v10934_v42 = vld [vmem:[#allocation161_spill] sm:$0xff]  ;;  %v10936_v40 = vld [vmem:[#allocation162_spill] sm:$0xff] }
 0x1a3   :  { %10911 = vst [vmem:[#allocation306_spill] sm:$0xff] %v6066_v10  ;;  %10913 = vst [vmem:[#allocation307_spill] sm:$0xff] %v6069_v16  ;;  %v6087_v10 = vmul.f32 0.5, %v10924_v20  ;;  %v6090_v16 = vmul.f32 0.5, %v10926_v51  ;;  %v10938_v20 = vld [vmem:[#allocation163_spill] sm:$0xff]  ;;  %v10940_v51 = vld [vmem:[#allocation164_spill] sm:$0xff] }
 0x1a4   :  { %10915 = vst [vmem:[#allocation308_spill] sm:$0xff] %v6072_v62  ;;  %10917 = vst [vmem:[#allocation309_spill] sm:$0xff] %v6075_v33  ;;  %v6093_v62 = vmul.f32 0.5, %v10928_v50  ;;  %v6096_v33 = vmul.f32 0.5, %v10930_v49  ;;  %v10942_v50 = vld [vmem:[#allocation165_spill] sm:$0xff]  ;;  %v10944_v49 = vld [vmem:[#allocation166_spill] sm:$0xff] }
 0x1a5   :  { %10919 = vst [vmem:[#allocation310_spill] sm:$0xff] %v6078_v34  ;;  %10921 = vst [vmem:[#allocation311_spill] sm:$0xff] %v6081_v37  ;;  %v6099_v34 = vmul.f32 0.5, %v10932_v46  ;;  %v6102_v37 = vmul.f32 0.5, %v10934_v42  ;;  %v10946_v46 = vld [vmem:[#allocation167_spill] sm:$0xff]  ;;  %v10948_v42 = vld [vmem:[#allocation168_spill] sm:$0xff] }
 0x1a6   :  { %10923 = vst [vmem:[#allocation312_spill] sm:$0xff] %v6084_v15  ;;  %10925 = vst [vmem:[#allocation313_spill] sm:$0xff] %v6087_v10  ;;  %v6105_v15 = vmul.f32 0.5, %v10936_v40  ;;  %v6108_v10 = vmul.f32 0.5, %v10938_v20  ;;  %v10950_v40 = vld [vmem:[#allocation169_spill] sm:$0xff]  ;;  %v10952_v20 = vld [vmem:[#allocation170_spill] sm:$0xff] }
 0x1a7   :  { %10927 = vst [vmem:[#allocation314_spill] sm:$0xff] %v6090_v16  ;;  %10929 = vst [vmem:[#allocation315_spill] sm:$0xff] %v6093_v62  ;;  %v6111_v16 = vmul.f32 0.5, %v10940_v51  ;;  %v6114_v62 = vmul.f32 0.5, %v10942_v50  ;;  %v10954_v51 = vld [vmem:[#allocation171_spill] sm:$0xff]  ;;  %v10956_v50 = vld [vmem:[#allocation172_spill] sm:$0xff] }
 0x1a8   :  { %10931 = vst [vmem:[#allocation316_spill] sm:$0xff] %v6096_v33  ;;  %10933 = vst [vmem:[#allocation317_spill] sm:$0xff] %v6099_v34  ;;  %v6117_v33 = vmul.f32 0.5, %v10944_v49  ;;  %v6120_v34 = vmul.f32 0.5, %v10946_v46  ;;  %v10958_v49 = vld [vmem:[#allocation173_spill] sm:$0xff]  ;;  %v10960_v46 = vld [vmem:[#allocation174_spill] sm:$0xff] }
 0x1a9   :  { %10935 = vst [vmem:[#allocation318_spill] sm:$0xff] %v6102_v37  ;;  %10937 = vst [vmem:[#allocation319_spill] sm:$0xff] %v6105_v15  ;;  %v6123_v37 = vmul.f32 0.5, %v10948_v42  ;;  %v6126_v15 = vmul.f32 0.5, %v10950_v40  ;;  %v10962_v42 = vld [vmem:[#allocation175_spill] sm:$0xff]  ;;  %v10964_v40 = vld [vmem:[#allocation176_spill] sm:$0xff] }
 0x1aa   :  { %10939 = vst [vmem:[#allocation320_spill] sm:$0xff] %v6108_v10  ;;  %10941 = vst [vmem:[#allocation321_spill] sm:$0xff] %v6111_v16  ;;  %v6129_v10 = vmul.f32 0.5, %v10952_v20  ;;  %v6132_v16 = vmul.f32 0.5, %v10954_v51  ;;  %v10966_v20 = vld [vmem:[#allocation177_spill] sm:$0xff]  ;;  %v10968_v51 = vld [vmem:[#allocation178_spill] sm:$0xff] }
 0x1ab   :  { %10943 = vst [vmem:[#allocation322_spill] sm:$0xff] %v6114_v62  ;;  %10945 = vst [vmem:[#allocation323_spill] sm:$0xff] %v6117_v33  ;;  %v6135_v62 = vmul.f32 0.5, %v10956_v50  ;;  %v6138_v33 = vmul.f32 0.5, %v10958_v49  ;;  %v10970_v50 = vld [vmem:[#allocation179_spill] sm:$0xff] }
 0x1ac   :  { %10947 = vst [vmem:[#allocation324_spill] sm:$0xff] %v6120_v34  ;;  %10949 = vst [vmem:[#allocation325_spill] sm:$0xff] %v6123_v37  ;;  %v6141_v34 = vmul.f32 0.5, %v10960_v46  ;;  %v6144_v37 = vmul.f32 0.5, %v10962_v42 }
 0x1ad   :  { %10951 = vst [vmem:[#allocation326_spill] sm:$0xff] %v6126_v15  ;;  %10953 = vst [vmem:[#allocation327_spill] sm:$0xff] %v6129_v10  ;;  %v6147_v15 = vmul.f32 0.5, %v10964_v40  ;;  %v6150_v10 = vmul.f32 0.5, %v10966_v20  ;;  %v10976_v20 = vld [vmem:[#allocation232_spill] sm:$0xff] }
 0x1ae   :  { %10955 = vst [vmem:[#allocation328_spill] sm:$0xff] %v6132_v16  ;;  %10957 = vst [vmem:[#allocation329_spill] sm:$0xff] %v6135_v62  ;;  %v6153_v16 = vmul.f32 0.5, %v10968_v51  ;;  %v6156_v62 = vmul.f32 0.5, %v10970_v50 }
 0x1af   :  { %10959 = vst [vmem:[#allocation173_spill] sm:$0xff] %v6138_v33  ;;  %10961 = vst [vmem:[#allocation174_spill] sm:$0xff] %v6141_v34  ;;  %v6159_v33 = vmul.f32 0.5, %v5368_v13  ;;  %v6162_v34 = vmul.f32 0.5, %v5372_v39  ;;  %v1492_v13 = vmul.f32 0.70710677, %v4896_v56 }
 0x1b0   :  { %10963 = vst [vmem:[#allocation175_spill] sm:$0xff] %v6144_v37  ;;  %10965 = vst [vmem:[#allocation176_spill] sm:$0xff] %v6147_v15  ;;  %v6165_v37 = vmul.f32 0.5, %v5376_v2  ;;  %v6168_v15 = vmul.f32 0.5, %v5380_v0  ;;  %v10981_v0 = vld [vmem:[#allocation73_spill] sm:$0xff]  ;;  %v10985_v56 = vld [vmem:[#allocation75_spill] sm:$0xff] }
 0x1b1   :  { %10967 = vst [vmem:[#allocation330_spill] sm:$0xff] %v6150_v10  ;;  %10969 = vst [vmem:[#allocation178_spill] sm:$0xff] %v6153_v16  ;;  %v6172_v10 = vadd.f32 %v4692_v63, %v10976_v20  ;;  %v1490_v16 = vmul.f32 0.70710677, %v4888_v41  ;;  %v6188_v63 = vmul.f32 0.5, %v10981_v0  ;;  %v10983_v20 = vld [vmem:[#allocation74_spill] sm:$0xff] }
 0x1b2   :  { %10971 = vst [vmem:[#allocation179_spill] sm:$0xff] %v6156_v62  ;;  %10972 = vst [vmem:[#allocation331_spill] sm:$0xff] %v6159_v33  ;;  %v1491_v62 = vmul.f32 0.70710677, %v4892_v38  ;;  %v6178_v33 = vmul.f32 0.5, %v5384_v8  ;;  %v6191_v41 = vmul.f32 0.5, %v10983_v20 }
 0x1b3   :  { %10973 = vst [vmem:[#allocation332_spill] sm:$0xff] %v6162_v34  ;;  %10974 = vst [vmem:[#allocation333_spill] sm:$0xff] %v6165_v37  ;;  %v6181_v34 = vmul.f32 0.5, %v5388_v9  ;;  %v6184_v37 = vmul.f32 0.5, %v5392_v3  ;;  %v1494_v38 = vmul.f32 0.70710677, %v4904_v7  ;;  %2780 = verf.f32 %v1490_v16 }
 0x1b4   :  { %10975 = vst [vmem:[#allocation334_spill] sm:$0xff] %v6168_v15  ;;  %10977 = vst [vmem:[#allocation232_spill] sm:$0xff] %v6172_v10  ;;  %v1493_v15 = vmul.f32 0.70710677, %v4900_v4  ;;  %v6195_v8 = vmul.f32 0.5, %v10985_v56  ;;  %2782 = verf.f32 %v1491_v62  ;;  %v10991_v0 = vld [vmem:[#allocation79_spill] sm:$0xff] }
 0x1b5   :  { %10978 = vst [vmem:[#allocation335_spill] sm:$0xff] %v6178_v33  ;;  %10979 = vst [vmem:[#allocation336_spill] sm:$0xff] %v6181_v34  ;;  %v10987_v33 = vld [vmem:[#allocation76_spill] sm:$0xff]  ;;  %v1495_v34 = vmul.f32 0.70710677, %v4908_v35  ;;  %2784 = verf.f32 %v1492_v13  ;;  %v10993_v7 = vld [vmem:[#allocation211_spill] sm:$0xff] }
 0x1b6   :  { %10980 = vst [vmem:[#allocation337_spill] sm:$0xff] %v6184_v37  ;;  %10982 = vst [vmem:[#allocation338_spill] sm:$0xff] %v6188_v63  ;;  %v6198_v9 = vmul.f32 0.5, %v10987_v33  ;;  %v10989_v37 = vld [vmem:[#allocation77_spill] sm:$0xff]  ;;  %v6205_v63 = vmul.f32 0.5, %v10991_v0  ;;  %v6209_v16 = vmul.f32 0.5, %v10993_v7  ;;  %2786 = verf.f32 %v1493_v15 }
 0x1b7   :  { %10984 = vst [vmem:[#allocation74_spill] sm:$0xff] %v6191_v41  ;;  %10986 = vst [vmem:[#allocation339_spill] sm:$0xff] %v6195_v8  ;;  %v6202_v4 = vmul.f32 0.5, %v10989_v37  ;;  %v1496_v41 = vmul.f32 0.70710677, %v4912_v36  ;;  %v10995_v56 = vld [vmem:[#allocation212_spill] sm:$0xff]  ;;  %2788 = verf.f32 %v1494_v38 }
 0x1b8   :  { %10988 = vst [vmem:[#allocation76_spill] sm:$0xff] %v6198_v9  ;;  %10992 = vst [vmem:[#allocation79_spill] sm:$0xff] %v6205_v63  ;;  %v6212_v8 = vmul.f32 0.5, %v10995_v56  ;;  %v1497_v9 = vmul.f32 0.70710677, %v4916_v32  ;;  %v10997_v35 = vld [vmem:[#allocation213_spill] sm:$0xff]  ;;  %2790 = verf.f32 %v1495_v34 }
 0x1b9   :  { %10990 = vst [vmem:[#allocation340_spill] sm:$0xff] %v6202_v4  ;;  %10994 = vst [vmem:[#allocation341_spill] sm:$0xff] %v6209_v16  ;;  %v6216_v62 = vmul.f32 0.5, %v10997_v35  ;;  %v10999_v37 = vld [vmem:[#allocation214_spill] sm:$0xff]  ;;  %v1498_v63 = vmul.f32 0.70710677, %v4920_v31  ;;  %2792 = verf.f32 %v1496_v41 }
 0x1ba   :  { %10996 = vst [vmem:[#allocation212_spill] sm:$0xff] %v6212_v8  ;;  %v6219_v4 = vmul.f32 0.5, %v10999_v37  ;;  %v11001_v36 = vld [vmem:[#allocation215_spill] sm:$0xff]  ;;  %v11003_v7 = vld [vmem:[#allocation216_spill] sm:$0xff]  ;;  %v1499_v8 = vmul.f32 0.70710677, %v4924_v30  ;;  %2794 = verf.f32 %v1497_v9 }
 0x1bb   :  { %10998 = vst [vmem:[#allocation342_spill] sm:$0xff] %v6216_v62  ;;  %v6223_v13 = vmul.f32 0.5, %v11001_v36  ;;  %v6226_v16 = vmul.f32 0.5, %v11003_v7  ;;  %v11005_v32 = vld [vmem:[#allocation217_spill] sm:$0xff]  ;;  %v11007_v35 = vld [vmem:[#allocation218_spill] sm:$0xff]  ;;  %v11009_v31 = vld [vmem:[#allocation219_spill] sm:$0xff]  ;;  %2796 = verf.f32 %v1498_v63 }
 0x1bc   :  { %11000 = vst [vmem:[#allocation214_spill] sm:$0xff] %v6219_v4  ;;  %v6230_v15 = vmul.f32 0.5, %v11005_v32  ;;  %v6233_v62 = vmul.f32 0.5, %v11007_v35  ;;  %v1500_v4 = vmul.f32 0.70710677, %v4928_v5  ;;  %v6237_v38 = vmul.f32 0.5, %v11009_v31 }
 0x1bd   :  { %11002 = vst [vmem:[#allocation343_spill] sm:$0xff] %v6223_v13  ;;  %11004 = vst [vmem:[#allocation216_spill] sm:$0xff] %v6226_v16  ;;  %v11011_v36 = vld [vmem:[#allocation220_spill] sm:$0xff]  ;;  %v1501_v16 = vmul.f32 0.70710677, %v4932_v28  ;;  %v11013_v30 = vld [vmem:[#allocation221_spill] sm:$0xff]  ;;  %2798 = verf.f32 %v1499_v8 }
 0x1be   :  { %11006 = vst [vmem:[#allocation344_spill] sm:$0xff] %v6230_v15  ;;  %11008 = vst [vmem:[#allocation218_spill] sm:$0xff] %v6233_v62  ;;  %v6240_v13 = vmul.f32 0.5, %v11011_v36  ;;  %v6244_v34 = vmul.f32 0.5, %v11013_v30  ;;  %v11015_v32 = vld [vmem:[#allocation222_spill] sm:$0xff]  ;;  %v11017_v5 = vld [vmem:[#allocation223_spill] sm:$0xff]  ;;  %2800 = verf.f32 %v1500_v4 }
 0x1bf   :  { %11010 = vst [vmem:[#allocation345_spill] sm:$0xff] %v6237_v38  ;;  %v6247_v15 = vmul.f32 0.5, %v11015_v32  ;;  %v1502_v62 = vmul.f32 0.70710677, %v4936_v27  ;;  %v6251_v41 = vmul.f32 0.5, %v11017_v5  ;;  %v11019_v31 = vld [vmem:[#allocation224_spill] sm:$0xff]  ;;  %2802 = verf.f32 %v1501_v16 }
 0x1c0   :  { %11012 = vst [vmem:[#allocation220_spill] sm:$0xff] %v6240_v13  ;;  %11014 = vst [vmem:[#allocation346_spill] sm:$0xff] %v6244_v34  ;;  %v6254_v38 = vmul.f32 0.5, %v11019_v31  ;;  %v1503_v13 = vmul.f32 0.70710677, %v4940_v26  ;;  %v11021_v28 = vld [vmem:[#allocation225_spill] sm:$0xff] }
 0x1c1   :  { %11016 = vst [vmem:[#allocation222_spill] sm:$0xff] %v6247_v15  ;;  %11018 = vst [vmem:[#allocation347_spill] sm:$0xff] %v6251_v41  ;;  %v6258_v9 = vmul.f32 0.5, %v11021_v28  ;;  %v11023_v30 = vld [vmem:[#allocation226_spill] sm:$0xff]  ;;  %v1504_v15 = vmul.f32 0.70710677, %v4944_v25  ;;  %2804 = verf.f32 %v1502_v62  ;;  %v6278_v25 = vpop.eup %2780 }
 0x1c2   :  { %11020 = vst [vmem:[#allocation224_spill] sm:$0xff] %v6254_v38  ;;  %v6261_v34 = vmul.f32 0.5, %v11023_v30  ;;  %v11025_v27 = vld [vmem:[#allocation227_spill] sm:$0xff]  ;;  %v11027_v5 = vld [vmem:[#allocation228_spill] sm:$0xff]  ;;  %v1505_v38 = vmul.f32 0.70710677, %v4948_v24  ;;  %2806 = verf.f32 %v1503_v13  ;;  %v6287_v16 = vpop.eup %2782 }
 0x1c3   :  { %11022 = vst [vmem:[#allocation348_spill] sm:$0xff] %v6258_v9  ;;  %v6265_v63 = vmul.f32 0.5, %v11025_v27  ;;  %v6268_v41 = vmul.f32 0.5, %v11027_v5  ;;  %v11029_v26 = vld [vmem:[#allocation229_spill] sm:$0xff]  ;;  %v11031_v28 = vld [vmem:[#allocation230_spill] sm:$0xff]  ;;  %11033 = vst [vmem:[#allocation350_spill] sm:$0xff] %v6278_v25  ;;  %2808 = verf.f32 %v1504_v15  ;;  %v6296_v62 = vpop.eup %2784 }
 0x1c4   :  { %11024 = vst [vmem:[#allocation226_spill] sm:$0xff] %v6261_v34  ;;  %v6272_v8 = vmul.f32 0.5, %v11029_v26  ;;  %v6275_v9 = vmul.f32 0.5, %v11031_v28  ;;  %v1506_v34 = vmul.f32 0.70710677, %v4952_v23  ;;  %v6281_v4 = vmul.f32 0.5, %v5396_v6  ;;  %v6305_v13 = vpop.eup %2786 }
 0x1c5   :  { %11026 = vst [vmem:[#allocation227_spill] sm:$0xff] %v6265_v63  ;;  %11028 = vst [vmem:[#allocation349_spill] sm:$0xff] %v6268_v41  ;;  %v11035_v63 = vld [vmem:[#allocation231_spill] sm:$0xff]  ;;  %v1507_v24 = vmul.f32 0.70710677, %v4956_v22  ;;  %2810 = verf.f32 %v1505_v38  ;;  %v6314_v15 = vpop.eup %2788 }
 0x1c6   :  { %11030 = vst [vmem:[#allocation229_spill] sm:$0xff] %v6272_v8  ;;  %11032 = vst [vmem:[#allocation230_spill] sm:$0xff] %v6275_v9  ;;  %v6284_v5 = vmul.f32 0.5, %v11035_v63  ;;  %v6290_v8 = vmul.f32 0.5, %v5400_v29  ;;  %v6293_v9 = vmul.f32 0.5, %v5404_v1  ;;  %2812 = verf.f32 %v1506_v34  ;;  %v6323_v38 = vpop.eup %2790 }
 0x1c7   :  { %11034 = vst [vmem:[#allocation351_spill] sm:$0xff] %v6281_v4  ;;  %11037 = vst [vmem:[#allocation352_spill] sm:$0xff] %v6287_v16  ;;  %v1508_v23 = vmul.f32 0.70710677, %v4960_v21  ;;  %v6299_v4 = vmul.f32 0.5, %v5408_v14  ;;  %2814 = verf.f32 %v1507_v24  ;;  %v6332_v34 = vpop.eup %2792 }
 0x1c8   :  { %11036 = vst [vmem:[#allocation231_spill] sm:$0xff] %v6284_v5  ;;  %11038 = vst [vmem:[#allocation353_spill] sm:$0xff] %v6290_v8  ;;  %v11042_v5 = vld [vmem:[#allocation184_spill] sm:$0xff]  ;;  %v1509_v22 = vmul.f32 0.70710677, %v4964_v19  ;;  %v11045_v8 = vld [vmem:[#allocation185_spill] sm:$0xff]  ;;  %v6341_v24 = vpop.eup %2794 }
 0x1c9   :  { %11039 = vst [vmem:[#allocation354_spill] sm:$0xff] %v6293_v9  ;;  %11040 = vst [vmem:[#allocation355_spill] sm:$0xff] %v6296_v62  ;;  %v6302_v41 = vmul.f32 0.5, %v11042_v5  ;;  %v6308_v16 = vmul.f32 0.5, %v11045_v8  ;;  %v11047_v9 = vld [vmem:[#allocation186_spill] sm:$0xff]  ;;  %2816 = verf.f32 %v1508_v23  ;;  %v6350_v23 = vpop.eup %2796 }
 0x1ca   :  { %11041 = vst [vmem:[#allocation356_spill] sm:$0xff] %v6299_v4  ;;  %11044 = vst [vmem:[#allocation358_spill] sm:$0xff] %v6305_v13  ;;  %v6311_v25 = vmul.f32 0.5, %v11047_v9  ;;  %v1510_v21 = vmul.f32 0.70710677, %v4968_v18  ;;  %v11050_v4 = vld [vmem:[#allocation187_spill] sm:$0xff]  ;;  %2818 = verf.f32 %v1509_v22  ;;  %v6359_v22 = vpop.eup %2798 }
 0x1cb   :  { %11043 = vst [vmem:[#allocation357_spill] sm:$0xff] %v6302_v41  ;;  %11046 = vst [vmem:[#allocation185_spill] sm:$0xff] %v6308_v16  ;;  %v6317_v62 = vmul.f32 0.5, %v11050_v4  ;;  %v11052_v41 = vld [vmem:[#allocation69_spill] sm:$0xff]  ;;  %v1511_v19 = vmul.f32 0.70710677, %v4972_v17 }
 0x1cc   :  { %11048 = vst [vmem:[#allocation359_spill] sm:$0xff] %v6311_v25  ;;  %11049 = vst [vmem:[#allocation360_spill] sm:$0xff] %v6314_v15  ;;  %v6320_v5 = vmul.f32 0.5, %v11052_v41  ;;  %v11055_v16 = vld [vmem:[#allocation188_spill] sm:$0xff]  ;;  %v11057_v25 = vld [vmem:[#allocation189_spill] sm:$0xff]  ;;  %2820 = verf.f32 %v1510_v21  ;;  %v6368_v21 = vpop.eup %2800 }
 0x1cd   :  { %11051 = vst [vmem:[#allocation187_spill] sm:$0xff] %v6317_v62  ;;  %11054 = vst [vmem:[#allocation362_spill] sm:$0xff] %v6323_v38  ;;  %v6326_v13 = vmul.f32 0.5, %v11055_v16  ;;  %v6329_v9 = vmul.f32 0.5, %v11057_v25  ;;  %v1512_v18 = vmul.f32 0.70710677, %v4976_v47  ;;  %2822 = verf.f32 %v1511_v19  ;;  %v6377_v19 = vpop.eup %2802 }
 0x1ce   :  { %11053 = vst [vmem:[#allocation361_spill] sm:$0xff] %v6320_v5  ;;  %11059 = vst [vmem:[#allocation365_spill] sm:$0xff] %v6332_v34  ;;  %v11060_v62 = vld [vmem:[#allocation190_spill] sm:$0xff]  ;;  %v11062_v5 = vld [vmem:[#allocation191_spill] sm:$0xff]  ;;  %v1513_v17 = vmul.f32 0.70710677, %v10778_v12 }
 0x1cf   :  { %11056 = vst [vmem:[#allocation363_spill] sm:$0xff] %v6326_v13  ;;  %11058 = vst [vmem:[#allocation364_spill] sm:$0xff] %v6329_v9  ;;  %v6335_v15 = vmul.f32 0.5, %v11060_v62  ;;  %v6338_v41 = vmul.f32 0.5, %v11062_v5  ;;  %v11065_v13 = vld [vmem:[#allocation192_spill] sm:$0xff]  ;;  %v11067_v9 = vld [vmem:[#allocation193_spill] sm:$0xff]  ;;  %2824 = verf.f32 %v1512_v18  ;;  %v6386_v18 = vpop.eup %2804 }
 0x1d0   :  { %11064 = vst [vmem:[#allocation368_spill] sm:$0xff] %v6341_v24  ;;  %v6344_v38 = vmul.f32 0.5, %v11065_v13  ;;  %v6347_v25 = vmul.f32 0.5, %v11067_v9  ;;  %v1514_v47 = vmul.f32 0.70710677, %v10780_v54  ;;  %11069 = vst [vmem:[#allocation371_spill] sm:$0xff] %v6350_v23  ;;  %2826 = verf.f32 %v1513_v17  ;;  %v6395_v17 = vpop.eup %2806 }
 0x1d1   :  { %11061 = vst [vmem:[#allocation366_spill] sm:$0xff] %v6335_v15  ;;  %11063 = vst [vmem:[#allocation367_spill] sm:$0xff] %v6338_v41  ;;  %v11070_v15 = vld [vmem:[#allocation194_spill] sm:$0xff]  ;;  %v11072_v41 = vld [vmem:[#allocation195_spill] sm:$0xff]  ;;  %v1515_v12 = vmul.f32 0.70710677, %v10782_v52 }
 0x1d2   :  { %11066 = vst [vmem:[#allocation369_spill] sm:$0xff] %v6344_v38  ;;  %11068 = vst [vmem:[#allocation370_spill] sm:$0xff] %v6347_v25  ;;  %v6353_v34 = vmul.f32 0.5, %v11070_v15  ;;  %v6356_v5 = vmul.f32 0.5, %v11072_v41  ;;  %v11075_v38 = vld [vmem:[#allocation78_spill] sm:$0xff]  ;;  %v11077_v25 = vld [vmem:[#allocation196_spill] sm:$0xff]  ;;  %2828 = verf.f32 %v1514_v47  ;;  %v6404_v47 = vpop.eup %2808 }
 0x1d3   :  { %11074 = vst [vmem:[#allocation374_spill] sm:$0xff] %v6359_v22  ;;  %v6362_v24 = vmul.f32 0.5, %v11075_v38  ;;  %v6365_v9 = vmul.f32 0.5, %v11077_v25  ;;  %v1516_v54 = vmul.f32 0.70710677, %v10784_v61  ;;  %11079 = vst [vmem:[#allocation377_spill] sm:$0xff] %v6368_v21  ;;  %2830 = verf.f32 %v1515_v12  ;;  %v6413_v12 = vpop.eup %2810 }
 0x1d4   :  { %11071 = vst [vmem:[#allocation372_spill] sm:$0xff] %v6353_v34  ;;  %11073 = vst [vmem:[#allocation373_spill] sm:$0xff] %v6356_v5  ;;  %v11080_v34 = vld [vmem:[#allocation80_spill] sm:$0xff]  ;;  %v11082_v5 = vld [vmem:[#allocation81_spill] sm:$0xff]  ;;  %v1517_v52 = vmul.f32 0.70710677, %v10786_v11 }
 0x1d5   :  { %11076 = vst [vmem:[#allocation375_spill] sm:$0xff] %v6362_v24  ;;  %11078 = vst [vmem:[#allocation376_spill] sm:$0xff] %v6365_v9  ;;  %v6371_v23 = vmul.f32 0.5, %v11080_v34  ;;  %v6374_v41 = vmul.f32 0.5, %v11082_v5  ;;  %v11085_v24 = vld [vmem:[#allocation82_spill] sm:$0xff]  ;;  %v11087_v9 = vld [vmem:[#allocation197_spill] sm:$0xff]  ;;  %2832 = verf.f32 %v1516_v54  ;;  %v6422_v54 = vpop.eup %2812 }
 0x1d6   :  { %11084 = vst [vmem:[#allocation380_spill] sm:$0xff] %v6377_v19  ;;  %v6380_v22 = vmul.f32 0.5, %v11085_v24  ;;  %v6383_v25 = vmul.f32 0.5, %v11087_v9  ;;  %v1518_v61 = vmul.f32 0.70710677, %v10788_v60  ;;  %11089 = vst [vmem:[#allocation383_spill] sm:$0xff] %v6386_v18  ;;  %2834 = verf.f32 %v1517_v52  ;;  %v6431_v52 = vpop.eup %2814 }
 0x1d7   :  { %11081 = vst [vmem:[#allocation378_spill] sm:$0xff] %v6371_v23  ;;  %11083 = vst [vmem:[#allocation379_spill] sm:$0xff] %v6374_v41  ;;  %v11090_v23 = vld [vmem:[#allocation198_spill] sm:$0xff]  ;;  %v11092_v41 = vld [vmem:[#allocation199_spill] sm:$0xff]  ;;  %v1519_v11 = vmul.f32 0.70710677, %v10790_v59 }
 0x1d8   :  { %11086 = vst [vmem:[#allocation381_spill] sm:$0xff] %v6380_v22  ;;  %11088 = vst [vmem:[#allocation382_spill] sm:$0xff] %v6383_v25  ;;  %v6389_v21 = vmul.f32 0.5, %v11090_v23  ;;  %v6392_v5 = vmul.f32 0.5, %v11092_v41  ;;  %v11095_v22 = vld [vmem:[#allocation200_spill] sm:$0xff]  ;;  %v11097_v25 = vld [vmem:[#allocation201_spill] sm:$0xff]  ;;  %2836 = verf.f32 %v1518_v61  ;;  %v6440_v61 = vpop.eup %2816 }
 0x1d9   :  { %11094 = vst [vmem:[#allocation386_spill] sm:$0xff] %v6395_v17  ;;  %v6398_v19 = vmul.f32 0.5, %v11095_v22  ;;  %v6401_v9 = vmul.f32 0.5, %v11097_v25  ;;  %v1520_v60 = vmul.f32 0.70710677, %v10792_v58  ;;  %11099 = vst [vmem:[#allocation389_spill] sm:$0xff] %v6404_v47  ;;  %2838 = verf.f32 %v1519_v11  ;;  %v6449_v11 = vpop.eup %2818 }
 0x1da   :  { %11091 = vst [vmem:[#allocation384_spill] sm:$0xff] %v6389_v21  ;;  %11093 = vst [vmem:[#allocation385_spill] sm:$0xff] %v6392_v5  ;;  %v11100_v21 = vld [vmem:[#allocation202_spill] sm:$0xff]  ;;  %v11102_v5 = vld [vmem:[#allocation203_spill] sm:$0xff]  ;;  %v1521_v59 = vmul.f32 0.70710677, %v10794_v57 }
 0x1db   :  { %11096 = vst [vmem:[#allocation387_spill] sm:$0xff] %v6398_v19  ;;  %11098 = vst [vmem:[#allocation388_spill] sm:$0xff] %v6401_v9  ;;  %v6407_v18 = vmul.f32 0.5, %v11100_v21  ;;  %v6410_v41 = vmul.f32 0.5, %v11102_v5  ;;  %v11105_v19 = vld [vmem:[#allocation204_spill] sm:$0xff]  ;;  %v11107_v9 = vld [vmem:[#allocation205_spill] sm:$0xff]  ;;  %2840 = verf.f32 %v1520_v60  ;;  %v6458_v60 = vpop.eup %2820 }
 0x1dc   :  { %11104 = vst [vmem:[#allocation392_spill] sm:$0xff] %v6413_v12  ;;  %v6416_v17 = vmul.f32 0.5, %v11105_v19  ;;  %v6419_v25 = vmul.f32 0.5, %v11107_v9  ;;  %v1522_v58 = vmul.f32 0.70710677, %v10796_v55  ;;  %11109 = vst [vmem:[#allocation395_spill] sm:$0xff] %v6422_v54  ;;  %2842 = verf.f32 %v1521_v59  ;;  %v6467_v59 = vpop.eup %2822 }
 0x1dd   :  { %11101 = vst [vmem:[#allocation390_spill] sm:$0xff] %v6407_v18  ;;  %11103 = vst [vmem:[#allocation391_spill] sm:$0xff] %v6410_v41  ;;  %v11110_v18 = vld [vmem:[#allocation206_spill] sm:$0xff]  ;;  %v11112_v41 = vld [vmem:[#allocation207_spill] sm:$0xff]  ;;  %v1523_v57 = vmul.f32 0.70710677, %v10798_v48 }
 0x1de   :  { %11106 = vst [vmem:[#allocation393_spill] sm:$0xff] %v6416_v17  ;;  %11108 = vst [vmem:[#allocation394_spill] sm:$0xff] %v6419_v25  ;;  %v6425_v47 = vmul.f32 0.5, %v11110_v18  ;;  %v6428_v5 = vmul.f32 0.5, %v11112_v41  ;;  %v11115_v17 = vld [vmem:[#allocation208_spill] sm:$0xff]  ;;  %v11117_v25 = vld [vmem:[#allocation209_spill] sm:$0xff]  ;;  %2844 = verf.f32 %v1522_v58 }
 0x1df   :  { %11114 = vst [vmem:[#allocation398_spill] sm:$0xff] %v6431_v52  ;;  %v6434_v12 = vmul.f32 0.5, %v11115_v17  ;;  %v6437_v9 = vmul.f32 0.5, %v11117_v25  ;;  %v1524_v55 = vmul.f32 0.70710677, %v10800_v53  ;;  %11119 = vst [vmem:[#allocation401_spill] sm:$0xff] %v6440_v61  ;;  %2846 = verf.f32 %v1523_v57 }
 0x1e0   :  { %11111 = vst [vmem:[#allocation396_spill] sm:$0xff] %v6425_v47  ;;  %11113 = vst [vmem:[#allocation397_spill] sm:$0xff] %v6428_v5  ;;  %v11120_v47 = vld [vmem:[#allocation6_spill] sm:$0xff]  ;;  %v11122_v5 = vld [vmem:[#allocation7_spill] sm:$0xff]  ;;  %v1525_v48 = vmul.f32 0.70710677, %v10802_v45 }
 0x1e1   :  { %11116 = vst [vmem:[#allocation399_spill] sm:$0xff] %v6434_v12  ;;  %11118 = vst [vmem:[#allocation400_spill] sm:$0xff] %v6437_v9  ;;  %v6443_v54 = vmul.f32 0.5, %v11120_v47  ;;  %v6446_v41 = vmul.f32 0.5, %v11122_v5  ;;  %v11125_v12 = vld [vmem:[#allocation8_spill] sm:$0xff]  ;;  %v11127_v9 = vld [vmem:[#allocation9_spill] sm:$0xff]  ;;  %2848 = verf.f32 %v1524_v55 }
 0x1e2   :  { %11124 = vst [vmem:[#allocation404_spill] sm:$0xff] %v6449_v11  ;;  %v6452_v52 = vmul.f32 0.5, %v11125_v12  ;;  %v6455_v25 = vmul.f32 0.5, %v11127_v9  ;;  %v1526_v53 = vmul.f32 0.70710677, %v10804_v44  ;;  %11129 = vst [vmem:[#allocation407_spill] sm:$0xff] %v6458_v60  ;;  %v6476_v60 = vpop.eup %2824  ;;  %2850 = verf.f32 %v1525_v48 }
 0x1e3   :  { %11121 = vst [vmem:[#allocation402_spill] sm:$0xff] %v6443_v54  ;;  %11123 = vst [vmem:[#allocation403_spill] sm:$0xff] %v6446_v41  ;;  %v11130_v54 = vld [vmem:[#allocation10_spill] sm:$0xff]  ;;  %v11132_v41 = vld [vmem:[#allocation11_spill] sm:$0xff]  ;;  %v1527_v45 = vmul.f32 0.70710677, %v10806_v43 }
 0x1e4   :  { %11126 = vst [vmem:[#allocation405_spill] sm:$0xff] %v6452_v52  ;;  %11128 = vst [vmem:[#allocation406_spill] sm:$0xff] %v6455_v25  ;;  %v6461_v61 = vmul.f32 0.5, %v11130_v54  ;;  %v6464_v5 = vmul.f32 0.5, %v11132_v41  ;;  %v11135_v52 = vld [vmem:[#allocation12_spill] sm:$0xff]  ;;  %v11137_v25 = vld [vmem:[#allocation13_spill] sm:$0xff]  ;;  %2852 = verf.f32 %v1526_v53 }
 0x1e5   :  { %11134 = vst [vmem:[#allocation410_spill] sm:$0xff] %v6467_v59  ;;  %v6470_v11 = vmul.f32 0.5, %v11135_v52  ;;  %v6473_v9 = vmul.f32 0.5, %v11137_v25  ;;  %v11139_v44 = vld [vmem:[#allocation98_spill] sm:$0xff]  ;;  %v11145_v43 = vld [vmem:[#allocation99_spill] sm:$0xff]  ;;  %v6485_v59 = vpop.eup %2826  ;;  %v11151_v55 = vld [vmem:[#allocation100_spill] sm:$0xff]  ;;  %2854 = verf.f32 %v1527_v45 }
 0x1e6   :  { %11131 = vst [vmem:[#allocation408_spill] sm:$0xff] %v6461_v61  ;;  %11133 = vst [vmem:[#allocation409_spill] sm:$0xff] %v6464_v5  ;;  %v1528_v58 = vmul.f32 0.70710677, %v11139_v44  ;;  %v11141_v61 = vld [vmem:[#allocation14_spill] sm:$0xff]  ;;  %v11143_v5 = vld [vmem:[#allocation15_spill] sm:$0xff] }
 0x1e7   :  { %11136 = vst [vmem:[#allocation411_spill] sm:$0xff] %v6470_v11  ;;  %11138 = vst [vmem:[#allocation412_spill] sm:$0xff] %v6473_v9  ;;  %v6479_v54 = vmul.f32 0.5, %v11141_v61  ;;  %v6482_v41 = vmul.f32 0.5, %v11143_v5  ;;  %v1529_v57 = vmul.f32 0.70710677, %v11145_v43 }
 0x1e8   :  { %11140 = vst [vmem:[#allocation98_spill] sm:$0xff] %v6476_v60  ;;  %11146 = vst [vmem:[#allocation99_spill] sm:$0xff] %v6485_v59  ;;  %v11147_v11 = vld [vmem:[#allocation16_spill] sm:$0xff]  ;;  %v11149_v9 = vld [vmem:[#allocation17_spill] sm:$0xff]  ;;  %v1530_v44 = vmul.f32 0.70710677, %v11151_v55  ;;  %v6494_v60 = vpop.eup %2828  ;;  %2856 = verf.f32 %v1528_v58 }
 0x1e9   :  { %11142 = vst [vmem:[#allocation413_spill] sm:$0xff] %v6479_v54  ;;  %11144 = vst [vmem:[#allocation414_spill] sm:$0xff] %v6482_v41  ;;  %v6488_v52 = vmul.f32 0.5, %v11147_v11  ;;  %v6491_v25 = vmul.f32 0.5, %v11149_v9  ;;  %v11153_v54 = vld [vmem:[#allocation18_spill] sm:$0xff]  ;;  %v11155_v41 = vld [vmem:[#allocation19_spill] sm:$0xff]  ;;  %v6503_v59 = vpop.eup %2830  ;;  %2858 = verf.f32 %v1529_v57 }
 0x1ea   :  { %11152 = vst [vmem:[#allocation100_spill] sm:$0xff] %v6494_v60  ;;  %v6497_v61 = vmul.f32 0.5, %v11153_v54  ;;  %v6500_v5 = vmul.f32 0.5, %v11155_v41  ;;  %v11157_v48 = vld [vmem:[#allocation101_spill] sm:$0xff]  ;;  %v11163_v53 = vld [vmem:[#allocation102_spill] sm:$0xff]  ;;  %v6512_v60 = vpop.eup %2832  ;;  %v11169_v45 = vld [vmem:[#allocation103_spill] sm:$0xff]  ;;  %2860 = verf.f32 %v1530_v44 }
 0x1eb   :  { %11148 = vst [vmem:[#allocation415_spill] sm:$0xff] %v6488_v52  ;;  %11150 = vst [vmem:[#allocation416_spill] sm:$0xff] %v6491_v25  ;;  %v1531_v43 = vmul.f32 0.70710677, %v11157_v48  ;;  %v11159_v52 = vld [vmem:[#allocation20_spill] sm:$0xff]  ;;  %v11161_v25 = vld [vmem:[#allocation21_spill] sm:$0xff] }
 0x1ec   :  { %11154 = vst [vmem:[#allocation417_spill] sm:$0xff] %v6497_v61  ;;  %11156 = vst [vmem:[#allocation418_spill] sm:$0xff] %v6500_v5  ;;  %v6506_v11 = vmul.f32 0.5, %v11159_v52  ;;  %v6509_v9 = vmul.f32 0.5, %v11161_v25  ;;  %v1532_v55 = vmul.f32 0.70710677, %v11163_v53 }
 0x1ed   :  { %11158 = vst [vmem:[#allocation101_spill] sm:$0xff] %v6503_v59  ;;  %11164 = vst [vmem:[#allocation102_spill] sm:$0xff] %v6512_v60  ;;  %v11165_v61 = vld [vmem:[#allocation22_spill] sm:$0xff]  ;;  %v11167_v5 = vld [vmem:[#allocation23_spill] sm:$0xff]  ;;  %v1533_v48 = vmul.f32 0.70710677, %v11169_v45  ;;  %v6521_v59 = vpop.eup %2834  ;;  %2862 = verf.f32 %v1531_v43 }
 0x1ee   :  { %11160 = vst [vmem:[#allocation419_spill] sm:$0xff] %v6506_v11  ;;  %11162 = vst [vmem:[#allocation420_spill] sm:$0xff] %v6509_v9  ;;  %v6515_v54 = vmul.f32 0.5, %v11165_v61  ;;  %v6518_v41 = vmul.f32 0.5, %v11167_v5  ;;  %v11171_v11 = vld [vmem:[#allocation24_spill] sm:$0xff]  ;;  %v11173_v9 = vld [vmem:[#allocation25_spill] sm:$0xff]  ;;  %v6530_v60 = vpop.eup %2836  ;;  %2864 = verf.f32 %v1532_v55 }
 0x1ef   :  { %11170 = vst [vmem:[#allocation103_spill] sm:$0xff] %v6521_v59  ;;  %v6524_v52 = vmul.f32 0.5, %v11171_v11  ;;  %v6527_v25 = vmul.f32 0.5, %v11173_v9  ;;  %v11175_v58 = vld [vmem:[#allocation104_spill] sm:$0xff]  ;;  %v11181_v57 = vld [vmem:[#allocation105_spill] sm:$0xff]  ;;  %v6539_v59 = vpop.eup %2838  ;;  %v11187_v44 = vld [vmem:[#allocation106_spill] sm:$0xff]  ;;  %2866 = verf.f32 %v1533_v48 }
 0x1f0   :  { %11166 = vst [vmem:[#allocation421_spill] sm:$0xff] %v6515_v54  ;;  %11168 = vst [vmem:[#allocation422_spill] sm:$0xff] %v6518_v41  ;;  %v1534_v53 = vmul.f32 0.70710677, %v11175_v58  ;;  %v11177_v54 = vld [vmem:[#allocation26_spill] sm:$0xff]  ;;  %v11179_v41 = vld [vmem:[#allocation27_spill] sm:$0xff] }
 0x1f1   :  { %11172 = vst [vmem:[#allocation423_spill] sm:$0xff] %v6524_v52  ;;  %11174 = vst [vmem:[#allocation424_spill] sm:$0xff] %v6527_v25  ;;  %v6533_v61 = vmul.f32 0.5, %v11177_v54  ;;  %v6536_v5 = vmul.f32 0.5, %v11179_v41  ;;  %v1535_v45 = vmul.f32 0.70710677, %v11181_v57 }
 0x1f2   :  { %11176 = vst [vmem:[#allocation104_spill] sm:$0xff] %v6530_v60  ;;  %11182 = vst [vmem:[#allocation105_spill] sm:$0xff] %v6539_v59  ;;  %v11183_v52 = vld [vmem:[#allocation28_spill] sm:$0xff]  ;;  %v11185_v25 = vld [vmem:[#allocation29_spill] sm:$0xff]  ;;  %v1536_v58 = vmul.f32 0.70710677, %v11187_v44  ;;  %v6548_v60 = vpop.eup %2840  ;;  %2868 = verf.f32 %v1534_v53 }
 0x1f3   :  { %11178 = vst [vmem:[#allocation425_spill] sm:$0xff] %v6533_v61  ;;  %11180 = vst [vmem:[#allocation426_spill] sm:$0xff] %v6536_v5  ;;  %v6542_v11 = vmul.f32 0.5, %v11183_v52  ;;  %v6545_v9 = vmul.f32 0.5, %v11185_v25  ;;  %v11189_v61 = vld [vmem:[#allocation30_spill] sm:$0xff]  ;;  %v11191_v5 = vld [vmem:[#allocation31_spill] sm:$0xff]  ;;  %v6557_v59 = vpop.eup %2842  ;;  %2870 = verf.f32 %v1535_v45 }
 0x1f4   :  { %11188 = vst [vmem:[#allocation106_spill] sm:$0xff] %v6548_v60  ;;  %v6551_v54 = vmul.f32 0.5, %v11189_v61  ;;  %v6554_v41 = vmul.f32 0.5, %v11191_v5  ;;  %v11193_v43 = vld [vmem:[#allocation107_spill] sm:$0xff]  ;;  %v11199_v55 = vld [vmem:[#allocation108_spill] sm:$0xff]  ;;  %v6566_v60 = vpop.eup %2844  ;;  %v11205_v48 = vld [vmem:[#allocation109_spill] sm:$0xff]  ;;  %2872 = verf.f32 %v1536_v58 }
 0x1f5   :  { %11184 = vst [vmem:[#allocation427_spill] sm:$0xff] %v6542_v11  ;;  %11186 = vst [vmem:[#allocation428_spill] sm:$0xff] %v6545_v9  ;;  %v1537_v57 = vmul.f32 0.70710677, %v11193_v43  ;;  %v11195_v11 = vld [vmem:[#allocation32_spill] sm:$0xff]  ;;  %v11197_v9 = vld [vmem:[#allocation33_spill] sm:$0xff] }
 0x1f6   :  { %11190 = vst [vmem:[#allocation429_spill] sm:$0xff] %v6551_v54  ;;  %11192 = vst [vmem:[#allocation430_spill] sm:$0xff] %v6554_v41  ;;  %v6560_v52 = vmul.f32 0.5, %v11195_v11  ;;  %v6563_v25 = vmul.f32 0.5, %v11197_v9  ;;  %v1538_v44 = vmul.f32 0.70710677, %v11199_v55 }
 0x1f7   :  { %11194 = vst [vmem:[#allocation107_spill] sm:$0xff] %v6557_v59  ;;  %11200 = vst [vmem:[#allocation108_spill] sm:$0xff] %v6566_v60  ;;  %v11201_v54 = vld [vmem:[#allocation34_spill] sm:$0xff]  ;;  %v11203_v41 = vld [vmem:[#allocation35_spill] sm:$0xff]  ;;  %v1539_v43 = vmul.f32 0.70710677, %v11205_v48  ;;  %v6575_v59 = vpop.eup %2846  ;;  %2874 = verf.f32 %v1537_v57 }
 0x1f8   :  { %11196 = vst [vmem:[#allocation431_spill] sm:$0xff] %v6560_v52  ;;  %11198 = vst [vmem:[#allocation432_spill] sm:$0xff] %v6563_v25  ;;  %v6569_v61 = vmul.f32 0.5, %v11201_v54  ;;  %v6572_v5 = vmul.f32 0.5, %v11203_v41  ;;  %v11207_v52 = vld [vmem:[#allocation36_spill] sm:$0xff]  ;;  %v11209_v25 = vld [vmem:[#allocation37_spill] sm:$0xff]  ;;  %v6584_v60 = vpop.eup %2848  ;;  %2876 = verf.f32 %v1538_v44 }
 0x1f9   :  { %11206 = vst [vmem:[#allocation109_spill] sm:$0xff] %v6575_v59  ;;  %v6578_v11 = vmul.f32 0.5, %v11207_v52  ;;  %v6581_v9 = vmul.f32 0.5, %v11209_v25  ;;  %v11211_v53 = vld [vmem:[#allocation110_spill] sm:$0xff]  ;;  %v11217_v45 = vld [vmem:[#allocation111_spill] sm:$0xff]  ;;  %v6593_v59 = vpop.eup %2850  ;;  %v11223_v58 = vld [vmem:[#allocation112_spill] sm:$0xff]  ;;  %2878 = verf.f32 %v1539_v43 }
 0x1fa   :  { %11202 = vst [vmem:[#allocation433_spill] sm:$0xff] %v6569_v61  ;;  %11204 = vst [vmem:[#allocation434_spill] sm:$0xff] %v6572_v5  ;;  %v1540_v55 = vmul.f32 0.70710677, %v11211_v53  ;;  %v11213_v61 = vld [vmem:[#allocation38_spill] sm:$0xff]  ;;  %v11215_v5 = vld [vmem:[#allocation39_spill] sm:$0xff] }
 0x1fb   :  { %11208 = vst [vmem:[#allocation435_spill] sm:$0xff] %v6578_v11  ;;  %11210 = vst [vmem:[#allocation436_spill] sm:$0xff] %v6581_v9  ;;  %v6587_v54 = vmul.f32 0.5, %v11213_v61  ;;  %v6590_v41 = vmul.f32 0.5, %v11215_v5  ;;  %v1541_v48 = vmul.f32 0.70710677, %v11217_v45 }
 0x1fc   :  { %11212 = vst [vmem:[#allocation110_spill] sm:$0xff] %v6584_v60  ;;  %11218 = vst [vmem:[#allocation111_spill] sm:$0xff] %v6593_v59  ;;  %v11219_v11 = vld [vmem:[#allocation40_spill] sm:$0xff]  ;;  %v11221_v9 = vld [vmem:[#allocation41_spill] sm:$0xff]  ;;  %v1542_v53 = vmul.f32 0.70710677, %v11223_v58  ;;  %v6602_v60 = vpop.eup %2852  ;;  %2880 = verf.f32 %v1540_v55 }
 0x1fd   :  { %11214 = vst [vmem:[#allocation437_spill] sm:$0xff] %v6587_v54  ;;  %11216 = vst [vmem:[#allocation438_spill] sm:$0xff] %v6590_v41  ;;  %v6596_v52 = vmul.f32 0.5, %v11219_v11  ;;  %v6599_v25 = vmul.f32 0.5, %v11221_v9  ;;  %v11225_v54 = vld [vmem:[#allocation42_spill] sm:$0xff]  ;;  %v11227_v41 = vld [vmem:[#allocation43_spill] sm:$0xff]  ;;  %v6611_v59 = vpop.eup %2854  ;;  %2882 = verf.f32 %v1541_v48 }
 0x1fe   :  { %11224 = vst [vmem:[#allocation112_spill] sm:$0xff] %v6602_v60  ;;  %v6605_v61 = vmul.f32 0.5, %v11225_v54  ;;  %v6608_v5 = vmul.f32 0.5, %v11227_v41  ;;  %v11229_v57 = vld [vmem:[#allocation113_spill] sm:$0xff]  ;;  %v11235_v44 = vld [vmem:[#allocation114_spill] sm:$0xff]  ;;  %v6620_v60 = vpop.eup %2856  ;;  %v11241_v43 = vld [vmem:[#allocation115_spill] sm:$0xff]  ;;  %2884 = verf.f32 %v1542_v53 }
 0x1ff   :  { %11220 = vst [vmem:[#allocation439_spill] sm:$0xff] %v6596_v52  ;;  %11222 = vst [vmem:[#allocation440_spill] sm:$0xff] %v6599_v25  ;;  %v1543_v45 = vmul.f32 0.70710677, %v11229_v57  ;;  %v11231_v52 = vld [vmem:[#allocation44_spill] sm:$0xff]  ;;  %v11233_v25 = vld [vmem:[#allocation45_spill] sm:$0xff] }
 0x200   :  { %11226 = vst [vmem:[#allocation441_spill] sm:$0xff] %v6605_v61  ;;  %11228 = vst [vmem:[#allocation442_spill] sm:$0xff] %v6608_v5  ;;  %v6614_v11 = vmul.f32 0.5, %v11231_v52  ;;  %v6617_v9 = vmul.f32 0.5, %v11233_v25  ;;  %v1544_v58 = vmul.f32 0.70710677, %v11235_v44 }
 0x201   :  { %11230 = vst [vmem:[#allocation113_spill] sm:$0xff] %v6611_v59  ;;  %11236 = vst [vmem:[#allocation114_spill] sm:$0xff] %v6620_v60  ;;  %v11237_v61 = vld [vmem:[#allocation46_spill] sm:$0xff]  ;;  %v11239_v5 = vld [vmem:[#allocation47_spill] sm:$0xff]  ;;  %v1545_v57 = vmul.f32 0.70710677, %v11241_v43  ;;  %v6629_v59 = vpop.eup %2858  ;;  %2886 = verf.f32 %v1543_v45 }
 0x202   :  { %11232 = vst [vmem:[#allocation443_spill] sm:$0xff] %v6614_v11  ;;  %11234 = vst [vmem:[#allocation444_spill] sm:$0xff] %v6617_v9  ;;  %v6623_v54 = vmul.f32 0.5, %v11237_v61  ;;  %v6626_v41 = vmul.f32 0.5, %v11239_v5  ;;  %v11243_v11 = vld [vmem:[#allocation48_spill] sm:$0xff]  ;;  %v11245_v9 = vld [vmem:[#allocation49_spill] sm:$0xff]  ;;  %v6638_v60 = vpop.eup %2860  ;;  %2888 = verf.f32 %v1544_v58 }
 0x203   :  { %11242 = vst [vmem:[#allocation115_spill] sm:$0xff] %v6629_v59  ;;  %v6632_v52 = vmul.f32 0.5, %v11243_v11  ;;  %v6635_v25 = vmul.f32 0.5, %v11245_v9  ;;  %v11247_v55 = vld [vmem:[#allocation116_spill] sm:$0xff]  ;;  %v11253_v48 = vld [vmem:[#allocation117_spill] sm:$0xff]  ;;  %v6647_v59 = vpop.eup %2862  ;;  %v11259_v53 = vld [vmem:[#allocation118_spill] sm:$0xff]  ;;  %2890 = verf.f32 %v1545_v57 }
 0x204   :  { %11238 = vst [vmem:[#allocation445_spill] sm:$0xff] %v6623_v54  ;;  %11240 = vst [vmem:[#allocation446_spill] sm:$0xff] %v6626_v41  ;;  %v1546_v44 = vmul.f32 0.70710677, %v11247_v55  ;;  %v11249_v54 = vld [vmem:[#allocation50_spill] sm:$0xff]  ;;  %v11251_v41 = vld [vmem:[#allocation51_spill] sm:$0xff] }
 0x205   :  { %11244 = vst [vmem:[#allocation447_spill] sm:$0xff] %v6632_v52  ;;  %11246 = vst [vmem:[#allocation448_spill] sm:$0xff] %v6635_v25  ;;  %v6641_v61 = vmul.f32 0.5, %v11249_v54  ;;  %v6644_v5 = vmul.f32 0.5, %v11251_v41  ;;  %v1547_v43 = vmul.f32 0.70710677, %v11253_v48 }
 0x206   :  { %11248 = vst [vmem:[#allocation116_spill] sm:$0xff] %v6638_v60  ;;  %11254 = vst [vmem:[#allocation117_spill] sm:$0xff] %v6647_v59  ;;  %v11255_v52 = vld [vmem:[#allocation52_spill] sm:$0xff]  ;;  %v11257_v25 = vld [vmem:[#allocation53_spill] sm:$0xff]  ;;  %v1548_v55 = vmul.f32 0.70710677, %v11259_v53  ;;  %v6656_v60 = vpop.eup %2864  ;;  %2892 = verf.f32 %v1546_v44 }
 0x207   :  { %11250 = vst [vmem:[#allocation449_spill] sm:$0xff] %v6641_v61  ;;  %11252 = vst [vmem:[#allocation450_spill] sm:$0xff] %v6644_v5  ;;  %v6650_v11 = vmul.f32 0.5, %v11255_v52  ;;  %v6653_v9 = vmul.f32 0.5, %v11257_v25  ;;  %v11261_v61 = vld [vmem:[#allocation54_spill] sm:$0xff]  ;;  %v11263_v5 = vld [vmem:[#allocation55_spill] sm:$0xff]  ;;  %v6665_v59 = vpop.eup %2866  ;;  %2894 = verf.f32 %v1547_v43 }
 0x208   :  { %11260 = vst [vmem:[#allocation118_spill] sm:$0xff] %v6656_v60  ;;  %v6659_v54 = vmul.f32 0.5, %v11261_v61  ;;  %v6662_v41 = vmul.f32 0.5, %v11263_v5  ;;  %v11265_v45 = vld [vmem:[#allocation119_spill] sm:$0xff]  ;;  %v11271_v58 = vld [vmem:[#allocation120_spill] sm:$0xff]  ;;  %v6674_v60 = vpop.eup %2868  ;;  %v11277_v57 = vld [vmem:[#allocation121_spill] sm:$0xff]  ;;  %2896 = verf.f32 %v1548_v55 }
 0x209   :  { %11256 = vst [vmem:[#allocation451_spill] sm:$0xff] %v6650_v11  ;;  %11258 = vst [vmem:[#allocation452_spill] sm:$0xff] %v6653_v9  ;;  %v1549_v48 = vmul.f32 0.70710677, %v11265_v45  ;;  %v11267_v11 = vld [vmem:[#allocation56_spill] sm:$0xff]  ;;  %v11269_v9 = vld [vmem:[#allocation57_spill] sm:$0xff] }
 0x20a   :  { %11262 = vst [vmem:[#allocation453_spill] sm:$0xff] %v6659_v54  ;;  %11264 = vst [vmem:[#allocation454_spill] sm:$0xff] %v6662_v41  ;;  %v6668_v52 = vmul.f32 0.5, %v11267_v11  ;;  %v6671_v25 = vmul.f32 0.5, %v11269_v9  ;;  %v1550_v53 = vmul.f32 0.70710677, %v11271_v58 }
 0x20b   :  { %11266 = vst [vmem:[#allocation119_spill] sm:$0xff] %v6665_v59  ;;  %11272 = vst [vmem:[#allocation120_spill] sm:$0xff] %v6674_v60  ;;  %v11273_v54 = vld [vmem:[#allocation58_spill] sm:$0xff]  ;;  %v11275_v41 = vld [vmem:[#allocation59_spill] sm:$0xff]  ;;  %v1551_v45 = vmul.f32 0.70710677, %v11277_v57  ;;  %v6683_v59 = vpop.eup %2870  ;;  %2898 = verf.f32 %v1549_v48 }
 0x20c   :  { %11268 = vst [vmem:[#allocation455_spill] sm:$0xff] %v6668_v52  ;;  %11270 = vst [vmem:[#allocation456_spill] sm:$0xff] %v6671_v25  ;;  %v6677_v61 = vmul.f32 0.5, %v11273_v54  ;;  %v6680_v5 = vmul.f32 0.5, %v11275_v41  ;;  %v11279_v52 = vld [vmem:[#allocation60_spill] sm:$0xff]  ;;  %v11281_v25 = vld [vmem:[#allocation61_spill] sm:$0xff]  ;;  %v6692_v60 = vpop.eup %2872  ;;  %2900 = verf.f32 %v1550_v53 }
 0x20d   :  { %11278 = vst [vmem:[#allocation121_spill] sm:$0xff] %v6683_v59  ;;  %v6686_v11 = vmul.f32 0.5, %v11279_v52  ;;  %v6689_v9 = vmul.f32 0.5, %v11281_v25  ;;  %v11283_v44 = vld [vmem:[#allocation122_spill] sm:$0xff]  ;;  %v11289_v43 = vld [vmem:[#allocation123_spill] sm:$0xff]  ;;  %v6701_v59 = vpop.eup %2874  ;;  %v11295_v55 = vld [vmem:[#allocation124_spill] sm:$0xff]  ;;  %2902 = verf.f32 %v1551_v45 }
 0x20e   :  { %11274 = vst [vmem:[#allocation457_spill] sm:$0xff] %v6677_v61  ;;  %11276 = vst [vmem:[#allocation458_spill] sm:$0xff] %v6680_v5  ;;  %v1552_v58 = vmul.f32 0.70710677, %v11283_v44  ;;  %v11285_v61 = vld [vmem:[#allocation62_spill] sm:$0xff]  ;;  %v11287_v5 = vld [vmem:[#allocation63_spill] sm:$0xff] }
 0x20f   :  { %11280 = vst [vmem:[#allocation459_spill] sm:$0xff] %v6686_v11  ;;  %11282 = vst [vmem:[#allocation460_spill] sm:$0xff] %v6689_v9  ;;  %v6695_v54 = vmul.f32 0.5, %v11285_v61  ;;  %v6698_v41 = vmul.f32 0.5, %v11287_v5  ;;  %v1553_v57 = vmul.f32 0.70710677, %v11289_v43 }
 0x210   :  { %11284 = vst [vmem:[#allocation122_spill] sm:$0xff] %v6692_v60  ;;  %11290 = vst [vmem:[#allocation123_spill] sm:$0xff] %v6701_v59  ;;  %v11291_v11 = vld [vmem:[#allocation64_spill] sm:$0xff]  ;;  %v11293_v9 = vld [vmem:[#allocation65_spill] sm:$0xff]  ;;  %v1554_v44 = vmul.f32 0.70710677, %v11295_v55  ;;  %v6710_v60 = vpop.eup %2876  ;;  %2904 = verf.f32 %v1552_v58 }
 0x211   :  { %11286 = vst [vmem:[#allocation461_spill] sm:$0xff] %v6695_v54  ;;  %11288 = vst [vmem:[#allocation462_spill] sm:$0xff] %v6698_v41  ;;  %v6704_v52 = vmul.f32 0.5, %v11291_v11  ;;  %v6707_v25 = vmul.f32 0.5, %v11293_v9  ;;  %v11297_v54 = vld [vmem:[#allocation66_spill] sm:$0xff]  ;;  %v11299_v41 = vld [vmem:[#allocation67_spill] sm:$0xff]  ;;  %v6719_v59 = vpop.eup %2878  ;;  %2906 = verf.f32 %v1553_v57 }
 0x212   :  { %11296 = vst [vmem:[#allocation124_spill] sm:$0xff] %v6710_v60  ;;  %v6713_v61 = vmul.f32 0.5, %v11297_v54  ;;  %v6716_v5 = vmul.f32 0.5, %v11299_v41  ;;  %v11301_v48 = vld [vmem:[#allocation125_spill] sm:$0xff]  ;;  %v11307_v53 = vld [vmem:[#allocation126_spill] sm:$0xff]  ;;  %v6728_v60 = vpop.eup %2880  ;;  %v11313_v45 = vld [vmem:[#allocation127_spill] sm:$0xff]  ;;  %2908 = verf.f32 %v1554_v44 }
 0x213   :  { %11292 = vst [vmem:[#allocation463_spill] sm:$0xff] %v6704_v52  ;;  %11294 = vst [vmem:[#allocation464_spill] sm:$0xff] %v6707_v25  ;;  %v1555_v43 = vmul.f32 0.70710677, %v11301_v48  ;;  %v11303_v52 = vld [vmem:[#allocation68_spill] sm:$0xff]  ;;  %v11305_v25 = vld [vmem:[#allocation210_spill] sm:$0xff] }
 0x214   :  { %11298 = vst [vmem:[#allocation465_spill] sm:$0xff] %v6713_v61  ;;  %11300 = vst [vmem:[#allocation466_spill] sm:$0xff] %v6716_v5  ;;  %v6722_v11 = vmul.f32 0.5, %v11303_v52  ;;  %v6725_v9 = vmul.f32 0.5, %v11305_v25  ;;  %v1556_v55 = vmul.f32 0.70710677, %v11307_v53 }
 0x215   :  { %11302 = vst [vmem:[#allocation125_spill] sm:$0xff] %v6719_v59  ;;  %11308 = vst [vmem:[#allocation126_spill] sm:$0xff] %v6728_v60  ;;  %v11309_v61 = vld [vmem:[#allocation70_spill] sm:$0xff]  ;;  %v11311_v5 = vld [vmem:[#allocation71_spill] sm:$0xff]  ;;  %v1557_v48 = vmul.f32 0.70710677, %v11313_v45  ;;  %v6737_v59 = vpop.eup %2882  ;;  %2910 = verf.f32 %v1555_v43 }
 0x216   :  { %11304 = vst [vmem:[#allocation467_spill] sm:$0xff] %v6722_v11  ;;  %11306 = vst [vmem:[#allocation468_spill] sm:$0xff] %v6725_v9  ;;  %v6731_v54 = vmul.f32 0.5, %v11309_v61  ;;  %v6734_v41 = vmul.f32 0.5, %v11311_v5  ;;  %v6740_v11 = vmul.f32 0.5, %v6172_v10  ;;  %v11316_v9 = vld [vmem:[#allocation128_spill] sm:$0xff]  ;;  %v6744_v60 = vpop.eup %2884  ;;  %2912 = verf.f32 %v1556_v55 }
 0x217   :  { %11314 = vst [vmem:[#allocation127_spill] sm:$0xff] %v6737_v59  ;;  %v1558_v25 = vmul.f32 0.70710677, %v11316_v9  ;;  %v11317_v53 = vld [vmem:[#allocation129_spill] sm:$0xff]  ;;  %11318 = vst [vmem:[#allocation128_spill] sm:$0xff] %v6744_v60  ;;  %v11319_v61 = vld [vmem:[#allocation130_spill] sm:$0xff]  ;;  %v6749_v57 = vpop.eup %2886  ;;  %2914 = verf.f32 %v1557_v48 }
 0x218   :  { %11310 = vst [vmem:[#allocation469_spill] sm:$0xff] %v6731_v54  ;;  %11312 = vst [vmem:[#allocation470_spill] sm:$0xff] %v6734_v41  ;;  %v1559_v58 = vmul.f32 0.70710677, %v11317_v53  ;;  %v1560_v54 = vmul.f32 0.70710677, %v11319_v61  ;;  %v6754_v53 = vpop.eup %2888 }
 0x219   :  { %11315 = vst [vmem:[#allocation471_spill] sm:$0xff] %v6740_v11  ;;  %v11320_v52 = vld [vmem:[#allocation131_spill] sm:$0xff]  ;;  %v11321_v41 = vld [vmem:[#allocation132_spill] sm:$0xff]  ;;  %11322 = vst [vmem:[#allocation129_spill] sm:$0xff] %v6749_v57  ;;  %2916 = verf.f32 %v1558_v25 }
 0x21a   :  { %v1561_v5 = vmul.f32 0.70710677, %v11320_v52  ;;  %v1562_v12 = vmul.f32 0.70710677, %v11321_v41  ;;  %v11323_v45 = vld [vmem:[#allocation133_spill] sm:$0xff]  ;;  %v11324_v10 = vld [vmem:[#allocation134_spill] sm:$0xff]  ;;  %v6759_v41 = vpop.eup %2890  ;;  %2918 = verf.f32 %v1559_v58 }
 0x21b   :  { %v1563_v59 = vmul.f32 0.70710677, %v11323_v45  ;;  %v1564_v11 = vmul.f32 0.70710677, %v11324_v10  ;;  %v11325_v47 = vld [vmem:[#allocation135_spill] sm:$0xff]  ;;  %11326 = vst [vmem:[#allocation130_spill] sm:$0xff] %v6754_v53  ;;  %2920 = verf.f32 %v1560_v54 }
 0x21c   :  { %v1565_v9 = vmul.f32 0.70710677, %v11325_v47  ;;  %v11327_v44 = vld [vmem:[#allocation136_spill] sm:$0xff]  ;;  %v11328_v17 = vld [vmem:[#allocation137_spill] sm:$0xff]  ;;  %v11329_v18 = vld [vmem:[#allocation138_spill] sm:$0xff]  ;;  %11330 = vst [vmem:[#allocation131_spill] sm:$0xff] %v6759_v41  ;;  %v6766_v47 = vpop.eup %2892  ;;  %2922 = verf.f32 %v1561_v5 }
 0x21d   :  { %v1566_v60 = vmul.f32 0.70710677, %v11327_v44  ;;  %v1567_v61 = vmul.f32 0.70710677, %v11328_v17  ;;  %v1568_v52 = vmul.f32 0.70710677, %v11329_v18  ;;  %v6777_v41 = vpop.eup %2894  ;;  %2924 = verf.f32 %v1562_v12 }
 0x21e   :  { %v11331_v43 = vld [vmem:[#allocation139_spill] sm:$0xff]  ;;  %v11332_v19 = vld [vmem:[#allocation140_spill] sm:$0xff]  ;;  %v11333_v21 = vld [vmem:[#allocation141_spill] sm:$0xff]  ;;  %11334 = vst [vmem:[#allocation132_spill] sm:$0xff] %v6766_v47  ;;  %2926 = verf.f32 %v1563_v59 }
 0x21f   :  { %v1569_v57 = vmul.f32 0.70710677, %v11331_v43  ;;  %v1570_v45 = vmul.f32 0.70710677, %v11332_v19  ;;  %v6764_v10 = vmul.f32 0.70710677, %v11333_v21 }
 0x220   :  { %v11335_v55 = vld [vmem:[#allocation142_spill] sm:$0xff]  ;;  %v11336_v44 = vld [vmem:[#allocation143_spill] sm:$0xff]  ;;  %v11337_v18 = vld [vmem:[#allocation144_spill] sm:$0xff]  ;;  %11338 = vst [vmem:[#allocation133_spill] sm:$0xff] %v6777_v41 }
 0x221   :  { %v6769_v53 = vmul.f32 0.70710677, %v11335_v55  ;;  %v6772_v17 = vmul.f32 0.70710677, %v11336_v44  ;;  %v6775_v48 = vmul.f32 0.70710677, %v11337_v18  ;;  %v6788_v55 = vpop.eup %2896  ;;  %2928 = verf.f32 %v1564_v11 }
 0x222   :  { %v11339_v43 = vld [vmem:[#allocation145_spill] sm:$0xff]  ;;  %v11340_v21 = vld [vmem:[#allocation146_spill] sm:$0xff]  ;;  %v11341_v25 = vld [vmem:[#allocation147_spill] sm:$0xff]  ;;  %11342 = vst [vmem:[#allocation134_spill] sm:$0xff] %v6788_v55 }
 0x223   :  { %v6780_v19 = vmul.f32 0.70710677, %v11339_v43  ;;  %v6783_v22 = vmul.f32 0.70710677, %v11340_v21  ;;  %v6786_v47 = vmul.f32 0.70710677, %v11341_v25  ;;  %v6799_v43 = vpop.eup %2898  ;;  %2930 = verf.f32 %v1565_v9 }
 0x224   :  { %v11343_v44 = vld [vmem:[#allocation148_spill] sm:$0xff]  ;;  %v11344_v18 = vld [vmem:[#allocation149_spill] sm:$0xff]  ;;  %v11345_v58 = vld [vmem:[#allocation150_spill] sm:$0xff]  ;;  %11346 = vst [vmem:[#allocation135_spill] sm:$0xff] %v6799_v43 }
 0x225   :  { %v6791_v23 = vmul.f32 0.70710677, %v11343_v44  ;;  %v6794_v24 = vmul.f32 0.70710677, %v11344_v18  ;;  %v6797_v41 = vmul.f32 0.70710677, %v11345_v58  ;;  %v6810_v44 = vpop.eup %2900  ;;  %2932 = verf.f32 %v1566_v60 }
 0x226   :  { %v11347_v21 = vld [vmem:[#allocation151_spill] sm:$0xff]  ;;  %v11348_v25 = vld [vmem:[#allocation152_spill] sm:$0xff]  ;;  %v11349_v54 = vld [vmem:[#allocation153_spill] sm:$0xff]  ;;  %11350 = vst [vmem:[#allocation136_spill] sm:$0xff] %v6810_v44 }
 0x227   :  { %v6802_v34 = vmul.f32 0.70710677, %v11347_v21  ;;  %v6805_v38 = vmul.f32 0.70710677, %v11348_v25  ;;  %v6808_v55 = vmul.f32 0.70710677, %v11349_v54  ;;  %v6821_v21 = vpop.eup %2902  ;;  %2934 = verf.f32 %v1567_v61 }
 0x228   :  { %v11351_v18 = vld [vmem:[#allocation154_spill] sm:$0xff]  ;;  %v11352_v58 = vld [vmem:[#allocation155_spill] sm:$0xff]  ;;  %v11354_v5 = vld [vmem:[#allocation156_spill] sm:$0xff]  ;;  %11356 = vst [vmem:[#allocation139_spill] sm:$0xff] %v6821_v21  ;;  %v6885_v61 = vmul.f32 0.70710677, %v10960_v46 }
 0x229   :  { %v6813_v15 = vmul.f32 0.70710677, %v11351_v18  ;;  %v6816_v13 = vmul.f32 0.70710677, %v11352_v58  ;;  %v6819_v43 = vmul.f32 0.70710677, %v11354_v5  ;;  %v6832_v18 = vpop.eup %2904  ;;  %2936 = verf.f32 %v1568_v52 }
 0x22a   :  { %v11357_v25 = vld [vmem:[#allocation157_spill] sm:$0xff]  ;;  %v11358_v54 = vld [vmem:[#allocation158_spill] sm:$0xff]  ;;  %v11360_v12 = vld [vmem:[#allocation159_spill] sm:$0xff]  ;;  %11362 = vst [vmem:[#allocation142_spill] sm:$0xff] %v6832_v18  ;;  %v6904_v46 = vmul.f32 0.70710677, %v10970_v50 }
 0x22b   :  { %11353 = vst [vmem:[#allocation137_spill] sm:$0xff] %v6816_v13  ;;  %11355 = vst [vmem:[#allocation138_spill] sm:$0xff] %v6819_v43  ;;  %v6824_v62 = vmul.f32 0.70710677, %v11357_v25  ;;  %v6827_v16 = vmul.f32 0.70710677, %v11358_v54  ;;  %v6843_v25 = vpop.eup %2906  ;;  %2938 = verf.f32 %v1569_v57 }
 0x22c   :  { %v6830_v44 = vmul.f32 0.70710677, %v11360_v12  ;;  %v11363_v58 = vld [vmem:[#allocation160_spill] sm:$0xff]  ;;  %v11364_v5 = vld [vmem:[#allocation161_spill] sm:$0xff]  ;;  %v11366_v59 = vld [vmem:[#allocation162_spill] sm:$0xff]  ;;  %11368 = vst [vmem:[#allocation145_spill] sm:$0xff] %v6843_v25 }
 0x22d   :  { %11359 = vst [vmem:[#allocation140_spill] sm:$0xff] %v6827_v16  ;;  %v6835_v13 = vmul.f32 0.70710677, %v11363_v58  ;;  %v6838_v43 = vmul.f32 0.70710677, %v11364_v5  ;;  %v11369_v54 = vld [vmem:[#allocation163_spill] sm:$0xff]  ;;  %v6854_v58 = vpop.eup %2908  ;;  %2940 = verf.f32 %v1570_v45 }
 0x22e   :  { %11361 = vst [vmem:[#allocation141_spill] sm:$0xff] %v6830_v44  ;;  %v6841_v21 = vmul.f32 0.70710677, %v11366_v59  ;;  %v6846_v16 = vmul.f32 0.70710677, %v11369_v54  ;;  %v11370_v12 = vld [vmem:[#allocation164_spill] sm:$0xff]  ;;  %v6865_v54 = vpop.eup %2910  ;;  %2942 = verf.f32 %v6764_v10 }
 0x22f   :  { %11365 = vst [vmem:[#allocation143_spill] sm:$0xff] %v6838_v43  ;;  %v6849_v44 = vmul.f32 0.70710677, %v11370_v12  ;;  %v11372_v11 = vld [vmem:[#allocation165_spill] sm:$0xff]  ;;  %11374 = vst [vmem:[#allocation148_spill] sm:$0xff] %v6854_v58  ;;  %v11375_v5 = vld [vmem:[#allocation166_spill] sm:$0xff] }
 0x230   :  { %11367 = vst [vmem:[#allocation144_spill] sm:$0xff] %v6841_v21  ;;  %v6852_v18 = vmul.f32 0.70710677, %v11372_v11  ;;  %v6857_v43 = vmul.f32 0.70710677, %v11375_v5  ;;  %v11376_v59 = vld [vmem:[#allocation167_spill] sm:$0xff]  ;;  %v6876_v5 = vpop.eup %2912  ;;  %2944 = verf.f32 %v6769_v53 }
 0x231   :  { %11371 = vst [vmem:[#allocation146_spill] sm:$0xff] %v6849_v44  ;;  %v6860_v21 = vmul.f32 0.70710677, %v11376_v59  ;;  %v11378_v9 = vld [vmem:[#allocation168_spill] sm:$0xff]  ;;  %11379 = vst [vmem:[#allocation150_spill] sm:$0xff] %v6865_v54  ;;  %v11380_v12 = vld [vmem:[#allocation169_spill] sm:$0xff] }
 0x232   :  { %11373 = vst [vmem:[#allocation147_spill] sm:$0xff] %v6852_v18  ;;  %v6863_v25 = vmul.f32 0.70710677, %v11378_v9  ;;  %v6868_v44 = vmul.f32 0.70710677, %v11380_v12  ;;  %v11381_v11 = vld [vmem:[#allocation170_spill] sm:$0xff]  ;;  %v6887_v12 = vpop.eup %2914  ;;  %2946 = verf.f32 %v6772_v17 }
 0x233   :  { %11377 = vst [vmem:[#allocation149_spill] sm:$0xff] %v6860_v21  ;;  %v6871_v18 = vmul.f32 0.70710677, %v11381_v11  ;;  %v11382_v60 = vld [vmem:[#allocation171_spill] sm:$0xff]  ;;  %11383 = vst [vmem:[#allocation151_spill] sm:$0xff] %v6876_v5  ;;  %v11384_v59 = vld [vmem:[#allocation172_spill] sm:$0xff] }
 0x234   :  { %v6874_v58 = vmul.f32 0.70710677, %v11382_v60  ;;  %v6879_v21 = vmul.f32 0.70710677, %v11384_v59  ;;  %v6882_v9 = vmul.f32 0.70710677, %v10958_v49  ;;  %v6898_v59 = vpop.eup %2916  ;;  %2948 = verf.f32 %v6775_v48 }
 0x235   :  { %11385 = vst [vmem:[#allocation152_spill] sm:$0xff] %v6887_v12  ;;  %v6890_v11 = vmul.f32 0.70710677, %v10962_v42  ;;  %v6893_v60 = vmul.f32 0.70710677, %v10964_v40  ;;  %v11386_v52 = vld [vmem:[#allocation177_spill] sm:$0xff]  ;;  %v6910_v42 = vpop.eup %2918  ;;  %2950 = verf.f32 %v6780_v19 }
 0x236   :  { %v6896_v5 = vmul.f32 0.70710677, %v11386_v52  ;;  %11387 = vst [vmem:[#allocation153_spill] sm:$0xff] %v6898_v59  ;;  %v6901_v49 = vmul.f32 0.70710677, %v10968_v51  ;;  %v11388_v57 = vld [vmem:[#allocation180_spill] sm:$0xff]  ;;  %v6922_v50 = vpop.eup %2920  ;;  %2952 = verf.f32 %v6783_v22 }
 0x237   :  { %v6907_v12 = vmul.f32 0.70710677, %v11388_v57  ;;  %11389 = vst [vmem:[#allocation154_spill] sm:$0xff] %v6910_v42  ;;  %v6913_v40 = vmul.f32 0.70710677, %v5372_v39  ;;  %v11390_v52 = vld [vmem:[#allocation181_spill] sm:$0xff]  ;;  %v6934_v39 = vpop.eup %2922  ;;  %2954 = verf.f32 %v6786_v47 }
 0x238   :  { %v6916_v45 = vmul.f32 0.70710677, %v5376_v2  ;;  %v6919_v59 = vmul.f32 0.70710677, %v11390_v52  ;;  %11392 = vst [vmem:[#allocation156_spill] sm:$0xff] %v6922_v50  ;;  %v11393_v51 = vld [vmem:[#allocation182_spill] sm:$0xff] }
 0x239   :  { %v6925_v57 = vmul.f32 0.70710677, %v11393_v51  ;;  %v11394_v54 = vld [vmem:[#allocation183_spill] sm:$0xff]  ;;  %v6931_v42 = vmul.f32 0.70710677, %v5392_v3  ;;  %11395 = vst [vmem:[#allocation157_spill] sm:$0xff] %v6934_v39 }
 0x23a   :  { %11391 = vst [vmem:[#allocation155_spill] sm:$0xff] %v6919_v59  ;;  %v6928_v10 = vmul.f32 0.70710677, %v11394_v54  ;;  %v11396_v2 = vld [vmem:[#allocation73_spill] sm:$0xff]  ;;  %v6940_v53 = vmul.f32 0.70710677, %v10983_v20  ;;  %v6946_v54 = vpop.eup %2924  ;;  %2956 = verf.f32 %v6791_v23 }
 0x23b   :  { %v6937_v52 = vmul.f32 0.70710677, %v11396_v2  ;;  %v11397_v50 = vld [vmem:[#allocation75_spill] sm:$0xff]  ;;  %11399 = vst [vmem:[#allocation159_spill] sm:$0xff] %v6946_v54  ;;  %v6949_v3 = vmul.f32 0.70710677, %v10987_v33  ;;  %v6958_v20 = vpop.eup %2926  ;;  %2958 = verf.f32 %v6794_v24 }
 0x23c   :  { %v6943_v59 = vmul.f32 0.70710677, %v11397_v50  ;;  %v11400_v51 = vld [vmem:[#allocation77_spill] sm:$0xff]  ;;  %v6955_v39 = vmul.f32 0.70710677, %v10991_v0  ;;  %11401 = vst [vmem:[#allocation160_spill] sm:$0xff] %v6958_v20  ;;  %v6970_v33 = vpop.eup %2928  ;;  %2960 = verf.f32 %v6797_v41 }
 0x23d   :  { %v6952_v17 = vmul.f32 0.70710677, %v11400_v51  ;;  %v11402_v2 = vld [vmem:[#allocation211_spill] sm:$0xff]  ;;  %v6964_v48 = vmul.f32 0.70710677, %v10995_v56  ;;  %v11403_v54 = vld [vmem:[#allocation213_spill] sm:$0xff]  ;;  %v6982_v56 = vpop.eup %2930  ;;  %2962 = verf.f32 %v6802_v34 }
 0x23e   :  { %11398 = vst [vmem:[#allocation158_spill] sm:$0xff] %v6943_v59  ;;  %v6961_v50 = vmul.f32 0.70710677, %v11402_v2  ;;  %v6967_v59 = vmul.f32 0.70710677, %v11403_v54  ;;  %11405 = vst [vmem:[#allocation162_spill] sm:$0xff] %v6970_v33 }
 0x23f   :  { %v6973_v0 = vmul.f32 0.70710677, %v10999_v37  ;;  %v11406_v51 = vld [vmem:[#allocation215_spill] sm:$0xff]  ;;  %v6979_v20 = vmul.f32 0.70710677, %v11003_v7  ;;  %11407 = vst [vmem:[#allocation163_spill] sm:$0xff] %v6982_v56  ;;  %v6994_v37 = vpop.eup %2932  ;;  %2964 = verf.f32 %v6805_v38 }
 0x240   :  { %11404 = vst [vmem:[#allocation161_spill] sm:$0xff] %v6967_v59  ;;  %v6976_v19 = vmul.f32 0.70710677, %v11406_v51  ;;  %v11408_v2 = vld [vmem:[#allocation217_spill] sm:$0xff]  ;;  %v6988_v22 = vmul.f32 0.70710677, %v11007_v35  ;;  %v7006_v35 = vpop.eup %2934  ;;  %2966 = verf.f32 %v6808_v55 }
 0x241   :  { %v6985_v54 = vmul.f32 0.70710677, %v11408_v2  ;;  %v11409_v33 = vld [vmem:[#allocation219_spill] sm:$0xff]  ;;  %11411 = vst [vmem:[#allocation165_spill] sm:$0xff] %v6994_v37  ;;  %v6997_v7 = vmul.f32 0.70710677, %v11011_v36  ;;  %v7018_v36 = vpop.eup %2936  ;;  %2968 = verf.f32 %v6813_v15 }
 0x242   :  { %v6991_v59 = vmul.f32 0.70710677, %v11409_v33  ;;  %v11412_v51 = vld [vmem:[#allocation221_spill] sm:$0xff]  ;;  %v7003_v56 = vmul.f32 0.70710677, %v11015_v32  ;;  %11413 = vst [vmem:[#allocation166_spill] sm:$0xff] %v7006_v35 }
 0x243   :  { %v7000_v47 = vmul.f32 0.70710677, %v11412_v51  ;;  %v11414_v2 = vld [vmem:[#allocation223_spill] sm:$0xff]  ;;  %v7012_v23 = vmul.f32 0.70710677, %v11019_v31  ;;  %v11415_v37 = vld [vmem:[#allocation225_spill] sm:$0xff]  ;;  %v7030_v31 = vpop.eup %2938 }
 0x244   :  { %11410 = vst [vmem:[#allocation164_spill] sm:$0xff] %v6991_v59  ;;  %v7009_v33 = vmul.f32 0.70710677, %v11414_v2  ;;  %v7015_v59 = vmul.f32 0.70710677, %v11415_v37  ;;  %v11416_v51 = vld [vmem:[#allocation228_spill] sm:$0xff] }
 0x245   :  { %v7021_v32 = vmul.f32 0.70710677, %v11023_v30  ;;  %v7024_v24 = vmul.f32 0.70710677, %v11025_v27  ;;  %v7027_v35 = vmul.f32 0.70710677, %v11416_v51  ;;  %v7042_v30 = vpop.eup %2940 }
 0x246   :  { %v7033_v37 = vmul.f32 0.70710677, %v11029_v26  ;;  %v7036_v41 = vmul.f32 0.70710677, %v11031_v28  ;;  %v7039_v2 = vmul.f32 0.70710677, %v5396_v6  ;;  %v7054_v28 = vpop.eup %2942 }
 0x247   :  { %11417 = vst [vmem:[#allocation167_spill] sm:$0xff] %v7042_v30  ;;  %v7045_v27 = vmul.f32 0.70710677, %v11035_v63  ;;  %v7048_v34 = vmul.f32 0.70710677, %v5400_v29  ;;  %v11421_v26 = vld [vmem:[#allocation184_spill] sm:$0xff]  ;;  %v7066_v29 = vpop.eup %2944 }
 0x248   :  { %v7051_v51 = vmul.f32 0.70710677, %v5404_v1  ;;  %v7057_v6 = vmul.f32 0.70710677, %v5408_v14  ;;  %v7060_v38 = vmul.f32 0.70710677, %v11421_v26  ;;  %v7078_v26 = vpop.eup %2946 }
 0x249   :  { %11418 = vst [vmem:[#allocation168_spill] sm:$0xff] %v7048_v34  ;;  %v7063_v30 = vmul.f32 0.70710677, %v11045_v8  ;;  %11424 = vst [vmem:[#allocation177_spill] sm:$0xff] %v7066_v29  ;;  %v11425_v63 = vld [vmem:[#allocation186_spill] sm:$0xff]  ;;  %v11430_v14 = vld [vmem:[#allocation137_spill] sm:$0xff] }
 0x24a   :  { %11419 = vst [vmem:[#allocation169_spill] sm:$0xff] %v7051_v51  ;;  %11420 = vst [vmem:[#allocation170_spill] sm:$0xff] %v7057_v6  ;;  %v7069_v1 = vmul.f32 0.70710677, %v11425_v63  ;;  %v7072_v55 = vmul.f32 0.70710677, %v11050_v4  ;;  %2970 = verf.f32 %v11430_v14  ;;  %v7090_v4 = vpop.eup %2948 }
 0x24b   :  { %11422 = vst [vmem:[#allocation171_spill] sm:$0xff] %v7060_v38  ;;  %11423 = vst [vmem:[#allocation172_spill] sm:$0xff] %v7063_v30  ;;  %v11428_v51 = vld [vmem:[#allocation69_spill] sm:$0xff]  ;;  %v11432_v38 = vld [vmem:[#allocation188_spill] sm:$0xff] }
 0x24c   :  { %11426 = vst [vmem:[#allocation180_spill] sm:$0xff] %v7069_v1  ;;  %11427 = vst [vmem:[#allocation181_spill] sm:$0xff] %v7072_v55  ;;  %v7075_v34 = vmul.f32 0.70710677, %v11428_v51  ;;  %v7081_v8 = vmul.f32 0.70710677, %v11432_v38 }
 0x24d   :  { %11431 = vst [vmem:[#allocation183_spill] sm:$0xff] %v7078_v26  ;;  %v11434_v30 = vld [vmem:[#allocation189_spill] sm:$0xff]  ;;  %v11436_v6 = vld [vmem:[#allocation190_spill] sm:$0xff]  ;;  %v11439_v55 = vld [vmem:[#allocation191_spill] sm:$0xff] }
 0x24e   :  { %11429 = vst [vmem:[#allocation182_spill] sm:$0xff] %v7075_v34  ;;  %11433 = vst [vmem:[#allocation73_spill] sm:$0xff] %v7081_v8  ;;  %v7084_v15 = vmul.f32 0.70710677, %v11434_v30  ;;  %v7087_v29 = vmul.f32 0.70710677, %v11436_v6  ;;  %v7102_v30 = vpop.eup %2950 }
 0x24f   :  { %v11438_v63 = vld [vmem:[#allocation138_spill] sm:$0xff]  ;;  %v7093_v51 = vmul.f32 0.70710677, %v11439_v55  ;;  %v11441_v34 = vld [vmem:[#allocation192_spill] sm:$0xff]  ;;  %v11443_v1 = vld [vmem:[#allocation193_spill] sm:$0xff]  ;;  %11445 = vst [vmem:[#allocation217_spill] sm:$0xff] %v7102_v30 }
 0x250   :  { %11435 = vst [vmem:[#allocation75_spill] sm:$0xff] %v7084_v15  ;;  %11437 = vst [vmem:[#allocation77_spill] sm:$0xff] %v7087_v29  ;;  %2972 = verf.f32 %v11438_v63  ;;  %v7096_v14 = vmul.f32 0.70710677, %v11441_v34  ;;  %v7099_v26 = vmul.f32 0.70710677, %v11443_v1  ;;  %v7114_v34 = vpop.eup %2952 }
 0x251   :  { %11440 = vst [vmem:[#allocation211_spill] sm:$0xff] %v7093_v51  ;;  %2974 = verf.f32 %v6824_v62  ;;  %v11446_v38 = vld [vmem:[#allocation194_spill] sm:$0xff]  ;;  %v11448_v29 = vld [vmem:[#allocation195_spill] sm:$0xff]  ;;  %v11452_v55 = vld [vmem:[#allocation140_spill] sm:$0xff] }
 0x252   :  { %11442 = vst [vmem:[#allocation213_spill] sm:$0xff] %v7096_v14  ;;  %11444 = vst [vmem:[#allocation215_spill] sm:$0xff] %v7099_v26  ;;  %v7105_v6 = vmul.f32 0.70710677, %v11446_v38  ;;  %v7108_v63 = vmul.f32 0.70710677, %v11448_v29  ;;  %2976 = verf.f32 %v11452_v55  ;;  %v7126_v29 = vpop.eup %2954 }
 0x253   :  { %v11450_v15 = vld [vmem:[#allocation78_spill] sm:$0xff]  ;;  %11453 = vst [vmem:[#allocation225_spill] sm:$0xff] %v7114_v34  ;;  %v11454_v14 = vld [vmem:[#allocation196_spill] sm:$0xff]  ;;  %v11458_v51 = vld [vmem:[#allocation81_spill] sm:$0xff] }
 0x254   :  { %11447 = vst [vmem:[#allocation219_spill] sm:$0xff] %v7105_v6  ;;  %11449 = vst [vmem:[#allocation221_spill] sm:$0xff] %v7108_v63  ;;  %v7111_v8 = vmul.f32 0.70710677, %v11450_v15  ;;  %v7117_v1 = vmul.f32 0.70710677, %v11454_v14 }
 0x255   :  { %v11456_v26 = vld [vmem:[#allocation80_spill] sm:$0xff]  ;;  %v7123_v30 = vmul.f32 0.70710677, %v11458_v51  ;;  %v11460_v38 = vld [vmem:[#allocation141_spill] sm:$0xff]  ;;  %v11461_v63 = vld [vmem:[#allocation82_spill] sm:$0xff] }
 0x256   :  { %11451 = vst [vmem:[#allocation223_spill] sm:$0xff] %v7111_v8  ;;  %11455 = vst [vmem:[#allocation228_spill] sm:$0xff] %v7117_v1  ;;  %v7120_v62 = vmul.f32 0.70710677, %v11456_v26  ;;  %2978 = verf.f32 %v11460_v38  ;;  %v7129_v15 = vmul.f32 0.70710677, %v11461_v63  ;;  %v7138_v26 = vpop.eup %2956 }
 0x257   :  { %11459 = vst [vmem:[#allocation186_spill] sm:$0xff] %v7123_v30  ;;  %v11463_v8 = vld [vmem:[#allocation197_spill] sm:$0xff]  ;;  %v11465_v6 = vld [vmem:[#allocation198_spill] sm:$0xff]  ;;  %2980 = verf.f32 %v6835_v13  ;;  %11467 = vst [vmem:[#allocation189_spill] sm:$0xff] %v7138_v26 }
 0x258   :  { %11457 = vst [vmem:[#allocation184_spill] sm:$0xff] %v7120_v62  ;;  %11462 = vst [vmem:[#allocation69_spill] sm:$0xff] %v7129_v15  ;;  %v7132_v55 = vmul.f32 0.70710677, %v11463_v8  ;;  %v7135_v34 = vmul.f32 0.70710677, %v11465_v6  ;;  %v7150_v8 = vpop.eup %2958 }
 0x259   :  { %v11468_v14 = vld [vmem:[#allocation199_spill] sm:$0xff]  ;;  %v11470_v30 = vld [vmem:[#allocation200_spill] sm:$0xff]  ;;  %v11472_v62 = vld [vmem:[#allocation201_spill] sm:$0xff]  ;;  %11475 = vst [vmem:[#allocation192_spill] sm:$0xff] %v7150_v8 }
 0x25a   :  { %11464 = vst [vmem:[#allocation137_spill] sm:$0xff] %v7132_v55  ;;  %11466 = vst [vmem:[#allocation188_spill] sm:$0xff] %v7135_v34  ;;  %v7141_v51 = vmul.f32 0.70710677, %v11468_v14  ;;  %v7144_v38 = vmul.f32 0.70710677, %v11470_v30  ;;  %v7162_v30 = vpop.eup %2960 }
 0x25b   :  { %v7147_v1 = vmul.f32 0.70710677, %v11472_v62  ;;  %v11474_v63 = vld [vmem:[#allocation143_spill] sm:$0xff]  ;;  %v11476_v55 = vld [vmem:[#allocation202_spill] sm:$0xff]  ;;  %v11480_v15 = vld [vmem:[#allocation204_spill] sm:$0xff] }
 0x25c   :  { %11469 = vst [vmem:[#allocation190_spill] sm:$0xff] %v7141_v51  ;;  %11471 = vst [vmem:[#allocation138_spill] sm:$0xff] %v7144_v38  ;;  %2982 = verf.f32 %v11474_v63  ;;  %v7153_v6 = vmul.f32 0.70710677, %v11476_v55  ;;  %v11478_v34 = vld [vmem:[#allocation203_spill] sm:$0xff]  ;;  %v11482_v14 = vld [vmem:[#allocation144_spill] sm:$0xff] }
 0x25d   :  { %11473 = vst [vmem:[#allocation191_spill] sm:$0xff] %v7147_v1  ;;  %v7156_v13 = vmul.f32 0.70710677, %v11478_v34  ;;  %v7159_v26 = vmul.f32 0.70710677, %v11480_v15  ;;  %2984 = verf.f32 %v11482_v14  ;;  %v11483_v38 = vld [vmem:[#allocation205_spill] sm:$0xff]  ;;  %v7174_v34 = vpop.eup %2962 }
 0x25e   :  { %11477 = vst [vmem:[#allocation193_spill] sm:$0xff] %v7153_v6  ;;  %v7165_v62 = vmul.f32 0.70710677, %v11483_v38  ;;  %v11485_v1 = vld [vmem:[#allocation206_spill] sm:$0xff]  ;;  %v11487_v51 = vld [vmem:[#allocation207_spill] sm:$0xff]  ;;  %2986 = verf.f32 %v6846_v16  ;;  %11489 = vst [vmem:[#allocation80_spill] sm:$0xff] %v7174_v34 }
 0x25f   :  { %11479 = vst [vmem:[#allocation194_spill] sm:$0xff] %v7156_v13  ;;  %11481 = vst [vmem:[#allocation195_spill] sm:$0xff] %v7159_v26  ;;  %v7168_v63 = vmul.f32 0.70710677, %v11485_v1  ;;  %v7171_v8 = vmul.f32 0.70710677, %v11487_v51  ;;  %v7186_v1 = vpop.eup %2964 }
 0x260   :  { %11484 = vst [vmem:[#allocation78_spill] sm:$0xff] %v7165_v62  ;;  %v11490_v55 = vld [vmem:[#allocation208_spill] sm:$0xff]  ;;  %v11492_v26 = vld [vmem:[#allocation209_spill] sm:$0xff]  ;;  %v11494_v13 = vld [vmem:[#allocation6_spill] sm:$0xff] }
 0x261   :  { %11486 = vst [vmem:[#allocation140_spill] sm:$0xff] %v7168_v63  ;;  %11488 = vst [vmem:[#allocation196_spill] sm:$0xff] %v7171_v8  ;;  %v7177_v15 = vmul.f32 0.70710677, %v11490_v55  ;;  %v7180_v14 = vmul.f32 0.70710677, %v11492_v26  ;;  %v7198_v26 = vpop.eup %2966 }
 0x262   :  { %v7183_v6 = vmul.f32 0.70710677, %v11494_v13  ;;  %v11496_v38 = vld [vmem:[#allocation146_spill] sm:$0xff]  ;;  %11497 = vst [vmem:[#allocation197_spill] sm:$0xff] %v7186_v1  ;;  %v11498_v63 = vld [vmem:[#allocation7_spill] sm:$0xff]  ;;  %v11500_v8 = vld [vmem:[#allocation8_spill] sm:$0xff] }
 0x263   :  { %11491 = vst [vmem:[#allocation81_spill] sm:$0xff] %v7177_v15  ;;  %11493 = vst [vmem:[#allocation141_spill] sm:$0xff] %v7180_v14  ;;  %2988 = verf.f32 %v11496_v38  ;;  %v7189_v51 = vmul.f32 0.70710677, %v11498_v63  ;;  %v7192_v16 = vmul.f32 0.70710677, %v11500_v8  ;;  %v7210_v8 = vpop.eup %2968 }
 0x264   :  { %11495 = vst [vmem:[#allocation82_spill] sm:$0xff] %v7183_v6  ;;  %v11502_v62 = vld [vmem:[#allocation9_spill] sm:$0xff]  ;;  %v11504_v55 = vld [vmem:[#allocation147_spill] sm:$0xff]  ;;  %v11505_v14 = vld [vmem:[#allocation10_spill] sm:$0xff] }
 0x265   :  { %11499 = vst [vmem:[#allocation198_spill] sm:$0xff] %v7189_v51  ;;  %11501 = vst [vmem:[#allocation199_spill] sm:$0xff] %v7192_v16  ;;  %v7195_v34 = vmul.f32 0.70710677, %v11502_v62  ;;  %2990 = verf.f32 %v11504_v55  ;;  %v7201_v13 = vmul.f32 0.70710677, %v11505_v14 }
 0x266   :  { %v11507_v6 = vld [vmem:[#allocation11_spill] sm:$0xff]  ;;  %v11509_v15 = vld [vmem:[#allocation12_spill] sm:$0xff]  ;;  %2992 = verf.f32 %v6857_v43  ;;  %11511 = vst [vmem:[#allocation203_spill] sm:$0xff] %v7210_v8  ;;  %v11512_v63 = vld [vmem:[#allocation13_spill] sm:$0xff] }
 0x267   :  { %11503 = vst [vmem:[#allocation200_spill] sm:$0xff] %v7195_v34  ;;  %11506 = vst [vmem:[#allocation201_spill] sm:$0xff] %v7201_v13  ;;  %v7204_v38 = vmul.f32 0.70710677, %v11507_v6  ;;  %v7207_v1 = vmul.f32 0.70710677, %v11509_v15  ;;  %v7222_v6 = vpop.eup %2970 }
 0x268   :  { %v7213_v62 = vmul.f32 0.70710677, %v11512_v63  ;;  %v11514_v34 = vld [vmem:[#allocation14_spill] sm:$0xff]  ;;  %v11516_v16 = vld [vmem:[#allocation15_spill] sm:$0xff]  ;;  %v11518_v14 = vld [vmem:[#allocation149_spill] sm:$0xff] }
 0x269   :  { %11508 = vst [vmem:[#allocation143_spill] sm:$0xff] %v7204_v38  ;;  %11510 = vst [vmem:[#allocation202_spill] sm:$0xff] %v7207_v1  ;;  %v7216_v55 = vmul.f32 0.70710677, %v11514_v34  ;;  %v7219_v51 = vmul.f32 0.70710677, %v11516_v16  ;;  %2994 = verf.f32 %v11518_v14  ;;  %v7234_v34 = vpop.eup %2972 }
 0x26a   :  { %11513 = vst [vmem:[#allocation204_spill] sm:$0xff] %v7213_v62  ;;  %v11519_v38 = vld [vmem:[#allocation16_spill] sm:$0xff]  ;;  %v11521_v1 = vld [vmem:[#allocation17_spill] sm:$0xff]  ;;  %v11523_v13 = vld [vmem:[#allocation18_spill] sm:$0xff]  ;;  %2996 = verf.f32 %v6863_v25 }
 0x26b   :  { %11515 = vst [vmem:[#allocation144_spill] sm:$0xff] %v7216_v55  ;;  %11517 = vst [vmem:[#allocation205_spill] sm:$0xff] %v7219_v51  ;;  %v7225_v15 = vmul.f32 0.70710677, %v11519_v38  ;;  %v7228_v43 = vmul.f32 0.70710677, %v11521_v1  ;;  %2998 = verf.f32 %v6868_v44  ;;  %v7246_v1 = vpop.eup %2974 }
 0x26c   :  { %v7231_v8 = vmul.f32 0.70710677, %v11523_v13  ;;  %v11525_v63 = vld [vmem:[#allocation19_spill] sm:$0xff]  ;;  %v11527_v51 = vld [vmem:[#allocation20_spill] sm:$0xff]  ;;  %v11529_v55 = vld [vmem:[#allocation21_spill] sm:$0xff]  ;;  %3000 = verf.f32 %v6871_v18 }
 0x26d   :  { %11520 = vst [vmem:[#allocation206_spill] sm:$0xff] %v7225_v15  ;;  %11522 = vst [vmem:[#allocation207_spill] sm:$0xff] %v7228_v43  ;;  %v7237_v16 = vmul.f32 0.70710677, %v11525_v63  ;;  %v7240_v14 = vmul.f32 0.70710677, %v11527_v51  ;;  %v7258_v51 = vpop.eup %2976  ;;  %3002 = verf.f32 %v6874_v58 }
 0x26e   :  { %11524 = vst [vmem:[#allocation208_spill] sm:$0xff] %v7231_v8  ;;  %v7243_v62 = vmul.f32 0.70710677, %v11529_v55  ;;  %v11531_v38 = vld [vmem:[#allocation22_spill] sm:$0xff]  ;;  %v11533_v8 = vld [vmem:[#allocation23_spill] sm:$0xff]  ;;  %v11535_v43 = vld [vmem:[#allocation24_spill] sm:$0xff]  ;;  %3004 = verf.f32 %v6879_v21 }
 0x26f   :  { %11526 = vst [vmem:[#allocation209_spill] sm:$0xff] %v7237_v16  ;;  %11528 = vst [vmem:[#allocation6_spill] sm:$0xff] %v7240_v14  ;;  %v7249_v13 = vmul.f32 0.70710677, %v11531_v38  ;;  %v7252_v25 = vmul.f32 0.70710677, %v11533_v8  ;;  %v7270_v8 = vpop.eup %2978  ;;  %3006 = verf.f32 %v6882_v9 }
 0x270   :  { %11530 = vst [vmem:[#allocation146_spill] sm:$0xff] %v7243_v62  ;;  %v7255_v15 = vmul.f32 0.70710677, %v11535_v43  ;;  %v11537_v63 = vld [vmem:[#allocation25_spill] sm:$0xff]  ;;  %v11539_v62 = vld [vmem:[#allocation26_spill] sm:$0xff]  ;;  %v11541_v14 = vld [vmem:[#allocation27_spill] sm:$0xff]  ;;  %3008 = verf.f32 %v6885_v61 }
 0x271   :  { %11532 = vst [vmem:[#allocation7_spill] sm:$0xff] %v7249_v13  ;;  %11534 = vst [vmem:[#allocation8_spill] sm:$0xff] %v7252_v25  ;;  %v7261_v55 = vmul.f32 0.70710677, %v11537_v63  ;;  %v7264_v44 = vmul.f32 0.70710677, %v11539_v62  ;;  %v7282_v62 = vpop.eup %2980  ;;  %3010 = verf.f32 %v6890_v11 }
 0x272   :  { %11536 = vst [vmem:[#allocation9_spill] sm:$0xff] %v7255_v15  ;;  %v7267_v16 = vmul.f32 0.70710677, %v11541_v14  ;;  %v11543_v38 = vld [vmem:[#allocation28_spill] sm:$0xff]  ;;  %v11545_v15 = vld [vmem:[#allocation29_spill] sm:$0xff]  ;;  %v11547_v25 = vld [vmem:[#allocation30_spill] sm:$0xff]  ;;  %3012 = verf.f32 %v6893_v60 }
 0x273   :  { %11538 = vst [vmem:[#allocation147_spill] sm:$0xff] %v7261_v55  ;;  %11540 = vst [vmem:[#allocation10_spill] sm:$0xff] %v7264_v44  ;;  %v7273_v43 = vmul.f32 0.70710677, %v11543_v38  ;;  %v7276_v18 = vmul.f32 0.70710677, %v11545_v15  ;;  %v7294_v15 = vpop.eup %2982  ;;  %3014 = verf.f32 %v6896_v5 }
 0x274   :  { %11542 = vst [vmem:[#allocation11_spill] sm:$0xff] %v7267_v16  ;;  %v7279_v13 = vmul.f32 0.70710677, %v11547_v25  ;;  %v11549_v63 = vld [vmem:[#allocation31_spill] sm:$0xff]  ;;  %v11551_v16 = vld [vmem:[#allocation32_spill] sm:$0xff]  ;;  %v11553_v44 = vld [vmem:[#allocation33_spill] sm:$0xff] }
 0x275   :  { %11544 = vst [vmem:[#allocation12_spill] sm:$0xff] %v7273_v43  ;;  %11546 = vst [vmem:[#allocation13_spill] sm:$0xff] %v7276_v18  ;;  %v7285_v14 = vmul.f32 0.70710677, %v11549_v63  ;;  %v7288_v58 = vmul.f32 0.70710677, %v11551_v16  ;;  %v7306_v16 = vpop.eup %2984  ;;  %3016 = verf.f32 %v6901_v49 }
 0x276   :  { %11548 = vst [vmem:[#allocation14_spill] sm:$0xff] %v7279_v13  ;;  %v7291_v55 = vmul.f32 0.70710677, %v11553_v44  ;;  %v11555_v38 = vld [vmem:[#allocation34_spill] sm:$0xff]  ;;  %v11557_v13 = vld [vmem:[#allocation35_spill] sm:$0xff]  ;;  %v11559_v18 = vld [vmem:[#allocation36_spill] sm:$0xff] }
 0x277   :  { %11550 = vst [vmem:[#allocation15_spill] sm:$0xff] %v7285_v14  ;;  %11552 = vst [vmem:[#allocation149_spill] sm:$0xff] %v7288_v58  ;;  %v7297_v25 = vmul.f32 0.70710677, %v11555_v38  ;;  %v7300_v21 = vmul.f32 0.70710677, %v11557_v13  ;;  %v7318_v13 = vpop.eup %2986  ;;  %3018 = verf.f32 %v6904_v46 }
 0x278   :  { %11554 = vst [vmem:[#allocation16_spill] sm:$0xff] %v7291_v55  ;;  %v7303_v43 = vmul.f32 0.70710677, %v11559_v18  ;;  %v11561_v63 = vld [vmem:[#allocation37_spill] sm:$0xff]  ;;  %v11563_v55 = vld [vmem:[#allocation38_spill] sm:$0xff]  ;;  %v11565_v58 = vld [vmem:[#allocation39_spill] sm:$0xff] }
 0x279   :  { %11556 = vst [vmem:[#allocation17_spill] sm:$0xff] %v7297_v25  ;;  %11558 = vst [vmem:[#allocation18_spill] sm:$0xff] %v7300_v21  ;;  %v7309_v44 = vmul.f32 0.70710677, %v11561_v63  ;;  %v7312_v9 = vmul.f32 0.70710677, %v11563_v55  ;;  %v7330_v55 = vpop.eup %2988  ;;  %3020 = verf.f32 %v6907_v12 }
 0x27a   :  { %11560 = vst [vmem:[#allocation19_spill] sm:$0xff] %v7303_v43  ;;  %v7315_v14 = vmul.f32 0.70710677, %v11565_v58  ;;  %v11567_v38 = vld [vmem:[#allocation40_spill] sm:$0xff]  ;;  %v11569_v43 = vld [vmem:[#allocation41_spill] sm:$0xff]  ;;  %v11571_v21 = vld [vmem:[#allocation42_spill] sm:$0xff] }
 0x27b   :  { %11562 = vst [vmem:[#allocation20_spill] sm:$0xff] %v7309_v44  ;;  %11564 = vst [vmem:[#allocation21_spill] sm:$0xff] %v7312_v9  ;;  %v7321_v18 = vmul.f32 0.70710677, %v11567_v38  ;;  %v7324_v61 = vmul.f32 0.70710677, %v11569_v43  ;;  %v7342_v43 = vpop.eup %2990  ;;  %3022 = verf.f32 %v6913_v40 }
 0x27c   :  { %11566 = vst [vmem:[#allocation22_spill] sm:$0xff] %v7315_v14  ;;  %v7327_v25 = vmul.f32 0.70710677, %v11571_v21  ;;  %v11573_v63 = vld [vmem:[#allocation43_spill] sm:$0xff]  ;;  %v11575_v14 = vld [vmem:[#allocation44_spill] sm:$0xff]  ;;  %v11577_v9 = vld [vmem:[#allocation45_spill] sm:$0xff] }
 0x27d   :  { %11568 = vst [vmem:[#allocation23_spill] sm:$0xff] %v7321_v18  ;;  %11570 = vst [vmem:[#allocation24_spill] sm:$0xff] %v7324_v61  ;;  %v7333_v58 = vmul.f32 0.70710677, %v11573_v63  ;;  %v7336_v11 = vmul.f32 0.70710677, %v11575_v14  ;;  %v7354_v14 = vpop.eup %2992  ;;  %3024 = verf.f32 %v6916_v45 }
 0x27e   :  { %11572 = vst [vmem:[#allocation25_spill] sm:$0xff] %v7327_v25  ;;  %v7339_v44 = vmul.f32 0.70710677, %v11577_v9  ;;  %v11579_v38 = vld [vmem:[#allocation46_spill] sm:$0xff]  ;;  %v11581_v25 = vld [vmem:[#allocation47_spill] sm:$0xff]  ;;  %v11583_v61 = vld [vmem:[#allocation48_spill] sm:$0xff] }
 0x27f   :  { %11574 = vst [vmem:[#allocation26_spill] sm:$0xff] %v7333_v58  ;;  %11576 = vst [vmem:[#allocation27_spill] sm:$0xff] %v7336_v11  ;;  %v7345_v21 = vmul.f32 0.70710677, %v11579_v38  ;;  %v7348_v60 = vmul.f32 0.70710677, %v11581_v25  ;;  %v7366_v25 = vpop.eup %2994 }
 0x280   :  { %11578 = vst [vmem:[#allocation28_spill] sm:$0xff] %v7339_v44  ;;  %v7351_v18 = vmul.f32 0.70710677, %v11583_v61  ;;  %v11585_v63 = vld [vmem:[#allocation49_spill] sm:$0xff]  ;;  %v11587_v44 = vld [vmem:[#allocation50_spill] sm:$0xff]  ;;  %v11589_v11 = vld [vmem:[#allocation51_spill] sm:$0xff] }
 0x281   :  { %11580 = vst [vmem:[#allocation29_spill] sm:$0xff] %v7345_v21  ;;  %11582 = vst [vmem:[#allocation30_spill] sm:$0xff] %v7348_v60  ;;  %v7357_v9 = vmul.f32 0.70710677, %v11585_v63  ;;  %v7360_v5 = vmul.f32 0.70710677, %v11587_v44  ;;  %v7378_v44 = vpop.eup %2996 }
 0x282   :  { %11584 = vst [vmem:[#allocation31_spill] sm:$0xff] %v7351_v18  ;;  %v7363_v58 = vmul.f32 0.70710677, %v11589_v11  ;;  %v11591_v38 = vld [vmem:[#allocation52_spill] sm:$0xff]  ;;  %v11593_v18 = vld [vmem:[#allocation53_spill] sm:$0xff]  ;;  %v11595_v60 = vld [vmem:[#allocation54_spill] sm:$0xff] }
 0x283   :  { %11586 = vst [vmem:[#allocation32_spill] sm:$0xff] %v7357_v9  ;;  %11588 = vst [vmem:[#allocation33_spill] sm:$0xff] %v7360_v5  ;;  %v7369_v61 = vmul.f32 0.70710677, %v11591_v38  ;;  %v7372_v49 = vmul.f32 0.70710677, %v11593_v18  ;;  %v7390_v18 = vpop.eup %2998 }
 0x284   :  { %11590 = vst [vmem:[#allocation34_spill] sm:$0xff] %v7363_v58  ;;  %v7375_v21 = vmul.f32 0.70710677, %v11595_v60  ;;  %v11597_v63 = vld [vmem:[#allocation55_spill] sm:$0xff]  ;;  %v11599_v58 = vld [vmem:[#allocation56_spill] sm:$0xff]  ;;  %v11601_v5 = vld [vmem:[#allocation57_spill] sm:$0xff] }
 0x285   :  { %11592 = vst [vmem:[#allocation35_spill] sm:$0xff] %v7369_v61  ;;  %11594 = vst [vmem:[#allocation36_spill] sm:$0xff] %v7372_v49  ;;  %v7381_v11 = vmul.f32 0.70710677, %v11597_v63  ;;  %v7384_v46 = vmul.f32 0.70710677, %v11599_v58  ;;  %v7402_v58 = vpop.eup %3000 }
 0x286   :  { %11596 = vst [vmem:[#allocation37_spill] sm:$0xff] %v7375_v21  ;;  %v7387_v9 = vmul.f32 0.70710677, %v11601_v5  ;;  %v11603_v38 = vld [vmem:[#allocation58_spill] sm:$0xff]  ;;  %v11605_v21 = vld [vmem:[#allocation59_spill] sm:$0xff]  ;;  %v11607_v49 = vld [vmem:[#allocation60_spill] sm:$0xff] }
 0x287   :  { %11598 = vst [vmem:[#allocation38_spill] sm:$0xff] %v7381_v11  ;;  %11600 = vst [vmem:[#allocation39_spill] sm:$0xff] %v7384_v46  ;;  %v7393_v60 = vmul.f32 0.70710677, %v11603_v38  ;;  %v7396_v12 = vmul.f32 0.70710677, %v11605_v21  ;;  %v7414_v21 = vpop.eup %3002 }
 0x288   :  { %11602 = vst [vmem:[#allocation40_spill] sm:$0xff] %v7387_v9  ;;  %v7399_v61 = vmul.f32 0.70710677, %v11607_v49  ;;  %11609 = vst [vmem:[#allocation44_spill] sm:$0xff] %v7402_v58  ;;  %v11610_v63 = vld [vmem:[#allocation61_spill] sm:$0xff]  ;;  %v11612_v9 = vld [vmem:[#allocation62_spill] sm:$0xff] }
 0x289   :  { %11604 = vst [vmem:[#allocation41_spill] sm:$0xff] %v7393_v60  ;;  %11606 = vst [vmem:[#allocation42_spill] sm:$0xff] %v7396_v12  ;;  %v7405_v5 = vmul.f32 0.70710677, %v11610_v63  ;;  %v7408_v40 = vmul.f32 0.70710677, %v11612_v9  ;;  %v7426_v9 = vpop.eup %3004 }
 0x28a   :  { %11608 = vst [vmem:[#allocation43_spill] sm:$0xff] %v7399_v61  ;;  %v11614_v46 = vld [vmem:[#allocation63_spill] sm:$0xff]  ;;  %v11617_v12 = vld [vmem:[#allocation64_spill] sm:$0xff]  ;;  %v11619_v61 = vld [vmem:[#allocation65_spill] sm:$0xff] }
 0x28b   :  { %11611 = vst [vmem:[#allocation45_spill] sm:$0xff] %v7405_v5  ;;  %11613 = vst [vmem:[#allocation46_spill] sm:$0xff] %v7408_v40  ;;  %v7411_v11 = vmul.f32 0.70710677, %v11614_v46  ;;  %v11616_v38 = vld [vmem:[#allocation155_spill] sm:$0xff]  ;;  %v11621_v60 = vld [vmem:[#allocation66_spill] sm:$0xff] }
 0x28c   :  { %3026 = verf.f32 %v11616_v38  ;;  %v7417_v49 = vmul.f32 0.70710677, %v11617_v12  ;;  %v7420_v45 = vmul.f32 0.70710677, %v11619_v61  ;;  %v7423_v58 = vmul.f32 0.70710677, %v11621_v60  ;;  %v7438_v61 = vpop.eup %3006 }
 0x28d   :  { %11615 = vst [vmem:[#allocation47_spill] sm:$0xff] %v7411_v11  ;;  %3028 = verf.f32 %v6925_v57  ;;  %v11623_v63 = vld [vmem:[#allocation67_spill] sm:$0xff]  ;;  %v11625_v11 = vld [vmem:[#allocation68_spill] sm:$0xff]  ;;  %v11627_v40 = vld [vmem:[#allocation210_spill] sm:$0xff] }
 0x28e   :  { %11618 = vst [vmem:[#allocation48_spill] sm:$0xff] %v7417_v49  ;;  %11620 = vst [vmem:[#allocation49_spill] sm:$0xff] %v7420_v45  ;;  %v7429_v46 = vmul.f32 0.70710677, %v11623_v63  ;;  %v7432_v38 = vmul.f32 0.70710677, %v11625_v11  ;;  %3030 = verf.f32 %v6928_v10  ;;  %v7450_v11 = vpop.eup %3008 }
 0x28f   :  { %11622 = vst [vmem:[#allocation50_spill] sm:$0xff] %v7423_v58  ;;  %v7435_v5 = vmul.f32 0.70710677, %v11627_v40  ;;  %v11629_v12 = vld [vmem:[#allocation70_spill] sm:$0xff]  ;;  %v11631_v58 = vld [vmem:[#allocation71_spill] sm:$0xff]  ;;  %v11633_v45 = vld [vmem:[#allocation232_spill] sm:$0xff]  ;;  %3032 = verf.f32 %v6931_v42 }
 0x290   :  { %11624 = vst [vmem:[#allocation51_spill] sm:$0xff] %v7429_v46  ;;  %11626 = vst [vmem:[#allocation52_spill] sm:$0xff] %v7432_v38  ;;  %v7441_v60 = vmul.f32 0.70710677, %v11629_v12  ;;  %v7444_v57 = vmul.f32 0.70710677, %v11631_v58  ;;  %3034 = verf.f32 %v6937_v52  ;;  %v7462_v58 = vpop.eup %3010 }
 0x291   :  { %11628 = vst [vmem:[#allocation53_spill] sm:$0xff] %v7435_v5  ;;  %v7447_v49 = vmul.f32 0.70710677, %v11633_v45  ;;  %v11635_v40 = vld [vmem:[#allocation350_spill] sm:$0xff]  ;;  %v11637_v10 = vld [vmem:[#allocation352_spill] sm:$0xff]  ;;  %v11639_v12 = vld [vmem:[#allocation355_spill] sm:$0xff]  ;;  %3036 = verf.f32 %v6940_v53 }
 0x292   :  { %11630 = vst [vmem:[#allocation54_spill] sm:$0xff] %v7441_v60  ;;  %11632 = vst [vmem:[#allocation55_spill] sm:$0xff] %v7444_v57  ;;  %v7454_v63 = vadd.f32 1.0, %v11635_v40  ;;  %v7457_v5 = vadd.f32 1.0, %v11637_v10  ;;  %v7460_v60 = vadd.f32 1.0, %v11639_v12  ;;  %v11641_v45 = vld [vmem:[#allocation358_spill] sm:$0xff]  ;;  %v7474_v40 = vpop.eup %3012 }
 0x293   :  { %11634 = vst [vmem:[#allocation56_spill] sm:$0xff] %v7447_v49  ;;  %v7466_v49 = vadd.f32 1.0, %v11641_v45  ;;  %v11643_v42 = vld [vmem:[#allocation360_spill] sm:$0xff]  ;;  %v11645_v52 = vld [vmem:[#allocation362_spill] sm:$0xff]  ;;  %v11648_v46 = vld [vmem:[#allocation365_spill] sm:$0xff]  ;;  %v7486_v45 = vpop.eup %3014 }
 0x294   :  { %11636 = vst [vmem:[#allocation57_spill] sm:$0xff] %v7454_v63  ;;  %11638 = vst [vmem:[#allocation58_spill] sm:$0xff] %v7457_v5  ;;  %v7469_v57 = vadd.f32 1.0, %v11643_v42  ;;  %v7472_v38 = vadd.f32 1.0, %v11645_v52  ;;  %v11647_v10 = vld [vmem:[#allocation158_spill] sm:$0xff]  ;;  %v7478_v12 = vadd.f32 1.0, %v11648_v46  ;;  %v7498_v46 = vpop.eup %3016 }
 0x295   :  { %11640 = vst [vmem:[#allocation59_spill] sm:$0xff] %v7460_v60  ;;  %11642 = vst [vmem:[#allocation60_spill] sm:$0xff] %v7466_v49  ;;  %3038 = verf.f32 %v11647_v10  ;;  %v11650_v60 = vld [vmem:[#allocation368_spill] sm:$0xff]  ;;  %v11652_v53 = vld [vmem:[#allocation371_spill] sm:$0xff] }
 0x296   :  { %11644 = vst [vmem:[#allocation61_spill] sm:$0xff] %v7469_v57  ;;  %11646 = vst [vmem:[#allocation62_spill] sm:$0xff] %v7472_v38  ;;  %v7481_v5 = vadd.f32 1.0, %v11650_v60  ;;  %v7484_v63 = vadd.f32 1.0, %v11652_v53  ;;  %3040 = verf.f32 %v6949_v3  ;;  %v11654_v42 = vld [vmem:[#allocation374_spill] sm:$0xff]  ;;  %v11656_v38 = vld [vmem:[#allocation377_spill] sm:$0xff] }
 0x297   :  { %11649 = vst [vmem:[#allocation63_spill] sm:$0xff] %v7478_v12  ;;  %v7490_v52 = vadd.f32 1.0, %v11654_v42  ;;  %v7493_v57 = vadd.f32 1.0, %v11656_v38  ;;  %v11658_v10 = vld [vmem:[#allocation380_spill] sm:$0xff]  ;;  %3042 = verf.f32 %v6952_v17  ;;  %v11660_v60 = vld [vmem:[#allocation383_spill] sm:$0xff]  ;;  %v11664_v3 = vld [vmem:[#allocation389_spill] sm:$0xff]  ;;  %v7510_v42 = vpop.eup %3018 }
 0x298   :  { %11651 = vst [vmem:[#allocation155_spill] sm:$0xff] %v7481_v5  ;;  %11653 = vst [vmem:[#allocation64_spill] sm:$0xff] %v7484_v63  ;;  %v7496_v49 = vadd.f32 1.0, %v11658_v10  ;;  %v7502_v53 = vadd.f32 1.0, %v11660_v60  ;;  %v11662_v63 = vld [vmem:[#allocation386_spill] sm:$0xff]  ;;  %v7508_v12 = vadd.f32 1.0, %v11664_v3  ;;  %3044 = verf.f32 %v6955_v39  ;;  %v7522_v60 = vpop.eup %3020 }
 0x299   :  { %11655 = vst [vmem:[#allocation65_spill] sm:$0xff] %v7490_v52  ;;  %11657 = vst [vmem:[#allocation66_spill] sm:$0xff] %v7493_v57  ;;  %v7505_v5 = vadd.f32 1.0, %v11662_v63  ;;  %v11666_v38 = vld [vmem:[#allocation392_spill] sm:$0xff]  ;;  %v11670_v17 = vld [vmem:[#allocation398_spill] sm:$0xff]  ;;  %3046 = verf.f32 %v6961_v50 }
 0x29a   :  { %11659 = vst [vmem:[#allocation67_spill] sm:$0xff] %v7496_v49  ;;  %11661 = vst [vmem:[#allocation68_spill] sm:$0xff] %v7502_v53  ;;  %v7514_v10 = vadd.f32 1.0, %v11666_v38  ;;  %v11668_v49 = vld [vmem:[#allocation395_spill] sm:$0xff]  ;;  %v7520_v52 = vadd.f32 1.0, %v11670_v17  ;;  %v11672_v63 = vld [vmem:[#allocation401_spill] sm:$0xff]  ;;  %v7534_v38 = vpop.eup %3022  ;;  %3048 = verf.f32 %v6964_v48 }
 0x29b   :  { %11663 = vst [vmem:[#allocation210_spill] sm:$0xff] %v7505_v5  ;;  %11665 = vst [vmem:[#allocation70_spill] sm:$0xff] %v7508_v12  ;;  %v7517_v57 = vadd.f32 1.0, %v11668_v49  ;;  %v7526_v3 = vadd.f32 1.0, %v11672_v63  ;;  %v11674_v12 = vld [vmem:[#allocation404_spill] sm:$0xff]  ;;  %v11676_v39 = vld [vmem:[#allocation407_spill] sm:$0xff]  ;;  %v7546_v63 = vpop.eup %3024 }
 0x29c   :  { %11667 = vst [vmem:[#allocation71_spill] sm:$0xff] %v7514_v10  ;;  %11671 = vst [vmem:[#allocation350_spill] sm:$0xff] %v7520_v52  ;;  %v7529_v5 = vadd.f32 1.0, %v11674_v12  ;;  %v7532_v53 = vadd.f32 1.0, %v11676_v39  ;;  %v11679_v49 = vld [vmem:[#allocation410_spill] sm:$0xff]  ;;  %v11683_v50 = vld [vmem:[#allocation99_spill] sm:$0xff] }
 0x29d   :  { %11669 = vst [vmem:[#allocation232_spill] sm:$0xff] %v7517_v57  ;;  %11673 = vst [vmem:[#allocation352_spill] sm:$0xff] %v7526_v3  ;;  %v7538_v17 = vadd.f32 1.0, %v11679_v49  ;;  %v11681_v52 = vld [vmem:[#allocation98_spill] sm:$0xff]  ;;  %v7544_v10 = vadd.f32 1.0, %v11683_v50  ;;  %v11685_v12 = vld [vmem:[#allocation161_spill] sm:$0xff]  ;;  %v7558_v49 = vpop.eup %3026 }
 0x29e   :  { %11675 = vst [vmem:[#allocation355_spill] sm:$0xff] %v7529_v5  ;;  %11677 = vst [vmem:[#allocation358_spill] sm:$0xff] %v7532_v53  ;;  %v7541_v57 = vadd.f32 1.0, %v11681_v52  ;;  %3050 = verf.f32 %v11685_v12  ;;  %v11686_v5 = vld [vmem:[#allocation100_spill] sm:$0xff]  ;;  %v11688_v53 = vld [vmem:[#allocation101_spill] sm:$0xff] }
 0x29f   :  { %11678 = vst [vmem:[#allocation360_spill] sm:$0xff] %v7534_v38  ;;  %11680 = vst [vmem:[#allocation362_spill] sm:$0xff] %v7538_v17  ;;  %v7550_v39 = vadd.f32 1.0, %v11686_v5  ;;  %v7553_v3 = vadd.f32 1.0, %v11688_v53  ;;  %v11690_v48 = vld [vmem:[#allocation102_spill] sm:$0xff]  ;;  %3052 = verf.f32 %v6973_v0  ;;  %v11692_v52 = vld [vmem:[#allocation103_spill] sm:$0xff]  ;;  %v7570_v5 = vpop.eup %3028 }
 0x2a0   :  { %11682 = vst [vmem:[#allocation158_spill] sm:$0xff] %v7541_v57  ;;  %11684 = vst [vmem:[#allocation365_spill] sm:$0xff] %v7544_v10  ;;  %v7556_v38 = vadd.f32 1.0, %v11690_v48  ;;  %v7562_v50 = vadd.f32 1.0, %v11692_v52  ;;  %v11694_v10 = vld [vmem:[#allocation104_spill] sm:$0xff]  ;;  %v11696_v12 = vld [vmem:[#allocation105_spill] sm:$0xff]  ;;  %3054 = verf.f32 %v6976_v19  ;;  %v7582_v52 = vpop.eup %3030 }
 0x2a1   :  { %11687 = vst [vmem:[#allocation368_spill] sm:$0xff] %v7550_v39  ;;  %11689 = vst [vmem:[#allocation371_spill] sm:$0xff] %v7553_v3  ;;  %v7565_v57 = vadd.f32 1.0, %v11694_v10  ;;  %v7568_v17 = vadd.f32 1.0, %v11696_v12  ;;  %v11698_v53 = vld [vmem:[#allocation106_spill] sm:$0xff]  ;;  %v11702_v0 = vld [vmem:[#allocation108_spill] sm:$0xff]  ;;  %3056 = verf.f32 %v6979_v20 }
 0x2a2   :  { %11691 = vst [vmem:[#allocation374_spill] sm:$0xff] %v7556_v38  ;;  %11693 = vst [vmem:[#allocation377_spill] sm:$0xff] %v7562_v50  ;;  %v7574_v48 = vadd.f32 1.0, %v11698_v53  ;;  %v11700_v38 = vld [vmem:[#allocation107_spill] sm:$0xff]  ;;  %v7580_v39 = vadd.f32 1.0, %v11702_v0  ;;  %v11704_v10 = vld [vmem:[#allocation109_spill] sm:$0xff]  ;;  %v7594_v53 = vpop.eup %3032  ;;  %3058 = verf.f32 %v6985_v54 }
 0x2a3   :  { %11695 = vst [vmem:[#allocation380_spill] sm:$0xff] %v7565_v57  ;;  %11697 = vst [vmem:[#allocation383_spill] sm:$0xff] %v7568_v17  ;;  %v7577_v3 = vadd.f32 1.0, %v11700_v38  ;;  %v7586_v12 = vadd.f32 1.0, %v11704_v10  ;;  %v11706_v17 = vld [vmem:[#allocation110_spill] sm:$0xff]  ;;  %v11708_v19 = vld [vmem:[#allocation111_spill] sm:$0xff]  ;;  %v7606_v10 = vpop.eup %3034  ;;  %3060 = verf.f32 %v6988_v22 }
 0x2a4   :  { %11699 = vst [vmem:[#allocation386_spill] sm:$0xff] %v7574_v48  ;;  %11703 = vst [vmem:[#allocation392_spill] sm:$0xff] %v7580_v39  ;;  %v7589_v57 = vadd.f32 1.0, %v11706_v17  ;;  %v7592_v50 = vadd.f32 1.0, %v11708_v19  ;;  %v11710_v38 = vld [vmem:[#allocation112_spill] sm:$0xff]  ;;  %v11712_v39 = vld [vmem:[#allocation113_spill] sm:$0xff] }
 0x2a5   :  { %11701 = vst [vmem:[#allocation389_spill] sm:$0xff] %v7577_v3  ;;  %11705 = vst [vmem:[#allocation395_spill] sm:$0xff] %v7586_v12  ;;  %v7598_v0 = vadd.f32 1.0, %v11710_v38  ;;  %v7601_v3 = vadd.f32 1.0, %v11712_v39  ;;  %v11714_v20 = vld [vmem:[#allocation114_spill] sm:$0xff]  ;;  %v11717_v17 = vld [vmem:[#allocation115_spill] sm:$0xff]  ;;  %v7618_v38 = vpop.eup %3036 }
 0x2a6   :  { %11707 = vst [vmem:[#allocation398_spill] sm:$0xff] %v7589_v57  ;;  %11709 = vst [vmem:[#allocation401_spill] sm:$0xff] %v7592_v50  ;;  %v7604_v48 = vadd.f32 1.0, %v11714_v20  ;;  %v7610_v19 = vadd.f32 1.0, %v11717_v17  ;;  %v11719_v50 = vld [vmem:[#allocation116_spill] sm:$0xff]  ;;  %v11721_v54 = vld [vmem:[#allocation117_spill] sm:$0xff]  ;;  %v7630_v17 = vpop.eup %3038 }
 0x2a7   :  { %11711 = vst [vmem:[#allocation404_spill] sm:$0xff] %v7598_v0  ;;  %11713 = vst [vmem:[#allocation407_spill] sm:$0xff] %v7601_v3  ;;  %v7613_v57 = vadd.f32 1.0, %v11719_v50  ;;  %v7616_v12 = vadd.f32 1.0, %v11721_v54  ;;  %v11723_v39 = vld [vmem:[#allocation164_spill] sm:$0xff]  ;;  %v11724_v3 = vld [vmem:[#allocation118_spill] sm:$0xff] }
 0x2a8   :  { %11715 = vst [vmem:[#allocation410_spill] sm:$0xff] %v7604_v48  ;;  %11716 = vst [vmem:[#allocation98_spill] sm:$0xff] %v7606_v10  ;;  %3062 = verf.f32 %v11723_v39  ;;  %v7622_v20 = vadd.f32 1.0, %v11724_v3  ;;  %v11726_v48 = vld [vmem:[#allocation119_spill] sm:$0xff]  ;;  %v11728_v22 = vld [vmem:[#allocation120_spill] sm:$0xff]  ;;  %v7642_v3 = vpop.eup %3040 }
 0x2a9   :  { %11718 = vst [vmem:[#allocation99_spill] sm:$0xff] %v7610_v19  ;;  %11720 = vst [vmem:[#allocation161_spill] sm:$0xff] %v7613_v57  ;;  %v7625_v0 = vadd.f32 1.0, %v11726_v48  ;;  %v7628_v10 = vadd.f32 1.0, %v11728_v22  ;;  %3064 = verf.f32 %v6997_v7  ;;  %v11730_v50 = vld [vmem:[#allocation121_spill] sm:$0xff]  ;;  %v11734_v39 = vld [vmem:[#allocation123_spill] sm:$0xff] }
 0x2aa   :  { %11722 = vst [vmem:[#allocation100_spill] sm:$0xff] %v7616_v12  ;;  %11725 = vst [vmem:[#allocation101_spill] sm:$0xff] %v7622_v20  ;;  %v7634_v54 = vadd.f32 1.0, %v11730_v50  ;;  %v11732_v12 = vld [vmem:[#allocation122_spill] sm:$0xff]  ;;  %v7640_v19 = vadd.f32 1.0, %v11734_v39  ;;  %3066 = verf.f32 %v7000_v47  ;;  %v11736_v48 = vld [vmem:[#allocation124_spill] sm:$0xff]  ;;  %v7654_v50 = vpop.eup %3042 }
 0x2ab   :  { %11727 = vst [vmem:[#allocation102_spill] sm:$0xff] %v7625_v0  ;;  %11729 = vst [vmem:[#allocation103_spill] sm:$0xff] %v7628_v10  ;;  %v7637_v57 = vadd.f32 1.0, %v11732_v12  ;;  %v7646_v22 = vadd.f32 1.0, %v11736_v48  ;;  %v11738_v10 = vld [vmem:[#allocation125_spill] sm:$0xff]  ;;  %v11740_v7 = vld [vmem:[#allocation126_spill] sm:$0xff]  ;;  %3068 = verf.f32 %v7003_v56  ;;  %v7666_v48 = vpop.eup %3044 }
 0x2ac   :  { %11731 = vst [vmem:[#allocation104_spill] sm:$0xff] %v7634_v54  ;;  %11735 = vst [vmem:[#allocation106_spill] sm:$0xff] %v7640_v19  ;;  %v7649_v0 = vadd.f32 1.0, %v11738_v10  ;;  %v7652_v20 = vadd.f32 1.0, %v11740_v7  ;;  %v11742_v12 = vld [vmem:[#allocation127_spill] sm:$0xff]  ;;  %v11744_v19 = vld [vmem:[#allocation128_spill] sm:$0xff]  ;;  %3070 = verf.f32 %v7009_v33 }
 0x2ad   :  { %11733 = vst [vmem:[#allocation105_spill] sm:$0xff] %v7637_v57  ;;  %11737 = vst [vmem:[#allocation107_spill] sm:$0xff] %v7646_v22  ;;  %v7658_v39 = vadd.f32 1.0, %v11742_v12  ;;  %v7661_v57 = vadd.f32 1.0, %v11744_v19  ;;  %v11746_v47 = vld [vmem:[#allocation129_spill] sm:$0xff]  ;;  %v11748_v10 = vld [vmem:[#allocation130_spill] sm:$0xff]  ;;  %v7678_v12 = vpop.eup %3046  ;;  %3072 = verf.f32 %v7012_v23 }
 0x2ae   :  { %11739 = vst [vmem:[#allocation108_spill] sm:$0xff] %v7649_v0  ;;  %11741 = vst [vmem:[#allocation109_spill] sm:$0xff] %v7652_v20  ;;  %v7664_v54 = vadd.f32 1.0, %v11746_v47  ;;  %v7670_v7 = vadd.f32 1.0, %v11748_v10  ;;  %v11750_v20 = vld [vmem:[#allocation131_spill] sm:$0xff]  ;;  %v11752_v56 = vld [vmem:[#allocation132_spill] sm:$0xff]  ;;  %v7690_v10 = vpop.eup %3048  ;;  %3074 = verf.f32 %v7015_v59 }
 0x2af   :  { %11743 = vst [vmem:[#allocation110_spill] sm:$0xff] %v7658_v39  ;;  %11745 = vst [vmem:[#allocation111_spill] sm:$0xff] %v7661_v57  ;;  %v7673_v0 = vadd.f32 1.0, %v11750_v20  ;;  %v7676_v22 = vadd.f32 1.0, %v11752_v56  ;;  %v11754_v19 = vld [vmem:[#allocation133_spill] sm:$0xff]  ;;  %v11758_v33 = vld [vmem:[#allocation135_spill] sm:$0xff]  ;;  %3076 = verf.f32 %v7021_v32 }
 0x2b0   :  { %11747 = vst [vmem:[#allocation112_spill] sm:$0xff] %v7664_v54  ;;  %11749 = vst [vmem:[#allocation113_spill] sm:$0xff] %v7670_v7  ;;  %v7682_v47 = vadd.f32 1.0, %v11754_v19  ;;  %v11756_v54 = vld [vmem:[#allocation134_spill] sm:$0xff]  ;;  %v7688_v39 = vadd.f32 1.0, %v11758_v33  ;;  %v11760_v20 = vld [vmem:[#allocation136_spill] sm:$0xff]  ;;  %v7702_v19 = vpop.eup %3050  ;;  %3078 = verf.f32 %v7024_v24 }
 0x2b1   :  { %11751 = vst [vmem:[#allocation114_spill] sm:$0xff] %v7673_v0  ;;  %11753 = vst [vmem:[#allocation115_spill] sm:$0xff] %v7676_v22  ;;  %v7685_v57 = vadd.f32 1.0, %v11756_v54  ;;  %v7694_v56 = vadd.f32 1.0, %v11760_v20  ;;  %v11762_v22 = vld [vmem:[#allocation139_spill] sm:$0xff]  ;;  %v11764_v23 = vld [vmem:[#allocation142_spill] sm:$0xff]  ;;  %v7714_v20 = vpop.eup %3052  ;;  %3080 = verf.f32 %v7027_v35 }
 0x2b2   :  { %11755 = vst [vmem:[#allocation116_spill] sm:$0xff] %v7682_v47  ;;  %11759 = vst [vmem:[#allocation164_spill] sm:$0xff] %v7688_v39  ;;  %v7697_v0 = vadd.f32 1.0, %v11762_v22  ;;  %v7700_v7 = vadd.f32 1.0, %v11764_v23  ;;  %v11766_v54 = vld [vmem:[#allocation145_spill] sm:$0xff]  ;;  %v11768_v39 = vld [vmem:[#allocation148_spill] sm:$0xff]  ;;  %3082 = verf.f32 %v7033_v37 }
 0x2b3   :  { %11757 = vst [vmem:[#allocation117_spill] sm:$0xff] %v7685_v57  ;;  %11761 = vst [vmem:[#allocation118_spill] sm:$0xff] %v7694_v56  ;;  %v7706_v33 = vadd.f32 1.0, %v11766_v54  ;;  %v7709_v57 = vadd.f32 1.0, %v11768_v39  ;;  %v11770_v59 = vld [vmem:[#allocation150_spill] sm:$0xff]  ;;  %v11772_v22 = vld [vmem:[#allocation151_spill] sm:$0xff]  ;;  %v7726_v54 = vpop.eup %3054  ;;  %3084 = verf.f32 %v7036_v41 }
 0x2b4   :  { %11763 = vst [vmem:[#allocation119_spill] sm:$0xff] %v7697_v0  ;;  %11765 = vst [vmem:[#allocation120_spill] sm:$0xff] %v7700_v7  ;;  %v7712_v47 = vadd.f32 1.0, %v11770_v59  ;;  %v7718_v23 = vadd.f32 1.0, %v11772_v22  ;;  %v11774_v7 = vld [vmem:[#allocation152_spill] sm:$0xff]  ;;  %v11776_v32 = vld [vmem:[#allocation153_spill] sm:$0xff]  ;;  %v7738_v22 = vpop.eup %3056  ;;  %3086 = verf.f32 %v7039_v2 }
 0x2b5   :  { %11767 = vst [vmem:[#allocation121_spill] sm:$0xff] %v7706_v33  ;;  %11769 = vst [vmem:[#allocation122_spill] sm:$0xff] %v7709_v57  ;;  %v7721_v0 = vadd.f32 1.0, %v11774_v7  ;;  %v7724_v56 = vadd.f32 1.0, %v11776_v32  ;;  %v11778_v39 = vld [vmem:[#allocation154_spill] sm:$0xff]  ;;  %v11782_v24 = vld [vmem:[#allocation157_spill] sm:$0xff]  ;;  %3088 = verf.f32 %v7045_v27 }
 0x2b6   :  { %11771 = vst [vmem:[#allocation123_spill] sm:$0xff] %v7712_v47  ;;  %11773 = vst [vmem:[#allocation124_spill] sm:$0xff] %v7718_v23  ;;  %v7730_v59 = vadd.f32 1.0, %v11778_v39  ;;  %v11780_v47 = vld [vmem:[#allocation156_spill] sm:$0xff]  ;;  %v7736_v33 = vadd.f32 1.0, %v11782_v24  ;;  %v11784_v7 = vld [vmem:[#allocation159_spill] sm:$0xff]  ;;  %v7750_v39 = vpop.eup %3058 }
 0x2b7   :  { %11775 = vst [vmem:[#allocation125_spill] sm:$0xff] %v7721_v0  ;;  %11777 = vst [vmem:[#allocation126_spill] sm:$0xff] %v7724_v56  ;;  %v7733_v57 = vadd.f32 1.0, %v11780_v47  ;;  %v7742_v32 = vadd.f32 1.0, %v11784_v7  ;;  %v11785_v56 = vld [vmem:[#allocation160_spill] sm:$0xff]  ;;  %v11786_v35 = vld [vmem:[#allocation162_spill] sm:$0xff]  ;;  %v7762_v7 = vpop.eup %3060 }
 0x2b8   :  { %11779 = vst [vmem:[#allocation127_spill] sm:$0xff] %v7730_v59  ;;  %11783 = vst [vmem:[#allocation129_spill] sm:$0xff] %v7736_v33  ;;  %v7745_v0 = vadd.f32 1.0, %v11785_v56  ;;  %v7748_v23 = vadd.f32 1.0, %v11786_v35  ;;  %v11788_v47 = vld [vmem:[#allocation163_spill] sm:$0xff]  ;;  %v11789_v33 = vld [vmem:[#allocation165_spill] sm:$0xff] }
 0x2b9   :  { %11781 = vst [vmem:[#allocation128_spill] sm:$0xff] %v7733_v57  ;;  %v7754_v24 = vadd.f32 1.0, %v11788_v47  ;;  %v7757_v57 = vadd.f32 1.0, %v11789_v33  ;;  %v11791_v37 = vld [vmem:[#allocation166_spill] sm:$0xff]  ;;  %v7766_v56 = vadd.f32 1.0, %v7018_v36  ;;  %v7769_v35 = vadd.f32 1.0, %v7030_v31  ;;  %v7774_v47 = vpop.eup %3062 }
 0x2ba   :  { %11787 = vst [vmem:[#allocation130_spill] sm:$0xff] %v7748_v23  ;;  %v7760_v59 = vadd.f32 1.0, %v11791_v37  ;;  %v11795_v41 = vld [vmem:[#allocation167_spill] sm:$0xff]  ;;  %v7778_v33 = vadd.f32 1.0, %v7054_v28  ;;  %v11798_v37 = vld [vmem:[#allocation177_spill] sm:$0xff]  ;;  %v7786_v36 = vpop.eup %3064  ;;  %v11802_v31 = vld [vmem:[#allocation168_spill] sm:$0xff] }
 0x2bb   :  { %11790 = vst [vmem:[#allocation131_spill] sm:$0xff] %v7757_v57  ;;  %11793 = vst [vmem:[#allocation133_spill] sm:$0xff] %v7766_v56  ;;  %v7772_v23 = vadd.f32 1.0, %v11795_v41  ;;  %v11800_v2 = vld [vmem:[#allocation183_spill] sm:$0xff]  ;;  %3090 = verf.f32 %v11802_v31  ;;  %v7790_v41 = vadd.f32 1.0, %v7090_v4  ;;  %v11806_v27 = vld [vmem:[#allocation225_spill] sm:$0xff]  ;;  %v7798_v28 = vpop.eup %3066 }
 0x2bc   :  { %11792 = vst [vmem:[#allocation132_spill] sm:$0xff] %v7760_v59  ;;  %11794 = vst [vmem:[#allocation134_spill] sm:$0xff] %v7769_v35  ;;  %v7781_v59 = vadd.f32 1.0, %v11798_v37  ;;  %v7784_v57 = vadd.f32 1.0, %v11800_v2  ;;  %v7796_v56 = vadd.f32 1.0, %v11806_v27  ;;  %v11808_v37 = vld [vmem:[#allocation169_spill] sm:$0xff]  ;;  %v7810_v4 = vpop.eup %3068 }
 0x2bd   :  { %11796 = vst [vmem:[#allocation135_spill] sm:$0xff] %v7772_v23  ;;  %11797 = vst [vmem:[#allocation136_spill] sm:$0xff] %v7778_v33  ;;  %v11804_v23 = vld [vmem:[#allocation217_spill] sm:$0xff]  ;;  %3092 = verf.f32 %v11808_v37  ;;  %v7802_v2 = vadd.f32 1.0, %v7126_v29  ;;  %v11811_v31 = vld [vmem:[#allocation192_spill] sm:$0xff]  ;;  %v7814_v27 = vadd.f32 1.0, %v7162_v30  ;;  %v7822_v29 = vpop.eup %3070 }
 0x2be   :  { %11799 = vst [vmem:[#allocation139_spill] sm:$0xff] %v7781_v59  ;;  %11801 = vst [vmem:[#allocation142_spill] sm:$0xff] %v7784_v57  ;;  %v7793_v35 = vadd.f32 1.0, %v11804_v23  ;;  %v11809_v57 = vld [vmem:[#allocation189_spill] sm:$0xff]  ;;  %v7808_v33 = vadd.f32 1.0, %v11811_v31  ;;  %v11813_v23 = vld [vmem:[#allocation170_spill] sm:$0xff]  ;;  %v7834_v30 = vpop.eup %3072 }
 0x2bf   :  { %11803 = vst [vmem:[#allocation145_spill] sm:$0xff] %v7790_v41  ;;  %11807 = vst [vmem:[#allocation150_spill] sm:$0xff] %v7796_v56  ;;  %v7805_v59 = vadd.f32 1.0, %v11809_v57  ;;  %3094 = verf.f32 %v11813_v23  ;;  %v11814_v56 = vld [vmem:[#allocation80_spill] sm:$0xff]  ;;  %v11815_v37 = vld [vmem:[#allocation197_spill] sm:$0xff]  ;;  %v7826_v31 = vadd.f32 1.0, %v7198_v26  ;;  %v7846_v26 = vpop.eup %3074 }
 0x2c0   :  { %11805 = vst [vmem:[#allocation148_spill] sm:$0xff] %v7793_v35  ;;  %11812 = vst [vmem:[#allocation152_spill] sm:$0xff] %v7808_v33  ;;  %v7817_v35 = vadd.f32 1.0, %v11814_v56  ;;  %v7820_v41 = vadd.f32 1.0, %v11815_v37  ;;  %v11817_v57 = vld [vmem:[#allocation171_spill] sm:$0xff]  ;;  %v7832_v23 = vadd.f32 1.0, %v7222_v6 }
 0x2c1   :  { %11810 = vst [vmem:[#allocation151_spill] sm:$0xff] %v7805_v59  ;;  %3096 = verf.f32 %v11817_v57  ;;  %v11818_v33 = vld [vmem:[#allocation203_spill] sm:$0xff]  ;;  %v11820_v56 = vld [vmem:[#allocation172_spill] sm:$0xff]  ;;  %v7838_v37 = vadd.f32 1.0, %v7234_v34  ;;  %v7844_v57 = vadd.f32 1.0, %v7258_v51  ;;  %v7850_v6 = vadd.f32 1.0, %v7270_v8  ;;  %v7858_v34 = vpop.eup %3076 }
 0x2c2   :  { %11816 = vst [vmem:[#allocation153_spill] sm:$0xff] %v7820_v41  ;;  %v7829_v59 = vadd.f32 1.0, %v11818_v33  ;;  %11819 = vst [vmem:[#allocation154_spill] sm:$0xff] %v7832_v23  ;;  %3098 = verf.f32 %v11820_v56  ;;  %v7841_v41 = vadd.f32 1.0, %v7246_v1  ;;  %v11822_v33 = vld [vmem:[#allocation180_spill] sm:$0xff]  ;;  %v7853_v23 = vadd.f32 1.0, %v7282_v62  ;;  %v7870_v8 = vpop.eup %3078 }
 0x2c3   :  { %11821 = vst [vmem:[#allocation156_spill] sm:$0xff] %v7844_v57  ;;  %3100 = verf.f32 %v11822_v33  ;;  %v7856_v56 = vadd.f32 1.0, %v7294_v15  ;;  %v11824_v1 = vld [vmem:[#allocation181_spill] sm:$0xff]  ;;  %v7862_v51 = vadd.f32 1.0, %v7306_v16  ;;  %v7865_v57 = vadd.f32 1.0, %v7318_v13  ;;  %v11827_v62 = vld [vmem:[#allocation182_spill] sm:$0xff]  ;;  %v7882_v16 = vpop.eup %3080 }
 0x2c4   :  { %3102 = verf.f32 %v11824_v1  ;;  %v7868_v33 = vadd.f32 1.0, %v7330_v55  ;;  %v7874_v15 = vadd.f32 1.0, %v7342_v43  ;;  %v7880_v1 = vadd.f32 1.0, %v7366_v25  ;;  %v11829_v13 = vld [vmem:[#allocation73_spill] sm:$0xff]  ;;  %v7894_v43 = vpop.eup %3082 }
 0x2c5   :  { %11823 = vst [vmem:[#allocation157_spill] sm:$0xff] %v7856_v56  ;;  %11825 = vst [vmem:[#allocation159_spill] sm:$0xff] %v7865_v57  ;;  %3104 = verf.f32 %v11827_v62  ;;  %v7877_v56 = vadd.f32 1.0, %v7354_v14  ;;  %v7886_v55 = vadd.f32 1.0, %v7378_v44  ;;  %v11830_v62 = vld [vmem:[#allocation44_spill] sm:$0xff]  ;;  %v11832_v14 = vld [vmem:[#allocation75_spill] sm:$0xff]  ;;  %v7906_v44 = vpop.eup %3084 }
 0x2c6   :  { %11826 = vst [vmem:[#allocation160_spill] sm:$0xff] %v7868_v33  ;;  %11828 = vst [vmem:[#allocation162_spill] sm:$0xff] %v7880_v1  ;;  %3106 = verf.f32 %v11829_v13  ;;  %v7889_v33 = vadd.f32 1.0, %v7390_v18  ;;  %v7892_v57 = vadd.f32 1.0, %v11830_v62  ;;  %v7898_v25 = vadd.f32 1.0, %v7414_v21  ;;  %v11834_v18 = vld [vmem:[#allocation77_spill] sm:$0xff]  ;;  %v3087_v21 = vpop.eup %3086 }
 0x2c7   :  { %3108 = verf.f32 %v11832_v14  ;;  %v7901_v1 = vadd.f32 1.0, %v7426_v9  ;;  %v7904_v13 = vadd.f32 1.0, %v7438_v61  ;;  %v7910_v62 = vadd.f32 1.0, %v7450_v11  ;;  %v3089_v11 = vpop.eup %3088 }
 0x2c8   :  { %11831 = vst [vmem:[#allocation163_spill] sm:$0xff] %v7892_v57  ;;  %11833 = vst [vmem:[#allocation165_spill] sm:$0xff] %v7898_v25  ;;  %3110 = verf.f32 %v11834_v18  ;;  %v7913_v57 = vadd.f32 1.0, %v7462_v58  ;;  %v7916_v14 = vadd.f32 1.0, %v7474_v40  ;;  %v11837_v25 = vld [vmem:[#allocation211_spill] sm:$0xff]  ;;  %v7920_v9 = vadd.f32 1.0, %v7486_v45  ;;  %v3091_v45 = vpop.eup %3090 }
 0x2c9   :  { %11835 = vst [vmem:[#allocation166_spill] sm:$0xff] %v7910_v62  ;;  %3112 = verf.f32 %v11837_v25  ;;  %v7923_v61 = vadd.f32 1.0, %v7498_v46  ;;  %v7926_v18 = vadd.f32 1.0, %v7510_v42  ;;  %v11839_v62 = vld [vmem:[#allocation213_spill] sm:$0xff]  ;;  %v7930_v58 = vadd.f32 1.0, %v7522_v60  ;;  %v11841_v40 = vld [vmem:[#allocation360_spill] sm:$0xff] }
 0x2ca   :  { %11836 = vst [vmem:[#allocation167_spill] sm:$0xff] %v7916_v14  ;;  %11838 = vst [vmem:[#allocation177_spill] sm:$0xff] %v7920_v9  ;;  %3114 = verf.f32 %v11839_v62  ;;  %v7933_v14 = vadd.f32 1.0, %v11841_v40  ;;  %v7936_v25 = vadd.f32 1.0, %v7546_v63  ;;  %v11843_v9 = vld [vmem:[#allocation215_spill] sm:$0xff]  ;;  %v7940_v46 = vadd.f32 1.0, %v7558_v49  ;;  %v3093_v60 = vpop.eup %3092 }
 0x2cb   :  { %11840 = vst [vmem:[#allocation183_spill] sm:$0xff] %v7930_v58  ;;  %3116 = verf.f32 %v11843_v9  ;;  %v7943_v42 = vadd.f32 1.0, %v7570_v5  ;;  %v7946_v62 = vadd.f32 1.0, %v7582_v52  ;;  %v11845_v58 = vld [vmem:[#allocation219_spill] sm:$0xff]  ;;  %v7950_v40 = vadd.f32 1.0, %v7594_v53  ;;  %v11847_v63 = vld [vmem:[#allocation98_spill] sm:$0xff] }
 0x2cc   :  { %11842 = vst [vmem:[#allocation168_spill] sm:$0xff] %v7936_v25  ;;  %11844 = vst [vmem:[#allocation217_spill] sm:$0xff] %v7940_v46  ;;  %3118 = verf.f32 %v11845_v58  ;;  %v7953_v25 = vadd.f32 1.0, %v11847_v63  ;;  %v7956_v9 = vadd.f32 1.0, %v7618_v38  ;;  %v3095_v49 = vpop.eup %3094  ;;  %v11848_v46 = vld [vmem:[#allocation221_spill] sm:$0xff]  ;;  %v7960_v5 = vadd.f32 1.0, %v7630_v17 }
 0x2cd   :  { %11846 = vst [vmem:[#allocation225_spill] sm:$0xff] %v7950_v40  ;;  %3120 = verf.f32 %v11848_v46  ;;  %v7963_v52 = vadd.f32 1.0, %v7642_v3  ;;  %v7966_v58 = vadd.f32 1.0, %v7654_v50  ;;  %v11850_v40 = vld [vmem:[#allocation223_spill] sm:$0xff]  ;;  %v7970_v63 = vadd.f32 1.0, %v7666_v48 }
 0x2ce   :  { %11849 = vst [vmem:[#allocation169_spill] sm:$0xff] %v7960_v5  ;;  %v3097_v53 = vpop.eup %3096  ;;  %3122 = verf.f32 %v11850_v40  ;;  %v7973_v38 = vadd.f32 1.0, %v7678_v12  ;;  %v7976_v46 = vadd.f32 1.0, %v7690_v10  ;;  %v11852_v5 = vld [vmem:[#allocation228_spill] sm:$0xff]  ;;  %v7980_v3 = vadd.f32 1.0, %v7702_v19 }
 0x2cf   :  { %11851 = vst [vmem:[#allocation189_spill] sm:$0xff] %v7970_v63  ;;  %v3099_v17 = vpop.eup %3098  ;;  %3124 = verf.f32 %v11852_v5  ;;  %v7983_v50 = vadd.f32 1.0, %v7714_v20  ;;  %v7986_v40 = vadd.f32 1.0, %v7726_v54  ;;  %v11854_v63 = vld [vmem:[#allocation184_spill] sm:$0xff]  ;;  %v7990_v12 = vadd.f32 1.0, %v7738_v22 }
 0x2d0   :  { %11853 = vst [vmem:[#allocation192_spill] sm:$0xff] %v7980_v3  ;;  %v3101_v48 = vpop.eup %3100  ;;  %3126 = verf.f32 %v11854_v63  ;;  %v7993_v10 = vadd.f32 1.0, %v7750_v39  ;;  %v7996_v5 = vadd.f32 1.0, %v7762_v7  ;;  %v11856_v3 = vld [vmem:[#allocation186_spill] sm:$0xff]  ;;  %v8000_v20 = vadd.f32 1.0, %v7774_v47 }
 0x2d1   :  { %11855 = vst [vmem:[#allocation170_spill] sm:$0xff] %v7990_v12  ;;  %v3103_v19 = vpop.eup %3102  ;;  %3128 = verf.f32 %v11856_v3  ;;  %v8003_v54 = vadd.f32 1.0, %v7786_v36  ;;  %v8006_v63 = vadd.f32 1.0, %v7798_v28  ;;  %v11858_v12 = vld [vmem:[#allocation69_spill] sm:$0xff]  ;;  %v8010_v39 = vadd.f32 1.0, %v7810_v4 }
 0x2d2   :  { %11857 = vst [vmem:[#allocation80_spill] sm:$0xff] %v8000_v20  ;;  %v3105_v22 = vpop.eup %3104  ;;  %3130 = verf.f32 %v11858_v12  ;;  %v8013_v7 = vadd.f32 1.0, %v7822_v29  ;;  %v8016_v3 = vadd.f32 1.0, %v7834_v30  ;;  %v11860_v20 = vld [vmem:[#allocation137_spill] sm:$0xff]  ;;  %v8020_v36 = vadd.f32 1.0, %v7846_v26 }
 0x2d3   :  { %11859 = vst [vmem:[#allocation197_spill] sm:$0xff] %v8010_v39  ;;  %v3107_v47 = vpop.eup %3106  ;;  %3132 = verf.f32 %v11860_v20  ;;  %v8023_v28 = vadd.f32 1.0, %v7858_v34  ;;  %v8026_v12 = vadd.f32 1.0, %v7870_v8  ;;  %v11864_v39 = vld [vmem:[#allocation188_spill] sm:$0xff]  ;;  %v8030_v29 = vadd.f32 1.0, %v7882_v16 }
 0x2d4   :  { %11861 = vst [vmem:[#allocation171_spill] sm:$0xff] %v8020_v36  ;;  %v3109_v4 = vpop.eup %3108  ;;  %3134 = verf.f32 %v11864_v39  ;;  %v8033_v30 = vadd.f32 1.0, %v7894_v43  ;;  %v8036_v20 = vadd.f32 1.0, %v7906_v44  ;;  %v11868_v36 = vld [vmem:[#allocation190_spill] sm:$0xff]  ;;  %v8039_v34 = vadd.f32 1.0, %v3087_v21 }
 0x2d5   :  { %11862 = vst [vmem:[#allocation203_spill] sm:$0xff] %v8023_v28  ;;  %11863 = vst [vmem:[#allocation172_spill] sm:$0xff] %v8026_v12  ;;  %v3111_v26 = vpop.eup %3110  ;;  %3136 = verf.f32 %v11868_v36  ;;  %v8041_v28 = vadd.f32 1.0, %v3089_v11  ;;  %v8043_v8 = vadd.f32 1.0, %v3091_v45  ;;  %v11870_v39 = vld [vmem:[#allocation138_spill] sm:$0xff]  ;;  %v8046_v16 = vadd.f32 1.0, %v3093_v60 }
 0x2d6   :  { %11865 = vst [vmem:[#allocation180_spill] sm:$0xff] %v8030_v29  ;;  %11866 = vst [vmem:[#allocation181_spill] sm:$0xff] %v8033_v30  ;;  %v3113_v12 = vpop.eup %3112  ;;  %3138 = verf.f32 %v11870_v39  ;;  %v8048_v29 = vadd.f32 1.0, %v3095_v49  ;;  %v8050_v43 = vadd.f32 1.0, %v3097_v53  ;;  %v8053_v30 = vadd.f32 1.0, %v3099_v17  ;;  %v11875_v36 = vld [vmem:[#allocation193_spill] sm:$0xff] }
 0x2d7   :  { %11867 = vst [vmem:[#allocation182_spill] sm:$0xff] %v8036_v20  ;;  %11869 = vst [vmem:[#allocation73_spill] sm:$0xff] %v8043_v8  ;;  %v3115_v44 = vpop.eup %3114  ;;  %v11872_v20 = vld [vmem:[#allocation191_spill] sm:$0xff]  ;;  %v8055_v21 = vadd.f32 1.0, %v3101_v48  ;;  %v8057_v11 = vadd.f32 1.0, %v3103_v19  ;;  %v8060_v8 = vadd.f32 1.0, %v3105_v22 }
 0x2d8   :  { %11871 = vst [vmem:[#allocation44_spill] sm:$0xff] %v8050_v43  ;;  %3140 = verf.f32 %v11872_v20  ;;  %v3117_v45 = vpop.eup %3116  ;;  %v8062_v60 = vadd.f32 1.0, %v3107_v47  ;;  %v8064_v49 = vadd.f32 1.0, %v3109_v4  ;;  %v11879_v39 = vld [vmem:[#allocation194_spill] sm:$0xff]  ;;  %v8067_v43 = vadd.f32 1.0, %v3111_v26  ;;  %v11883_v20 = vld [vmem:[#allocation195_spill] sm:$0xff] }
 0x2d9   :  { %11873 = vst [vmem:[#allocation75_spill] sm:$0xff] %v8055_v21  ;;  %11874 = vst [vmem:[#allocation77_spill] sm:$0xff] %v8057_v11  ;;  %3142 = verf.f32 %v11875_v36  ;;  %v3119_v53 = vpop.eup %3118  ;;  %v8069_v17 = vadd.f32 1.0, %v3113_v12  ;;  %v8071_v48 = vadd.f32 1.0, %v3115_v44  ;;  %v8074_v11 = vadd.f32 1.0, %v3117_v45  ;;  %v11886_v47 = vld [vmem:[#allocation72_spill] sm:$0xff] }
 0x2da   :  { %11876 = vst [vmem:[#allocation211_spill] sm:$0xff] %v8060_v8  ;;  %11877 = vst [vmem:[#allocation213_spill] sm:$0xff] %v8062_v60  ;;  %3144 = verf.f32 %v11879_v39  ;;  %v3121_v19 = vpop.eup %3120  ;;  %v8076_v22 = vadd.f32 1.0, %v3119_v53  ;;  %v11887_v36 = vld [vmem:[#allocation57_spill] sm:$0xff]  ;;  %v11888_v60 = vld [vmem:[#allocation78_spill] sm:$0xff] }
 0x2db   :  { %11878 = vst [vmem:[#allocation360_spill] sm:$0xff] %v8064_v49  ;;  %11880 = vst [vmem:[#allocation215_spill] sm:$0xff] %v8067_v43  ;;  %3146 = verf.f32 %v11883_v20  ;;  %v2258_v4 = vmul.f32 %v11887_v36, %v11886_v47  ;;  %v3123_v49 = vpop.eup %3122  ;;  %v8081_v39 = vadd.f32 1.0, %v3121_v19  ;;  %v11889_v26 = vld [vmem:[#allocation233_spill] sm:$0xff]  ;;  %v11890_v12 = vld [vmem:[#allocation58_spill] sm:$0xff] }
 0x2dc   :  { %11881 = vst [vmem:[#allocation219_spill] sm:$0xff] %v8069_v17  ;;  %11882 = vst [vmem:[#allocation98_spill] sm:$0xff] %v8071_v48  ;;  %3148 = verf.f32 %v11888_v60  ;;  %v2259_v17 = vmul.f32 %v11890_v12, %v11889_v26  ;;  %v11891_v44 = vld [vmem:[#allocation234_spill] sm:$0xff]  ;;  %v11892_v48 = vld [vmem:[#allocation59_spill] sm:$0xff]  ;;  %v3125_v8 = vpop.eup %3124  ;;  %v8088_v45 = vadd.f32 1.0, %v3123_v49 }
 0x2dd   :  { %11884 = vst [vmem:[#allocation221_spill] sm:$0xff] %v8074_v11  ;;  %11885 = vst [vmem:[#allocation223_spill] sm:$0xff] %v8076_v22  ;;  %v2260_v43 = vmul.f32 %v11892_v48, %v11891_v44  ;;  %v11893_v20 = vld [vmem:[#allocation140_spill] sm:$0xff]  ;;  %v11895_v53 = vld [vmem:[#allocation235_spill] sm:$0xff]  ;;  %v3127_v60 = vpop.eup %3126  ;;  %v8098_v26 = vadd.f32 1.0, %v3125_v8 }
 0x2de   :  { %3150 = verf.f32 %v11893_v20  ;;  %11894 = vst [vmem:[#allocation228_spill] sm:$0xff] %v8088_v45  ;;  %v11896_v22 = vld [vmem:[#allocation60_spill] sm:$0xff]  ;;  %v11898_v36 = vld [vmem:[#allocation61_spill] sm:$0xff]  ;;  %2514 = vst [vmem:[%s9605_s3] sm:$0xff] %v2258_v4 }
 0x2df   :  { %v2261_v11 = vmul.f32 %v11896_v22, %v11895_v53  ;;  %v11897_v47 = vld [vmem:[#allocation236_spill] sm:$0xff]  ;;  %v11900_v48 = vld [vmem:[#allocation237_spill] sm:$0xff]  ;;  %v11901_v12 = vld [vmem:[#allocation62_spill] sm:$0xff]  ;;  %2515 = vst [vmem:[%s9605_s3 + $0x8] sm:$0xff] %v2259_v17  ;;  %v3129_v22 = vpop.eup %3128  ;;  %v8111_v53 = vadd.f32 1.0, %v3127_v60 }
 0x2e0   :  { %v2262_v21 = vmul.f32 %v11898_v36, %v11897_v47  ;;  %v11899_v19 = vld [vmem:[#allocation196_spill] sm:$0xff]  ;;  %v2263_v44 = vmul.f32 %v11901_v12, %v11900_v48  ;;  %v11902_v49 = vld [vmem:[#allocation238_spill] sm:$0xff]  ;;  %v11903_v20 = vld [vmem:[#allocation63_spill] sm:$0xff]  ;;  %2516 = vst [vmem:[%s9605_s3 + $0x10] sm:$0xff] %v2260_v43  ;;  %v3131_v43 = vpop.eup %3130 }
 0x2e1   :  { %3152 = verf.f32 %v11899_v19  ;;  %v2264_v45 = vmul.f32 %v11903_v20, %v11902_v49  ;;  %v11904_v4 = vld [vmem:[#allocation81_spill] sm:$0xff]  ;;  %11905 = vst [vmem:[#allocation184_spill] sm:$0xff] %v8111_v53  ;;  %v11906_v8 = vld [vmem:[#allocation239_spill] sm:$0xff]  ;;  %v11908_v19 = vld [vmem:[#allocation240_spill] sm:$0xff]  ;;  %v8124_v49 = vadd.f32 1.0, %v3129_v22 }
 0x2e2   :  { %3154 = verf.f32 %v11904_v4  ;;  %v11907_v47 = vld [vmem:[#allocation155_spill] sm:$0xff]  ;;  %v11909_v48 = vld [vmem:[#allocation64_spill] sm:$0xff]  ;;  %2517 = vst [vmem:[%s9605_s3 + $0x18] sm:$0xff] %v2261_v11  ;;  %2518 = vst [vmem:[%s9605_s3 + $0x20] sm:$0xff] %v2262_v21  ;;  %v3133_v21 = vpop.eup %3132 }
 0x2e3   :  { %v2265_v36 = vmul.f32 %v11907_v47, %v11906_v8  ;;  %v2266_v12 = vmul.f32 %v11909_v48, %v11908_v19  ;;  %v11910_v17 = vld [vmem:[#allocation141_spill] sm:$0xff]  ;;  %11911 = vst [vmem:[#allocation186_spill] sm:$0xff] %v8124_v49  ;;  %v11914_v8 = vld [vmem:[#allocation242_spill] sm:$0xff]  ;;  %2519 = vst [vmem:[%s9605_s3 + $0x28] sm:$0xff] %v2263_v44  ;;  %v8137_v19 = vadd.f32 1.0, %v3131_v43 }
 0x2e4   :  { %3156 = verf.f32 %v11910_v17  ;;  %v11912_v60 = vld [vmem:[#allocation241_spill] sm:$0xff]  ;;  %v11915_v47 = vld [vmem:[#allocation66_spill] sm:$0xff]  ;;  %2520 = vst [vmem:[%s9605_s3 + $0x30] sm:$0xff] %v2264_v45  ;;  %v11918_v22 = vld [vmem:[#allocation243_spill] sm:$0xff]  ;;  %v3135_v45 = vpop.eup %3134 }
 0x2e5   :  { %v11913_v20 = vld [vmem:[#allocation65_spill] sm:$0xff]  ;;  %v2268_v53 = vmul.f32 %v11915_v47, %v11914_v8  ;;  %v11916_v11 = vld [vmem:[#allocation82_spill] sm:$0xff]  ;;  %11917 = vst [vmem:[#allocation69_spill] sm:$0xff] %v8137_v19  ;;  %v11919_v48 = vld [vmem:[#allocation67_spill] sm:$0xff]  ;;  %v8150_v8 = vadd.f32 1.0, %v3133_v21 }
 0x2e6   :  { %v2267_v4 = vmul.f32 %v11913_v20, %v11912_v60  ;;  %3158 = verf.f32 %v11916_v11  ;;  %v2269_v17 = vmul.f32 %v11919_v48, %v11918_v22  ;;  %v11920_v60 = vld [vmem:[#allocation244_spill] sm:$0xff]  ;;  %2521 = vst [vmem:[%s9605_s3 + $0x38] sm:$0xff] %v2265_v36  ;;  %2522 = vst [vmem:[%s9605_s3 + $0x40] sm:$0xff] %v2266_v12  ;;  %v11922_v44 = vld [vmem:[#allocation198_spill] sm:$0xff]  ;;  %v3137_v36 = vpop.eup %3136 }
 0x2e7   :  { %v11921_v20 = vld [vmem:[#allocation68_spill] sm:$0xff]  ;;  %3160 = verf.f32 %v11922_v44  ;;  %11923 = vst [vmem:[#allocation137_spill] sm:$0xff] %v8150_v8  ;;  %v11924_v43 = vld [vmem:[#allocation245_spill] sm:$0xff]  ;;  %v11925_v47 = vld [vmem:[#allocation210_spill] sm:$0xff] }
 0x2e8   :  { %v2270_v49 = vmul.f32 %v11921_v20, %v11920_v60  ;;  %v2271_v11 = vmul.f32 %v11925_v47, %v11924_v43  ;;  %v11926_v22 = vld [vmem:[#allocation246_spill] sm:$0xff]  ;;  %2523 = vst [vmem:[%s9605_s3 + $0x48] sm:$0xff] %v2267_v4  ;;  %2524 = vst [vmem:[%s9605_s3 + $0x50] sm:$0xff] %v2268_v53  ;;  %v11928_v12 = vld [vmem:[#allocation199_spill] sm:$0xff]  ;;  %v8163_v60 = vadd.f32 1.0, %v3135_v45  ;;  %v3139_v53 = vpop.eup %3138 }
 0x2e9   :  { %v11927_v48 = vld [vmem:[#allocation70_spill] sm:$0xff]  ;;  %3162 = verf.f32 %v11928_v12  ;;  %v11930_v21 = vld [vmem:[#allocation247_spill] sm:$0xff]  ;;  %v11932_v43 = vld [vmem:[#allocation248_spill] sm:$0xff]  ;;  %2525 = vst [vmem:[%s9605_s3 + $0x58] sm:$0xff] %v2269_v17 }
 0x2ea   :  { %v2272_v19 = vmul.f32 %v11927_v48, %v11926_v22  ;;  %11929 = vst [vmem:[#allocation188_spill] sm:$0xff] %v8163_v60  ;;  %v11931_v20 = vld [vmem:[#allocation71_spill] sm:$0xff]  ;;  %v11933_v47 = vld [vmem:[#allocation232_spill] sm:$0xff]  ;;  %2526 = vst [vmem:[%s9605_s3 + $0x60] sm:$0xff] %v2270_v49  ;;  %v8176_v22 = vadd.f32 1.0, %v3137_v36  ;;  %v3141_v49 = vpop.eup %3140 }
 0x2eb   :  { %v2273_v44 = vmul.f32 %v11931_v20, %v11930_v21  ;;  %v2274_v8 = vmul.f32 %v11933_v47, %v11932_v43  ;;  %v11934_v4 = vld [vmem:[#allocation200_spill] sm:$0xff]  ;;  %v11936_v45 = vld [vmem:[#allocation249_spill] sm:$0xff]  ;;  %v11937_v48 = vld [vmem:[#allocation350_spill] sm:$0xff]  ;;  %2527 = vst [vmem:[%s9605_s3 + $0x68] sm:$0xff] %v2271_v11  ;;  %v8189_v43 = vadd.f32 1.0, %v3139_v53 }
 0x2ec   :  { %3164 = verf.f32 %v11934_v4  ;;  %11935 = vst [vmem:[#allocation190_spill] sm:$0xff] %v8176_v22  ;;  %v2275_v12 = vmul.f32 %v11937_v48, %v11936_v45  ;;  %v11938_v21 = vld [vmem:[#allocation250_spill] sm:$0xff]  ;;  %v11939_v20 = vld [vmem:[#allocation352_spill] sm:$0xff]  ;;  %2528 = vst [vmem:[%s9605_s3 + $0x70] sm:$0xff] %v2272_v19  ;;  %v3143_v19 = vpop.eup %3142 }
 0x2ed   :  { %v2276_v60 = vmul.f32 %v11939_v20, %v11938_v21  ;;  %v11940_v17 = vld [vmem:[#allocation201_spill] sm:$0xff]  ;;  %11941 = vst [vmem:[#allocation138_spill] sm:$0xff] %v8189_v43  ;;  %v11942_v36 = vld [vmem:[#allocation251_spill] sm:$0xff]  ;;  %v11944_v45 = vld [vmem:[#allocation252_spill] sm:$0xff]  ;;  %v8202_v21 = vadd.f32 1.0, %v3141_v49 }
 0x2ee   :  { %3166 = verf.f32 %v11940_v17  ;;  %v11943_v47 = vld [vmem:[#allocation355_spill] sm:$0xff]  ;;  %v11945_v48 = vld [vmem:[#allocation358_spill] sm:$0xff]  ;;  %2529 = vst [vmem:[%s9605_s3 + $0x78] sm:$0xff] %v2273_v44  ;;  %2530 = vst [vmem:[%s9605_s3 + $0x80] sm:$0xff] %v2274_v8  ;;  %v3145_v8 = vpop.eup %3144 }
 0x2ef   :  { %v2277_v4 = vmul.f32 %v11943_v47, %v11942_v36  ;;  %v2278_v22 = vmul.f32 %v11945_v48, %v11944_v45  ;;  %v11946_v11 = vld [vmem:[#allocation143_spill] sm:$0xff]  ;;  %11947 = vst [vmem:[#allocation191_spill] sm:$0xff] %v8202_v21  ;;  %v11948_v53 = vld [vmem:[#allocation253_spill] sm:$0xff]  ;;  %v11949_v20 = vld [vmem:[#allocation362_spill] sm:$0xff]  ;;  %v8215_v45 = vadd.f32 1.0, %v3143_v19 }
 0x2f0   :  { %3168 = verf.f32 %v11946_v11  ;;  %v2279_v17 = vmul.f32 %v11949_v20, %v11948_v53  ;;  %v11950_v36 = vld [vmem:[#allocation254_spill] sm:$0xff]  ;;  %2531 = vst [vmem:[%s9605_s3 + $0x88] sm:$0xff] %v2275_v12  ;;  %2532 = vst [vmem:[%s9605_s3 + $0x90] sm:$0xff] %v2276_v60  ;;  %v11954_v49 = vld [vmem:[#allocation83_spill] sm:$0xff]  ;;  %v3147_v60 = vpop.eup %3146 }
 0x2f1   :  { %v11951_v47 = vld [vmem:[#allocation158_spill] sm:$0xff]  ;;  %11953 = vst [vmem:[#allocation193_spill] sm:$0xff] %v8215_v45  ;;  %v11955_v48 = vld [vmem:[#allocation365_spill] sm:$0xff]  ;;  %v11956_v53 = vld [vmem:[#allocation84_spill] sm:$0xff] }
 0x2f2   :  { %v2280_v43 = vmul.f32 %v11951_v47, %v11950_v36  ;;  %v11952_v44 = vld [vmem:[#allocation202_spill] sm:$0xff]  ;;  %v2281_v11 = vmul.f32 %v11955_v48, %v11954_v49  ;;  %v11957_v20 = vld [vmem:[#allocation368_spill] sm:$0xff]  ;;  %2533 = vst [vmem:[%s9605_s3 + $0x98] sm:$0xff] %v2277_v4  ;;  %2534 = vst [vmem:[%s9605_s3 + $0xa0] sm:$0xff] %v2278_v22  ;;  %v8228_v36 = vadd.f32 1.0, %v3145_v8  ;;  %v3149_v22 = vpop.eup %3148 }
 0x2f3   :  { %3170 = verf.f32 %v11952_v44  ;;  %v2282_v21 = vmul.f32 %v11957_v20, %v11956_v53  ;;  %v11958_v12 = vld [vmem:[#allocation204_spill] sm:$0xff]  ;;  %v11960_v19 = vld [vmem:[#allocation85_spill] sm:$0xff]  ;;  %v11961_v47 = vld [vmem:[#allocation371_spill] sm:$0xff]  ;;  %2535 = vst [vmem:[%s9605_s3 + $0xa8] sm:$0xff] %v2279_v17  ;;  %v8241_v53 = vadd.f32 1.0, %v3147_v60 }
 0x2f4   :  { %3172 = verf.f32 %v11958_v12  ;;  %11959 = vst [vmem:[#allocation194_spill] sm:$0xff] %v8228_v36  ;;  %v2283_v44 = vmul.f32 %v11961_v47, %v11960_v19  ;;  %v11962_v49 = vld [vmem:[#allocation86_spill] sm:$0xff]  ;;  %2536 = vst [vmem:[%s9605_s3 + $0xb0] sm:$0xff] %v2280_v43  ;;  %v11964_v4 = vld [vmem:[#allocation144_spill] sm:$0xff]  ;;  %v3151_v43 = vpop.eup %3150 }
 0x2f5   :  { %v11963_v48 = vld [vmem:[#allocation374_spill] sm:$0xff]  ;;  %3174 = verf.f32 %v11964_v4  ;;  %11965 = vst [vmem:[#allocation195_spill] sm:$0xff] %v8241_v53  ;;  %v11966_v8 = vld [vmem:[#allocation87_spill] sm:$0xff]  ;;  %v11967_v20 = vld [vmem:[#allocation377_spill] sm:$0xff] }
 0x2f6   :  { %v2284_v45 = vmul.f32 %v11963_v48, %v11962_v49  ;;  %v2285_v12 = vmul.f32 %v11967_v20, %v11966_v8  ;;  %v11968_v19 = vld [vmem:[#allocation88_spill] sm:$0xff]  ;;  %2537 = vst [vmem:[%s9605_s3 + $0xb8] sm:$0xff] %v2281_v11  ;;  %2538 = vst [vmem:[%s9605_s3 + $0xc0] sm:$0xff] %v2282_v21  ;;  %v11970_v17 = vld [vmem:[#allocation205_spill] sm:$0xff]  ;;  %v8254_v49 = vadd.f32 1.0, %v3149_v22  ;;  %v3153_v21 = vpop.eup %3152 }
 0x2f7   :  { %v11969_v47 = vld [vmem:[#allocation380_spill] sm:$0xff]  ;;  %3176 = verf.f32 %v11970_v17  ;;  %v11972_v60 = vld [vmem:[#allocation89_spill] sm:$0xff]  ;;  %v11973_v48 = vld [vmem:[#allocation383_spill] sm:$0xff]  ;;  %2539 = vst [vmem:[%s9605_s3 + $0xc8] sm:$0xff] %v2283_v44 }
 0x2f8   :  { %v2286_v36 = vmul.f32 %v11969_v47, %v11968_v19  ;;  %11971 = vst [vmem:[#allocation72_spill] sm:$0xff] %v8254_v49  ;;  %v2287_v4 = vmul.f32 %v11973_v48, %v11972_v60  ;;  %v11974_v8 = vld [vmem:[#allocation90_spill] sm:$0xff]  ;;  %2540 = vst [vmem:[%s9605_s3 + $0xd0] sm:$0xff] %v2284_v45  ;;  %v8267_v19 = vadd.f32 1.0, %v3151_v43  ;;  %v11978_v22 = vld [vmem:[#allocation91_spill] sm:$0xff]  ;;  %v3155_v45 = vpop.eup %3154 }
 0x2f9   :  { %v11975_v20 = vld [vmem:[#allocation386_spill] sm:$0xff]  ;;  %v11979_v47 = vld [vmem:[#allocation389_spill] sm:$0xff]  ;;  %v11980_v60 = vld [vmem:[#allocation92_spill] sm:$0xff]  ;;  %2541 = vst [vmem:[%s9605_s3 + $0xd8] sm:$0xff] %v2285_v12 }
 0x2fa   :  { %v2288_v53 = vmul.f32 %v11975_v20, %v11974_v8  ;;  %v11976_v11 = vld [vmem:[#allocation206_spill] sm:$0xff]  ;;  %11977 = vst [vmem:[#allocation57_spill] sm:$0xff] %v8267_v19  ;;  %v2289_v17 = vmul.f32 %v11979_v47, %v11978_v22  ;;  %v11981_v48 = vld [vmem:[#allocation392_spill] sm:$0xff]  ;;  %2542 = vst [vmem:[%s9605_s3 + $0xe0] sm:$0xff] %v2286_v36  ;;  %v8280_v8 = vadd.f32 1.0, %v3153_v21  ;;  %v3157_v36 = vpop.eup %3156 }
 0x2fb   :  { %3178 = verf.f32 %v11976_v11  ;;  %v2290_v49 = vmul.f32 %v11981_v48, %v11980_v60  ;;  %v11982_v44 = vld [vmem:[#allocation207_spill] sm:$0xff]  ;;  %v11984_v43 = vld [vmem:[#allocation93_spill] sm:$0xff]  ;;  %v11986_v22 = vld [vmem:[#allocation94_spill] sm:$0xff]  ;;  %2543 = vst [vmem:[%s9605_s3 + $0xe8] sm:$0xff] %v2287_v4  ;;  %v8293_v60 = vadd.f32 1.0, %v3155_v45 }
 0x2fc   :  { %3180 = verf.f32 %v11982_v44  ;;  %11983 = vst [vmem:[#allocation78_spill] sm:$0xff] %v8280_v8  ;;  %v11985_v20 = vld [vmem:[#allocation395_spill] sm:$0xff]  ;;  %v11987_v47 = vld [vmem:[#allocation398_spill] sm:$0xff]  ;;  %2544 = vst [vmem:[%s9605_s3 + $0xf0] sm:$0xff] %v2288_v53  ;;  %v3159_v53 = vpop.eup %3158 }
 0x2fd   :  { %v2291_v11 = vmul.f32 %v11985_v20, %v11984_v43  ;;  %v2292_v19 = vmul.f32 %v11987_v47, %v11986_v22  ;;  %v11988_v12 = vld [vmem:[#allocation208_spill] sm:$0xff]  ;;  %11989 = vst [vmem:[#allocation233_spill] sm:$0xff] %v8293_v60  ;;  %v11990_v21 = vld [vmem:[#allocation95_spill] sm:$0xff]  ;;  %v11991_v48 = vld [vmem:[#allocation401_spill] sm:$0xff]  ;;  %v8306_v22 = vadd.f32 1.0, %v3157_v36 }
 0x2fe   :  { %3182 = verf.f32 %v11988_v12  ;;  %v2293_v44 = vmul.f32 %v11991_v48, %v11990_v21  ;;  %v11992_v43 = vld [vmem:[#allocation96_spill] sm:$0xff]  ;;  %2545 = vst [vmem:[%s9605_s3 + $0xf8] sm:$0xff] %v2289_v17  ;;  %2546 = vst [vmem:[%s9605_s3 + $0x100] sm:$0xff] %v2290_v49  ;;  %v11994_v4 = vld [vmem:[#allocation209_spill] sm:$0xff]  ;;  %v3161_v49 = vpop.eup %3160 }
 0x2ff   :  { %v11993_v20 = vld [vmem:[#allocation404_spill] sm:$0xff]  ;;  %3184 = verf.f32 %v11994_v4  ;;  %11995 = vst [vmem:[#allocation58_spill] sm:$0xff] %v8306_v22  ;;  %v11996_v45 = vld [vmem:[#allocation97_spill] sm:$0xff]  ;;  %v11997_v47 = vld [vmem:[#allocation407_spill] sm:$0xff] }
 0x300   :  { %v2294_v8 = vmul.f32 %v11993_v20, %v11992_v43  ;;  %v2295_v12 = vmul.f32 %v11997_v47, %v11996_v45  ;;  %v11998_v21 = vld [vmem:[#allocation255_spill] sm:$0xff]  ;;  %v11999_v48 = vld [vmem:[#allocation410_spill] sm:$0xff]  ;;  %2547 = vst [vmem:[%s9605_s3 + $0x108] sm:$0xff] %v2291_v11  ;;  %2548 = vst [vmem:[%s9605_s3 + $0x110] sm:$0xff] %v2292_v19  ;;  %v8319_v43 = vadd.f32 1.0, %v3159_v53  ;;  %v3163_v19 = vpop.eup %3162 }
 0x301   :  { %v2296_v60 = vmul.f32 %v11999_v48, %v11998_v21  ;;  %v12000_v17 = vld [vmem:[#allocation6_spill] sm:$0xff]  ;;  %v12002_v36 = vld [vmem:[#allocation256_spill] sm:$0xff]  ;;  %v12003_v20 = vld [vmem:[#allocation99_spill] sm:$0xff]  ;;  %2549 = vst [vmem:[%s9605_s3 + $0x118] sm:$0xff] %v2293_v44  ;;  %v8332_v21 = vadd.f32 1.0, %v3161_v49 }
 0x302   :  { %3186 = verf.f32 %v12000_v17  ;;  %12001 = vst [vmem:[#allocation234_spill] sm:$0xff] %v8319_v43  ;;  %v2297_v4 = vmul.f32 %v12003_v20, %v12002_v36  ;;  %v12004_v45 = vld [vmem:[#allocation257_spill] sm:$0xff]  ;;  %2550 = vst [vmem:[%s9605_s3 + $0x120] sm:$0xff] %v2294_v8  ;;  %v12006_v11 = vld [vmem:[#allocation146_spill] sm:$0xff]  ;;  %v3165_v8 = vpop.eup %3164 }
 0x303   :  { %v12005_v47 = vld [vmem:[#allocation161_spill] sm:$0xff]  ;;  %3188 = verf.f32 %v12006_v11  ;;  %12007 = vst [vmem:[#allocation59_spill] sm:$0xff] %v8332_v21  ;;  %v12008_v53 = vld [vmem:[#allocation258_spill] sm:$0xff]  ;;  %v12009_v48 = vld [vmem:[#allocation100_spill] sm:$0xff] }
 0x304   :  { %v2298_v22 = vmul.f32 %v12005_v47, %v12004_v45  ;;  %v2299_v17 = vmul.f32 %v12009_v48, %v12008_v53  ;;  %v12010_v36 = vld [vmem:[#allocation259_spill] sm:$0xff]  ;;  %v12011_v20 = vld [vmem:[#allocation101_spill] sm:$0xff]  ;;  %2551 = vst [vmem:[%s9605_s3 + $0x128] sm:$0xff] %v2295_v12  ;;  %2552 = vst [vmem:[%s9605_s3 + $0x130] sm:$0xff] %v2296_v60  ;;  %v8345_v45 = vadd.f32 1.0, %v3163_v19  ;;  %v3167_v60 = vpop.eup %3166 }
 0x305   :  { %v2300_v43 = vmul.f32 %v12011_v20, %v12010_v36  ;;  %v12012_v44 = vld [vmem:[#allocation7_spill] sm:$0xff]  ;;  %v12014_v49 = vld [vmem:[#allocation260_spill] sm:$0xff]  ;;  %v12015_v47 = vld [vmem:[#allocation102_spill] sm:$0xff]  ;;  %2553 = vst [vmem:[%s9605_s3 + $0x138] sm:$0xff] %v2297_v4  ;;  %v8358_v36 = vadd.f32 1.0, %v3165_v8 }
 0x306   :  { %3190 = verf.f32 %v12012_v44  ;;  %12013 = vst [vmem:[#allocation140_spill] sm:$0xff] %v8345_v45  ;;  %v2301_v11 = vmul.f32 %v12015_v47, %v12014_v49  ;;  %v12016_v53 = vld [vmem:[#allocation261_spill] sm:$0xff]  ;;  %v12017_v48 = vld [vmem:[#allocation103_spill] sm:$0xff]  ;;  %2554 = vst [vmem:[%s9605_s3 + $0x140] sm:$0xff] %v2298_v22  ;;  %v3169_v22 = vpop.eup %3168 }
 0x307   :  { %v2302_v21 = vmul.f32 %v12017_v48, %v12016_v53  ;;  %v12018_v12 = vld [vmem:[#allocation8_spill] sm:$0xff]  ;;  %12019 = vst [vmem:[#allocation235_spill] sm:$0xff] %v8358_v36  ;;  %v12020_v19 = vld [vmem:[#allocation262_spill] sm:$0xff]  ;;  %v12022_v49 = vld [vmem:[#allocation263_spill] sm:$0xff]  ;;  %v8371_v53 = vadd.f32 1.0, %v3167_v60 }
 0x308   :  { %3192 = verf.f32 %v12018_v12  ;;  %v12021_v20 = vld [vmem:[#allocation104_spill] sm:$0xff]  ;;  %v12023_v47 = vld [vmem:[#allocation105_spill] sm:$0xff]  ;;  %2555 = vst [vmem:[%s9605_s3 + $0x148] sm:$0xff] %v2299_v17  ;;  %2556 = vst [vmem:[%s9605_s3 + $0x150] sm:$0xff] %v2300_v43  ;;  %v3171_v43 = vpop.eup %3170 }
 0x309   :  { %v2303_v44 = vmul.f32 %v12021_v20, %v12020_v19  ;;  %v2304_v45 = vmul.f32 %v12023_v47, %v12022_v49  ;;  %v12024_v4 = vld [vmem:[#allocation9_spill] sm:$0xff]  ;;  %12025 = vst [vmem:[#allocation60_spill] sm:$0xff] %v8371_v53  ;;  %v12026_v8 = vld [vmem:[#allocation264_spill] sm:$0xff]  ;;  %v12027_v48 = vld [vmem:[#allocation106_spill] sm:$0xff]  ;;  %v8384_v49 = vadd.f32 1.0, %v3169_v22 }
 0x30a   :  { %3194 = verf.f32 %v12024_v4  ;;  %v2305_v12 = vmul.f32 %v12027_v48, %v12026_v8  ;;  %v12028_v19 = vld [vmem:[#allocation265_spill] sm:$0xff]  ;;  %v12029_v20 = vld [vmem:[#allocation107_spill] sm:$0xff]  ;;  %2557 = vst [vmem:[%s9605_s3 + $0x158] sm:$0xff] %v2301_v11  ;;  %2558 = vst [vmem:[%s9605_s3 + $0x160] sm:$0xff] %v2302_v21  ;;  %v3173_v21 = vpop.eup %3172 }
 0x30b   :  { %v2306_v36 = vmul.f32 %v12029_v20, %v12028_v19  ;;  %v12030_v17 = vld [vmem:[#allocation147_spill] sm:$0xff]  ;;  %12031 = vst [vmem:[#allocation236_spill] sm:$0xff] %v8384_v49  ;;  %v12032_v60 = vld [vmem:[#allocation266_spill] sm:$0xff]  ;;  %v12033_v47 = vld [vmem:[#allocation108_spill] sm:$0xff]  ;;  %v8397_v19 = vadd.f32 1.0, %v3171_v43 }
 0x30c   :  { %3196 = verf.f32 %v12030_v17  ;;  %v2307_v4 = vmul.f32 %v12033_v47, %v12032_v60  ;;  %v12034_v8 = vld [vmem:[#allocation267_spill] sm:$0xff]  ;;  %v12035_v48 = vld [vmem:[#allocation109_spill] sm:$0xff]  ;;  %2559 = vst [vmem:[%s9605_s3 + $0x168] sm:$0xff] %v2303_v44  ;;  %2560 = vst [vmem:[%s9605_s3 + $0x170] sm:$0xff] %v2304_v45  ;;  %v3175_v45 = vpop.eup %3174 }
 0x30d   :  { %v2308_v53 = vmul.f32 %v12035_v48, %v12034_v8  ;;  %v12036_v11 = vld [vmem:[#allocation10_spill] sm:$0xff]  ;;  %12037 = vst [vmem:[#allocation61_spill] sm:$0xff] %v8397_v19  ;;  %v12038_v22 = vld [vmem:[#allocation268_spill] sm:$0xff]  ;;  %v12040_v60 = vld [vmem:[#allocation269_spill] sm:$0xff]  ;;  %v8410_v8 = vadd.f32 1.0, %v3173_v21 }
 0x30e   :  { %3198 = verf.f32 %v12036_v11  ;;  %v12039_v20 = vld [vmem:[#allocation110_spill] sm:$0xff]  ;;  %v12041_v47 = vld [vmem:[#allocation111_spill] sm:$0xff]  ;;  %2561 = vst [vmem:[%s9605_s3 + $0x178] sm:$0xff] %v2305_v12  ;;  %2562 = vst [vmem:[%s9605_s3 + $0x180] sm:$0xff] %v2306_v36  ;;  %v3177_v36 = vpop.eup %3176 }
 0x30f   :  { %v2309_v17 = vmul.f32 %v12039_v20, %v12038_v22  ;;  %v2310_v49 = vmul.f32 %v12041_v47, %v12040_v60  ;;  %v12042_v44 = vld [vmem:[#allocation11_spill] sm:$0xff]  ;;  %12043 = vst [vmem:[#allocation196_spill] sm:$0xff] %v8410_v8  ;;  %v12044_v43 = vld [vmem:[#allocation270_spill] sm:$0xff]  ;;  %v12045_v48 = vld [vmem:[#allocation112_spill] sm:$0xff]  ;;  %v8423_v60 = vadd.f32 1.0, %v3175_v45 }
 0x310   :  { %3200 = verf.f32 %v12042_v44  ;;  %v2311_v11 = vmul.f32 %v12045_v48, %v12044_v43  ;;  %v12046_v22 = vld [vmem:[#allocation271_spill] sm:$0xff]  ;;  %v12047_v20 = vld [vmem:[#allocation113_spill] sm:$0xff]  ;;  %2563 = vst [vmem:[%s9605_s3 + $0x188] sm:$0xff] %v2307_v4  ;;  %2564 = vst [vmem:[%s9605_s3 + $0x190] sm:$0xff] %v2308_v53  ;;  %v3179_v53 = vpop.eup %3178 }
 0x311   :  { %v2312_v19 = vmul.f32 %v12047_v20, %v12046_v22  ;;  %v12048_v12 = vld [vmem:[#allocation12_spill] sm:$0xff]  ;;  %12049 = vst [vmem:[#allocation237_spill] sm:$0xff] %v8423_v60  ;;  %v12051_v47 = vld [vmem:[#allocation114_spill] sm:$0xff]  ;;  %v12052_v43 = vld [vmem:[#allocation273_spill] sm:$0xff]  ;;  %v8436_v22 = vadd.f32 1.0, %v3177_v36 }
 0x312   :  { %3202 = verf.f32 %v12048_v12  ;;  %v12050_v21 = vld [vmem:[#allocation272_spill] sm:$0xff]  ;;  %v12053_v48 = vld [vmem:[#allocation115_spill] sm:$0xff]  ;;  %2565 = vst [vmem:[%s9605_s3 + $0x198] sm:$0xff] %v2309_v17  ;;  %2566 = vst [vmem:[%s9605_s3 + $0x1a0] sm:$0xff] %v2310_v49  ;;  %v3181_v49 = vpop.eup %3180 }
 0x313   :  { %v2313_v44 = vmul.f32 %v12051_v47, %v12050_v21  ;;  %v2314_v8 = vmul.f32 %v12053_v48, %v12052_v43  ;;  %v12054_v4 = vld [vmem:[#allocation13_spill] sm:$0xff]  ;;  %12055 = vst [vmem:[#allocation62_spill] sm:$0xff] %v8436_v22  ;;  %v12056_v45 = vld [vmem:[#allocation274_spill] sm:$0xff]  ;;  %v12057_v20 = vld [vmem:[#allocation116_spill] sm:$0xff]  ;;  %v8449_v43 = vadd.f32 1.0, %v3179_v53 }
 0x314   :  { %3204 = verf.f32 %v12054_v4  ;;  %v2315_v12 = vmul.f32 %v12057_v20, %v12056_v45  ;;  %v12058_v21 = vld [vmem:[#allocation275_spill] sm:$0xff]  ;;  %v12059_v47 = vld [vmem:[#allocation117_spill] sm:$0xff]  ;;  %2567 = vst [vmem:[%s9605_s3 + $0x1a8] sm:$0xff] %v2311_v11  ;;  %2568 = vst [vmem:[%s9605_s3 + $0x1b0] sm:$0xff] %v2312_v19  ;;  %v3183_v19 = vpop.eup %3182 }
 0x315   :  { %v2316_v60 = vmul.f32 %v12059_v47, %v12058_v21  ;;  %v12060_v17 = vld [vmem:[#allocation14_spill] sm:$0xff]  ;;  %12061 = vst [vmem:[#allocation238_spill] sm:$0xff] %v8449_v43  ;;  %v12062_v36 = vld [vmem:[#allocation276_spill] sm:$0xff]  ;;  %v12064_v45 = vld [vmem:[#allocation277_spill] sm:$0xff]  ;;  %v8462_v21 = vadd.f32 1.0, %v3181_v49 }
 0x316   :  { %3206 = verf.f32 %v12060_v17  ;;  %v12063_v48 = vld [vmem:[#allocation164_spill] sm:$0xff]  ;;  %v12065_v20 = vld [vmem:[#allocation118_spill] sm:$0xff]  ;;  %2569 = vst [vmem:[%s9605_s3 + $0x1b8] sm:$0xff] %v2313_v44  ;;  %2570 = vst [vmem:[%s9605_s3 + $0x1c0] sm:$0xff] %v2314_v8  ;;  %v3185_v8 = vpop.eup %3184 }
 0x317   :  { %v2317_v4 = vmul.f32 %v12063_v48, %v12062_v36  ;;  %v2318_v22 = vmul.f32 %v12065_v20, %v12064_v45  ;;  %v12066_v11 = vld [vmem:[#allocation15_spill] sm:$0xff]  ;;  %12067 = vst [vmem:[#allocation63_spill] sm:$0xff] %v8462_v21  ;;  %v12068_v53 = vld [vmem:[#allocation278_spill] sm:$0xff]  ;;  %v12071_v48 = vld [vmem:[#allocation120_spill] sm:$0xff]  ;;  %v8475_v45 = vadd.f32 1.0, %v3183_v19 }
 0x318   :  { %3208 = verf.f32 %v12066_v11  ;;  %v12069_v47 = vld [vmem:[#allocation119_spill] sm:$0xff]  ;;  %2571 = vst [vmem:[%s9605_s3 + $0x1c8] sm:$0xff] %v2315_v12  ;;  %2572 = vst [vmem:[%s9605_s3 + $0x1d0] sm:$0xff] %v2316_v60  ;;  %v12072_v44 = vld [vmem:[#allocation149_spill] sm:$0xff]  ;;  %v3187_v60 = vpop.eup %3186 }
 0x319   :  { %v2319_v17 = vmul.f32 %v12069_v47, %v12068_v53  ;;  %v12070_v36 = vld [vmem:[#allocation279_spill] sm:$0xff]  ;;  %3210 = verf.f32 %v12072_v44  ;;  %12073 = vst [vmem:[#allocation81_spill] sm:$0xff] %v8475_v45  ;;  %v12074_v49 = vld [vmem:[#allocation280_spill] sm:$0xff]  ;;  %v12075_v20 = vld [vmem:[#allocation121_spill] sm:$0xff] }
 0x31a   :  { %v2320_v43 = vmul.f32 %v12071_v48, %v12070_v36  ;;  %v2321_v11 = vmul.f32 %v12075_v20, %v12074_v49  ;;  %v12076_v53 = vld [vmem:[#allocation281_spill] sm:$0xff]  ;;  %v12077_v47 = vld [vmem:[#allocation122_spill] sm:$0xff]  ;;  %2573 = vst [vmem:[%s9605_s3 + $0x1d8] sm:$0xff] %v2317_v4  ;;  %2574 = vst [vmem:[%s9605_s3 + $0x1e0] sm:$0xff] %v2318_v22  ;;  %v8488_v36 = vadd.f32 1.0, %v3185_v8  ;;  %v3189_v22 = vpop.eup %3188 }
 0x31b   :  { %v2322_v21 = vmul.f32 %v12077_v47, %v12076_v53  ;;  %v12078_v12 = vld [vmem:[#allocation16_spill] sm:$0xff]  ;;  %v12080_v19 = vld [vmem:[#allocation282_spill] sm:$0xff]  ;;  %v12081_v48 = vld [vmem:[#allocation123_spill] sm:$0xff]  ;;  %2575 = vst [vmem:[%s9605_s3 + $0x1e8] sm:$0xff] %v2319_v17  ;;  %v8501_v53 = vadd.f32 1.0, %v3187_v60 }
 0x31c   :  { %3212 = verf.f32 %v12078_v12  ;;  %12079 = vst [vmem:[#allocation239_spill] sm:$0xff] %v8488_v36  ;;  %v2323_v44 = vmul.f32 %v12081_v48, %v12080_v19  ;;  %v12082_v49 = vld [vmem:[#allocation283_spill] sm:$0xff]  ;;  %v12083_v20 = vld [vmem:[#allocation124_spill] sm:$0xff]  ;;  %2576 = vst [vmem:[%s9605_s3 + $0x1f0] sm:$0xff] %v2320_v43  ;;  %v3191_v43 = vpop.eup %3190 }
 0x31d   :  { %v2324_v45 = vmul.f32 %v12083_v20, %v12082_v49  ;;  %v12084_v4 = vld [vmem:[#allocation17_spill] sm:$0xff]  ;;  %12085 = vst [vmem:[#allocation155_spill] sm:$0xff] %v8501_v53  ;;  %v12086_v8 = vld [vmem:[#allocation284_spill] sm:$0xff]  ;;  %v12089_v48 = vld [vmem:[#allocation126_spill] sm:$0xff]  ;;  %v8514_v49 = vadd.f32 1.0, %v3189_v22 }
 0x31e   :  { %3214 = verf.f32 %v12084_v4  ;;  %v12087_v47 = vld [vmem:[#allocation125_spill] sm:$0xff]  ;;  %2577 = vst [vmem:[%s9605_s3 + $0x1f8] sm:$0xff] %v2321_v11  ;;  %2578 = vst [vmem:[%s9605_s3 + $0x200] sm:$0xff] %v2322_v21  ;;  %v12090_v17 = vld [vmem:[#allocation18_spill] sm:$0xff]  ;;  %v3193_v21 = vpop.eup %3192 }
 0x31f   :  { %v2325_v12 = vmul.f32 %v12087_v47, %v12086_v8  ;;  %v12088_v19 = vld [vmem:[#allocation285_spill] sm:$0xff]  ;;  %3216 = verf.f32 %v12090_v17  ;;  %v12091_v60 = vld [vmem:[#allocation286_spill] sm:$0xff]  ;;  %v12092_v20 = vld [vmem:[#allocation127_spill] sm:$0xff]  ;;  %2579 = vst [vmem:[%s9605_s3 + $0x208] sm:$0xff] %v2323_v44 }
 0x320   :  { %v2326_v36 = vmul.f32 %v12089_v48, %v12088_v19  ;;  %v2327_v4 = vmul.f32 %v12092_v20, %v12091_v60  ;;  %v12093_v8 = vld [vmem:[#allocation287_spill] sm:$0xff]  ;;  %v12094_v47 = vld [vmem:[#allocation128_spill] sm:$0xff]  ;;  %2580 = vst [vmem:[%s9605_s3 + $0x210] sm:$0xff] %v2324_v45  ;;  %v8527_v19 = vadd.f32 1.0, %v3191_v43  ;;  %v12097_v48 = vld [vmem:[#allocation129_spill] sm:$0xff]  ;;  %v3195_v45 = vpop.eup %3194 }
 0x321   :  { %v2328_v53 = vmul.f32 %v12094_v47, %v12093_v8  ;;  %v12095_v11 = vld [vmem:[#allocation19_spill] sm:$0xff]  ;;  %v12096_v22 = vld [vmem:[#allocation288_spill] sm:$0xff]  ;;  %v12098_v60 = vld [vmem:[#allocation289_spill] sm:$0xff]  ;;  %2581 = vst [vmem:[%s9605_s3 + $0x218] sm:$0xff] %v2325_v12  ;;  %v8540_v8 = vadd.f32 1.0, %v3193_v21  ;;  %v8553_v12 = vadd.f32 1.0, %v3195_v45 }
 0x322   :  { %3218 = verf.f32 %v12095_v11  ;;  %v2329_v17 = vmul.f32 %v12097_v48, %v12096_v22  ;;  %v2330_v20 = vmul.f32 %v7742_v32, %v12098_v60  ;;  %2582 = vst [vmem:[%s9605_s3 + $0x220] sm:$0xff] %v2326_v36  ;;  %v12099_v44 = vld [vmem:[#allocation20_spill] sm:$0xff]  ;;  %v12100_v43 = vld [vmem:[#allocation290_spill] sm:$0xff]  ;;  %v12101_v11 = vld [vmem:[#allocation291_spill] sm:$0xff]  ;;  %v3197_v32 = vpop.eup %3196 }
 0x323   :  { %3220 = verf.f32 %v12099_v44  ;;  %v2331_v47 = vmul.f32 %v7745_v0, %v12100_v43  ;;  %v12102_v22 = vld [vmem:[#allocation130_spill] sm:$0xff]  ;;  %2583 = vst [vmem:[%s9605_s3 + $0x228] sm:$0xff] %v2327_v4  ;;  %2584 = vst [vmem:[%s9605_s3 + $0x230] sm:$0xff] %v2328_v53  ;;  %v12103_v36 = vld [vmem:[#allocation21_spill] sm:$0xff]  ;;  %v3199_v53 = vpop.eup %3198 }
 0x324   :  { %v2332_v48 = vmul.f32 %v12102_v22, %v12101_v11  ;;  %3222 = verf.f32 %v12103_v36  ;;  %12104 = vst [vmem:[#allocation240_spill] sm:$0xff] %v8553_v12  ;;  %v12105_v21 = vld [vmem:[#allocation292_spill] sm:$0xff]  ;;  %v12106_v0 = vld [vmem:[#allocation293_spill] sm:$0xff]  ;;  %v12107_v44 = vld [vmem:[#allocation131_spill] sm:$0xff]  ;;  %v8566_v11 = vadd.f32 1.0, %v3197_v32 }
 0x325   :  { %v2333_v60 = vmul.f32 %v7754_v24, %v12105_v21  ;;  %v2334_v43 = vmul.f32 %v12107_v44, %v12106_v0  ;;  %2585 = vst [vmem:[%s9605_s3 + $0x238] sm:$0xff] %v2329_v17  ;;  %2586 = vst [vmem:[%s9605_s3 + $0x240] sm:$0xff] %v2330_v20  ;;  %v12108_v4 = vld [vmem:[#allocation22_spill] sm:$0xff]  ;;  %v12111_v22 = vld [vmem:[#allocation132_spill] sm:$0xff]  ;;  %v3201_v17 = vpop.eup %3200  ;;  %v8579_v0 = vadd.f32 1.0, %v3199_v53 }
 0x326   :  { %3224 = verf.f32 %v12108_v4  ;;  %12109 = vst [vmem:[#allocation64_spill] sm:$0xff] %v8566_v11  ;;  %v12110_v45 = vld [vmem:[#allocation294_spill] sm:$0xff]  ;;  %v12112_v24 = vld [vmem:[#allocation295_spill] sm:$0xff]  ;;  %v12113_v21 = vld [vmem:[#allocation133_spill] sm:$0xff] }
 0x327   :  { %v2335_v36 = vmul.f32 %v12111_v22, %v12110_v45  ;;  %v2336_v12 = vmul.f32 %v12113_v21, %v12112_v24  ;;  %2587 = vst [vmem:[%s9605_s3 + $0x248] sm:$0xff] %v2331_v47  ;;  %2588 = vst [vmem:[%s9605_s3 + $0x250] sm:$0xff] %v2332_v48  ;;  %v12114_v20 = vld [vmem:[#allocation23_spill] sm:$0xff]  ;;  %v12116_v32 = vld [vmem:[#allocation296_spill] sm:$0xff]  ;;  %v3203_v47 = vpop.eup %3202  ;;  %v8592_v24 = vadd.f32 1.0, %v3201_v17 }
 0x328   :  { %3226 = verf.f32 %v12114_v20  ;;  %12115 = vst [vmem:[#allocation141_spill] sm:$0xff] %v8579_v0  ;;  %v12117_v44 = vld [vmem:[#allocation134_spill] sm:$0xff]  ;;  %v12118_v45 = vld [vmem:[#allocation297_spill] sm:$0xff]  ;;  %v12119_v22 = vld [vmem:[#allocation135_spill] sm:$0xff] }
 0x329   :  { %v2337_v4 = vmul.f32 %v12117_v44, %v12116_v32  ;;  %v2338_v11 = vmul.f32 %v12119_v22, %v12118_v45  ;;  %2589 = vst [vmem:[%s9605_s3 + $0x258] sm:$0xff] %v2333_v60  ;;  %2590 = vst [vmem:[%s9605_s3 + $0x260] sm:$0xff] %v2334_v43  ;;  %v12120_v48 = vld [vmem:[#allocation24_spill] sm:$0xff]  ;;  %v12122_v53 = vld [vmem:[#allocation298_spill] sm:$0xff]  ;;  %v3205_v60 = vpop.eup %3204  ;;  %v8605_v45 = vadd.f32 1.0, %v3203_v47 }
 0x32a   :  { %3228 = verf.f32 %v12120_v48  ;;  %12121 = vst [vmem:[#allocation241_spill] sm:$0xff] %v8592_v24  ;;  %v12123_v21 = vld [vmem:[#allocation136_spill] sm:$0xff]  ;;  %v12124_v32 = vld [vmem:[#allocation299_spill] sm:$0xff]  ;;  %2591 = vst [vmem:[%s9605_s3 + $0x268] sm:$0xff] %v2335_v36 }
 0x32b   :  { %v2339_v20 = vmul.f32 %v12123_v21, %v12122_v53  ;;  %v12125_v44 = vld [vmem:[#allocation139_spill] sm:$0xff]  ;;  %2592 = vst [vmem:[%s9605_s3 + $0x270] sm:$0xff] %v2336_v12  ;;  %v12126_v43 = vld [vmem:[#allocation25_spill] sm:$0xff]  ;;  %12127 = vst [vmem:[#allocation65_spill] sm:$0xff] %v8605_v45  ;;  %v3207_v12 = vpop.eup %3206 }
 0x32c   :  { %v2340_v0 = vmul.f32 %v12125_v44, %v12124_v32  ;;  %3230 = verf.f32 %v12126_v43  ;;  %v12128_v17 = vld [vmem:[#allocation300_spill] sm:$0xff]  ;;  %v12129_v22 = vld [vmem:[#allocation142_spill] sm:$0xff]  ;;  %v12130_v53 = vld [vmem:[#allocation301_spill] sm:$0xff]  ;;  %2593 = vst [vmem:[%s9605_s3 + $0x278] sm:$0xff] %v2337_v4  ;;  %v8618_v32 = vadd.f32 1.0, %v3205_v60 }
 0x32d   :  { %v2341_v48 = vmul.f32 %v12129_v22, %v12128_v17  ;;  %v12131_v21 = vld [vmem:[#allocation145_spill] sm:$0xff]  ;;  %2594 = vst [vmem:[%s9605_s3 + $0x280] sm:$0xff] %v2338_v11  ;;  %v12132_v36 = vld [vmem:[#allocation26_spill] sm:$0xff]  ;;  %v12134_v44 = vld [vmem:[#allocation148_spill] sm:$0xff]  ;;  %v3209_v11 = vpop.eup %3208 }
 0x32e   :  { %v2342_v24 = vmul.f32 %v12131_v21, %v12130_v53  ;;  %3232 = verf.f32 %v12132_v36  ;;  %v12133_v47 = vld [vmem:[#allocation302_spill] sm:$0xff]  ;;  %v12135_v17 = vld [vmem:[#allocation303_spill] sm:$0xff]  ;;  %2595 = vst [vmem:[%s9605_s3 + $0x288] sm:$0xff] %v2339_v20  ;;  %2596 = vst [vmem:[%s9605_s3 + $0x290] sm:$0xff] %v2340_v0  ;;  %v8631_v53 = vadd.f32 1.0, %v3207_v12  ;;  %v3211_v0 = vpop.eup %3210 }
 0x32f   :  { %v2343_v43 = vmul.f32 %v12134_v44, %v12133_v47  ;;  %v12136_v22 = vld [vmem:[#allocation150_spill] sm:$0xff]  ;;  %v12137_v4 = vld [vmem:[#allocation27_spill] sm:$0xff]  ;;  %v12138_v60 = vld [vmem:[#allocation304_spill] sm:$0xff]  ;;  %2597 = vst [vmem:[%s9605_s3 + $0x298] sm:$0xff] %v2341_v48 }
 0x330   :  { %v2344_v45 = vmul.f32 %v12136_v22, %v12135_v17  ;;  %3234 = verf.f32 %v12137_v4  ;;  %v2345_v21 = vmul.f32 %v7802_v2, %v12138_v60  ;;  %v12139_v36 = vld [vmem:[#allocation305_spill] sm:$0xff]  ;;  %v12140_v47 = vld [vmem:[#allocation151_spill] sm:$0xff]  ;;  %2598 = vst [vmem:[%s9605_s3 + $0x2a0] sm:$0xff] %v2342_v24  ;;  %v12141_v20 = vld [vmem:[#allocation28_spill] sm:$0xff]  ;;  %v8644_v17 = vadd.f32 1.0, %v3209_v11  ;;  %v3213_v24 = vpop.eup %3212 }
 0x331   :  { %v2346_v44 = vmul.f32 %v12140_v47, %v12139_v36  ;;  %3236 = verf.f32 %v12141_v20  ;;  %v12142_v12 = vld [vmem:[#allocation306_spill] sm:$0xff]  ;;  %v12143_v22 = vld [vmem:[#allocation152_spill] sm:$0xff]  ;;  %v12144_v2 = vld [vmem:[#allocation307_spill] sm:$0xff]  ;;  %2599 = vst [vmem:[%s9605_s3 + $0x2a8] sm:$0xff] %v2343_v43  ;;  %v8657_v36 = vadd.f32 1.0, %v3211_v0  ;;  %v8670_v43 = vadd.f32 1.0, %v3213_v24 }
 0x332   :  { %v2347_v4 = vmul.f32 %v12143_v22, %v12142_v12  ;;  %v2348_v60 = vmul.f32 %v7814_v27, %v12144_v2  ;;  %2600 = vst [vmem:[%s9605_s3 + $0x2b0] sm:$0xff] %v2344_v45  ;;  %v12145_v48 = vld [vmem:[#allocation29_spill] sm:$0xff]  ;;  %v12146_v11 = vld [vmem:[#allocation308_spill] sm:$0xff]  ;;  %2601 = vst [vmem:[%s9605_s3 + $0x2b8] sm:$0xff] %v2345_v21  ;;  %v3215_v27 = vpop.eup %3214 }
 0x333   :  { %3238 = verf.f32 %v12145_v48  ;;  %v2349_v47 = vmul.f32 %v7817_v35, %v12146_v11  ;;  %v12147_v20 = vld [vmem:[#allocation309_spill] sm:$0xff]  ;;  %2602 = vst [vmem:[%s9605_s3 + $0x2c0] sm:$0xff] %v2346_v44  ;;  %v12149_v45 = vld [vmem:[#allocation30_spill] sm:$0xff]  ;;  %v12151_v35 = vld [vmem:[#allocation311_spill] sm:$0xff]  ;;  %v3217_v21 = vpop.eup %3216  ;;  %v8683_v11 = vadd.f32 1.0, %v3215_v27 }
 0x334   :  { %v12148_v12 = vld [vmem:[#allocation153_spill] sm:$0xff]  ;;  %3240 = verf.f32 %v12149_v45  ;;  %v12150_v0 = vld [vmem:[#allocation310_spill] sm:$0xff]  ;;  %v2352_v48 = vmul.f32 %v7829_v59, %v12151_v35  ;;  %2603 = vst [vmem:[%s9605_s3 + $0x2c8] sm:$0xff] %v2347_v4  ;;  %2604 = vst [vmem:[%s9605_s3 + $0x2d0] sm:$0xff] %v2348_v60  ;;  %v3219_v59 = vpop.eup %3218  ;;  %v8696_v60 = vadd.f32 1.0, %v3217_v21 }
 0x335   :  { %v2350_v22 = vmul.f32 %v12148_v12, %v12147_v20  ;;  %v2351_v2 = vmul.f32 %v7826_v31, %v12150_v0  ;;  %v12152_v44 = vld [vmem:[#allocation31_spill] sm:$0xff]  ;;  %v12153_v24 = vld [vmem:[#allocation312_spill] sm:$0xff]  ;;  %v12154_v20 = vld [vmem:[#allocation154_spill] sm:$0xff]  ;;  %2605 = vst [vmem:[%s9605_s3 + $0x2d8] sm:$0xff] %v2349_v47 }
 0x336   :  { %3242 = verf.f32 %v12152_v44  ;;  %v2353_v12 = vmul.f32 %v12154_v20, %v12153_v24  ;;  %v12155_v31 = vld [vmem:[#allocation313_spill] sm:$0xff]  ;;  %v12156_v4 = vld [vmem:[#allocation32_spill] sm:$0xff]  ;;  %v12157_v27 = vld [vmem:[#allocation314_spill] sm:$0xff]  ;;  %2608 = vst [vmem:[%s9605_s3 + $0x2f0] sm:$0xff] %v2352_v48 }
 0x337   :  { %v2354_v45 = vmul.f32 %v7838_v37, %v12155_v31  ;;  %2606 = vst [vmem:[%s9605_s3 + $0x2e0] sm:$0xff] %v2350_v22  ;;  %3244 = verf.f32 %v12156_v4  ;;  %v2355_v0 = vmul.f32 %v7841_v41, %v12157_v27  ;;  %v12158_v35 = vld [vmem:[#allocation315_spill] sm:$0xff]  ;;  %v12159_v44 = vld [vmem:[#allocation156_spill] sm:$0xff]  ;;  %2607 = vst [vmem:[%s9605_s3 + $0x2e8] sm:$0xff] %v2351_v2  ;;  %v3221_v37 = vpop.eup %3220  ;;  %v8709_v22 = vadd.f32 1.0, %v3219_v59 }
 0x338   :  { %v2356_v24 = vmul.f32 %v12159_v44, %v12158_v35  ;;  %v12160_v47 = vld [vmem:[#allocation33_spill] sm:$0xff]  ;;  %v12161_v21 = vld [vmem:[#allocation316_spill] sm:$0xff]  ;;  %2609 = vst [vmem:[%s9605_s3 + $0x2f8] sm:$0xff] %v2353_v12  ;;  %v3223_v2 = vpop.eup %3222  ;;  %v12163_v48 = vld [vmem:[#allocation34_spill] sm:$0xff]  ;;  %v8722_v4 = vadd.f32 1.0, %v3221_v37 }
 0x339   :  { %3246 = verf.f32 %v12160_v47  ;;  %v2357_v20 = vmul.f32 %v7850_v6, %v12161_v21  ;;  %v12162_v41 = vld [vmem:[#allocation317_spill] sm:$0xff]  ;;  %2610 = vst [vmem:[%s9605_s3 + $0x300] sm:$0xff] %v2354_v45  ;;  %v12164_v59 = vld [vmem:[#allocation318_spill] sm:$0xff]  ;;  %v12166_v6 = vld [vmem:[#allocation319_spill] sm:$0xff]  ;;  %v8735_v45 = vadd.f32 1.0, %v3223_v2 }
 0x33a   :  { %v2358_v31 = vmul.f32 %v7853_v23, %v12162_v41  ;;  %3248 = verf.f32 %v12163_v48  ;;  %v12165_v27 = vld [vmem:[#allocation157_spill] sm:$0xff]  ;;  %v2360_v44 = vmul.f32 %v7862_v51, %v12166_v6  ;;  %2611 = vst [vmem:[%s9605_s3 + $0x308] sm:$0xff] %v2355_v0  ;;  %2612 = vst [vmem:[%s9605_s3 + $0x310] sm:$0xff] %v2356_v24  ;;  %v3225_v23 = vpop.eup %3224  ;;  %v12167_v12 = vld [vmem:[#allocation35_spill] sm:$0xff] }
 0x33b   :  { %v2359_v35 = vmul.f32 %v12165_v27, %v12164_v59  ;;  %3250 = verf.f32 %v12167_v12  ;;  %v12168_v37 = vld [vmem:[#allocation320_spill] sm:$0xff]  ;;  %v12169_v47 = vld [vmem:[#allocation159_spill] sm:$0xff]  ;;  %v12170_v41 = vld [vmem:[#allocation321_spill] sm:$0xff]  ;;  %2613 = vst [vmem:[%s9605_s3 + $0x318] sm:$0xff] %v2357_v20  ;;  %v3227_v51 = vpop.eup %3226  ;;  %v8748_v24 = vadd.f32 1.0, %v3225_v23 }
 0x33c   :  { %v2361_v21 = vmul.f32 %v12169_v47, %v12168_v37  ;;  %v12171_v48 = vld [vmem:[#allocation160_spill] sm:$0xff]  ;;  %2614 = vst [vmem:[%s9605_s3 + $0x320] sm:$0xff] %v2358_v31  ;;  %v12173_v2 = vld [vmem:[#allocation322_spill] sm:$0xff]  ;;  %v12174_v6 = vld [vmem:[#allocation323_spill] sm:$0xff]  ;;  %v3229_v20 = vpop.eup %3228  ;;  %v8761_v37 = vadd.f32 1.0, %v3227_v51 }
 0x33d   :  { %v2362_v59 = vmul.f32 %v12171_v48, %v12170_v41  ;;  %v12172_v0 = vld [vmem:[#allocation36_spill] sm:$0xff]  ;;  %v2363_v27 = vmul.f32 %v7874_v15, %v12173_v2  ;;  %v2364_v12 = vmul.f32 %v7877_v56, %v12174_v6  ;;  %2615 = vst [vmem:[%s9605_s3 + $0x328] sm:$0xff] %v2359_v35  ;;  %2616 = vst [vmem:[%s9605_s3 + $0x330] sm:$0xff] %v2360_v44  ;;  %v12175_v31 = vld [vmem:[#allocation37_spill] sm:$0xff]  ;;  %v3231_v56 = vpop.eup %3230  ;;  %v8774_v44 = vadd.f32 1.0, %v3229_v20 }
 0x33e   :  { %3252 = verf.f32 %v12172_v0  ;;  %v12176_v23 = vld [vmem:[#allocation324_spill] sm:$0xff]  ;;  %v12177_v47 = vld [vmem:[#allocation162_spill] sm:$0xff]  ;;  %v12178_v15 = vld [vmem:[#allocation325_spill] sm:$0xff]  ;;  %2617 = vst [vmem:[%s9605_s3 + $0x338] sm:$0xff] %v2361_v21 }
 0x33f   :  { %3254 = verf.f32 %v12175_v31  ;;  %v2365_v41 = vmul.f32 %v12177_v47, %v12176_v23  ;;  %v2366_v48 = vmul.f32 %v7886_v55, %v12178_v15  ;;  %2618 = vst [vmem:[%s9605_s3 + $0x340] sm:$0xff] %v2362_v59  ;;  %v12179_v35 = vld [vmem:[#allocation38_spill] sm:$0xff]  ;;  %v12181_v2 = vld [vmem:[#allocation327_spill] sm:$0xff]  ;;  %2619 = vst [vmem:[%s9605_s3 + $0x348] sm:$0xff] %v2363_v27  ;;  %v3233_v55 = vpop.eup %3232  ;;  %v8787_v59 = vadd.f32 1.0, %v3231_v56 }
 0x340   :  { %3256 = verf.f32 %v12179_v35  ;;  %v12180_v51 = vld [vmem:[#allocation326_spill] sm:$0xff]  ;;  %v12182_v6 = vld [vmem:[#allocation163_spill] sm:$0xff]  ;;  %2620 = vst [vmem:[%s9605_s3 + $0x350] sm:$0xff] %v2364_v12  ;;  %v12184_v20 = vld [vmem:[#allocation328_spill] sm:$0xff]  ;;  %v3235_v27 = vpop.eup %3234  ;;  %v8800_v35 = vadd.f32 1.0, %v3233_v55 }
 0x341   :  { %v2367_v0 = vmul.f32 %v7889_v33, %v12180_v51  ;;  %v2368_v31 = vmul.f32 %v12182_v6, %v12181_v2  ;;  %v12183_v21 = vld [vmem:[#allocation39_spill] sm:$0xff]  ;;  %v12185_v23 = vld [vmem:[#allocation165_spill] sm:$0xff]  ;;  %2621 = vst [vmem:[%s9605_s3 + $0x358] sm:$0xff] %v2365_v41  ;;  %2622 = vst [vmem:[%s9605_s3 + $0x360] sm:$0xff] %v2366_v48  ;;  %v8813_v48 = vadd.f32 1.0, %v3235_v27 }
 0x342   :  { %3258 = verf.f32 %v12183_v21  ;;  %v2369_v47 = vmul.f32 %v12185_v23, %v12184_v20  ;;  %v12186_v33 = vld [vmem:[#allocation329_spill] sm:$0xff]  ;;  %v12187_v12 = vld [vmem:[#allocation40_spill] sm:$0xff]  ;;  %v12189_v2 = vld [vmem:[#allocation174_spill] sm:$0xff] }
 0x343   :  { %v2370_v15 = vmul.f32 %v7901_v1, %v12186_v33  ;;  %3260 = verf.f32 %v12187_v12  ;;  %v12188_v56 = vld [vmem:[#allocation173_spill] sm:$0xff]  ;;  %v12190_v6 = vld [vmem:[#allocation166_spill] sm:$0xff]  ;;  %2623 = vst [vmem:[%s9605_s3 + $0x368] sm:$0xff] %v2367_v0  ;;  %2624 = vst [vmem:[%s9605_s3 + $0x370] sm:$0xff] %v2368_v31  ;;  %v3237_v1 = vpop.eup %3236 }
 0x344   :  { %v2371_v51 = vmul.f32 %v7904_v13, %v12188_v56  ;;  %v2372_v21 = vmul.f32 %v12190_v6, %v12189_v2  ;;  %v12191_v41 = vld [vmem:[#allocation41_spill] sm:$0xff]  ;;  %v12192_v55 = vld [vmem:[#allocation175_spill] sm:$0xff]  ;;  %v12193_v13 = vld [vmem:[#allocation176_spill] sm:$0xff]  ;;  %2625 = vst [vmem:[%s9605_s3 + $0x378] sm:$0xff] %v2369_v47  ;;  %v3239_v0 = vpop.eup %3238  ;;  %v8826_v12 = vadd.f32 1.0, %v3237_v1 }
 0x345   :  { %3262 = verf.f32 %v12191_v41  ;;  %v2373_v20 = vmul.f32 %v7913_v57, %v12192_v55  ;;  %v12194_v23 = vld [vmem:[#allocation167_spill] sm:$0xff]  ;;  %2626 = vst [vmem:[%s9605_s3 + $0x380] sm:$0xff] %v2370_v15  ;;  %v12195_v31 = vld [vmem:[#allocation42_spill] sm:$0xff]  ;;  %v12197_v56 = vld [vmem:[#allocation177_spill] sm:$0xff]  ;;  %v3241_v47 = vpop.eup %3240  ;;  %v8839_v41 = vadd.f32 1.0, %v3239_v0 }
 0x346   :  { %v2374_v33 = vmul.f32 %v12194_v23, %v12193_v13  ;;  %3264 = verf.f32 %v12195_v31  ;;  %v12196_v27 = vld [vmem:[#allocation330_spill] sm:$0xff]  ;;  %2627 = vst [vmem:[%s9605_s3 + $0x388] sm:$0xff] %v2371_v51  ;;  %2628 = vst [vmem:[%s9605_s3 + $0x390] sm:$0xff] %v2372_v21  ;;  %v12199_v15 = vld [vmem:[#allocation43_spill] sm:$0xff]  ;;  %v8852_v21 = vadd.f32 1.0, %v3241_v47 }
 0x347   :  { %v2375_v2 = vmul.f32 %v12197_v56, %v12196_v27  ;;  %v12198_v57 = vld [vmem:[#allocation178_spill] sm:$0xff]  ;;  %3266 = verf.f32 %v12199_v15  ;;  %v12200_v1 = vld [vmem:[#allocation179_spill] sm:$0xff]  ;;  %2629 = vst [vmem:[%s9605_s3 + $0x398] sm:$0xff] %v2373_v20  ;;  %v12203_v51 = vld [vmem:[#allocation45_spill] sm:$0xff] }
 0x348   :  { %v2376_v6 = vmul.f32 %v7923_v61, %v12198_v57  ;;  %v2377_v55 = vmul.f32 %v7926_v18, %v12200_v1  ;;  %v12201_v13 = vld [vmem:[#allocation331_spill] sm:$0xff]  ;;  %2630 = vst [vmem:[%s9605_s3 + $0x3a0] sm:$0xff] %v2374_v33  ;;  %v3243_v61 = vpop.eup %3242  ;;  %3268 = verf.f32 %v12203_v51  ;;  %v12204_v0 = vld [vmem:[#allocation332_spill] sm:$0xff]  ;;  %v12205_v18 = vld [vmem:[#allocation333_spill] sm:$0xff] }
 0x349   :  { %v12202_v23 = vld [vmem:[#allocation183_spill] sm:$0xff]  ;;  %v2379_v27 = vmul.f32 %v7933_v14, %v12204_v0  ;;  %v12206_v56 = vld [vmem:[#allocation168_spill] sm:$0xff]  ;;  %2631 = vst [vmem:[%s9605_s3 + $0x3a8] sm:$0xff] %v2375_v2  ;;  %v3245_v20 = vpop.eup %3244  ;;  %v12207_v33 = vld [vmem:[#allocation46_spill] sm:$0xff]  ;;  %v8865_v15 = vadd.f32 1.0, %v3243_v61 }
 0x34a   :  { %v2378_v31 = vmul.f32 %v12202_v23, %v12201_v13  ;;  %v2380_v57 = vmul.f32 %v12206_v56, %v12205_v18  ;;  %2632 = vst [vmem:[%s9605_s3 + $0x3b0] sm:$0xff] %v2376_v6  ;;  %3270 = verf.f32 %v12207_v33  ;;  %v12208_v47 = vld [vmem:[#allocation334_spill] sm:$0xff]  ;;  %v12209_v1 = vld [vmem:[#allocation217_spill] sm:$0xff]  ;;  %v12210_v14 = vld [vmem:[#allocation335_spill] sm:$0xff]  ;;  %v3247_v2 = vpop.eup %3246  ;;  %v8878_v51 = vadd.f32 1.0, %v3245_v20 }
 0x34b   :  { %v2381_v13 = vmul.f32 %v12209_v1, %v12208_v47  ;;  %v2382_v23 = vmul.f32 %v7943_v42, %v12210_v14  ;;  %2633 = vst [vmem:[%s9605_s3 + $0x3b8] sm:$0xff] %v2377_v55  ;;  %v12211_v6 = vld [vmem:[#allocation47_spill] sm:$0xff]  ;;  %v12212_v61 = vld [vmem:[#allocation336_spill] sm:$0xff]  ;;  %v12213_v18 = vld [vmem:[#allocation337_spill] sm:$0xff]  ;;  %v3249_v42 = vpop.eup %3248 }
 0x34c   :  { %2634 = vst [vmem:[%s9605_s3 + $0x3c0] sm:$0xff] %v2378_v31  ;;  %3272 = verf.f32 %v12211_v6  ;;  %v2383_v0 = vmul.f32 %v7946_v62, %v12212_v61  ;;  %v12214_v56 = vld [vmem:[#allocation225_spill] sm:$0xff]  ;;  %2635 = vst [vmem:[%s9605_s3 + $0x3c8] sm:$0xff] %v2379_v27  ;;  %v12215_v55 = vld [vmem:[#allocation48_spill] sm:$0xff]  ;;  %v8891_v31 = vadd.f32 1.0, %v3247_v2  ;;  %v3251_v27 = vpop.eup %3250  ;;  %v8904_v14 = vadd.f32 1.0, %v3249_v42 }
 0x34d   :  { %v2384_v33 = vmul.f32 %v12214_v56, %v12213_v18  ;;  %2636 = vst [vmem:[%s9605_s3 + $0x3d0] sm:$0xff] %v2380_v57  ;;  %3274 = verf.f32 %v12215_v55  ;;  %v12216_v20 = vld [vmem:[#allocation338_spill] sm:$0xff]  ;;  %2637 = vst [vmem:[%s9605_s3 + $0x3d8] sm:$0xff] %v2381_v13  ;;  %v12218_v57 = vld [vmem:[#allocation49_spill] sm:$0xff] }
 0x34e   :  { %v2385_v47 = vmul.f32 %v7953_v25, %v12216_v20  ;;  %v12217_v62 = vld [vmem:[#allocation74_spill] sm:$0xff]  ;;  %2638 = vst [vmem:[%s9605_s3 + $0x3e0] sm:$0xff] %v2382_v23  ;;  %3276 = verf.f32 %v12218_v57  ;;  %v12219_v2 = vld [vmem:[#allocation339_spill] sm:$0xff]  ;;  %v12220_v6 = vld [vmem:[#allocation169_spill] sm:$0xff]  ;;  %v8917_v23 = vadd.f32 1.0, %v3251_v27 }
 0x34f   :  { %v2386_v1 = vmul.f32 %v7956_v9, %v12217_v62  ;;  %v2387_v61 = vmul.f32 %v12220_v6, %v12219_v2  ;;  %v12221_v25 = vld [vmem:[#allocation76_spill] sm:$0xff]  ;;  %2639 = vst [vmem:[%s9605_s3 + $0x3e8] sm:$0xff] %v2383_v0  ;;  %2640 = vst [vmem:[%s9605_s3 + $0x3f0] sm:$0xff] %v2384_v33  ;;  %v3253_v9 = vpop.eup %3252  ;;  %v12222_v13 = vld [vmem:[#allocation50_spill] sm:$0xff] }
 0x350   :  { %v2388_v18 = vmul.f32 %v7963_v52, %v12221_v25  ;;  %3278 = verf.f32 %v12222_v13  ;;  %v12223_v56 = vld [vmem:[#allocation340_spill] sm:$0xff]  ;;  %v12224_v55 = vld [vmem:[#allocation79_spill] sm:$0xff]  ;;  %v12225_v20 = vld [vmem:[#allocation189_spill] sm:$0xff]  ;;  %2641 = vst [vmem:[%s9605_s3 + $0x3f8] sm:$0xff] %v2385_v47  ;;  %v3255_v52 = vpop.eup %3254  ;;  %v8930_v33 = vadd.f32 1.0, %v3253_v9 }
 0x351   :  { %v2389_v42 = vmul.f32 %v7966_v58, %v12223_v56  ;;  %v2390_v62 = vmul.f32 %v12225_v20, %v12224_v55  ;;  %2642 = vst [vmem:[%s9605_s3 + $0x400] sm:$0xf] %v2386_v1  ;;  %v12226_v0 = vld [vmem:[#allocation51_spill] sm:$0xff]  ;;  %v12227_v27 = vld [vmem:[#allocation341_spill] sm:$0xff]  ;;  %v12228_v58 = vld [vmem:[#allocation212_spill] sm:$0xff]  ;;  %v3257_v47 = vpop.eup %3256  ;;  %v8943_v6 = vadd.f32 1.0, %v3255_v52 }
 0x352   :  { %3280 = verf.f32 %v12226_v0  ;;  %v2391_v57 = vmul.f32 %v7973_v38, %v12227_v27  ;;  %v2392_v2 = vmul.f32 %v7976_v46, %v12228_v58  ;;  %2643 = vst [vmem:[%s9605_s3 + $0x408] sm:$0xf] %v2387_v61  ;;  %2644 = vst [vmem:[%s9605_s3 + $0x410] sm:$0xf] %v2388_v18  ;;  %v12229_v1 = vld [vmem:[#allocation52_spill] sm:$0xff]  ;;  %v12230_v25 = vld [vmem:[#allocation342_spill] sm:$0xff]  ;;  %v3259_v46 = vpop.eup %3258 }
 0x353   :  { %3282 = verf.f32 %v12229_v1  ;;  %v12231_v9 = vld [vmem:[#allocation192_spill] sm:$0xff]  ;;  %v12232_v38 = vld [vmem:[#allocation214_spill] sm:$0xff]  ;;  %2645 = vst [vmem:[%s9605_s3 + $0x418] sm:$0xf] %v2389_v42  ;;  %2646 = vst [vmem:[%s9605_s3 + $0x420] sm:$0xf] %v2390_v62 }
 0x354   :  { %v2393_v13 = vmul.f32 %v12231_v9, %v12230_v25  ;;  %v2394_v56 = vmul.f32 %v7983_v50, %v12232_v38  ;;  %v12233_v61 = vld [vmem:[#allocation53_spill] sm:$0xff]  ;;  %v8956_v18 = vadd.f32 1.0, %v3257_v47  ;;  %v12234_v55 = vld [vmem:[#allocation343_spill] sm:$0xff]  ;;  %v12235_v52 = vld [vmem:[#allocation216_spill] sm:$0xff]  ;;  %2647 = vst [vmem:[%s9605_s3 + $0x428] sm:$0xf] %v2391_v57  ;;  %v3261_v50 = vpop.eup %3260 }
 0x355   :  { %3284 = verf.f32 %v12233_v61  ;;  %v2395_v20 = vmul.f32 %v7986_v40, %v12234_v55  ;;  %v12236_v0 = vld [vmem:[#allocation170_spill] sm:$0xff]  ;;  %2648 = vst [vmem:[%s9605_s3 + $0x430] sm:$0xf] %v2392_v2  ;;  %v8969_v62 = vadd.f32 1.0, %v3259_v46  ;;  %v12238_v58 = vld [vmem:[#allocation344_spill] sm:$0xff]  ;;  %v3263_v57 = vpop.eup %3262  ;;  %v12240_v2 = vld [vmem:[#allocation55_spill] sm:$0xff] }
 0x356   :  { %v2396_v27 = vmul.f32 %v12236_v0, %v12235_v52  ;;  %v12237_v42 = vld [vmem:[#allocation54_spill] sm:$0xff]  ;;  %v2397_v47 = vmul.f32 %v7993_v10, %v12238_v58  ;;  %2649 = vst [vmem:[%s9605_s3 + $0x438] sm:$0xf] %v2393_v13  ;;  %2650 = vst [vmem:[%s9605_s3 + $0x440] sm:$0xf] %v2394_v56  ;;  %v8982_v25 = vadd.f32 1.0, %v3261_v50 }
 0x357   :  { %3286 = verf.f32 %v12237_v42  ;;  %v12239_v40 = vld [vmem:[#allocation218_spill] sm:$0xff]  ;;  %v12241_v9 = vld [vmem:[#allocation345_spill] sm:$0xff]  ;;  %v12242_v38 = vld [vmem:[#allocation80_spill] sm:$0xff]  ;;  %2651 = vst [vmem:[%s9605_s3 + $0x448] sm:$0xf] %v2395_v20  ;;  %v8995_v56 = vadd.f32 1.0, %v3263_v57 }
 0x358   :  { %v2398_v1 = vmul.f32 %v7996_v5, %v12239_v40  ;;  %3288 = verf.f32 %v12240_v2  ;;  %v2399_v46 = vmul.f32 %v12242_v38, %v12241_v9  ;;  %v12243_v10 = vld [vmem:[#allocation220_spill] sm:$0xff]  ;;  %2652 = vst [vmem:[%s9605_s3 + $0x450] sm:$0xf] %v2396_v27  ;;  %v3265_v5 = vpop.eup %3264  ;;  %v12245_v55 = vld [vmem:[#allocation346_spill] sm:$0xff]  ;;  %v12247_v50 = vld [vmem:[#allocation197_spill] sm:$0xff] }
 0x359   :  { %v2400_v61 = vmul.f32 %v8003_v54, %v12243_v10  ;;  %v12244_v13 = vld [vmem:[#allocation56_spill] sm:$0xff]  ;;  %v2401_v52 = vmul.f32 %v8006_v63, %v12245_v55  ;;  %v12246_v0 = vld [vmem:[#allocation222_spill] sm:$0xff]  ;;  %2653 = vst [vmem:[%s9605_s3 + $0x458] sm:$0xf] %v2397_v47  ;;  %v3267_v54 = vpop.eup %3266  ;;  %v9007_v20 = vadd.f32 1.0, %v3265_v5  ;;  %v12248_v27 = vld [vmem:[#allocation347_spill] sm:$0xff] }
 0x35a   :  { %3290 = verf.f32 %v12244_v13  ;;  %v2402_v42 = vmul.f32 %v12247_v50, %v12246_v0  ;;  %2654 = vst [vmem:[%s9605_s3 + $0x460] sm:$0xf] %v2398_v1  ;;  %v2403_v58 = vmul.f32 %v8013_v7, %v12248_v27  ;;  %v12249_v40 = vld [vmem:[#allocation224_spill] sm:$0xff]  ;;  %v12251_v2 = vld [vmem:[#allocation171_spill] sm:$0xff]  ;;  %2655 = vst [vmem:[%s9605_s3 + $0x468] sm:$0xf] %v2399_v46  ;;  %v3269_v47 = vpop.eup %3268 }
 0x35b   :  { %v2404_v63 = vmul.f32 %v8016_v3, %v12249_v40  ;;  %v12250_v57 = vld [vmem:[#allocation348_spill] sm:$0xff]  ;;  %2656 = vst [vmem:[%s9605_s3 + $0x470] sm:$0xf] %v2400_v61  ;;  %v9021_v1 = vadd.f32 1.0, %v3267_v54  ;;  %v12252_v38 = vld [vmem:[#allocation226_spill] sm:$0xff]  ;;  %v12253_v10 = vld [vmem:[#allocation203_spill] sm:$0xff]  ;;  %v3271_v46 = vpop.eup %3270 }
 0x35c   :  { %v2405_v9 = vmul.f32 %v12251_v2, %v12250_v57  ;;  %v2406_v7 = vmul.f32 %v12253_v10, %v12252_v38  ;;  %v12254_v5 = vld [vmem:[#allocation227_spill] sm:$0xff]  ;;  %v12255_v13 = vld [vmem:[#allocation172_spill] sm:$0xff]  ;;  %v12256_v55 = vld [vmem:[#allocation349_spill] sm:$0xff]  ;;  %2657 = vst [vmem:[%s9605_s3 + $0x478] sm:$0xf] %v2401_v52  ;;  %v9035_v61 = vadd.f32 1.0, %v3269_v47  ;;  %v3273_v52 = vpop.eup %3272 }
 0x35d   :  { %v2407_v3 = vmul.f32 %v12255_v13, %v12254_v5  ;;  %v12257_v0 = vld [vmem:[#allocation180_spill] sm:$0xff]  ;;  %2658 = vst [vmem:[%s9605_s3 + $0x480] sm:$0xf] %v2402_v42  ;;  %v12258_v54 = vld [vmem:[#allocation229_spill] sm:$0xff]  ;;  %v12260_v57 = vld [vmem:[#allocation230_spill] sm:$0xff]  ;;  %v9052_v42 = vadd.f32 1.0, %v3271_v46 }
 0x35e   :  { %v2408_v50 = vmul.f32 %v12257_v0, %v12256_v55  ;;  %v12259_v27 = vld [vmem:[#allocation181_spill] sm:$0xff]  ;;  %v12261_v2 = vld [vmem:[#allocation182_spill] sm:$0xff]  ;;  %v12262_v10 = vld [vmem:[#allocation351_spill] sm:$0xff]  ;;  %2659 = vst [vmem:[%s9605_s3 + $0x488] sm:$0xf] %v2403_v58 }
 0x35f   :  { %v2409_v40 = vmul.f32 %v12259_v27, %v12258_v54  ;;  %v2410_v38 = vmul.f32 %v12261_v2, %v12260_v57  ;;  %v2411_v5 = vmul.f32 %v8039_v34, %v12262_v10  ;;  %2660 = vst [vmem:[%s9605_s3 + $0x490] sm:$0xf] %v2404_v63  ;;  %2661 = vst [vmem:[%s9605_s3 + $0x498] sm:$0xf] %v2405_v9  ;;  %v12263_v47 = vld [vmem:[#allocation231_spill] sm:$0xff]  ;;  %v12264_v55 = vld [vmem:[#allocation353_spill] sm:$0xff]  ;;  %v3275_v63 = vpop.eup %3274 }
 0x360   :  { %v2412_v13 = vmul.f32 %v8041_v28, %v12263_v47  ;;  %v12265_v34 = vld [vmem:[#allocation73_spill] sm:$0xff]  ;;  %v12266_v54 = vld [vmem:[#allocation354_spill] sm:$0xff]  ;;  %2662 = vst [vmem:[%s9605_s3 + $0x4a0] sm:$0xf] %v2406_v7  ;;  %2663 = vst [vmem:[%s9605_s3 + $0x4a8] sm:$0xf] %v2407_v3  ;;  %v3277_v3 = vpop.eup %3276 }
 0x361   :  { %v2413_v0 = vmul.f32 %v12265_v34, %v12264_v55  ;;  %v2414_v58 = vmul.f32 %v8046_v16, %v12266_v54  ;;  %2664 = vst [vmem:[%s9605_s3 + $0x4b0] sm:$0xf] %v2408_v50  ;;  %v9069_v28 = vadd.f32 1.0, %v3273_v52  ;;  %v12267_v9 = vld [vmem:[#allocation356_spill] sm:$0xff]  ;;  %v12268_v27 = vld [vmem:[#allocation357_spill] sm:$0xff]  ;;  %v12271_v50 = vld [vmem:[#allocation359_spill] sm:$0xff] }
 0x362   :  { %v2415_v46 = vmul.f32 %v8048_v29, %v12267_v9  ;;  %v12269_v16 = vld [vmem:[#allocation44_spill] sm:$0xff]  ;;  %v12270_v2 = vld [vmem:[#allocation185_spill] sm:$0xff]  ;;  %2665 = vst [vmem:[%s9605_s3 + $0x4b8] sm:$0xf] %v2409_v40  ;;  %2666 = vst [vmem:[%s9605_s3 + $0x4c0] sm:$0xf] %v2410_v38  ;;  %v3279_v38 = vpop.eup %3278 }
 0x363   :  { %v2416_v57 = vmul.f32 %v12269_v16, %v12268_v27  ;;  %v2417_v7 = vmul.f32 %v8053_v30, %v12270_v2  ;;  %2667 = vst [vmem:[%s9605_s3 + $0x4c8] sm:$0xf] %v2411_v5  ;;  %v9086_v29 = vadd.f32 1.0, %v3275_v63  ;;  %v12272_v10 = vld [vmem:[#allocation75_spill] sm:$0xff]  ;;  %v12274_v30 = vld [vmem:[#allocation77_spill] sm:$0xff]  ;;  %v9103_v5 = vadd.f32 1.0, %v3277_v3 }
 0x364   :  { %v2418_v52 = vmul.f32 %v12272_v10, %v12271_v50  ;;  %v12273_v47 = vld [vmem:[#allocation187_spill] sm:$0xff]  ;;  %v12275_v34 = vld [vmem:[#allocation361_spill] sm:$0xff]  ;;  %2668 = vst [vmem:[%s9605_s3 + $0x4d0] sm:$0xf] %v2412_v13  ;;  %2669 = vst [vmem:[%s9605_s3 + $0x4d8] sm:$0xf] %v2413_v0  ;;  %v3281_v0 = vpop.eup %3280 }
 0x365   :  { %v2419_v55 = vmul.f32 %v12274_v30, %v12273_v47  ;;  %v12276_v54 = vld [vmem:[#allocation211_spill] sm:$0xff]  ;;  %2670 = vst [vmem:[%s9605_s3 + $0x4e0] sm:$0xf] %v2414_v58  ;;  %v12278_v9 = vld [vmem:[#allocation213_spill] sm:$0xff]  ;;  %v12279_v16 = vld [vmem:[#allocation364_spill] sm:$0xff]  ;;  %v9120_v58 = vadd.f32 1.0, %v3279_v38 }
 0x366   :  { %v2420_v40 = vmul.f32 %v12276_v54, %v12275_v34  ;;  %v12277_v63 = vld [vmem:[#allocation363_spill] sm:$0xff]  ;;  %v12280_v2 = vld [vmem:[#allocation360_spill] sm:$0xff]  ;;  %v12281_v10 = vld [vmem:[#allocation366_spill] sm:$0xff]  ;;  %2671 = vst [vmem:[%s9605_s3 + $0x4e8] sm:$0xf] %v2415_v46 }
 0x367   :  { %v2421_v27 = vmul.f32 %v12278_v9, %v12277_v63  ;;  %v2422_v50 = vmul.f32 %v12280_v2, %v12279_v16  ;;  %v12282_v47 = vld [vmem:[#allocation215_spill] sm:$0xff]  ;;  %2672 = vst [vmem:[%s9605_s3 + $0x4f0] sm:$0xf] %v2416_v57  ;;  %2673 = vst [vmem:[%s9605_s3 + $0x4f8] sm:$0xf] %v2417_v7  ;;  %v12285_v54 = vld [vmem:[#allocation369_spill] sm:$0xff]  ;;  %v3283_v57 = vpop.eup %3282 }
 0x368   :  { %v2423_v13 = vmul.f32 %v12282_v47, %v12281_v10  ;;  %v12283_v3 = vld [vmem:[#allocation367_spill] sm:$0xff]  ;;  %v12286_v63 = vld [vmem:[#allocation98_spill] sm:$0xff]  ;;  %v12288_v2 = vld [vmem:[#allocation221_spill] sm:$0xff]  ;;  %2674 = vst [vmem:[%s9605_s3 + $0x500] sm:$0xf] %v2418_v52  ;;  %v9137_v7 = vadd.f32 1.0, %v3281_v0 }
 0x369   :  { %v12284_v30 = vld [vmem:[#allocation219_spill] sm:$0xff]  ;;  %v2425_v9 = vmul.f32 %v12286_v63, %v12285_v54  ;;  %v12287_v16 = vld [vmem:[#allocation370_spill] sm:$0xff]  ;;  %2675 = vst [vmem:[%s9605_s3 + $0x508] sm:$0xf] %v2419_v55  ;;  %2676 = vst [vmem:[%s9605_s3 + $0x510] sm:$0xf] %v2420_v40  ;;  %v3285_v55 = vpop.eup %3284 }
 0x36a   :  { %v2424_v34 = vmul.f32 %v12284_v30, %v12283_v3  ;;  %v2426_v46 = vmul.f32 %v12288_v2, %v12287_v16  ;;  %v12289_v38 = vld [vmem:[#allocation372_spill] sm:$0xff]  ;;  %v12290_v10 = vld [vmem:[#allocation223_spill] sm:$0xff]  ;;  %v12291_v3 = vld [vmem:[#allocation373_spill] sm:$0xff]  ;;  %2677 = vst [vmem:[%s9605_s3 + $0x518] sm:$0xf] %v2421_v27  ;;  %v9154_v40 = vadd.f32 1.0, %v3283_v57 }
 0x36b   :  { %v2427_v47 = vmul.f32 %v12290_v10, %v12289_v38  ;;  %v2428_v30 = vmul.f32 %v8081_v39, %v12291_v3  ;;  %v12292_v54 = vld [vmem:[#allocation375_spill] sm:$0xff]  ;;  %v12293_v63 = vld [vmem:[#allocation228_spill] sm:$0xff]  ;;  %2678 = vst [vmem:[%s9605_s3 + $0x520] sm:$0xf] %v2422_v50  ;;  %2679 = vst [vmem:[%s9605_s3 + $0x528] sm:$0xf] %v2423_v13  ;;  %v3287_v50 = vpop.eup %3286 }
 0x36c   :  { %v2429_v52 = vmul.f32 %v12293_v63, %v12292_v54  ;;  %12294 = vst [vmem:[#allocation242_spill] sm:$0xff] %v9154_v40  ;;  %v12295_v0 = vld [vmem:[#allocation376_spill] sm:$0xff]  ;;  %v12296_v16 = vld [vmem:[#allocation378_spill] sm:$0xff]  ;;  %v12298_v10 = vld [vmem:[#allocation379_spill] sm:$0xff] }
 0x36d   :  { %v2430_v39 = vmul.f32 %v8098_v26, %v12295_v0  ;;  %v12297_v2 = vld [vmem:[#allocation184_spill] sm:$0xff]  ;;  %v12299_v3 = vld [vmem:[#allocation186_spill] sm:$0xff]  ;;  %2680 = vst [vmem:[%s9605_s3 + $0x530] sm:$0xf] %v2424_v34  ;;  %2681 = vst [vmem:[%s9605_s3 + $0x538] sm:$0xf] %v2425_v9  ;;  %v3289_v9 = vpop.eup %3288 }
 0x36e   :  { %v2431_v38 = vmul.f32 %v12297_v2, %v12296_v16  ;;  %v2432_v27 = vmul.f32 %v12299_v3, %v12298_v10  ;;  %2682 = vst [vmem:[%s9605_s3 + $0x540] sm:$0xf] %v2426_v46  ;;  %v9171_v26 = vadd.f32 1.0, %v3285_v55  ;;  %v12301_v13 = vld [vmem:[#allocation381_spill] sm:$0xff]  ;;  %v12303_v63 = vld [vmem:[#allocation382_spill] sm:$0xff]  ;;  %v12305_v2 = vld [vmem:[#allocation384_spill] sm:$0xff] }
 0x36f   :  { %v12302_v57 = vld [vmem:[#allocation69_spill] sm:$0xff]  ;;  %v12306_v10 = vld [vmem:[#allocation188_spill] sm:$0xff]  ;;  %2683 = vst [vmem:[%s9605_s3 + $0x548] sm:$0xf] %v2427_v47  ;;  %2684 = vst [vmem:[%s9605_s3 + $0x550] sm:$0xf] %v2428_v30  ;;  %v3291_v30 = vpop.eup %3290 }
 0x370   :  { %12300 = vst [vmem:[#allocation66_spill] sm:$0xff] %v9171_v26  ;;  %v2433_v54 = vmul.f32 %v12302_v57, %v12301_v13  ;;  %v12304_v0 = vld [vmem:[#allocation137_spill] sm:$0xff]  ;;  %v2435_v34 = vmul.f32 %v12306_v10, %v12305_v2  ;;  %2685 = vst [vmem:[%s9605_s3 + $0x558] sm:$0xf] %v2429_v52  ;;  %v9188_v46 = vadd.f32 1.0, %v3287_v50  ;;  %v12309_v3 = vld [vmem:[#allocation190_spill] sm:$0xff] }
 0x371   :  { %v2434_v16 = vmul.f32 %v12304_v0, %v12303_v63  ;;  %v12308_v55 = vld [vmem:[#allocation385_spill] sm:$0xff]  ;;  %v12310_v57 = vld [vmem:[#allocation387_spill] sm:$0xff]  ;;  %v12311_v63 = vld [vmem:[#allocation138_spill] sm:$0xff]  ;;  %2686 = vst [vmem:[%s9605_s3 + $0x560] sm:$0xf] %v2430_v39  ;;  %v9205_v52 = vadd.f32 1.0, %v3289_v9 }
 0x372   :  { %12307 = vst [vmem:[#allocation82_spill] sm:$0xff] %v9188_v46  ;;  %v2436_v13 = vmul.f32 %v12309_v3, %v12308_v55  ;;  %v2437_v0 = vmul.f32 %v12311_v63, %v12310_v57  ;;  %v12312_v2 = vld [vmem:[#allocation388_spill] sm:$0xff]  ;;  %v12313_v10 = vld [vmem:[#allocation191_spill] sm:$0xff]  ;;  %2687 = vst [vmem:[%s9605_s3 + $0x568] sm:$0xf] %v2431_v38  ;;  %v9222_v38 = vadd.f32 1.0, %v3291_v30 }
 0x373   :  { %v2438_v47 = vmul.f32 %v12313_v10, %v12312_v2  ;;  %2688 = vst [vmem:[%s9605_s3 + $0x570] sm:$0xf] %v2432_v27  ;;  %12314 = vst [vmem:[#allocation243_spill] sm:$0xff] %v9205_v52  ;;  %v12315_v50 = vld [vmem:[#allocation390_spill] sm:$0xff]  ;;  %v12316_v55 = vld [vmem:[#allocation193_spill] sm:$0xff] }
 0x374   :  { %v2439_v3 = vmul.f32 %v12316_v55, %v12315_v50  ;;  %v12317_v57 = vld [vmem:[#allocation391_spill] sm:$0xff]  ;;  %v12318_v63 = vld [vmem:[#allocation194_spill] sm:$0xff]  ;;  %v12319_v10 = vld [vmem:[#allocation393_spill] sm:$0xff]  ;;  %2689 = vst [vmem:[%s9605_s3 + $0x578] sm:$0xf] %v2433_v54 }
 0x375   :  { %v2440_v2 = vmul.f32 %v12318_v63, %v12317_v57  ;;  %v12320_v46 = vld [vmem:[#allocation195_spill] sm:$0xff]  ;;  %2690 = vst [vmem:[%s9605_s3 + $0x580] sm:$0xf] %v2434_v16  ;;  %2691 = vst [vmem:[%s9605_s3 + $0x588] sm:$0xf] %v2435_v34  ;;  %v12322_v27 = vld [vmem:[#allocation394_spill] sm:$0xff] }
 0x376   :  { %v2441_v39 = vmul.f32 %v12320_v46, %v12319_v10  ;;  %12321 = vst [vmem:[#allocation67_spill] sm:$0xff] %v9222_v38  ;;  %v12323_v9 = vld [vmem:[#allocation72_spill] sm:$0xff]  ;;  %v12325_v57 = vld [vmem:[#allocation57_spill] sm:$0xff]  ;;  %v12327_v10 = vld [vmem:[#allocation78_spill] sm:$0xff] }
 0x377   :  { %v2442_v50 = vmul.f32 %v12323_v9, %v12322_v27  ;;  %v12324_v55 = vld [vmem:[#allocation396_spill] sm:$0xff]  ;;  %v12326_v63 = vld [vmem:[#allocation397_spill] sm:$0xff]  ;;  %2692 = vst [vmem:[%s9605_s3 + $0x590] sm:$0xf] %v2436_v13  ;;  %2693 = vst [vmem:[%s9605_s3 + $0x598] sm:$0xf] %v2437_v0 }
 0x378   :  { %v2443_v46 = vmul.f32 %v12325_v57, %v12324_v55  ;;  %v2444_v52 = vmul.f32 %v12327_v10, %v12326_v63  ;;  %2694 = vst [vmem:[%s9605_s3 + $0x5a0] sm:$0xf] %v2438_v47  ;;  %v12328_v54 = vld [vmem:[#allocation399_spill] sm:$0xff]  ;;  %v12329_v16 = vld [vmem:[#allocation233_spill] sm:$0xff]  ;;  %v12330_v30 = vld [vmem:[#allocation400_spill] sm:$0xff] }
 0x379   :  { %v2445_v34 = vmul.f32 %v12329_v16, %v12328_v54  ;;  %v12331_v27 = vld [vmem:[#allocation58_spill] sm:$0xff]  ;;  %v12334_v10 = vld [vmem:[#allocation403_spill] sm:$0xff]  ;;  %2695 = vst [vmem:[%s9605_s3 + $0x5a8] sm:$0xf] %v2439_v3  ;;  %2696 = vst [vmem:[%s9605_s3 + $0x5b0] sm:$0xf] %v2440_v2 }
 0x37a   :  { %v2446_v9 = vmul.f32 %v12331_v27, %v12330_v30  ;;  %v12332_v55 = vld [vmem:[#allocation402_spill] sm:$0xff]  ;;  %v12335_v38 = vld [vmem:[#allocation59_spill] sm:$0xff]  ;;  %2697 = vst [vmem:[%s9605_s3 + $0x5b8] sm:$0xf] %v2441_v39  ;;  %v12336_v0 = vld [vmem:[#allocation405_spill] sm:$0xff] }
 0x37b   :  { %v12333_v57 = vld [vmem:[#allocation234_spill] sm:$0xff]  ;;  %v2448_v13 = vmul.f32 %v12335_v38, %v12334_v10  ;;  %v12337_v47 = vld [vmem:[#allocation140_spill] sm:$0xff]  ;;  %v12339_v30 = vld [vmem:[#allocation235_spill] sm:$0xff]  ;;  %2698 = vst [vmem:[%s9605_s3 + $0x5c0] sm:$0xf] %v2442_v50 }
 0x37c   :  { %v2447_v63 = vmul.f32 %v12333_v57, %v12332_v55  ;;  %v2449_v54 = vmul.f32 %v12337_v47, %v12336_v0  ;;  %v12338_v16 = vld [vmem:[#allocation406_spill] sm:$0xff]  ;;  %v12340_v55 = vld [vmem:[#allocation408_spill] sm:$0xff]  ;;  %v12342_v10 = vld [vmem:[#allocation409_spill] sm:$0xff]  ;;  %2699 = vst [vmem:[%s9605_s3 + $0x5c8] sm:$0xf] %v2443_v46 }
 0x37d   :  { %v2450_v27 = vmul.f32 %v12339_v30, %v12338_v16  ;;  %v12341_v38 = vld [vmem:[#allocation60_spill] sm:$0xff]  ;;  %2700 = vst [vmem:[%s9605_s3 + $0x5d0] sm:$0xf] %v2444_v52  ;;  %v12344_v2 = vld [vmem:[#allocation411_spill] sm:$0xff]  ;;  %v12345_v39 = vld [vmem:[#allocation61_spill] sm:$0xff] }
 0x37e   :  { %v2451_v57 = vmul.f32 %v12341_v38, %v12340_v55  ;;  %v12343_v26 = vld [vmem:[#allocation236_spill] sm:$0xff]  ;;  %v2453_v0 = vmul.f32 %v12345_v39, %v12344_v2  ;;  %v12348_v55 = vld [vmem:[#allocation413_spill] sm:$0xff]  ;;  %v12351_v40 = vld [vmem:[#allocation62_spill] sm:$0xff]  ;;  %2701 = vst [vmem:[%s9605_s3 + $0x5d8] sm:$0xf] %v2445_v34 }
 0x37f   :  { %v2452_v3 = vmul.f32 %v12343_v26, %v12342_v10  ;;  %v12346_v47 = vld [vmem:[#allocation412_spill] sm:$0xff]  ;;  %v12349_v26 = vld [vmem:[#allocation237_spill] sm:$0xff]  ;;  %v12350_v10 = vld [vmem:[#allocation414_spill] sm:$0xff]  ;;  %2702 = vst [vmem:[%s9605_s3 + $0x5e0] sm:$0xf] %v2446_v9 }
 0x380   :  { %v12347_v16 = vld [vmem:[#allocation196_spill] sm:$0xff]  ;;  %v2455_v38 = vmul.f32 %v12349_v26, %v12348_v55  ;;  %v2456_v50 = vmul.f32 %v12351_v40, %v12350_v10  ;;  %2703 = vst [vmem:[%s9605_s3 + $0x5e8] sm:$0xf] %v2447_v63  ;;  %2704 = vst [vmem:[%s9605_s3 + $0x5f0] sm:$0xf] %v2448_v13  ;;  %v12352_v52 = vld [vmem:[#allocation415_spill] sm:$0xff] }
 0x381   :  { %v2454_v30 = vmul.f32 %v12347_v16, %v12346_v47  ;;  %v12353_v46 = vld [vmem:[#allocation238_spill] sm:$0xff]  ;;  %v12354_v40 = vld [vmem:[#allocation416_spill] sm:$0xff]  ;;  %v12355_v39 = vld [vmem:[#allocation63_spill] sm:$0xff]  ;;  %2705 = vst [vmem:[%s9605_s3 + $0x5f8] sm:$0xf] %v2449_v54 }
 0x382   :  { %v2457_v2 = vmul.f32 %v12353_v46, %v12352_v52  ;;  %v2458_v47 = vmul.f32 %v12355_v39, %v12354_v40  ;;  %v12356_v16 = vld [vmem:[#allocation417_spill] sm:$0xff]  ;;  %v12358_v26 = vld [vmem:[#allocation418_spill] sm:$0xff]  ;;  %v12359_v10 = vld [vmem:[#allocation239_spill] sm:$0xff]  ;;  %2706 = vst [vmem:[%s9605_s3 + $0x600] sm:$0xf] %v2450_v27 }
 0x383   :  { %v12357_v34 = vld [vmem:[#allocation81_spill] sm:$0xff]  ;;  %v2460_v9 = vmul.f32 %v12359_v10, %v12358_v26  ;;  %2707 = vst [vmem:[%s9605_s3 + $0x608] sm:$0xf] %v2451_v57  ;;  %2708 = vst [vmem:[%s9605_s3 + $0x610] sm:$0xf] %v2452_v3  ;;  %v12360_v63 = vld [vmem:[#allocation419_spill] sm:$0xff] }
 0x384   :  { %v2459_v55 = vmul.f32 %v12357_v34, %v12356_v16  ;;  %v12361_v13 = vld [vmem:[#allocation155_spill] sm:$0xff]  ;;  %v12362_v46 = vld [vmem:[#allocation420_spill] sm:$0xff]  ;;  %v12363_v39 = vld [vmem:[#allocation421_spill] sm:$0xff]  ;;  %2709 = vst [vmem:[%s9605_s3 + $0x618] sm:$0xf] %v2453_v0 }
 0x385   :  { %v2461_v52 = vmul.f32 %v12361_v13, %v12360_v63  ;;  %v2462_v40 = vmul.f32 %v8514_v49, %v12362_v46  ;;  %v2463_v54 = vmul.f32 %v8527_v19, %v12363_v39  ;;  %v12364_v16 = vld [vmem:[#allocation422_spill] sm:$0xff]  ;;  %2710 = vst [vmem:[%s9605_s3 + $0x620] sm:$0xf] %v2454_v30  ;;  %2711 = vst [vmem:[%s9605_s3 + $0x628] sm:$0xf] %v2455_v38  ;;  %v12365_v49 = vld [vmem:[#allocation423_spill] sm:$0xff] }
 0x386   :  { %v2464_v27 = vmul.f32 %v8540_v8, %v12364_v16  ;;  %2712 = vst [vmem:[%s9605_s3 + $0x630] sm:$0xf] %v2456_v50  ;;  %v12366_v19 = vld [vmem:[#allocation240_spill] sm:$0xff]  ;;  %v12369_v26 = vld [vmem:[#allocation425_spill] sm:$0xff]  ;;  %v12371_v63 = vld [vmem:[#allocation426_spill] sm:$0xff] }
 0x387   :  { %v2465_v57 = vmul.f32 %v12366_v19, %v12365_v49  ;;  %v12367_v8 = vld [vmem:[#allocation424_spill] sm:$0xff]  ;;  %v12370_v0 = vld [vmem:[#allocation141_spill] sm:$0xff]  ;;  %2713 = vst [vmem:[%s9605_s3 + $0x638] sm:$0xf] %v2457_v2  ;;  %2714 = vst [vmem:[%s9605_s3 + $0x640] sm:$0xf] %v2458_v47 }
 0x388   :  { %v12368_v3 = vld [vmem:[#allocation64_spill] sm:$0xff]  ;;  %v2467_v10 = vmul.f32 %v12370_v0, %v12369_v26  ;;  %v12372_v13 = vld [vmem:[#allocation241_spill] sm:$0xff]  ;;  %2715 = vst [vmem:[%s9605_s3 + $0x648] sm:$0xf] %v2459_v55  ;;  %2716 = vst [vmem:[%s9605_s3 + $0x650] sm:$0xf] %v2460_v9 }
 0x389   :  { %v2466_v34 = vmul.f32 %v12368_v3, %v12367_v8  ;;  %v2468_v30 = vmul.f32 %v12372_v13, %v12371_v63  ;;  %v12373_v38 = vld [vmem:[#allocation427_spill] sm:$0xff]  ;;  %v12374_v50 = vld [vmem:[#allocation65_spill] sm:$0xff]  ;;  %v12375_v39 = vld [vmem:[#allocation428_spill] sm:$0xff]  ;;  %2717 = vst [vmem:[%s9605_s3 + $0x658] sm:$0xf] %v2461_v52 }
 0x38a   :  { %v2469_v46 = vmul.f32 %v12374_v50, %v12373_v38  ;;  %v2470_v16 = vmul.f32 %v8618_v32, %v12375_v39  ;;  %v12376_v49 = vld [vmem:[#allocation429_spill] sm:$0xff]  ;;  %v12377_v19 = vld [vmem:[#allocation430_spill] sm:$0xff]  ;;  %2718 = vst [vmem:[%s9605_s3 + $0x660] sm:$0xf] %v2462_v40  ;;  %2719 = vst [vmem:[%s9605_s3 + $0x668] sm:$0xf] %v2463_v54 }
 0x38b   :  { %v2471_v2 = vmul.f32 %v8631_v53, %v12376_v49  ;;  %v2472_v47 = vmul.f32 %v8644_v17, %v12377_v19  ;;  %2720 = vst [vmem:[%s9605_s3 + $0x670] sm:$0xf] %v2464_v27  ;;  %v12378_v32 = vld [vmem:[#allocation431_spill] sm:$0xff]  ;;  %v12379_v17 = vld [vmem:[#allocation432_spill] sm:$0xff]  ;;  %v12380_v9 = vld [vmem:[#allocation433_spill] sm:$0xff] }
 0x38c   :  { %v2473_v53 = vmul.f32 %v8657_v36, %v12378_v32  ;;  %v2474_v55 = vmul.f32 %v8670_v43, %v12379_v17  ;;  %v2475_v52 = vmul.f32 %v8683_v11, %v12380_v9  ;;  %v12381_v8 = vld [vmem:[#allocation434_spill] sm:$0xff]  ;;  %2721 = vst [vmem:[%s9605_s3 + $0x678] sm:$0xf] %v2465_v57  ;;  %2722 = vst [vmem:[%s9605_s3 + $0x680] sm:$0xf] %v2466_v34  ;;  %v12382_v36 = vld [vmem:[#allocation435_spill] sm:$0xff] }
 0x38d   :  { %v2476_v40 = vmul.f32 %v8696_v60, %v12381_v8  ;;  %2723 = vst [vmem:[%s9605_s3 + $0x688] sm:$0xf] %v2467_v10  ;;  %2724 = vst [vmem:[%s9605_s3 + $0x690] sm:$0xf] %v2468_v30  ;;  %v2477_v43 = vmul.f32 %v8709_v22, %v12382_v36  ;;  %v12383_v11 = vld [vmem:[#allocation436_spill] sm:$0xff]  ;;  %v12384_v54 = vld [vmem:[#allocation437_spill] sm:$0xff] }
 0x38e   :  { %v2478_v60 = vmul.f32 %v8722_v4, %v12383_v11  ;;  %v2479_v27 = vmul.f32 %v8735_v45, %v12384_v54  ;;  %v12385_v57 = vld [vmem:[#allocation438_spill] sm:$0xff]  ;;  %2725 = vst [vmem:[%s9605_s3 + $0x698] sm:$0xf] %v2469_v46  ;;  %2726 = vst [vmem:[%s9605_s3 + $0x6a0] sm:$0xf] %v2470_v16  ;;  %v12386_v22 = vld [vmem:[#allocation439_spill] sm:$0xff] }
 0x38f   :  { %v2480_v3 = vmul.f32 %v8748_v24, %v12385_v57  ;;  %2727 = vst [vmem:[%s9605_s3 + $0x6a8] sm:$0xf] %v2471_v2  ;;  %2728 = vst [vmem:[%s9605_s3 + $0x6b0] sm:$0xf] %v2472_v47  ;;  %v2481_v4 = vmul.f32 %v8761_v37, %v12386_v22  ;;  %v12387_v45 = vld [vmem:[#allocation440_spill] sm:$0xff]  ;;  %v12388_v34 = vld [vmem:[#allocation441_spill] sm:$0xff] }
 0x390   :  { %v2482_v24 = vmul.f32 %v8774_v44, %v12387_v45  ;;  %v2483_v26 = vmul.f32 %v8787_v59, %v12388_v34  ;;  %v12389_v0 = vld [vmem:[#allocation442_spill] sm:$0xff]  ;;  %2729 = vst [vmem:[%s9605_s3 + $0x6b8] sm:$0xf] %v2473_v53  ;;  %2730 = vst [vmem:[%s9605_s3 + $0x6c0] sm:$0xf] %v2474_v55  ;;  %v12390_v37 = vld [vmem:[#allocation443_spill] sm:$0xff] }
 0x391   :  { %v2484_v10 = vmul.f32 %v8800_v35, %v12389_v0  ;;  %2731 = vst [vmem:[%s9605_s3 + $0x6c8] sm:$0xf] %v2475_v52  ;;  %2732 = vst [vmem:[%s9605_s3 + $0x6d0] sm:$0xf] %v2476_v40  ;;  %v2485_v44 = vmul.f32 %v8813_v48, %v12390_v37  ;;  %v12391_v59 = vld [vmem:[#allocation444_spill] sm:$0xff]  ;;  %v12392_v63 = vld [vmem:[#allocation445_spill] sm:$0xff] }
 0x392   :  { %v2486_v35 = vmul.f32 %v8826_v12, %v12391_v59  ;;  %v2487_v13 = vmul.f32 %v8839_v41, %v12392_v63  ;;  %v12393_v30 = vld [vmem:[#allocation446_spill] sm:$0xff]  ;;  %2733 = vst [vmem:[%s9605_s3 + $0x6d8] sm:$0xf] %v2477_v43  ;;  %2734 = vst [vmem:[%s9605_s3 + $0x6e0] sm:$0xf] %v2478_v60  ;;  %v12394_v48 = vld [vmem:[#allocation447_spill] sm:$0xff] }
 0x393   :  { %v2488_v38 = vmul.f32 %v8852_v21, %v12393_v30  ;;  %2735 = vst [vmem:[%s9605_s3 + $0x6e8] sm:$0xf] %v2479_v27  ;;  %2736 = vst [vmem:[%s9605_s3 + $0x6f0] sm:$0xf] %v2480_v3  ;;  %v2489_v12 = vmul.f32 %v8865_v15, %v12394_v48  ;;  %v12395_v41 = vld [vmem:[#allocation448_spill] sm:$0xff]  ;;  %v12396_v50 = vld [vmem:[#allocation449_spill] sm:$0xff] }
 0x394   :  { %v2490_v21 = vmul.f32 %v8878_v51, %v12395_v41  ;;  %v2491_v46 = vmul.f32 %v8891_v31, %v12396_v50  ;;  %v12397_v39 = vld [vmem:[#allocation450_spill] sm:$0xff]  ;;  %2737 = vst [vmem:[%s9605_s3 + $0x6f8] sm:$0xf] %v2481_v4  ;;  %2738 = vst [vmem:[%s9605_s3 + $0x700] sm:$0xf] %v2482_v24  ;;  %v12398_v15 = vld [vmem:[#allocation451_spill] sm:$0xff] }
 0x395   :  { %v2492_v16 = vmul.f32 %v8904_v14, %v12397_v39  ;;  %2739 = vst [vmem:[%s9605_s3 + $0x708] sm:$0xf] %v2483_v26  ;;  %2740 = vst [vmem:[%s9605_s3 + $0x710] sm:$0xf] %v2484_v10  ;;  %v2493_v51 = vmul.f32 %v8917_v23, %v12398_v15  ;;  %v12399_v31 = vld [vmem:[#allocation452_spill] sm:$0xff]  ;;  %v12400_v49 = vld [vmem:[#allocation453_spill] sm:$0xff] }
 0x396   :  { %v2494_v14 = vmul.f32 %v8930_v33, %v12399_v31  ;;  %v2495_v2 = vmul.f32 %v8943_v6, %v12400_v49  ;;  %v12401_v19 = vld [vmem:[#allocation454_spill] sm:$0xff]  ;;  %2741 = vst [vmem:[%s9605_s3 + $0x718] sm:$0xf] %v2485_v44  ;;  %2742 = vst [vmem:[%s9605_s3 + $0x720] sm:$0xf] %v2486_v35  ;;  %v12402_v23 = vld [vmem:[#allocation455_spill] sm:$0xff] }
 0x397   :  { %v2496_v47 = vmul.f32 %v8956_v18, %v12401_v19  ;;  %2743 = vst [vmem:[%s9605_s3 + $0x728] sm:$0xf] %v2487_v13  ;;  %2744 = vst [vmem:[%s9605_s3 + $0x730] sm:$0xf] %v2488_v38  ;;  %v2497_v33 = vmul.f32 %v8969_v62, %v12402_v23  ;;  %v12403_v6 = vld [vmem:[#allocation456_spill] sm:$0xff]  ;;  %v12404_v32 = vld [vmem:[#allocation457_spill] sm:$0xff] }
 0x398   :  { %v2498_v18 = vmul.f32 %v8982_v25, %v12403_v6  ;;  %v2499_v53 = vmul.f32 %v8995_v56, %v12404_v32  ;;  %v12405_v17 = vld [vmem:[#allocation458_spill] sm:$0xff]  ;;  %2745 = vst [vmem:[%s9605_s3 + $0x738] sm:$0xf] %v2489_v12  ;;  %2746 = vst [vmem:[%s9605_s3 + $0x740] sm:$0xf] %v2490_v21  ;;  %v12406_v62 = vld [vmem:[#allocation459_spill] sm:$0xff] }
 0x399   :  { %v2500_v55 = vmul.f32 %v9007_v20, %v12405_v17  ;;  %2747 = vst [vmem:[%s9605_s3 + $0x748] sm:$0xf] %v2491_v46  ;;  %2748 = vst [vmem:[%s9605_s3 + $0x750] sm:$0xf] %v2492_v16  ;;  %v2501_v25 = vmul.f32 %v9021_v1, %v12406_v62  ;;  %v12407_v56 = vld [vmem:[#allocation460_spill] sm:$0xff]  ;;  %v12408_v9 = vld [vmem:[#allocation461_spill] sm:$0xff] }
 0x39a   :  { %v2502_v20 = vmul.f32 %v9035_v61, %v12407_v56  ;;  %v2503_v52 = vmul.f32 %v9052_v42, %v12408_v9  ;;  %v12409_v8 = vld [vmem:[#allocation462_spill] sm:$0xff]  ;;  %2749 = vst [vmem:[%s9605_s3 + $0x758] sm:$0xf] %v2493_v51  ;;  %2750 = vst [vmem:[%s9605_s3 + $0x760] sm:$0xf] %v2494_v14  ;;  %v12410_v1 = vld [vmem:[#allocation463_spill] sm:$0xff] }
 0x39b   :  { %v2504_v40 = vmul.f32 %v9069_v28, %v12409_v8  ;;  %2751 = vst [vmem:[%s9605_s3 + $0x768] sm:$0xf] %v2495_v2  ;;  %2752 = vst [vmem:[%s9605_s3 + $0x770] sm:$0xf] %v2496_v47  ;;  %v2505_v61 = vmul.f32 %v9086_v29, %v12410_v1  ;;  %v12411_v42 = vld [vmem:[#allocation464_spill] sm:$0xff]  ;;  %v12412_v36 = vld [vmem:[#allocation465_spill] sm:$0xff] }
 0x39c   :  { %v2506_v28 = vmul.f32 %v9103_v5, %v12411_v42  ;;  %v2507_v43 = vmul.f32 %v9120_v58, %v12412_v36  ;;  %v12413_v11 = vld [vmem:[#allocation466_spill] sm:$0xff]  ;;  %2753 = vst [vmem:[%s9605_s3 + $0x778] sm:$0xf] %v2497_v33  ;;  %2754 = vst [vmem:[%s9605_s3 + $0x780] sm:$0xf] %v2498_v18  ;;  %v12414_v29 = vld [vmem:[#allocation467_spill] sm:$0xff] }
 0x39d   :  { %v2508_v60 = vmul.f32 %v9137_v7, %v12413_v11  ;;  %2755 = vst [vmem:[%s9605_s3 + $0x788] sm:$0xf] %v2499_v53  ;;  %2756 = vst [vmem:[%s9605_s3 + $0x790] sm:$0xf] %v2500_v55  ;;  %v12415_v5 = vld [vmem:[#allocation242_spill] sm:$0xff]  ;;  %v12416_v7 = vld [vmem:[#allocation468_spill] sm:$0xff] }
 0x39e   :  { %v2509_v58 = vmul.f32 %v12415_v5, %v12414_v29  ;;  %v12417_v54 = vld [vmem:[#allocation66_spill] sm:$0xff]  ;;  %v12418_v57 = vld [vmem:[#allocation469_spill] sm:$0xff]  ;;  %v12421_v45 = vld [vmem:[#allocation243_spill] sm:$0xff]  ;;  %2757 = vst [vmem:[%s9605_s3 + $0x798] sm:$0xf] %v2501_v25 }
 0x39f   :  { %v2510_v27 = vmul.f32 %v12417_v54, %v12416_v7  ;;  %v12419_v3 = vld [vmem:[#allocation82_spill] sm:$0xff]  ;;  %2758 = vst [vmem:[%s9605_s3 + $0x7a0] sm:$0xf] %v2502_v20  ;;  %2759 = vst [vmem:[%s9605_s3 + $0x7a8] sm:$0xf] %v2503_v52  ;;  %v12422_v34 = vld [vmem:[#allocation471_spill] sm:$0xff] }
 0x3a0   :  { %v2511_v22 = vmul.f32 %v12419_v3, %v12418_v57  ;;  %v12420_v4 = vld [vmem:[#allocation470_spill] sm:$0xff]  ;;  %2760 = vst [vmem:[%s9605_s3 + $0x7b0] sm:$0xf] %v2504_v40  ;;  %v12423_v26 = vld [vmem:[#allocation67_spill] sm:$0xff]  ;;  %2761 = vst [vmem:[%s9605_s3 + $0x7b8] sm:$0xf] %v2505_v61 }
 0x3a1   :  { %v2512_v24 = vmul.f32 %v12421_v45, %v12420_v4  ;;  %v2513_v0 = vmul.f32 %v12423_v26, %v12422_v34  ;;  %2762 = vst [vmem:[%s9605_s3 + $0x7c0] sm:$0xf] %v2506_v28  ;;  %2763 = vst [vmem:[%s9605_s3 + $0x7c8] sm:$0xf] %v2507_v43 }
 0x3a2   :  { %2764 = vst [vmem:[%s9605_s3 + $0x7d0] sm:$0xf] %v2508_v60  ;;  %2765 = vst [vmem:[%s9605_s3 + $0x7d8] sm:$0xf] %v2509_v58 }
 0x3a3   :  { %2766 = vst [vmem:[%s9605_s3 + $0x7e0] sm:$0xf] %v2510_v27  ;;  %2767 = vst [vmem:[%s9605_s3 + $0x7e8] sm:$0xf] %v2511_v22 }
 0x3a4   :  { %2768 = vst [vmem:[%s9605_s3 + $0x7f0] sm:$0xf] %v2512_v24  ;;  %2769 = vst [vmem:[%s9605_s3 + $0x7f8] sm:$0xf] %v2513_v0 }
 0x3a5   :  { %2774 = vsyncpa [#allocation4], 1 }

</bundles_post_ra>
